<compile_context>
chip_gen: v6e
topology: v6e:2x2x1
jax: 0.10.0
libtpu: 0.0.40
codegen_flags: <defaults>
</compile_context>

<pallas_src>
import functools

import jax
import jax.numpy as jnp
from jax.experimental import pallas as pl
from jax.experimental.pallas import tpu as pltpu

BN_EPS = 1e-5
CONV1_CIN_PAD = 32   # pad conv1's 3 input channels -> 32 (aligned contraction dim)
CPAD = 128           # pad conv1/conv2 output channels -> 128 (lane-dense activations)


# ----------------------------- Pallas kernels ------------------------------

def _conv_stage_kernel(x_ref, w_ref, scale_ref, shift_ref, o_ref, *,
                       H, W, Cin, Cout, pad_out):
    """Fused 3x3 conv (pad=1) + BN + ReLU + 2x2 max-pool for ONE image.

    x_ref:     (1, H+2, W+2, Cin)          bf16, spatially pre-padded NHWC
    w_ref:     (9, Cin, Cout)              bf16, tap-major (dy*3+dx)
    scale_ref: (1, Cout)                   f32 folded BN scale
    shift_ref: (1, Cout)                   f32 folded BN shift (includes conv bias)
    o_ref:     (1, Ho(+2), Wo(+2), Cout)   bf16 pooled output (zero halo if pad_out)
    """
    x = x_ref[0]                                           # (H+2, W+2, Cin) bf16
    acc = jnp.zeros((H * W, Cout), jnp.float32)
    # 9 shifted windows -> 9 small MXU dots accumulated in f32 (fused im2col).
    for k in range(9):
        dy, dx = k // 3, k % 3
        win = x[dy:dy + H, dx:dx + W, :].reshape(H * W, Cin)
        acc = acc + jnp.dot(win, w_ref[k], preferred_element_type=jnp.float32)

    # Eval-mode BatchNorm (folded) + ReLU epilogue in f32.
    y = jnp.maximum(acc * scale_ref[...] + shift_ref[...], 0.0)   # (H*W, Cout)

    # 2x2 / stride-2 max pool, done in registers on the conv output tile.
    y5 = y.reshape(H // 2, 2, W // 2, 2, Cout)
    pooled = jnp.maximum(jnp.maximum(y5[:, 0, :, 0, :], y5[:, 0, :, 1, :]),
                         jnp.maximum(y5[:, 1, :, 0, :], y5[:, 1, :, 1, :]))
    pooled = pooled.astype(o_ref.dtype)                    # (H//2, W//2, Cout) bf16

    if pad_out:
        # Emit the next conv stage's spatially padded input directly.
        o_ref[...] = jnp.zeros_like(o_ref)
        o_ref[0, 1:H // 2 + 1, 1:W // 2 + 1, :] = pooled
    else:
        o_ref[0] = pooled


def _mlp_kernel(x_ref, w1_ref, b1_ref, w2_ref, b2_ref, o_ref):
    """Fused fc1 + ReLU + (dropout: eval identity) + fc2."""
    h = jnp.dot(x_ref[...], w1_ref[...], preferred_element_type=jnp.float32)
    h = jnp.maximum(h + b1_ref[...], 0.0)
    # TODO(synk): nn.Dropout(0.5) implemented as eval-mode identity (no masking).
    y = jnp.dot(h.astype(jnp.bfloat16), w2_ref[...],
                preferred_element_type=jnp.float32)
    o_ref[...] = y + b2_ref[...]


# ----------------------------- kernel wrappers ------------------------------

def conv_stage(x_pad, w, scale, shift, *, pad_out):
    """x_pad: (N, H+2, W+2, Cin) bf16 -> pooled (N, Ho(+2), Wo(+2), Cout) bf16."""
    N, Hp, Wp, Cin = x_pad.shape
    H, W = Hp - 2, Wp - 2
    Cout = w.shape[-1]
    Ho, Wo = H // 2, W // 2
    Hop, Wop = (Ho + 2, Wo + 2) if pad_out else (Ho, Wo)
    kernel = functools.partial(_conv_stage_kernel, H=H, W=W, Cin=Cin,
                               Cout=Cout, pad_out=pad_out)
    return pl.pallas_call(
        kernel,
        out_shape=jax.ShapeDtypeStruct((N, Hop, Wop, Cout), jnp.bfloat16),
        grid=(N,),
        in_specs=[
            pl.BlockSpec((1, Hp, Wp, Cin), lambda n: (n, 0, 0, 0)),   # per-image tile
            pl.BlockSpec((9, Cin, Cout), lambda n: (0, 0, 0)),        # resident weights
            pl.BlockSpec((1, Cout), lambda n: (0, 0)),                # resident BN scale
            pl.BlockSpec((1, Cout), lambda n: (0, 0)),                # resident BN shift
        ],
        out_specs=pl.BlockSpec((1, Hop, Wop, Cout), lambda n: (n, 0, 0, 0)),
        compiler_params=pltpu.CompilerParams(
            dimension_semantics=("parallel",)),
    )(x_pad, w, scale, shift)


def mlp_head(flat, w1, b1, w2, b2):
    N, D = flat.shape
    Dh = w1.shape[1]
    Nc = w2.shape[1]
    return pl.pallas_call(
        _mlp_kernel,
        out_shape=jax.ShapeDtypeStruct((N, Nc), jnp.float32),
        in_specs=[
            pl.BlockSpec((N, D), lambda: (0, 0)),
            pl.BlockSpec((D, Dh), lambda: (0, 0)),
            pl.BlockSpec((1, Dh), lambda: (0, 0)),
            pl.BlockSpec((Dh, Nc), lambda: (0, 0)),
            pl.BlockSpec((1, Nc), lambda: (0, 0)),
        ],
        out_specs=pl.BlockSpec((N, Nc), lambda: (0, 0)),
    )(flat, w1, b1, w2, b2)


# ------------------------------- parameters ---------------------------------

def init_params(key, num_class, H, W):
    """Random parameters in PyTorch-equivalent layout (eval-mode BN stats)."""
    def normal(k, shape, scale=0.05):
        return (scale * jax.random.normal(k, shape)).astype(jnp.float32)

    cins, couts = (3, 32, 64), (32, 64, 128)
    keys = iter(jax.random.split(key, 6 * 3 + 4))
    params = {}
    for i, (cin, cout) in enumerate(zip(cins, couts), start=1):
        params[f"c{i}"] = dict(
            w=normal(next(keys), (3, 3, cin, cout)),        # HWIO
            b=normal(next(keys), (cout,)),
            gamma=1.0 + normal(next(keys), (cout,)),
            beta=normal(next(keys), (cout,)),
            mean=normal(next(keys), (cout,)),
            var=jnp.abs(1.0 + normal(next(keys), (cout,))),
        )
    d_flat = 128 * (H // 8) * (W // 8)
    params["fc1_w"] = normal(next(keys), (d_flat, 256))     # rows in NCHW-flatten order
    params["fc1_b"] = normal(next(keys), (256,))
    params["fc2_w"] = normal(next(keys), (256, num_class))
    params["fc2_b"] = normal(next(keys), (num_class,))
    return params


def prepare_params(params, H, W):
    """One-time repack: BN fold, channel padding, bf16 cast, fc1 row permute."""
    cin_pads = (CONV1_CIN_PAD, CPAD, CPAD)
    cout_pads = (CPAD, CPAD, 128)
    prepped = {}
    for i in (1, 2, 3):
        p = params[f"c{i}"]
        cin, cout = p["w"].shape[2], p["w"].shape[3]
        cin_p, cout_p = cin_pads[i - 1], cout_pads[i - 1]
        scale = p["gamma"] / jnp.sqrt(p["var"] + BN_EPS)           # eval-mode BN fold
        shift = (p["b"] - p["mean"]) * scale + p["beta"]
        w = jnp.zeros((3, 3, cin_p, cout_p), jnp.float32)
        w = w.at[:, :, :cin, :cout].set(p["w"])
        prepped[f"c{i}"] = dict(
            w=w.reshape(9, cin_p, cout_p).astype(jnp.bfloat16),
            scale=jnp.zeros((1, cout_p), jnp.float32).at[0, :cout].set(scale),
            shift=jnp.zeros((1, cout_p), jnp.float32).at[0, :cout].set(shift),
        )
    # PyTorch flattens NCHW (c, h, w); the kernels flatten NHWC (h, w, c).
    # Permute fc1 rows once so the forward pass needs no activation transpose.
    Ho, Wo, C = H // 8, W // 8, 128
    hh = jnp.arange(Ho)[:, None, None]
    ww = jnp.arange(Wo)[None, :, None]
    cc = jnp.arange(C)[None, None, :]
    perm = ((cc * Ho + hh) * Wo + ww).reshape(-1)                  # (Ho*Wo*C,)
    prepped["fc1_w"] = params["fc1_w"][perm, :].astype(jnp.bfloat16)
    prepped["fc1_b"] = params["fc1_b"].reshape(1, -1)
    prepped["fc2_w"] = params["fc2_w"].astype(jnp.bfloat16)
    prepped["fc2_b"] = params["fc2_b"].reshape(1, -1)
    return prepped


# --------------------------------- forward ----------------------------------

def net_forward(prepped, x_nchw):
    # NCHW (PyTorch) -> NHWC bf16, pad channels 3->CONV1_CIN_PAD and spatial
    # halo by 1.  This is the only per-forward XLA-side data marshaling.
    x = jnp.transpose(x_nchw, (0, 2, 3, 1)).astype(jnp.bfloat16)
    N, H, W, C = x.shape
    x = jnp.pad(x, ((0, 0), (1, 1), (1, 1), (0, CONV1_CIN_PAD - C)))

    x = conv_stage(x, **prepped["c1"], pad_out=True)    # (N, H/2+2, W/2+2, 128)
    x = conv_stage(x, **prepped["c2"], pad_out=True)    # (N, H/4+2, W/4+2, 128)
    x = conv_stage(x, **prepped["c3"], pad_out=False)   # (N, H/8,   W/8,   128)

    flat = x.reshape(N, -1)                             # NHWC flatten (fc1_w pre-permuted)
    return mlp_head(flat, prepped["fc1_w"], prepped["fc1_b"],
                    prepped["fc2_w"], prepped["fc2_b"])


if __name__ == "__main__":
    num_class, H, W = 10, 16, 16
    key = jax.random.PRNGKey(0)
    k_param, k_x = jax.random.split(key)
    params = init_params(k_param, num_class, H, W)
    prepped = prepare_params(params, H, W)
    x = jax.random.normal(k_x, (2, 3, H, W), dtype=jnp.float32)   # NCHW like PyTorch

    logits = jax.jit(net_forward)(prepped, x)
    jax.block_until_ready(logits)
    assert logits.shape == (2, num_class), logits.shape
    print("KERNEL_OK")
</pallas_src>

<mosaic_0001>
module attributes {stable_mosaic.version = 11 : i64} {
  func.func @_conv_stage_kernel(%arg0: i32, %arg1: memref<1x18x18x32xbf16, #tpu.memory_space<vmem>>, %arg2: memref<9x32x128xbf16, #tpu.memory_space<vmem>>, %arg3: memref<1x128xf32, #tpu.memory_space<vmem>>, %arg4: memref<1x128xf32, #tpu.memory_space<vmem>>, %arg5: memref<1x10x10x128xbf16, #tpu.memory_space<vmem>>) attributes {dimension_semantics = [#tpu.dimension_semantics<parallel>], iteration_bounds = array<i64: 2>, scalar_prefetch = 0 : i64, scratch_operands = 0 : i64, tpu.core_type = #tpu.core_type<tc>, window_params = [{transform_indices = @transform_0, window_bounds = array<i64: 1, 18, 18, 32>}, {pipeline_mode = #tpu.pipeline_mode<synchronous>, transform_indices = @transform_1, window_bounds = array<i64: 9, 32, 128>}, {pipeline_mode = #tpu.pipeline_mode<synchronous>, transform_indices = @transform_2, window_bounds = array<i64: 1, 128>}, {pipeline_mode = #tpu.pipeline_mode<synchronous>, transform_indices = @transform_3, window_bounds = array<i64: 1, 128>}, {transform_indices = @transform_4, window_bounds = array<i64: 1, 10, 10, 128>}]} {
    %c0 = arith.constant 0 : index
    %c0_0 = arith.constant 0 : index
    %c0_1 = arith.constant 0 : index
    %c0_2 = arith.constant 0 : index
    %0 = vector.load %arg1[%c0, %c0_0, %c0_1, %c0_2] : memref<1x18x18x32xbf16, #tpu.memory_space<vmem>>, vector<1x18x18x32xbf16>
    %1 = vector.shape_cast %0 : vector<1x18x18x32xbf16> to vector<18x18x32xbf16>
    %cst = arith.constant 0.000000e+00 : f32
    %2 = vector.broadcast %cst : f32 to vector<256x128xf32>
    %3 = vector.extract_strided_slice %1 {offsets = [0, 0, 0], sizes = [16, 16, 32], strides = [1, 1, 1]} : vector<18x18x32xbf16> to vector<16x16x32xbf16>
    %4 = vector.shape_cast %3 : vector<16x16x32xbf16> to vector<256x32xbf16>
    %c0_3 = arith.constant 0 : index
    %c0_4 = arith.constant 0 : index
    %c0_5 = arith.constant 0 : index
    %5 = vector.load %arg2[%c0_3, %c0_4, %c0_5] : memref<9x32x128xbf16, #tpu.memory_space<vmem>>, vector<1x32x128xbf16>
    %6 = vector.shape_cast %5 : vector<1x32x128xbf16> to vector<32x128xbf16>
    %cst_6 = arith.constant dense<0.000000e+00> : vector<256x128xf32>
    %7 = tpu.matmul %4, %6, %cst_6 {dimension_numbers = #tpu.dot_dimension_numbers<[1], [0], [0], [1], [0, 0, 1, 1], [], []>} : vector<256x32xbf16>, vector<32x128xbf16>, vector<256x128xf32> -> vector<256x128xf32>
    %8 = arith.addf %2, %7 : vector<256x128xf32>
    %9 = vector.extract_strided_slice %1 {offsets = [0, 1, 0], sizes = [16, 16, 32], strides = [1, 1, 1]} : vector<18x18x32xbf16> to vector<16x16x32xbf16>
    %10 = vector.shape_cast %9 : vector<16x16x32xbf16> to vector<256x32xbf16>
    %c1 = arith.constant 1 : index
    %c0_7 = arith.constant 0 : index
    %c0_8 = arith.constant 0 : index
    %11 = vector.load %arg2[%c1, %c0_7, %c0_8] : memref<9x32x128xbf16, #tpu.memory_space<vmem>>, vector<1x32x128xbf16>
    %12 = vector.shape_cast %11 : vector<1x32x128xbf16> to vector<32x128xbf16>
    %cst_9 = arith.constant dense<0.000000e+00> : vector<256x128xf32>
    %13 = tpu.matmul %10, %12, %cst_9 {dimension_numbers = #tpu.dot_dimension_numbers<[1], [0], [0], [1], [0, 0, 1, 1], [], []>} : vector<256x32xbf16>, vector<32x128xbf16>, vector<256x128xf32> -> vector<256x128xf32>
    %14 = arith.addf %8, %13 : vector<256x128xf32>
    %15 = vector.extract_strided_slice %1 {offsets = [0, 2, 0], sizes = [16, 16, 32], strides = [1, 1, 1]} : vector<18x18x32xbf16> to vector<16x16x32xbf16>
    %16 = vector.shape_cast %15 : vector<16x16x32xbf16> to vector<256x32xbf16>
    %c2 = arith.constant 2 : index
    %c0_10 = arith.constant 0 : index
    %c0_11 = arith.constant 0 : index
    %17 = vector.load %arg2[%c2, %c0_10, %c0_11] : memref<9x32x128xbf16, #tpu.memory_space<vmem>>, vector<1x32x128xbf16>
    %18 = vector.shape_cast %17 : vector<1x32x128xbf16> to vector<32x128xbf16>
    %cst_12 = arith.constant dense<0.000000e+00> : vector<256x128xf32>
    %19 = tpu.matmul %16, %18, %cst_12 {dimension_numbers = #tpu.dot_dimension_numbers<[1], [0], [0], [1], [0, 0, 1, 1], [], []>} : vector<256x32xbf16>, vector<32x128xbf16>, vector<256x128xf32> -> vector<256x128xf32>
    %20 = arith.addf %14, %19 : vector<256x128xf32>
    %21 = vector.extract_strided_slice %1 {offsets = [1, 0, 0], sizes = [16, 16, 32], strides = [1, 1, 1]} : vector<18x18x32xbf16> to vector<16x16x32xbf16>
    %22 = vector.shape_cast %21 : vector<16x16x32xbf16> to vector<256x32xbf16>
    %c3 = arith.constant 3 : index
    %c0_13 = arith.constant 0 : index
    %c0_14 = arith.constant 0 : index
    %23 = vector.load %arg2[%c3, %c0_13, %c0_14] : memref<9x32x128xbf16, #tpu.memory_space<vmem>>, vector<1x32x128xbf16>
    %24 = vector.shape_cast %23 : vector<1x32x128xbf16> to vector<32x128xbf16>
    %cst_15 = arith.constant dense<0.000000e+00> : vector<256x128xf32>
    %25 = tpu.matmul %22, %24, %cst_15 {dimension_numbers = #tpu.dot_dimension_numbers<[1], [0], [0], [1], [0, 0, 1, 1], [], []>} : vector<256x32xbf16>, vector<32x128xbf16>, vector<256x128xf32> -> vector<256x128xf32>
    %26 = arith.addf %20, %25 : vector<256x128xf32>
    %27 = vector.extract_strided_slice %1 {offsets = [1, 1, 0], sizes = [16, 16, 32], strides = [1, 1, 1]} : vector<18x18x32xbf16> to vector<16x16x32xbf16>
    %28 = vector.shape_cast %27 : vector<16x16x32xbf16> to vector<256x32xbf16>
    %c4 = arith.constant 4 : index
    %c0_16 = arith.constant 0 : index
    %c0_17 = arith.constant 0 : index
    %29 = vector.load %arg2[%c4, %c0_16, %c0_17] : memref<9x32x128xbf16, #tpu.memory_space<vmem>>, vector<1x32x128xbf16>
    %30 = vector.shape_cast %29 : vector<1x32x128xbf16> to vector<32x128xbf16>
    %cst_18 = arith.constant dense<0.000000e+00> : vector<256x128xf32>
    %31 = tpu.matmul %28, %30, %cst_18 {dimension_numbers = #tpu.dot_dimension_numbers<[1], [0], [0], [1], [0, 0, 1, 1], [], []>} : vector<256x32xbf16>, vector<32x128xbf16>, vector<256x128xf32> -> vector<256x128xf32>
    %32 = arith.addf %26, %31 : vector<256x128xf32>
    %33 = vector.extract_strided_slice %1 {offsets = [1, 2, 0], sizes = [16, 16, 32], strides = [1, 1, 1]} : vector<18x18x32xbf16> to vector<16x16x32xbf16>
    %34 = vector.shape_cast %33 : vector<16x16x32xbf16> to vector<256x32xbf16>
    %c5 = arith.constant 5 : index
    %c0_19 = arith.constant 0 : index
    %c0_20 = arith.constant 0 : index
    %35 = vector.load %arg2[%c5, %c0_19, %c0_20] : memref<9x32x128xbf16, #tpu.memory_space<vmem>>, vector<1x32x128xbf16>
    %36 = vector.shape_cast %35 : vector<1x32x128xbf16> to vector<32x128xbf16>
    %cst_21 = arith.constant dense<0.000000e+00> : vector<256x128xf32>
    %37 = tpu.matmul %34, %36, %cst_21 {dimension_numbers = #tpu.dot_dimension_numbers<[1], [0], [0], [1], [0, 0, 1, 1], [], []>} : vector<256x32xbf16>, vector<32x128xbf16>, vector<256x128xf32> -> vector<256x128xf32>
    %38 = arith.addf %32, %37 : vector<256x128xf32>
    %39 = vector.extract_strided_slice %1 {offsets = [2, 0, 0], sizes = [16, 16, 32], strides = [1, 1, 1]} : vector<18x18x32xbf16> to vector<16x16x32xbf16>
    %40 = vector.shape_cast %39 : vector<16x16x32xbf16> to vector<256x32xbf16>
    %c6 = arith.constant 6 : index
    %c0_22 = arith.constant 0 : index
    %c0_23 = arith.constant 0 : index
    %41 = vector.load %arg2[%c6, %c0_22, %c0_23] : memref<9x32x128xbf16, #tpu.memory_space<vmem>>, vector<1x32x128xbf16>
    %42 = vector.shape_cast %41 : vector<1x32x128xbf16> to vector<32x128xbf16>
    %cst_24 = arith.constant dense<0.000000e+00> : vector<256x128xf32>
    %43 = tpu.matmul %40, %42, %cst_24 {dimension_numbers = #tpu.dot_dimension_numbers<[1], [0], [0], [1], [0, 0, 1, 1], [], []>} : vector<256x32xbf16>, vector<32x128xbf16>, vector<256x128xf32> -> vector<256x128xf32>
    %44 = arith.addf %38, %43 : vector<256x128xf32>
    %45 = vector.extract_strided_slice %1 {offsets = [2, 1, 0], sizes = [16, 16, 32], strides = [1, 1, 1]} : vector<18x18x32xbf16> to vector<16x16x32xbf16>
    %46 = vector.shape_cast %45 : vector<16x16x32xbf16> to vector<256x32xbf16>
    %c7 = arith.constant 7 : index
    %c0_25 = arith.constant 0 : index
    %c0_26 = arith.constant 0 : index
    %47 = vector.load %arg2[%c7, %c0_25, %c0_26] : memref<9x32x128xbf16, #tpu.memory_space<vmem>>, vector<1x32x128xbf16>
    %48 = vector.shape_cast %47 : vector<1x32x128xbf16> to vector<32x128xbf16>
    %cst_27 = arith.constant dense<0.000000e+00> : vector<256x128xf32>
    %49 = tpu.matmul %46, %48, %cst_27 {dimension_numbers = #tpu.dot_dimension_numbers<[1], [0], [0], [1], [0, 0, 1, 1], [], []>} : vector<256x32xbf16>, vector<32x128xbf16>, vector<256x128xf32> -> vector<256x128xf32>
    %50 = arith.addf %44, %49 : vector<256x128xf32>
    %51 = vector.extract_strided_slice %1 {offsets = [2, 2, 0], sizes = [16, 16, 32], strides = [1, 1, 1]} : vector<18x18x32xbf16> to vector<16x16x32xbf16>
    %52 = vector.shape_cast %51 : vector<16x16x32xbf16> to vector<256x32xbf16>
    %c8 = arith.constant 8 : index
    %c0_28 = arith.constant 0 : index
    %c0_29 = arith.constant 0 : index
    %53 = vector.load %arg2[%c8, %c0_28, %c0_29] : memref<9x32x128xbf16, #tpu.memory_space<vmem>>, vector<1x32x128xbf16>
    %54 = vector.shape_cast %53 : vector<1x32x128xbf16> to vector<32x128xbf16>
    %cst_30 = arith.constant dense<0.000000e+00> : vector<256x128xf32>
    %55 = tpu.matmul %52, %54, %cst_30 {dimension_numbers = #tpu.dot_dimension_numbers<[1], [0], [0], [1], [0, 0, 1, 1], [], []>} : vector<256x32xbf16>, vector<32x128xbf16>, vector<256x128xf32> -> vector<256x128xf32>
    %56 = arith.addf %50, %55 : vector<256x128xf32>
    %c0_31 = arith.constant 0 : index
    %c0_32 = arith.constant 0 : index
    %57 = vector.load %arg3[%c0_31, %c0_32] : memref<1x128xf32, #tpu.memory_space<vmem>>, vector<1x128xf32>
    %58 = vector.broadcast %57 : vector<1x128xf32> to vector<256x128xf32>
    %59 = arith.mulf %56, %58 : vector<256x128xf32>
    %c0_33 = arith.constant 0 : index
    %c0_34 = arith.constant 0 : index
    %60 = vector.load %arg4[%c0_33, %c0_34] : memref<1x128xf32, #tpu.memory_space<vmem>>, vector<1x128xf32>
    %61 = vector.broadcast %60 : vector<1x128xf32> to vector<256x128xf32>
    %62 = arith.addf %59, %61 : vector<256x128xf32>
    %cst_35 = arith.constant 0.000000e+00 : f32
    %63 = vector.broadcast %cst_35 : f32 to vector<256x128xf32>
    %64 = arith.maximumf %62, %63 : vector<256x128xf32>
    %65 = vector.shape_cast %64 : vector<256x128xf32> to vector<8x2x8x2x128xf32>
    %66 = vector.extract_strided_slice %65 {offsets = [0, 0, 0, 0, 0], sizes = [8, 1, 8, 1, 128], strides = [1, 1, 1, 1, 1]} : vector<8x2x8x2x128xf32> to vector<8x1x8x1x128xf32>
    %67 = vector.shape_cast %66 : vector<8x1x8x1x128xf32> to vector<8x8x128xf32>
    %68 = vector.extract_strided_slice %65 {offsets = [0, 0, 0, 1, 0], sizes = [8, 1, 8, 1, 128], strides = [1, 1, 1, 1, 1]} : vector<8x2x8x2x128xf32> to vector<8x1x8x1x128xf32>
    %69 = vector.shape_cast %68 : vector<8x1x8x1x128xf32> to vector<8x8x128xf32>
    %70 = arith.maximumf %67, %69 : vector<8x8x128xf32>
    %71 = vector.extract_strided_slice %65 {offsets = [0, 1, 0, 0, 0], sizes = [8, 1, 8, 1, 128], strides = [1, 1, 1, 1, 1]} : vector<8x2x8x2x128xf32> to vector<8x1x8x1x128xf32>
    %72 = vector.shape_cast %71 : vector<8x1x8x1x128xf32> to vector<8x8x128xf32>
    %73 = vector.extract_strided_slice %65 {offsets = [0, 1, 0, 1, 0], sizes = [8, 1, 8, 1, 128], strides = [1, 1, 1, 1, 1]} : vector<8x2x8x2x128xf32> to vector<8x1x8x1x128xf32>
    %74 = vector.shape_cast %73 : vector<8x1x8x1x128xf32> to vector<8x8x128xf32>
    %75 = arith.maximumf %72, %74 : vector<8x8x128xf32>
    %76 = arith.maximumf %70, %75 : vector<8x8x128xf32>
    %77 = arith.truncf %76 : vector<8x8x128xf32> to vector<8x8x128xbf16>
    %cst_36 = arith.constant 0.000000e+00 : bf16
    %78 = vector.broadcast %cst_36 : bf16 to vector<1x10x10x128xbf16>
    %c0_37 = arith.constant 0 : index
    %c0_38 = arith.constant 0 : index
    %c0_39 = arith.constant 0 : index
    %c0_40 = arith.constant 0 : index
    %79 = vector.load %arg5[%c0_37, %c0_38, %c0_39, %c0_40] : memref<1x10x10x128xbf16, #tpu.memory_space<vmem>>, vector<1x10x10x128xbf16>
    tpu.vector_store %arg5[%c0_37, %c0_38, %c0_39, %c0_40], %78 {strides = array<i32>} : memref<1x10x10x128xbf16, #tpu.memory_space<vmem>>, vector<1x10x10x128xbf16>,
    %c0_41 = arith.constant 0 : index
    %c1_42 = arith.constant 1 : index
    %c1_43 = arith.constant 1 : index
    %c0_44 = arith.constant 0 : index
    %80 = vector.load %arg5[%c0_41, %c1_42, %c1_43, %c0_44] : memref<1x10x10x128xbf16, #tpu.memory_space<vmem>>, vector<1x8x8x128xbf16>
    %81 = vector.shape_cast %80 : vector<1x8x8x128xbf16> to vector<8x8x128xbf16>
    %82 = vector.shape_cast %77 : vector<8x8x128xbf16> to vector<1x8x8x128xbf16>
    tpu.vector_store %arg5[%c0_41, %c1_42, %c1_43, %c0_44], %82 {strides = array<i32>} : memref<1x10x10x128xbf16, #tpu.memory_space<vmem>>, vector<1x8x8x128xbf16>,
    return
  }
  func.func @transform_0(%arg0: i32) -> (i32, i32, i32, i32) {
    %c0_i32 = arith.constant 0 : i32
    %c0_i32_0 = arith.constant 0 : i32
    %c0_i32_1 = arith.constant 0 : i32
    %c0_i32_2 = arith.constant 0 : i32
    return %arg0, %c0_i32, %c0_i32_0, %c0_i32_1 : i32, i32, i32, i32
  }
  func.func @transform_1(%arg0: i32) -> (i32, i32, i32) {
    %c0_i32 = arith.constant 0 : i32
    %c0_i32_0 = arith.constant 0 : i32
    %c0_i32_1 = arith.constant 0 : i32
    %c0_i32_2 = arith.constant 0 : i32
    return %c0_i32, %c0_i32_0, %c0_i32_1 : i32, i32, i32
  }
  func.func @transform_2(%arg0: i32) -> (i32, i32) {
    %c0_i32 = arith.constant 0 : i32
    %c0_i32_0 = arith.constant 0 : i32
    %c0_i32_1 = arith.constant 0 : i32
    return %c0_i32, %c0_i32_0 : i32, i32
  }
  func.func @transform_3(%arg0: i32) -> (i32, i32) {
    %c0_i32 = arith.constant 0 : i32
    %c0_i32_0 = arith.constant 0 : i32
    %c0_i32_1 = arith.constant 0 : i32
    return %c0_i32, %c0_i32_0 : i32, i32
  }
  func.func @transform_4(%arg0: i32) -> (i32, i32, i32, i32) {
    %c0_i32 = arith.constant 0 : i32
    %c0_i32_0 = arith.constant 0 : i32
    %c0_i32_1 = arith.constant 0 : i32
    %c0_i32_2 = arith.constant 0 : i32
    return %arg0, %c0_i32, %c0_i32_0, %c0_i32_1 : i32, i32, i32, i32
  }
}

module attributes {stable_mosaic.version = 11 : i64} {
  func.func @_conv_stage_kernel(%arg0: i32, %arg1: memref<1x10x10x128xbf16, #tpu.memory_space<vmem>>, %arg2: memref<9x128x128xbf16, #tpu.memory_space<vmem>>, %arg3: memref<1x128xf32, #tpu.memory_space<vmem>>, %arg4: memref<1x128xf32, #tpu.memory_space<vmem>>, %arg5: memref<1x6x6x128xbf16, #tpu.memory_space<vmem>>) attributes {dimension_semantics = [#tpu.dimension_semantics<parallel>], iteration_bounds = array<i64: 2>, scalar_prefetch = 0 : i64, scratch_operands = 0 : i64, tpu.core_type = #tpu.core_type<tc>, window_params = [{transform_indices = @transform_0, window_bounds = array<i64: 1, 10, 10, 128>}, {pipeline_mode = #tpu.pipeline_mode<synchronous>, transform_indices = @transform_1, window_bounds = array<i64: 9, 128, 128>}, {pipeline_mode = #tpu.pipeline_mode<synchronous>, transform_indices = @transform_2, window_bounds = array<i64: 1, 128>}, {pipeline_mode = #tpu.pipeline_mode<synchronous>, transform_indices = @transform_3, window_bounds = array<i64: 1, 128>}, {transform_indices = @transform_4, window_bounds = array<i64: 1, 6, 6, 128>}]} {
    %c0 = arith.constant 0 : index
    %c0_0 = arith.constant 0 : index
    %c0_1 = arith.constant 0 : index
    %c0_2 = arith.constant 0 : index
    %0 = vector.load %arg1[%c0, %c0_0, %c0_1, %c0_2] : memref<1x10x10x128xbf16, #tpu.memory_space<vmem>>, vector<1x10x10x128xbf16>
    %1 = vector.shape_cast %0 : vector<1x10x10x128xbf16> to vector<10x10x128xbf16>
    %cst = arith.constant 0.000000e+00 : f32
    %2 = vector.broadcast %cst : f32 to vector<64x128xf32>
    %3 = vector.extract_strided_slice %1 {offsets = [0, 0, 0], sizes = [8, 8, 128], strides = [1, 1, 1]} : vector<10x10x128xbf16> to vector<8x8x128xbf16>
    %4 = vector.shape_cast %3 : vector<8x8x128xbf16> to vector<64x128xbf16>
    %c0_3 = arith.constant 0 : index
    %c0_4 = arith.constant 0 : index
    %c0_5 = arith.constant 0 : index
    %5 = vector.load %arg2[%c0_3, %c0_4, %c0_5] : memref<9x128x128xbf16, #tpu.memory_space<vmem>>, vector<1x128x128xbf16>
    %6 = vector.shape_cast %5 : vector<1x128x128xbf16> to vector<128x128xbf16>
    %cst_6 = arith.constant dense<0.000000e+00> : vector<64x128xf32>
    %7 = tpu.matmul %4, %6, %cst_6 {dimension_numbers = #tpu.dot_dimension_numbers<[1], [0], [0], [1], [0, 0, 1, 1], [], []>} : vector<64x128xbf16>, vector<128x128xbf16>, vector<64x128xf32> -> vector<64x128xf32>
    %8 = arith.addf %2, %7 : vector<64x128xf32>
    %9 = vector.extract_strided_slice %1 {offsets = [0, 1, 0], sizes = [8, 8, 128], strides = [1, 1, 1]} : vector<10x10x128xbf16> to vector<8x8x128xbf16>
    %10 = vector.shape_cast %9 : vector<8x8x128xbf16> to vector<64x128xbf16>
    %c1 = arith.constant 1 : index
    %c0_7 = arith.constant 0 : index
    %c0_8 = arith.constant 0 : index
    %11 = vector.load %arg2[%c1, %c0_7, %c0_8] : memref<9x128x128xbf16, #tpu.memory_space<vmem>>, vector<1x128x128xbf16>
    %12 = vector.shape_cast %11 : vector<1x128x128xbf16> to vector<128x128xbf16>
    %cst_9 = arith.constant dense<0.000000e+00> : vector<64x128xf32>
    %13 = tpu.matmul %10, %12, %cst_9 {dimension_numbers = #tpu.dot_dimension_numbers<[1], [0], [0], [1], [0, 0, 1, 1], [], []>} : vector<64x128xbf16>, vector<128x128xbf16>, vector<64x128xf32> -> vector<64x128xf32>
    %14 = arith.addf %8, %13 : vector<64x128xf32>
    %15 = vector.extract_strided_slice %1 {offsets = [0, 2, 0], sizes = [8, 8, 128], strides = [1, 1, 1]} : vector<10x10x128xbf16> to vector<8x8x128xbf16>
    %16 = vector.shape_cast %15 : vector<8x8x128xbf16> to vector<64x128xbf16>
    %c2 = arith.constant 2 : index
    %c0_10 = arith.constant 0 : index
    %c0_11 = arith.constant 0 : index
    %17 = vector.load %arg2[%c2, %c0_10, %c0_11] : memref<9x128x128xbf16, #tpu.memory_space<vmem>>, vector<1x128x128xbf16>
    %18 = vector.shape_cast %17 : vector<1x128x128xbf16> to vector<128x128xbf16>
    %cst_12 = arith.constant dense<0.000000e+00> : vector<64x128xf32>
    %19 = tpu.matmul %16, %18, %cst_12 {dimension_numbers = #tpu.dot_dimension_numbers<[1], [0], [0], [1], [0, 0, 1, 1], [], []>} : vector<64x128xbf16>, vector<128x128xbf16>, vector<64x128xf32> -> vector<64x128xf32>
    %20 = arith.addf %14, %19 : vector<64x128xf32>
    %21 = vector.extract_strided_slice %1 {offsets = [1, 0, 0], sizes = [8, 8, 128], strides = [1, 1, 1]} : vector<10x10x128xbf16> to vector<8x8x128xbf16>
    %22 = vector.shape_cast %21 : vector<8x8x128xbf16> to vector<64x128xbf16>
    %c3 = arith.constant 3 : index
    %c0_13 = arith.constant 0 : index
    %c0_14 = arith.constant 0 : index
    %23 = vector.load %arg2[%c3, %c0_13, %c0_14] : memref<9x128x128xbf16, #tpu.memory_space<vmem>>, vector<1x128x128xbf16>
    %24 = vector.shape_cast %23 : vector<1x128x128xbf16> to vector<128x128xbf16>
    %cst_15 = arith.constant dense<0.000000e+00> : vector<64x128xf32>
    %25 = tpu.matmul %22, %24, %cst_15 {dimension_numbers = #tpu.dot_dimension_numbers<[1], [0], [0], [1], [0, 0, 1, 1], [], []>} : vector<64x128xbf16>, vector<128x128xbf16>, vector<64x128xf32> -> vector<64x128xf32>
    %26 = arith.addf %20, %25 : vector<64x128xf32>
    %27 = vector.extract_strided_slice %1 {offsets = [1, 1, 0], sizes = [8, 8, 128], strides = [1, 1, 1]} : vector<10x10x128xbf16> to vector<8x8x128xbf16>
    %28 = vector.shape_cast %27 : vector<8x8x128xbf16> to vector<64x128xbf16>
    %c4 = arith.constant 4 : index
    %c0_16 = arith.constant 0 : index
    %c0_17 = arith.constant 0 : index
    %29 = vector.load %arg2[%c4, %c0_16, %c0_17] : memref<9x128x128xbf16, #tpu.memory_space<vmem>>, vector<1x128x128xbf16>
    %30 = vector.shape_cast %29 : vector<1x128x128xbf16> to vector<128x128xbf16>
    %cst_18 = arith.constant dense<0.000000e+00> : vector<64x128xf32>
    %31 = tpu.matmul %28, %30, %cst_18 {dimension_numbers = #tpu.dot_dimension_numbers<[1], [0], [0], [1], [0, 0, 1, 1], [], []>} : vector<64x128xbf16>, vector<128x128xbf16>, vector<64x128xf32> -> vector<64x128xf32>
    %32 = arith.addf %26, %31 : vector<64x128xf32>
    %33 = vector.extract_strided_slice %1 {offsets = [1, 2, 0], sizes = [8, 8, 128], strides = [1, 1, 1]} : vector<10x10x128xbf16> to vector<8x8x128xbf16>
    %34 = vector.shape_cast %33 : vector<8x8x128xbf16> to vector<64x128xbf16>
    %c5 = arith.constant 5 : index
    %c0_19 = arith.constant 0 : index
    %c0_20 = arith.constant 0 : index
    %35 = vector.load %arg2[%c5, %c0_19, %c0_20] : memref<9x128x128xbf16, #tpu.memory_space<vmem>>, vector<1x128x128xbf16>
    %36 = vector.shape_cast %35 : vector<1x128x128xbf16> to vector<128x128xbf16>
    %cst_21 = arith.constant dense<0.000000e+00> : vector<64x128xf32>
    %37 = tpu.matmul %34, %36, %cst_21 {dimension_numbers = #tpu.dot_dimension_numbers<[1], [0], [0], [1], [0, 0, 1, 1], [], []>} : vector<64x128xbf16>, vector<128x128xbf16>, vector<64x128xf32> -> vector<64x128xf32>
    %38 = arith.addf %32, %37 : vector<64x128xf32>
    %39 = vector.extract_strided_slice %1 {offsets = [2, 0, 0], sizes = [8, 8, 128], strides = [1, 1, 1]} : vector<10x10x128xbf16> to vector<8x8x128xbf16>
    %40 = vector.shape_cast %39 : vector<8x8x128xbf16> to vector<64x128xbf16>
    %c6 = arith.constant 6 : index
    %c0_22 = arith.constant 0 : index
    %c0_23 = arith.constant 0 : index
    %41 = vector.load %arg2[%c6, %c0_22, %c0_23] : memref<9x128x128xbf16, #tpu.memory_space<vmem>>, vector<1x128x128xbf16>
    %42 = vector.shape_cast %41 : vector<1x128x128xbf16> to vector<128x128xbf16>
    %cst_24 = arith.constant dense<0.000000e+00> : vector<64x128xf32>
    %43 = tpu.matmul %40, %42, %cst_24 {dimension_numbers = #tpu.dot_dimension_numbers<[1], [0], [0], [1], [0, 0, 1, 1], [], []>} : vector<64x128xbf16>, vector<128x128xbf16>, vector<64x128xf32> -> vector<64x128xf32>
    %44 = arith.addf %38, %43 : vector<64x128xf32>
    %45 = vector.extract_strided_slice %1 {offsets = [2, 1, 0], sizes = [8, 8, 128], strides = [1, 1, 1]} : vector<10x10x128xbf16> to vector<8x8x128xbf16>
    %46 = vector.shape_cast %45 : vector<8x8x128xbf16> to vector<64x128xbf16>
    %c7 = arith.constant 7 : index
    %c0_25 = arith.constant 0 : index
    %c0_26 = arith.constant 0 : index
    %47 = vector.load %arg2[%c7, %c0_25, %c0_26] : memref<9x128x128xbf16, #tpu.memory_space<vmem>>, vector<1x128x128xbf16>
    %48 = vector.shape_cast %47 : vector<1x128x128xbf16> to vector<128x128xbf16>
    %cst_27 = arith.constant dense<0.000000e+00> : vector<64x128xf32>
    %49 = tpu.matmul %46, %48, %cst_27 {dimension_numbers = #tpu.dot_dimension_numbers<[1], [0], [0], [1], [0, 0, 1, 1], [], []>} : vector<64x128xbf16>, vector<128x128xbf16>, vector<64x128xf32> -> vector<64x128xf32>
    %50 = arith.addf %44, %49 : vector<64x128xf32>
    %51 = vector.extract_strided_slice %1 {offsets = [2, 2, 0], sizes = [8, 8, 128], strides = [1, 1, 1]} : vector<10x10x128xbf16> to vector<8x8x128xbf16>
    %52 = vector.shape_cast %51 : vector<8x8x128xbf16> to vector<64x128xbf16>
    %c8 = arith.constant 8 : index
    %c0_28 = arith.constant 0 : index
    %c0_29 = arith.constant 0 : index
    %53 = vector.load %arg2[%c8, %c0_28, %c0_29] : memref<9x128x128xbf16, #tpu.memory_space<vmem>>, vector<1x128x128xbf16>
    %54 = vector.shape_cast %53 : vector<1x128x128xbf16> to vector<128x128xbf16>
    %cst_30 = arith.constant dense<0.000000e+00> : vector<64x128xf32>
    %55 = tpu.matmul %52, %54, %cst_30 {dimension_numbers = #tpu.dot_dimension_numbers<[1], [0], [0], [1], [0, 0, 1, 1], [], []>} : vector<64x128xbf16>, vector<128x128xbf16>, vector<64x128xf32> -> vector<64x128xf32>
    %56 = arith.addf %50, %55 : vector<64x128xf32>
    %c0_31 = arith.constant 0 : index
    %c0_32 = arith.constant 0 : index
    %57 = vector.load %arg3[%c0_31, %c0_32] : memref<1x128xf32, #tpu.memory_space<vmem>>, vector<1x128xf32>
    %58 = vector.broadcast %57 : vector<1x128xf32> to vector<64x128xf32>
    %59 = arith.mulf %56, %58 : vector<64x128xf32>
    %c0_33 = arith.constant 0 : index
    %c0_34 = arith.constant 0 : index
    %60 = vector.load %arg4[%c0_33, %c0_34] : memref<1x128xf32, #tpu.memory_space<vmem>>, vector<1x128xf32>
    %61 = vector.broadcast %60 : vector<1x128xf32> to vector<64x128xf32>
    %62 = arith.addf %59, %61 : vector<64x128xf32>
    %cst_35 = arith.constant 0.000000e+00 : f32
    %63 = vector.broadcast %cst_35 : f32 to vector<64x128xf32>
    %64 = arith.maximumf %62, %63 : vector<64x128xf32>
    %65 = vector.shape_cast %64 : vector<64x128xf32> to vector<4x2x4x2x128xf32>
    %66 = vector.extract_strided_slice %65 {offsets = [0, 0, 0, 0, 0], sizes = [4, 1, 4, 1, 128], strides = [1, 1, 1, 1, 1]} : vector<4x2x4x2x128xf32> to vector<4x1x4x1x128xf32>
    %67 = vector.shape_cast %66 : vector<4x1x4x1x128xf32> to vector<4x4x128xf32>
    %68 = vector.extract_strided_slice %65 {offsets = [0, 0, 0, 1, 0], sizes = [4, 1, 4, 1, 128], strides = [1, 1, 1, 1, 1]} : vector<4x2x4x2x128xf32> to vector<4x1x4x1x128xf32>
    %69 = vector.shape_cast %68 : vector<4x1x4x1x128xf32> to vector<4x4x128xf32>
    %70 = arith.maximumf %67, %69 : vector<4x4x128xf32>
    %71 = vector.extract_strided_slice %65 {offsets = [0, 1, 0, 0, 0], sizes = [4, 1, 4, 1, 128], strides = [1, 1, 1, 1, 1]} : vector<4x2x4x2x128xf32> to vector<4x1x4x1x128xf32>
    %72 = vector.shape_cast %71 : vector<4x1x4x1x128xf32> to vector<4x4x128xf32>
    %73 = vector.extract_strided_slice %65 {offsets = [0, 1, 0, 1, 0], sizes = [4, 1, 4, 1, 128], strides = [1, 1, 1, 1, 1]} : vector<4x2x4x2x128xf32> to vector<4x1x4x1x128xf32>
    %74 = vector.shape_cast %73 : vector<4x1x4x1x128xf32> to vector<4x4x128xf32>
    %75 = arith.maximumf %72, %74 : vector<4x4x128xf32>
    %76 = arith.maximumf %70, %75 : vector<4x4x128xf32>
    %77 = arith.truncf %76 : vector<4x4x128xf32> to vector<4x4x128xbf16>
    %cst_36 = arith.constant 0.000000e+00 : bf16
    %78 = vector.broadcast %cst_36 : bf16 to vector<1x6x6x128xbf16>
    %c0_37 = arith.constant 0 : index
    %c0_38 = arith.constant 0 : index
    %c0_39 = arith.constant 0 : index
    %c0_40 = arith.constant 0 : index
    %79 = vector.load %arg5[%c0_37, %c0_38, %c0_39, %c0_40] : memref<1x6x6x128xbf16, #tpu.memory_space<vmem>>, vector<1x6x6x128xbf16>
    tpu.vector_store %arg5[%c0_37, %c0_38, %c0_39, %c0_40], %78 {strides = array<i32>} : memref<1x6x6x128xbf16, #tpu.memory_space<vmem>>, vector<1x6x6x128xbf16>,
    %c0_41 = arith.constant 0 : index
    %c1_42 = arith.constant 1 : index
    %c1_43 = arith.constant 1 : index
    %c0_44 = arith.constant 0 : index
    %80 = vector.load %arg5[%c0_41, %c1_42, %c1_43, %c0_44] : memref<1x6x6x128xbf16, #tpu.memory_space<vmem>>, vector<1x4x4x128xbf16>
    %81 = vector.shape_cast %80 : vector<1x4x4x128xbf16> to vector<4x4x128xbf16>
    %82 = vector.shape_cast %77 : vector<4x4x128xbf16> to vector<1x4x4x128xbf16>
    tpu.vector_store %arg5[%c0_41, %c1_42, %c1_43, %c0_44], %82 {strides = array<i32>} : memref<1x6x6x128xbf16, #tpu.memory_space<vmem>>, vector<1x4x4x128xbf16>,
    return
  }
  func.func @transform_0(%arg0: i32) -> (i32, i32, i32, i32) {
    %c0_i32 = arith.constant 0 : i32
    %c0_i32_0 = arith.constant 0 : i32
    %c0_i32_1 = arith.constant 0 : i32
    %c0_i32_2 = arith.constant 0 : i32
    return %arg0, %c0_i32, %c0_i32_0, %c0_i32_1 : i32, i32, i32, i32
  }
  func.func @transform_1(%arg0: i32) -> (i32, i32, i32) {
    %c0_i32 = arith.constant 0 : i32
    %c0_i32_0 = arith.constant 0 : i32
    %c0_i32_1 = arith.constant 0 : i32
    %c0_i32_2 = arith.constant 0 : i32
    return %c0_i32, %c0_i32_0, %c0_i32_1 : i32, i32, i32
  }
  func.func @transform_2(%arg0: i32) -> (i32, i32) {
    %c0_i32 = arith.constant 0 : i32
    %c0_i32_0 = arith.constant 0 : i32
    %c0_i32_1 = arith.constant 0 : i32
    return %c0_i32, %c0_i32_0 : i32, i32
  }
  func.func @transform_3(%arg0: i32) -> (i32, i32) {
    %c0_i32 = arith.constant 0 : i32
    %c0_i32_0 = arith.constant 0 : i32
    %c0_i32_1 = arith.constant 0 : i32
    return %c0_i32, %c0_i32_0 : i32, i32
  }
  func.func @transform_4(%arg0: i32) -> (i32, i32, i32, i32) {
    %c0_i32 = arith.constant 0 : i32
    %c0_i32_0 = arith.constant 0 : i32
    %c0_i32_1 = arith.constant 0 : i32
    %c0_i32_2 = arith.constant 0 : i32
    return %arg0, %c0_i32, %c0_i32_0, %c0_i32_1 : i32, i32, i32, i32
  }
}

module attributes {stable_mosaic.version = 11 : i64} {
  func.func @_conv_stage_kernel(%arg0: i32, %arg1: memref<1x6x6x128xbf16, #tpu.memory_space<vmem>>, %arg2: memref<9x128x128xbf16, #tpu.memory_space<vmem>>, %arg3: memref<1x128xf32, #tpu.memory_space<vmem>>, %arg4: memref<1x128xf32, #tpu.memory_space<vmem>>, %arg5: memref<1x2x2x128xbf16, #tpu.memory_space<vmem>>) attributes {dimension_semantics = [#tpu.dimension_semantics<parallel>], iteration_bounds = array<i64: 2>, scalar_prefetch = 0 : i64, scratch_operands = 0 : i64, tpu.core_type = #tpu.core_type<tc>, window_params = [{transform_indices = @transform_0, window_bounds = array<i64: 1, 6, 6, 128>}, {pipeline_mode = #tpu.pipeline_mode<synchronous>, transform_indices = @transform_1, window_bounds = array<i64: 9, 128, 128>}, {pipeline_mode = #tpu.pipeline_mode<synchronous>, transform_indices = @transform_2, window_bounds = array<i64: 1, 128>}, {pipeline_mode = #tpu.pipeline_mode<synchronous>, transform_indices = @transform_3, window_bounds = array<i64: 1, 128>}, {transform_indices = @transform_4, window_bounds = array<i64: 1, 2, 2, 128>}]} {
    %c0 = arith.constant 0 : index
    %c0_0 = arith.constant 0 : index
    %c0_1 = arith.constant 0 : index
    %c0_2 = arith.constant 0 : index
    %0 = vector.load %arg1[%c0, %c0_0, %c0_1, %c0_2] : memref<1x6x6x128xbf16, #tpu.memory_space<vmem>>, vector<1x6x6x128xbf16>
    %1 = vector.shape_cast %0 : vector<1x6x6x128xbf16> to vector<6x6x128xbf16>
    %cst = arith.constant 0.000000e+00 : f32
    %2 = vector.broadcast %cst : f32 to vector<16x128xf32>
    %3 = vector.extract_strided_slice %1 {offsets = [0, 0, 0], sizes = [4, 4, 128], strides = [1, 1, 1]} : vector<6x6x128xbf16> to vector<4x4x128xbf16>
    %4 = vector.shape_cast %3 : vector<4x4x128xbf16> to vector<16x128xbf16>
    %c0_3 = arith.constant 0 : index
    %c0_4 = arith.constant 0 : index
    %c0_5 = arith.constant 0 : index
    %5 = vector.load %arg2[%c0_3, %c0_4, %c0_5] : memref<9x128x128xbf16, #tpu.memory_space<vmem>>, vector<1x128x128xbf16>
    %6 = vector.shape_cast %5 : vector<1x128x128xbf16> to vector<128x128xbf16>
    %cst_6 = arith.constant dense<0.000000e+00> : vector<16x128xf32>
    %7 = tpu.matmul %4, %6, %cst_6 {dimension_numbers = #tpu.dot_dimension_numbers<[1], [0], [0], [1], [0, 0, 1, 1], [], []>} : vector<16x128xbf16>, vector<128x128xbf16>, vector<16x128xf32> -> vector<16x128xf32>
    %8 = arith.addf %2, %7 : vector<16x128xf32>
    %9 = vector.extract_strided_slice %1 {offsets = [0, 1, 0], sizes = [4, 4, 128], strides = [1, 1, 1]} : vector<6x6x128xbf16> to vector<4x4x128xbf16>
    %10 = vector.shape_cast %9 : vector<4x4x128xbf16> to vector<16x128xbf16>
    %c1 = arith.constant 1 : index
    %c0_7 = arith.constant 0 : index
    %c0_8 = arith.constant 0 : index
    %11 = vector.load %arg2[%c1, %c0_7, %c0_8] : memref<9x128x128xbf16, #tpu.memory_space<vmem>>, vector<1x128x128xbf16>
    %12 = vector.shape_cast %11 : vector<1x128x128xbf16> to vector<128x128xbf16>
    %cst_9 = arith.constant dense<0.000000e+00> : vector<16x128xf32>
    %13 = tpu.matmul %10, %12, %cst_9 {dimension_numbers = #tpu.dot_dimension_numbers<[1], [0], [0], [1], [0, 0, 1, 1], [], []>} : vector<16x128xbf16>, vector<128x128xbf16>, vector<16x128xf32> -> vector<16x128xf32>
    %14 = arith.addf %8, %13 : vector<16x128xf32>
    %15 = vector.extract_strided_slice %1 {offsets = [0, 2, 0], sizes = [4, 4, 128], strides = [1, 1, 1]} : vector<6x6x128xbf16> to vector<4x4x128xbf16>
    %16 = vector.shape_cast %15 : vector<4x4x128xbf16> to vector<16x128xbf16>
    %c2 = arith.constant 2 : index
    %c0_10 = arith.constant 0 : index
    %c0_11 = arith.constant 0 : index
    %17 = vector.load %arg2[%c2, %c0_10, %c0_11] : memref<9x128x128xbf16, #tpu.memory_space<vmem>>, vector<1x128x128xbf16>
    %18 = vector.shape_cast %17 : vector<1x128x128xbf16> to vector<128x128xbf16>
    %cst_12 = arith.constant dense<0.000000e+00> : vector<16x128xf32>
    %19 = tpu.matmul %16, %18, %cst_12 {dimension_numbers = #tpu.dot_dimension_numbers<[1], [0], [0], [1], [0, 0, 1, 1], [], []>} : vector<16x128xbf16>, vector<128x128xbf16>, vector<16x128xf32> -> vector<16x128xf32>
    %20 = arith.addf %14, %19 : vector<16x128xf32>
    %21 = vector.extract_strided_slice %1 {offsets = [1, 0, 0], sizes = [4, 4, 128], strides = [1, 1, 1]} : vector<6x6x128xbf16> to vector<4x4x128xbf16>
    %22 = vector.shape_cast %21 : vector<4x4x128xbf16> to vector<16x128xbf16>
    %c3 = arith.constant 3 : index
    %c0_13 = arith.constant 0 : index
    %c0_14 = arith.constant 0 : index
    %23 = vector.load %arg2[%c3, %c0_13, %c0_14] : memref<9x128x128xbf16, #tpu.memory_space<vmem>>, vector<1x128x128xbf16>
    %24 = vector.shape_cast %23 : vector<1x128x128xbf16> to vector<128x128xbf16>
    %cst_15 = arith.constant dense<0.000000e+00> : vector<16x128xf32>
    %25 = tpu.matmul %22, %24, %cst_15 {dimension_numbers = #tpu.dot_dimension_numbers<[1], [0], [0], [1], [0, 0, 1, 1], [], []>} : vector<16x128xbf16>, vector<128x128xbf16>, vector<16x128xf32> -> vector<16x128xf32>
    %26 = arith.addf %20, %25 : vector<16x128xf32>
    %27 = vector.extract_strided_slice %1 {offsets = [1, 1, 0], sizes = [4, 4, 128], strides = [1, 1, 1]} : vector<6x6x128xbf16> to vector<4x4x128xbf16>
    %28 = vector.shape_cast %27 : vector<4x4x128xbf16> to vector<16x128xbf16>
    %c4 = arith.constant 4 : index
    %c0_16 = arith.constant 0 : index
    %c0_17 = arith.constant 0 : index
    %29 = vector.load %arg2[%c4, %c0_16, %c0_17] : memref<9x128x128xbf16, #tpu.memory_space<vmem>>, vector<1x128x128xbf16>
    %30 = vector.shape_cast %29 : vector<1x128x128xbf16> to vector<128x128xbf16>
    %cst_18 = arith.constant dense<0.000000e+00> : vector<16x128xf32>
    %31 = tpu.matmul %28, %30, %cst_18 {dimension_numbers = #tpu.dot_dimension_numbers<[1], [0], [0], [1], [0, 0, 1, 1], [], []>} : vector<16x128xbf16>, vector<128x128xbf16>, vector<16x128xf32> -> vector<16x128xf32>
    %32 = arith.addf %26, %31 : vector<16x128xf32>
    %33 = vector.extract_strided_slice %1 {offsets = [1, 2, 0], sizes = [4, 4, 128], strides = [1, 1, 1]} : vector<6x6x128xbf16> to vector<4x4x128xbf16>
    %34 = vector.shape_cast %33 : vector<4x4x128xbf16> to vector<16x128xbf16>
    %c5 = arith.constant 5 : index
    %c0_19 = arith.constant 0 : index
    %c0_20 = arith.constant 0 : index
    %35 = vector.load %arg2[%c5, %c0_19, %c0_20] : memref<9x128x128xbf16, #tpu.memory_space<vmem>>, vector<1x128x128xbf16>
    %36 = vector.shape_cast %35 : vector<1x128x128xbf16> to vector<128x128xbf16>
    %cst_21 = arith.constant dense<0.000000e+00> : vector<16x128xf32>
    %37 = tpu.matmul %34, %36, %cst_21 {dimension_numbers = #tpu.dot_dimension_numbers<[1], [0], [0], [1], [0, 0, 1, 1], [], []>} : vector<16x128xbf16>, vector<128x128xbf16>, vector<16x128xf32> -> vector<16x128xf32>
    %38 = arith.addf %32, %37 : vector<16x128xf32>
    %39 = vector.extract_strided_slice %1 {offsets = [2, 0, 0], sizes = [4, 4, 128], strides = [1, 1, 1]} : vector<6x6x128xbf16> to vector<4x4x128xbf16>
    %40 = vector.shape_cast %39 : vector<4x4x128xbf16> to vector<16x128xbf16>
    %c6 = arith.constant 6 : index
    %c0_22 = arith.constant 0 : index
    %c0_23 = arith.constant 0 : index
    %41 = vector.load %arg2[%c6, %c0_22, %c0_23] : memref<9x128x128xbf16, #tpu.memory_space<vmem>>, vector<1x128x128xbf16>
    %42 = vector.shape_cast %41 : vector<1x128x128xbf16> to vector<128x128xbf16>
    %cst_24 = arith.constant dense<0.000000e+00> : vector<16x128xf32>
    %43 = tpu.matmul %40, %42, %cst_24 {dimension_numbers = #tpu.dot_dimension_numbers<[1], [0], [0], [1], [0, 0, 1, 1], [], []>} : vector<16x128xbf16>, vector<128x128xbf16>, vector<16x128xf32> -> vector<16x128xf32>
    %44 = arith.addf %38, %43 : vector<16x128xf32>
    %45 = vector.extract_strided_slice %1 {offsets = [2, 1, 0], sizes = [4, 4, 128], strides = [1, 1, 1]} : vector<6x6x128xbf16> to vector<4x4x128xbf16>
    %46 = vector.shape_cast %45 : vector<4x4x128xbf16> to vector<16x128xbf16>
    %c7 = arith.constant 7 : index
    %c0_25 = arith.constant 0 : index
    %c0_26 = arith.constant 0 : index
    %47 = vector.load %arg2[%c7, %c0_25, %c0_26] : memref<9x128x128xbf16, #tpu.memory_space<vmem>>, vector<1x128x128xbf16>
    %48 = vector.shape_cast %47 : vector<1x128x128xbf16> to vector<128x128xbf16>
    %cst_27 = arith.constant dense<0.000000e+00> : vector<16x128xf32>
    %49 = tpu.matmul %46, %48, %cst_27 {dimension_numbers = #tpu.dot_dimension_numbers<[1], [0], [0], [1], [0, 0, 1, 1], [], []>} : vector<16x128xbf16>, vector<128x128xbf16>, vector<16x128xf32> -> vector<16x128xf32>
    %50 = arith.addf %44, %49 : vector<16x128xf32>
    %51 = vector.extract_strided_slice %1 {offsets = [2, 2, 0], sizes = [4, 4, 128], strides = [1, 1, 1]} : vector<6x6x128xbf16> to vector<4x4x128xbf16>
    %52 = vector.shape_cast %51 : vector<4x4x128xbf16> to vector<16x128xbf16>
    %c8 = arith.constant 8 : index
    %c0_28 = arith.constant 0 : index
    %c0_29 = arith.constant 0 : index
    %53 = vector.load %arg2[%c8, %c0_28, %c0_29] : memref<9x128x128xbf16, #tpu.memory_space<vmem>>, vector<1x128x128xbf16>
    %54 = vector.shape_cast %53 : vector<1x128x128xbf16> to vector<128x128xbf16>
    %cst_30 = arith.constant dense<0.000000e+00> : vector<16x128xf32>
    %55 = tpu.matmul %52, %54, %cst_30 {dimension_numbers = #tpu.dot_dimension_numbers<[1], [0], [0], [1], [0, 0, 1, 1], [], []>} : vector<16x128xbf16>, vector<128x128xbf16>, vector<16x128xf32> -> vector<16x128xf32>
    %56 = arith.addf %50, %55 : vector<16x128xf32>
    %c0_31 = arith.constant 0 : index
    %c0_32 = arith.constant 0 : index
    %57 = vector.load %arg3[%c0_31, %c0_32] : memref<1x128xf32, #tpu.memory_space<vmem>>, vector<1x128xf32>
    %58 = vector.broadcast %57 : vector<1x128xf32> to vector<16x128xf32>
    %59 = arith.mulf %56, %58 : vector<16x128xf32>
    %c0_33 = arith.constant 0 : index
    %c0_34 = arith.constant 0 : index
    %60 = vector.load %arg4[%c0_33, %c0_34] : memref<1x128xf32, #tpu.memory_space<vmem>>, vector<1x128xf32>
    %61 = vector.broadcast %60 : vector<1x128xf32> to vector<16x128xf32>
    %62 = arith.addf %59, %61 : vector<16x128xf32>
    %cst_35 = arith.constant 0.000000e+00 : f32
    %63 = vector.broadcast %cst_35 : f32 to vector<16x128xf32>
    %64 = arith.maximumf %62, %63 : vector<16x128xf32>
    %65 = vector.shape_cast %64 : vector<16x128xf32> to vector<2x2x2x2x128xf32>
    %66 = vector.extract_strided_slice %65 {offsets = [0, 0, 0, 0, 0], sizes = [2, 1, 2, 1, 128], strides = [1, 1, 1, 1, 1]} : vector<2x2x2x2x128xf32> to vector<2x1x2x1x128xf32>
    %67 = vector.shape_cast %66 : vector<2x1x2x1x128xf32> to vector<2x2x128xf32>
    %68 = vector.extract_strided_slice %65 {offsets = [0, 0, 0, 1, 0], sizes = [2, 1, 2, 1, 128], strides = [1, 1, 1, 1, 1]} : vector<2x2x2x2x128xf32> to vector<2x1x2x1x128xf32>
    %69 = vector.shape_cast %68 : vector<2x1x2x1x128xf32> to vector<2x2x128xf32>
    %70 = arith.maximumf %67, %69 : vector<2x2x128xf32>
    %71 = vector.extract_strided_slice %65 {offsets = [0, 1, 0, 0, 0], sizes = [2, 1, 2, 1, 128], strides = [1, 1, 1, 1, 1]} : vector<2x2x2x2x128xf32> to vector<2x1x2x1x128xf32>
    %72 = vector.shape_cast %71 : vector<2x1x2x1x128xf32> to vector<2x2x128xf32>
    %73 = vector.extract_strided_slice %65 {offsets = [0, 1, 0, 1, 0], sizes = [2, 1, 2, 1, 128], strides = [1, 1, 1, 1, 1]} : vector<2x2x2x2x128xf32> to vector<2x1x2x1x128xf32>
    %74 = vector.shape_cast %73 : vector<2x1x2x1x128xf32> to vector<2x2x128xf32>
    %75 = arith.maximumf %72, %74 : vector<2x2x128xf32>
    %76 = arith.maximumf %70, %75 : vector<2x2x128xf32>
    %77 = arith.truncf %76 : vector<2x2x128xf32> to vector<2x2x128xbf16>
    %c0_36 = arith.constant 0 : index
    %c0_37 = arith.constant 0 : index
    %c0_38 = arith.constant 0 : index
    %c0_39 = arith.constant 0 : index
    %78 = vector.load %arg5[%c0_36, %c0_37, %c0_38, %c0_39] : memref<1x2x2x128xbf16, #tpu.memory_space<vmem>>, vector<1x2x2x128xbf16>
    %79 = vector.shape_cast %78 : vector<1x2x2x128xbf16> to vector<2x2x128xbf16>
    %80 = vector.shape_cast %77 : vector<2x2x128xbf16> to vector<1x2x2x128xbf16>
    tpu.vector_store %arg5[%c0_36, %c0_37, %c0_38, %c0_39], %80 {strides = array<i32>} : memref<1x2x2x128xbf16, #tpu.memory_space<vmem>>, vector<1x2x2x128xbf16>,
    return
  }
  func.func @transform_0(%arg0: i32) -> (i32, i32, i32, i32) {
    %c0_i32 = arith.constant 0 : i32
    %c0_i32_0 = arith.constant 0 : i32
    %c0_i32_1 = arith.constant 0 : i32
    %c0_i32_2 = arith.constant 0 : i32
    return %arg0, %c0_i32, %c0_i32_0, %c0_i32_1 : i32, i32, i32, i32
  }
  func.func @transform_1(%arg0: i32) -> (i32, i32, i32) {
    %c0_i32 = arith.constant 0 : i32
    %c0_i32_0 = arith.constant 0 : i32
    %c0_i32_1 = arith.constant 0 : i32
    %c0_i32_2 = arith.constant 0 : i32
    return %c0_i32, %c0_i32_0, %c0_i32_1 : i32, i32, i32
  }
  func.func @transform_2(%arg0: i32) -> (i32, i32) {
    %c0_i32 = arith.constant 0 : i32
    %c0_i32_0 = arith.constant 0 : i32
    %c0_i32_1 = arith.constant 0 : i32
    return %c0_i32, %c0_i32_0 : i32, i32
  }
  func.func @transform_3(%arg0: i32) -> (i32, i32) {
    %c0_i32 = arith.constant 0 : i32
    %c0_i32_0 = arith.constant 0 : i32
    %c0_i32_1 = arith.constant 0 : i32
    return %c0_i32, %c0_i32_0 : i32, i32
  }
  func.func @transform_4(%arg0: i32) -> (i32, i32, i32, i32) {
    %c0_i32 = arith.constant 0 : i32
    %c0_i32_0 = arith.constant 0 : i32
    %c0_i32_1 = arith.constant 0 : i32
    %c0_i32_2 = arith.constant 0 : i32
    return %arg0, %c0_i32, %c0_i32_0, %c0_i32_1 : i32, i32, i32, i32
  }
}

module attributes {stable_mosaic.version = 11 : i64} {
  func.func @_mlp_kernel(%arg0: memref<2x512xbf16, #tpu.memory_space<vmem>>, %arg1: memref<512x256xbf16, #tpu.memory_space<vmem>>, %arg2: memref<1x256xf32, #tpu.memory_space<vmem>>, %arg3: memref<256x10xbf16, #tpu.memory_space<vmem>>, %arg4: memref<1x10xf32, #tpu.memory_space<vmem>>, %arg5: memref<2x10xf32, #tpu.memory_space<vmem>>) attributes {dimension_semantics = [], scalar_prefetch = 0 : i64, scratch_operands = 0 : i64, tpu.core_type = #tpu.core_type<tc>} {
    %c0 = arith.constant 0 : index
    %c0_0 = arith.constant 0 : index
    %0 = vector.load %arg0[%c0, %c0_0] : memref<2x512xbf16, #tpu.memory_space<vmem>>, vector<2x512xbf16>
    %c0_1 = arith.constant 0 : index
    %c0_2 = arith.constant 0 : index
    %1 = vector.load %arg1[%c0_1, %c0_2] : memref<512x256xbf16, #tpu.memory_space<vmem>>, vector<512x256xbf16>
    %cst = arith.constant dense<0.000000e+00> : vector<2x256xf32>
    %2 = tpu.matmul %0, %1, %cst {dimension_numbers = #tpu.dot_dimension_numbers<[1], [0], [0], [1], [0, 0, 1, 1], [], []>} : vector<2x512xbf16>, vector<512x256xbf16>, vector<2x256xf32> -> vector<2x256xf32>
    %c0_3 = arith.constant 0 : index
    %c0_4 = arith.constant 0 : index
    %3 = vector.load %arg2[%c0_3, %c0_4] : memref<1x256xf32, #tpu.memory_space<vmem>>, vector<1x256xf32>
    %4 = vector.broadcast %3 : vector<1x256xf32> to vector<2x256xf32>
    %5 = arith.addf %2, %4 : vector<2x256xf32>
    %cst_5 = arith.constant 0.000000e+00 : f32
    %6 = vector.broadcast %cst_5 : f32 to vector<2x256xf32>
    %7 = arith.maximumf %5, %6 : vector<2x256xf32>
    %8 = arith.truncf %7 : vector<2x256xf32> to vector<2x256xbf16>
    %c0_6 = arith.constant 0 : index
    %c0_7 = arith.constant 0 : index
    %9 = vector.load %arg3[%c0_6, %c0_7] : memref<256x10xbf16, #tpu.memory_space<vmem>>, vector<256x10xbf16>
    %cst_8 = arith.constant dense<0.000000e+00> : vector<2x10xf32>
    %10 = tpu.matmul %8, %9, %cst_8 {dimension_numbers = #tpu.dot_dimension_numbers<[1], [0], [0], [1], [0, 0, 1, 1], [], []>} : vector<2x256xbf16>, vector<256x10xbf16>, vector<2x10xf32> -> vector<2x10xf32>
    %c0_9 = arith.constant 0 : index
    %c0_10 = arith.constant 0 : index
    %11 = vector.load %arg4[%c0_9, %c0_10] : memref<1x10xf32, #tpu.memory_space<vmem>>, vector<1x10xf32>
    %12 = vector.broadcast %11 : vector<1x10xf32> to vector<2x10xf32>
    %13 = arith.addf %10, %12 : vector<2x10xf32>
    %c0_11 = arith.constant 0 : index
    %c0_12 = arith.constant 0 : index
    %14 = vector.load %arg5[%c0_11, %c0_12] : memref<2x10xf32, #tpu.memory_space<vmem>>, vector<2x10xf32>
    tpu.vector_store %arg5[%c0_11, %c0_12], %13 {strides = array<i32>} : memref<2x10xf32, #tpu.memory_space<vmem>>, vector<2x10xf32>,
    return
  }
}

</mosaic_0001>

<bundles_post_ra>
// kernel: net_forward.7
= control target key start
LH: loop header
LB: loop body
LE: loop exit
PB: predicated region body
PF: predicated region fallthrough
CT: control target
= control target key end

     0   :  { %v89_v38 = vlaneseq  ;;  %v965_v39 = vmov 1966171168   ;;  %s1254_s0 = inlined_call_operand.vmem [shape: bf16[2,512], index: 0, kind: input, shape index: {}]   ;;  %s1255_s1 = inlined_call_operand.vmem [shape: bf16[512,256], index: 1, kind: input, shape index: {}]   ;;  %s1256_s2 = inlined_call_operand.vmem [shape: f32[1,256], index: 2, kind: input, shape index: {}]   ;;  %s1257_s3 = inlined_call_operand.vmem [shape: bf16[256,10], index: 3, kind: input, shape index: {}]   ;;  %s1258_s4 = inlined_call_operand.vmem [shape: f32[1,10], index: 4, kind: input, shape index: {}]   ;;  %s1259_s5 = inlined_call_operand.hbm [shape: f32[2,10], index: 5, kind: output, shape index: {}]  }
   0x1   :  { %v831_v0 = vld [vmem:[%s1255_s1 + $0x74] ss:$8 sps:$4 sm:$0xff]   ;;  %v835_v2 = vld [vmem:[%s1255_s1 + $0x70] ss:$8 sps:$4 sm:$0xff]   ;;  %v837_v4 = vld [vmem:[%s1255_s1 + $0x64] ss:$8 sps:$4 sm:$0xff]   ;;  %v109_v40 = vunpack.c.l.s4 %v965_v39 }
   0x2   :  { %v833_v1 = vld [vmem:[%s1255_s1 + $0x174] ss:$8 sps:$4 sm:$0xff]   ;;  %448 = vmatprep.subr.bf16.mxu0 %v831_v0  ;;  %v836_v3 = vld [vmem:[%s1255_s1 + $0x170] ss:$8 sps:$4 sm:$0xff]   ;;  %v839_v5 = vld [vmem:[%s1255_s1 + $0x164] ss:$8 sps:$4 sm:$0xff]  }
   0x3   :  { %489 = vmatprep.subr.bf16.mxu1 %v833_v1  ;;  %449 = vmatpush1.bf16.msra.mxu0 %v835_v2  ;;  %v841_v6 = vld [vmem:[%s1255_s1 + $0x60] ss:$8 sps:$4 sm:$0xff]   ;;  %v843_v8 = vld [vmem:[%s1255_s1 + $0x54] ss:$8 sps:$4 sm:$0xff]   ;;  %v847_v10 = vld [vmem:[%s1255_s1 + $0x50] ss:$8 sps:$4 sm:$0xff]   ;;  %v110_v46 = vunpack.c.0.s8 %v109_v40 }
   0x4   :  { %490 = vmatpush1.bf16.msra.mxu1 %v836_v3  ;;  %450 = vmatprep.subr.bf16.mxu0 %v837_v4  ;;  %v842_v7 = vld [vmem:[%s1255_s1 + $0x160] ss:$8 sps:$4 sm:$0xff]   ;;  %v845_v9 = vld [vmem:[%s1255_s1 + $0x154] ss:$8 sps:$4 sm:$0xff]   ;;  %v848_v11 = vld [vmem:[%s1255_s1 + $0x150] ss:$8 sps:$4 sm:$0xff]  }
   0x5   :  { %491 = vmatprep.subr.bf16.mxu1 %v839_v5  ;;  %v849_v12 = vld [vmem:[%s1255_s1 + $0x44] ss:$8 sps:$4 sm:$0xff]   ;;  %v853_v14 = vld [vmem:[%s1255_s1 + $0x40] ss:$8 sps:$4 sm:$0xff]   ;;  %v855_v16 = vld [vmem:[%s1255_s1 + $0x34] ss:$8 sps:$4 sm:$0xff]  }
   0x6   :  { %v851_v13 = vld [vmem:[%s1255_s1 + $0x144] ss:$8 sps:$4 sm:$0xff]   ;;  %v854_v15 = vld [vmem:[%s1255_s1 + $0x140] ss:$8 sps:$4 sm:$0xff]   ;;  %v857_v17 = vld [vmem:[%s1255_s1 + $0x134] ss:$8 sps:$4 sm:$0xff]  }
   0x7   :  { %451 = vmatpush1.bf16.msra.mxu0 %v841_v6  ;;  %v859_v18 = vld [vmem:[%s1255_s1 + $0x30] ss:$8 sps:$4 sm:$0xff]   ;;  %v861_v20 = vld [vmem:[%s1255_s1 + $0x24] ss:$8 sps:$4 sm:$0xff]   ;;  %v865_v22 = vld [vmem:[%s1255_s1 + $0x20] ss:$8 sps:$4 sm:$0xff]  }
   0x8   :  { %492 = vmatpush1.bf16.msra.mxu1 %v842_v7  ;;  %452 = vmatprep.subr.bf16.mxu0 %v843_v8  ;;  %v860_v19 = vld [vmem:[%s1255_s1 + $0x130] ss:$8 sps:$4 sm:$0xff]   ;;  %v863_v21 = vld [vmem:[%s1255_s1 + $0x124] ss:$8 sps:$4 sm:$0xff]   ;;  %v866_v23 = vld [vmem:[%s1255_s1 + $0x120] ss:$8 sps:$4 sm:$0xff]  }
   0x9   :  { %493 = vmatprep.subr.bf16.mxu1 %v845_v9  ;;  %v867_v24 = vld [vmem:[%s1255_s1 + $0x14] ss:$8 sps:$4 sm:$0xff]   ;;  %v871_v26 = vld [vmem:[%s1255_s1 + $0x10] ss:$8 sps:$4 sm:$0xff]   ;;  %v873_v28 = vld [vmem:[%s1255_s1 + $0x4] ss:$8 sps:$4 sm:$0xff]  }
   0xa   :  { %v869_v25 = vld [vmem:[%s1255_s1 + $0x114] ss:$8 sps:$4 sm:$0xff]   ;;  %v872_v27 = vld [vmem:[%s1255_s1 + $0x110] ss:$8 sps:$4 sm:$0xff]   ;;  %v875_v29 = vld [vmem:[%s1255_s1 + $0x104] ss:$8 sps:$4 sm:$0xff]  }
   0xb   :  { %453 = vmatpush1.bf16.msra.mxu0 %v847_v10  ;;  %v877_v30 = vld [vmem:[%s1255_s1] ss:$8 sps:$4 sm:$0xff]   ;;  %v879_v32 = vld [vmem:[%s1255_s1 + $0xf4] ss:$8 sps:$4 sm:$0xff]   ;;  %v883_v34 = vld [vmem:[%s1255_s1 + $0xf0] ss:$8 sps:$4 sm:$0xff]  }
   0xc   :  { %494 = vmatpush1.bf16.msra.mxu1 %v848_v11  ;;  %454 = vmatprep.subr.bf16.mxu0 %v849_v12  ;;  %v878_v31 = vld [vmem:[%s1255_s1 + $0x100] ss:$8 sps:$4 sm:$0xff]   ;;  %v881_v33 = vld [vmem:[%s1255_s1 + $0x1f4] ss:$8 sps:$4 sm:$0xff]   ;;  %v884_v35 = vld [vmem:[%s1255_s1 + $0x1f0] ss:$8 sps:$4 sm:$0xff]  }
   0xd   :  { %495 = vmatprep.subr.bf16.mxu1 %v851_v13  ;;  %v885_v36 = vld [vmem:[%s1255_s1 + $0xe4] ss:$8 sps:$4 sm:$0xff]   ;;  %v889_v41 = vld [vmem:[%s1255_s1 + $0xe0] ss:$8 sps:$4 sm:$0xff]   ;;  %v891_v43 = vld [vmem:[%s1255_s1 + $0xd4] ss:$8 sps:$4 sm:$0xff]  }
   0xe   :  { %v887_v37 = vld [vmem:[%s1255_s1 + $0x1e4] ss:$8 sps:$4 sm:$0xff]   ;;  %v890_v42 = vld [vmem:[%s1255_s1 + $0x1e0] ss:$8 sps:$4 sm:$0xff]   ;;  %v893_v44 = vld [vmem:[%s1255_s1 + $0x1d4] ss:$8 sps:$4 sm:$0xff]  }
   0xf   :  { %455 = vmatpush1.bf16.msra.mxu0 %v853_v14  ;;  %v1123_v45 = vshrl.u32 %v89_v38, 7  ;;  %v895_v47 = vld [vmem:[%s1255_s1 + $0xd0] ss:$8 sps:$4 sm:$0xff]   ;;  %v897_v49 = vld [vmem:[%s1255_s1 + $0xc4] ss:$8 sps:$4 sm:$0xff]  }
  0x10   :  { %496 = vmatpush1.bf16.msra.mxu1 %v854_v15  ;;  %456 = vmatprep.subr.bf16.mxu0 %v855_v16  ;;  %v896_v48 = vld [vmem:[%s1255_s1 + $0x1d0] ss:$8 sps:$4 sm:$0xff]   ;;  %v899_v50 = vld [vmem:[%s1255_s1 + $0x1c4] ss:$8 sps:$4 sm:$0xff]   ;;  %v901_v51 = vld [vmem:[%s1255_s1 + $0xc0] ss:$8 sps:$4 sm:$0xff]  }
  0x11   :  { %497 = vmatprep.subr.bf16.mxu1 %v857_v17  ;;  %v902_v52 = vld [vmem:[%s1255_s1 + $0x1c0] ss:$8 sps:$4 sm:$0xff]   ;;  %v113_v53 = vsub.s32 %v110_v46, %v1123_v45  ;;  %v903_v55 = vld [vmem:[%s1255_s1 + $0xb4] ss:$8 sps:$4 sm:$0xff]   ;;  %v907_v58 = vld [vmem:[%s1255_s1 + $0xb0] ss:$8 sps:$4 sm:$0xff]  }
  0x12   :  { %v725_v54 = vld.sshfl [vmem:[%s1254_s0] sm:$0x33 pattern:$0x75316420]  ;;  %v905_v57 = vld [vmem:[%s1255_s1 + $0x1b4] ss:$8 sps:$4 sm:$0xff]  }
  0x13   :  { %457 = vmatpush1.bf16.msra.mxu0 %v859_v18  ;;  %v107_v56 = vcombine.high %v725_v54, %v725_v54  ;;  %v908_v60 = vld [vmem:[%s1255_s1 + $0x1b0] ss:$8 sps:$4 sm:$0xff]   ;;  %v909_v61 = vld [vmem:[%s1255_s1 + $0xa4] ss:$8 sps:$4 sm:$0xff]   ;;  %v913_v0 = vld [vmem:[%s1255_s1 + $0xa0] ss:$8 sps:$4 sm:$0xff]  }
  0x14   :  { %498 = vmatpush1.bf16.msra.mxu1 %v860_v19  ;;  %458 = vmatprep.subr.bf16.mxu0 %v861_v20  ;;  %v911_v63 = vld [vmem:[%s1255_s1 + $0x1a4] ss:$8 sps:$4 sm:$0xff]   ;;  %v914_v1 = vld [vmem:[%s1255_s1 + $0x1a0] ss:$8 sps:$4 sm:$0xff]   ;;  %v915_v2 = vld [vmem:[%s1255_s1 + $0x94] ss:$8 sps:$4 sm:$0xff]  }
  0x15   :  { %499 = vmatprep.subr.bf16.mxu1 %v863_v21  ;;  %v121_v59 = vrot.slane %v107_v56, %v113_v53  ;;  %v917_v3 = vld [vmem:[%s1255_s1 + $0x194] ss:$8 sps:$4 sm:$0xff]   ;;  %v919_v4 = vld [vmem:[%s1255_s1 + $0x90] ss:$8 sps:$4 sm:$0xff]   ;;  %v921_v6 = vld [vmem:[%s1255_s1 + $0x84] ss:$8 sps:$4 sm:$0xff]  }
  0x16   :  { %v920_v5 = vld [vmem:[%s1255_s1 + $0x190] ss:$8 sps:$4 sm:$0xff]   ;;  %v923_v7 = vld [vmem:[%s1255_s1 + $0x184] ss:$8 sps:$4 sm:$0xff]  }
  0x17   :  { %459 = vmatpush1.bf16.msra.mxu0 %v865_v22  ;;  %v123_v62 = vcombine.high %v121_v59, %v121_v59  ;;  %480 = vmatprep.mubr.bf16.mxu0 %v121_v59 }
  0x18   :  { %500 = vmatpush1.bf16.msra.mxu1 %v866_v23  ;;  %460 = vmatprep.subr.bf16.mxu0 %v867_v24 }
  0x19   :  { %501 = vmatprep.subr.bf16.mxu1 %v869_v25  ;;  %521 = vmatprep.mubr.bf16.mxu1 %v123_v62 }
  0x1b   :  { %461 = vmatpush1.bf16.msra.mxu0 %v871_v26 }
  0x1c   :  { %502 = vmatpush1.bf16.msra.mxu1 %v872_v27  ;;  %462 = vmatprep.subr.bf16.mxu0 %v873_v28 }
  0x1d   :  { %503 = vmatprep.subr.bf16.mxu1 %v875_v29 }
  0x1f   :  { %463 = vmatpush1.bf16.msra.mxu0 %v877_v30 }
  0x20   :  { %504 = vmatpush1.bf16.msra.mxu1 %v878_v31  ;;  %464 = vmatprep.subr.bf16.mxu0 %v879_v32 }
  0x21   :  { %505 = vmatprep.subr.bf16.mxu1 %v881_v33 }
  0x23   :  { %465 = vmatpush2.bf16.msra.mxu0 %v883_v34 }
  0x24   :  { %506 = vmatpush2.bf16.msra.mxu1 %v884_v35  ;;  %466 = vmatprep.subr.bf16.mxu0 %v885_v36 }
  0x25   :  { %507 = vmatprep.subr.bf16.mxu1 %v887_v37 }
  0x27   :  { %467 = vmatpush2.bf16.msra.mxu0 %v889_v41 }
  0x28   :  { %508 = vmatpush2.bf16.msra.mxu1 %v890_v42  ;;  %468 = vmatprep.subr.bf16.mxu0 %v891_v43 }
  0x29   :  { %509 = vmatprep.subr.bf16.mxu1 %v893_v44 }
  0x2b   :  { %469 = vmatpush2.bf16.msra.mxu0 %v895_v47 }
  0x2c   :  { %510 = vmatpush2.bf16.msra.mxu1 %v896_v48  ;;  %470 = vmatprep.subr.bf16.mxu0 %v897_v49 }
  0x2d   :  { %511 = vmatprep.subr.bf16.mxu1 %v899_v50 }
  0x2f   :  { %471 = vmatpush2.bf16.msra.mxu0 %v901_v51 }
  0x30   :  { %512 = vmatpush2.bf16.msra.mxu1 %v902_v52  ;;  %472 = vmatprep.subr.bf16.mxu0 %v903_v55 }
  0x31   :  { %513 = vmatprep.subr.bf16.mxu1 %v905_v57 }
  0x33   :  { %473 = vmatpush2.bf16.msra.mxu0 %v907_v58 }
  0x34   :  { %514 = vmatpush2.bf16.msra.mxu1 %v908_v60  ;;  %474 = vmatprep.subr.bf16.mxu0 %v909_v61 }
  0x35   :  { %515 = vmatprep.subr.bf16.mxu1 %v911_v63 }
  0x37   :  { %475 = vmatpush2.bf16.msra.mxu0 %v913_v0 }
  0x38   :  { %516 = vmatpush2.bf16.msra.mxu1 %v914_v1  ;;  %476 = vmatprep.subr.bf16.mxu0 %v915_v2 }
  0x39   :  { %517 = vmatprep.subr.bf16.mxu1 %v917_v3 }
  0x3a   :  { %10 = vsyncpa [#allocation3], 0  ;;  %v114_v8 = vrot.slane %v725_v54, %v113_v53  ;;  %v925_v9 = vld [vmem:[%s1255_s1 + $0x80] ss:$8 sps:$4 sm:$0xff]   ;;  %v927_v11 = vld [vmem:[%s1257_s3 + $0x78] sm:$0xff]   ;;  %v91_v28 = vsub.s32 0, %v1123_v45 }
  0x3b   :  { %477 = vmatpush2.bf16.msra.mxu0 %v919_v4  ;;  %v926_v10 = vld [vmem:[%s1255_s1 + $0x180] ss:$8 sps:$4 sm:$0xff]   ;;  %v928_v13 = vld [vmem:[%s1257_s3 + $0x38] sm:$0xff]   ;;  %v929_v14 = vld [vmem:[%s1257_s3 + $0x70] sm:$0xff]   ;;  %v95_v30 = vsub.s32 1, %v1123_v45  ;;  %s966_s27 = smov [#allocation2]  }
  0x3c   :  { %518 = vmatpush2.bf16.msra.mxu1 %v920_v5  ;;  %478 = vmatprep.subr.bf16.mxu0 %v921_v6  ;;  %v122_v12 = vcombine.high %v114_v8, %v114_v8  ;;  %v930_v15 = vld [vmem:[%s1257_s3 + $0x30] sm:$0xff]   ;;  %v931_v16 = vld [vmem:[%s1257_s3 + $0x68] sm:$0xff]   ;;  %v933_v18 = vld [vmem:[%s1257_s3 + $0x60] sm:$0xff]   ;;  %s717_s28 = sshll.u32 %s966_s27, 4  ;;  %vm709_vm0 = vcmask 74752   ;;  %s718_s28 = int_to_ptr.vmem [resolvable:$true] %s717_s28 }
  0x3d   :  { %519 = vmatprep.subr.bf16.mxu1 %v923_v7  ;;  %v932_v17 = vld [vmem:[%s1257_s3 + $0x28] sm:$0xff]   ;;  %v934_v19 = vld [vmem:[%s1257_s3 + $0x20] sm:$0xff]   ;;  %v935_v20 = vld [vmem:[%s1257_s3 + $0x58] sm:$0xff]   ;;  %s943_s29 = scalar_lea.vmem %s718_s28, 32  ;;  %p948_p1 = scmp.lt.s32.totalorder %s718_s28, %s718_s28 }
  0x3e   :  { %v936_v21 = vld [vmem:[%s1257_s3 + $0x18] sm:$0xff]   ;;  %v937_v22 = vld [vmem:[%s1257_s3 + $0x50] sm:$0xff]   ;;  %v939_v24 = vld [vmem:[%s1257_s3 + $0x48] sm:$0xff]   ;;  %p944_p0 = scmp.ne.s32.totalorder %s718_s28, %s943_s29  ;;  %p949_p2 = scmp.lt.s32.totalorder %s943_s29, %s943_s29 }
  0x3f   :  { %479 = vmatpush2.bf16.msra.mxu0 %v925_v9  ;;  %v938_v23 = vld [vmem:[%s1257_s3 + $0x10] sm:$0xff]   ;;  %v940_v25 = vld [vmem:[%s1257_s3 + $0x8] sm:$0xff]   ;;  %v941_v26 = vld [vmem:[%s1257_s3 + $0x40] sm:$0xff]  }
  0x40   :  { %520 = vmatpush2.bf16.msra.mxu1 %v926_v10  ;;  %807 = vmatprep.subr.bf16.mxu0 %v927_v11  ;;  %v942_v27 = vld [vmem:[%s1257_s3] sm:$0xff]   ;;  %p950_p3 = por %p949_p2, %p948_p1 }
  0x41   :  { %v87_v29 = vld [vmem:[%s1256_s2] sm:$0x3] }
  0x42   :  { %481 = vmatmul.mubr.bf16.vlgmr.msra.gmra.mxu0 %v114_v8  ;;  %v92_v31 = vrot.slane %v87_v29, %v91_v28  ;;  %v96_v32 = vrot.slane %v87_v29, %v95_v30  ;;  %v790_v50 = vld [vmem:[%s1258_s4] ss:$0 sm:$0xff]  ;;  %p951_p4 = pnand %p950_p3, %p944_p0 }
  0x43   :  { %522 = vmatmul.mubr.bf16.vlgmr.msra.gmra.mxu1 %v122_v12  ;;  %808 = vmatpush3.bf16.msra.mxu0 %v928_v13 }
  0x44   :  { %809 = vmatprep.subr.bf16.mxu0 %v929_v14 }
  0x47   :  { %810 = vmatpush3.bf16.msra.mxu0 %v930_v15 }
  0x48   :  { %811 = vmatprep.subr.bf16.mxu0 %v931_v16 }
  0x4b   :  { %812 = vmatpush3.bf16.msra.mxu0 %v932_v17 }
  0x4c   :  { %813 = vmatprep.subr.bf16.mxu0 %v933_v18 }
  0x4f   :  { %814 = vmatpush3.bf16.msra.mxu0 %v934_v19 }
  0x50   :  { %815 = vmatprep.subr.bf16.mxu0 %v935_v20 }
  0x53   :  { %816 = vmatpush3.bf16.msra.mxu0 %v936_v21 }
  0x54   :  { %817 = vmatprep.subr.bf16.mxu0 %v937_v22 }
  0x57   :  { %818 = vmatpush3.bf16.msra.mxu0 %v938_v23 }
  0x58   :  { %819 = vmatprep.subr.bf16.mxu0 %v939_v24 }
  0x5b   :  { %820 = vmatpush3.bf16.msra.mxu0 %v940_v25 }
  0x5c   :  { %821 = vmatprep.subr.bf16.mxu0 %v941_v26 }
  0x5f   :  { %822 = vmatpush3.bf16.msra.mxu0 %v942_v27 }
 0x102   :  { %v482_v33 = vpop.f32.mrf.mxu0 }
 0x103   :  { %v523_v34 = vpop.f32.mrf.mxu1  ;;  %v483_v35 = vadd.f32 %v482_v33, %v92_v31 }
 0x104   :  { %v484_v36 = vpop.f32.mrf.mxu0 }
 0x105   :  { %v525_v37 = vpop.f32.mrf.mxu1  ;;  %v524_v38 = vadd.f32 %v523_v34, %v483_v35  ;;  %v485_v39 = vadd.f32 %v484_v36, %v96_v32 }
 0x106   :  { %v486_v40 = vpop.f32.mrf.mxu0 }
 0x107   :  { %v527_v41 = vpop.f32.mrf.mxu1  ;;  %v526_v42 = vadd.f32 %v525_v37, %v485_v39  ;;  %v530_v43 = vmax.f32 %v524_v38, 0.0 }
 0x108   :  { %v487_v44 = vpop.f32.mrf.mxu0 }
 0x109   :  { %v528_v46 = vpop.f32.mrf.mxu1  ;;  %v531_v47 = vmax.f32 %v526_v42, 0.0  ;;  %v532_v49 = vpack.c.bf16 %v530_v43, %v530_v43 }
 0x10b   :  { %v533_v48 = vpack.c.bf16 %v531_v47, %v531_v47 }
 0x10d   :  { %701 = vmatprep.mubr.bf16.mxu0 %v533_v48 }
 0x10e   :  { %702 = vmatmul.mubr.bf16.vlgmr.msra.gmra.mxu0 %v532_v49 }
 0x1ce   :  { %v823_v45 = vpop.f32.mrf.mxu0 }
 0x1d0   :  { %v824_v51 = vpop.f32.mrf.mxu0 }
 0x1d1   :  { %v825_v52 = vadd.f32 %v824_v51, %v823_v45 }
 0x1d2   :  { %v826_v53 = vpop.f32.mrf.mxu0 }
 0x1d3   :  { %v704_v54 = vadd.f32 %v825_v52, %v790_v50 }
 0x1d4   :  { %v827_v55 = vpop.f32.mrf.mxu0 }
 0x1d5   :  { %710 = vst.msk [vmem:[#allocation2] sm:$0x3] %vm709_vm0, %v704_v54 }
 0x1d6   :  { %954 = shalt.err (!%p951_p4)
}
 0x1d7   :  { %720 = dma.vmem_to_hbm [thread:$0]  %s718_s28, 32, %s1259_s5, [#allocation3]  }
 0x1d8   :  { %963 = dma.done.wait [#allocation3], 32  }
 0x1d9   :  { %964 = vsyncadd [#allocation3], 4294967264 }
 0x1da   :  { %724 = vsyncpa [#allocation3], 1 }

// kernel: net_forward.6
= control target key start
LH: loop header
LB: loop body
LE: loop exit
PB: predicated region body
PF: predicated region fallthrough
CT: control target
= control target key end

     0   :  { %s2417_s15 = smov 0   ;;  %s2963_s0 = inlined_call_operand.vmem [shape: bf16[2,6,6,128], index: 0, kind: input, shape index: {}]   ;;  %s2964_s1 = inlined_call_operand.vmem [shape: bf16[9,128,128], index: 1, kind: input, shape index: {}]   ;;  %s2965_s2 = inlined_call_operand.vmem [shape: f32[1,128], index: 2, kind: input, shape index: {}]   ;;  %s2966_s3 = inlined_call_operand.vmem [shape: f32[1,128], index: 3, kind: input, shape index: {}]   ;;  %s2967_s4 = inlined_call_operand.vmem [shape: bf16[2,2,2,128], index: 4, kind: output, shape index: {}]  }
   0x1 LB: > { %s1800_s16 = sadd.s32 4294967295, %s2385_s15   ;;  %p1804_p0 = scmp.ge.s32.totalorder %s2385_s15, 1  ;;  %s2385_s15 = sphi %s2417_s15, %s14_s15  }
   0x2   : > { %p162_p1 = scmp.lt.s32.totalorder %s2385_s15, 3 }
   0x4   : > { %p163_p2 = pnand %p1804_p0, %p162_p1 }
   0x5   : > { %p187_p3 = scmp.lt.s32.totalorder (!%p163_p2), %s1800_s16, 1 }
   0x6   : > { %166 = sbr.rel (%p163_p2) target bundleno = 412 (0x19c), region = 36 }
   0xb   : > { %v2302_v0 = vld [vmem:[%s2964_s1 + $0x78] sm:$0xff]   ;;  %v2387_v1 = vmov 0.0   ;;  %v2304_v3 = vld [vmem:[%s2964_s1 + $0x70] sm:$0xff]   ;;  %vm2388_vm0 = vmmov 0   ;;  %v2306_v5 = vld [vmem:[%s2964_s1 + $0x68] sm:$0xff]   ;;  %s2975_s16 = smov (!%p187_p3, %s1800_s16), 1  ;;  %v226_v10 = vlaneseq }
   0xc   : > { %2108 = vmatprep.subr.bf16.mxu0 %v2387_v1  ;;  %2128 = vmatprep.subr.bf16.mxu1 %v2387_v1  ;;  %v2303_v2 = vld [vmem:[%s2964_s1 + $0x38] sm:$0xff]   ;;  %v2305_v4 = vld [vmem:[%s2964_s1 + $0x30] sm:$0xff]   ;;  %v2307_v6 = vld [vmem:[%s2964_s1 + $0x28] sm:$0xff]   ;;  %s2288_s7 = smul.u32 24, %s2975_s16  ;;  %v2389_v15 = vmov 1983009808  }
   0xd   : > { %2109 = vmatpush3.bf16.msra.mxu0 %v2302_v0  ;;  %2124 = vmatprep.mubr.msk.bf16.mxu0 %vm2388_vm0, %v2387_v1  ;;  %v2308_v7 = vld [vmem:[%s2964_s1 + $0x60] sm:$0xff]   ;;  %v2310_v9 = vld [vmem:[%s2964_s1 + $0x58] sm:$0xff]   ;;  %v2312_v12 = vld [vmem:[%s2964_s1 + $0x50] sm:$0xff]   ;;  %v224_v16 = vunpack.c.l.s4 %v2389_v15  ;;  %v2484_v17 = vshrl.u32 %v226_v10, 7  ;;  %vm255_vm1 = vsmask.f32 1280 }
   0xe   : > { %2129 = vmatpush3.bf16.msra.mxu1 %v2303_v2  ;;  %2110 = vmatprep.subr.bf16.mxu0 %v2387_v1  ;;  %v2309_v8 = vld [vmem:[%s2964_s1 + $0x20] sm:$0xff]   ;;  %v2311_v11 = vld [vmem:[%s2964_s1 + $0x18] sm:$0xff]   ;;  %s2474_s14 = scalar_lea.vmem %s2963_s0, %s2288_s7  ;;  %v2313_v13 = vld [vmem:[%s2964_s1 + $0x10] sm:$0xff]   ;;  %vm256_vm2 = vsmask.f32 3336  ;;  %vm549_vm8 = vcmask 1040384  }
   0xf   : > { %2130 = vmatprep.subr.bf16.mxu1 %v2387_v1  ;;  %2144 = vmatprep.mubr.msk.bf16.mxu1 %vm2388_vm0, %v2387_v1  ;;  %v197_v14 = vld [vmem:[%s2474_s14] sm:$0x7]  ;;  %v2488_v18 = vld [vmem:[%s2474_s14 + $0x4] sm:$0x7]  ;;  %v2492_v19 = vld [vmem:[%s2474_s14 + $0x8] sm:$0x7]  ;;  %v225_v21 = vunpack.c.0.s8 %v224_v16 }
  0x10   : > { %v2495_v20 = vld [vmem:[%s2474_s14 + $0xc] sm:$0x7]  ;;  %v442_v24 = vcombine.low %v197_v14, %v2488_v18  ;;  %vm258_vm3 = vsmask.f32 5392  ;;  %v2316_v27 = vld [vmem:[%s2964_s1 + $0x40] sm:$0xff]   ;;  %vm257_vm5 = vmor %vm255_vm1, %vm256_vm2  ;;  %vm550_vm9 = vcmask 1042434  }
  0x11   : > { %2111 = vmatpush3.bf16.msra.mxu0 %v2304_v3  ;;  %v2314_v22 = vld [vmem:[%s2964_s1 + $0x48] sm:$0xff]   ;;  %v443_v25 = vcombine.low %v2492_v19, %v2495_v20  ;;  %v2507_v26 = vsub.s32 %v225_v21, %v2484_v17  ;;  %v2515_v28 = vld [vmem:[%s2474_s14 + $0x10] sm:$0x7]  ;;  %v2317_v33 = vld [vmem:[%s2964_s1] sm:$0xff]   ;;  %vm260_vm4 = vsmask.f32 7448 }
  0x12   : > { %2131 = vmatpush3.bf16.msra.mxu1 %v2305_v4  ;;  %2112 = vmatprep.subr.bf16.mxu0 %v2387_v1  ;;  %v2315_v23 = vld [vmem:[%s2964_s1 + $0x8] sm:$0xff]   ;;  %vm2574_vm6 = vmor %vm257_vm5, %vm258_vm3  ;;  %vm552_vm11 = vcmask 1044484   ;;  %vm554_vm12 = vcmask 1046534   ;;  %v2349_v62 = vld [vmem:[%s2964_s1 + $0x150] sm:$0xff]   ;;  %vm1709_vm15 = vcmask 1041409   ;;  %s1806_s26 = sshll.u32 %s2975_s16, 1 }
  0x13   : > { %2132 = vmatprep.subr.bf16.mxu1 %v2387_v1  ;;  %v2518_v29 = vrot.slane %v197_v14, %v2507_v26  ;;  %v2522_v30 = vrot.slane %v2488_v18, %v2507_v26  ;;  %v2526_v31 = vrot.slane %v2492_v19, %v2507_v26  ;;  %v2530_v32 = vrot.slane %v2495_v20, %v2507_v26  ;;  %vm2584_vm7 = vmor %vm2574_vm6, %vm260_vm4  ;;  %s195_s29 = scalar_lea.vmem %s2967_s4, %s1806_s26 }
  0x14   : > { %v2537_v34 = vrot.slane %v2515_v28, %v2507_v26  ;;  %v2540_v35 = vrot.slane %v442_v24, %v2507_v26  ;;  %v2543_v36 = vrot.slane %v443_v25, %v2507_v26  ;;  %vm551_vm10 = vmor %vm549_vm8, %vm550_vm9 }
  0x15   : > { %2113 = vmatpush3.bf16.msra.mxu0 %v2306_v5  ;;  %v2547_v37 = vcombine.high %v2518_v29, %v2518_v29  ;;  %v2551_v38 = vcombine.high %v2522_v30, %v2522_v30  ;;  %v2555_v39 = vcombine.high %v2526_v31, %v2526_v31  ;;  %v2559_v40 = vcombine.high %v2530_v32, %v2530_v32  ;;  %vm553_vm13 = vmor %vm551_vm10, %vm552_vm11 }
  0x16   : > { %2133 = vmatpush3.bf16.msra.mxu1 %v2307_v6  ;;  %2114 = vmatprep.subr.bf16.mxu0 %v2387_v1  ;;  %v263_v41 = vshrl.u32 %v2518_v29, 16  ;;  %v266_v42 = vshll.u32 %v2518_v29, 16  ;;  %v277_v43 = vshrl.u32 %v2522_v30, 16  ;;  %v280_v44 = vshll.u32 %v2522_v30, 16  ;;  %vm2685_vm14 = vmor %vm553_vm13, %vm554_vm12 }
  0x17   : > { %2134 = vmatprep.subr.bf16.mxu1 %v2387_v1  ;;  %v272_v45 = vshll.u32 %v2547_v37, 16  ;;  %v286_v46 = vshll.u32 %v2551_v38, 16  ;;  %v291_v47 = vshrl.u32 %v2526_v31, 16  ;;  %v294_v48 = vshll.u32 %v2526_v31, 16 }
  0x18   : > { %v265_v50 = vrot.slane %v263_v41, 6  ;;  %v268_v51 = vrot.slane %v266_v42, 7  ;;  %v279_v52 = vrot.slane %v277_v43, 6  ;;  %v282_v53 = vrot.slane %v280_v44, 7 }
  0x19   : > { %2115 = vmatpush3.bf16.msra.mxu0 %v2308_v7  ;;  %v274_v54 = vrot.slane %v272_v45, 7  ;;  %v288_v55 = vrot.slane %v286_v46, 7  ;;  %v293_v56 = vrot.slane %v291_v47, 6  ;;  %v296_v57 = vrot.slane %v294_v48, 7  ;;  %v2323_v45 = vld [vmem:[%s2964_s1 + $0xf0] sm:$0xff]  }
  0x1a   : > { %2135 = vmatpush3.bf16.msra.mxu1 %v2309_v8  ;;  %2116 = vmatprep.subr.bf16.mxu0 %v2387_v1  ;;  %v269_v58 = vor.u32 %v268_v51, %v265_v50  ;;  %v283_v59 = vor.u32 %v282_v53, %v279_v52  ;;  %v300_v60 = vshll.u32 %v2555_v39, 16  ;;  %v305_v61 = vshrl.u32 %v2530_v32, 16  ;;  %v2325_v52 = vld [vmem:[%s2964_s1 + $0xe8] sm:$0xff]  }
  0x1b   : > { %2136 = vmatprep.subr.bf16.mxu1 %v2387_v1  ;;  %v297_v63 = vor.u32 %v296_v57, %v293_v56  ;;  %v308_v0 = vshll.u32 %v2530_v32, 16  ;;  %v314_v2 = vshll.u32 %v2559_v40, 16  ;;  %v2592_v3 = vcombine.high %v2537_v34, %v2537_v34  ;;  %v2322_v56 = vld [vmem:[%s2964_s1 + $0xb0] sm:$0xff]   ;;  %v2327_v57 = vld [vmem:[%s2964_s1 + $0xe0] sm:$0xff]  }
  0x1c   : > { %v270_v4 = vrot.slane %v269_v58, 2  ;;  %v284_v5 = vrot.slane %v283_v59, 2  ;;  %v302_v6 = vrot.slane %v300_v60, 7  ;;  %v307_v7 = vrot.slane %v305_v61, 6  ;;  %v2324_v59 = vld [vmem:[%s2964_s1 + $0xa8] sm:$0xff]   ;;  %v2329_v60 = vld [vmem:[%s2964_s1 + $0xd8] sm:$0xff]  }
  0x1d   : > { %2117 = vmatpush3.bf16.msra.mxu0 %v2310_v9  ;;  %v298_v8 = vrot.slane %v297_v63, 2  ;;  %v310_v9 = vrot.slane %v308_v0, 7  ;;  %v834_v10 = vshrl.u32 %v2537_v34, 16  ;;  %v837_v14 = vshll.u32 %v2537_v34, 16  ;;  %v2326_v61 = vld [vmem:[%s2964_s1 + $0xa0] sm:$0xff]   ;;  %v2331_v63 = vld [vmem:[%s2964_s1 + $0xd0] sm:$0xff]  }
  0x1e   : > { %2137 = vmatpush3.bf16.msra.mxu1 %v2311_v11  ;;  %2118 = vmatprep.subr.bf16.mxu0 %v2387_v1  ;;  %v2321_v11 = vld [vmem:[%s2964_s1 + $0xf8] sm:$0xff]   ;;  %v843_v15 = vshll.u32 %v2592_v3, 16  ;;  %v1839_v0 = vrot.slane %v2518_v29, 9  ;;  %v716_v29 = vcombine.low %v2488_v18, %v2492_v19  ;;  %v2330_v18 = vld [vmem:[%s2964_s1 + $0x90] sm:$0xff]  }
  0x1f   : > { %2138 = vmatprep.subr.bf16.mxu1 %v2387_v1  ;;  %v303_v16 = vsel %vm2584_vm7, %v298_v8, %v302_v6  ;;  %v311_v21 = vor.u32 %v310_v9, %v307_v7  ;;  %v839_v25 = vrot.slane %v837_v14, 7  ;;  %v1840_v6 = vrot.slane %v2522_v30, 9 }
  0x20   : > { %v845_v42 = vrot.slane %v843_v15, 7  ;;  %v562_v7 = vrot.slane %v2551_v38, 7  ;;  %v1841_v8 = vrot.slane %v2526_v31, 9  ;;  %v566_v9 = vrot.slane %v2555_v39, 7 }
  0x21   : > { %2119 = vmatpush3.bf16.msra.mxu0 %v2312_v12  ;;  %v275_v12 = vsel %vm2584_vm7, %v270_v4, %v274_v54  ;;  %v312_v41 = vrot.slane %v311_v21, 2  ;;  %v2328_v4 = vld [vmem:[%s2964_s1 + $0x98] sm:$0xff]   ;;  %v1842_v30 = vrot.slane %v2530_v32, 9  ;;  %v570_v38 = vrot.slane %v2559_v40, 7  ;;  %v2335_v32 = vld [vmem:[%s2964_s1 + $0xc0] sm:$0xff]  }
  0x22   : > { %2139 = vmatpush3.bf16.msra.mxu1 %v2313_v13  ;;  %2120 = vmatprep.subr.bf16.mxu0 %v2387_v1  ;;  %v289_v13 = vsel %vm2584_vm7, %v284_v5, %v288_v55  ;;  %v2333_v5 = vld [vmem:[%s2964_s1 + $0xc8] sm:$0xff]   ;;  %v2705_v39 = vsel %vm2685_vm14, %v1840_v6, %v562_v7  ;;  %v2709_v40 = vsel %vm2685_vm14, %v1841_v8, %v566_v9  ;;  %v2334_v21 = vld [vmem:[%s2964_s1 + $0x80] sm:$0xff]  }
  0x23   : > { %2140 = vmatprep.subr.bf16.mxu1 %v2387_v1  ;;  %v335_v24 = vcombine.low %v275_v12, %v289_v13  ;;  %v2332_v12 = vld [vmem:[%s2964_s1 + $0x88] sm:$0xff]  }
  0x25   : > { %2121 = vmatpush3.bf16.msra.mxu0 %v2314_v22  ;;  %v316_v22 = vrot.slane %v314_v2, 7  ;;  %v343_v47 = vrot.slane %v335_v24, %v2507_v26  ;;  %v558_v2 = vrot.slane %v2547_v37, 7  ;;  %v717_v37 = vcombine.low %v2495_v20, %v2515_v28  ;;  %v2341_v24 = vld [vmem:[%s2964_s1 + $0x170] sm:$0xff]  }
  0x26   : > { %2141 = vmatpush3.bf16.msra.mxu1 %v2315_v23  ;;  %2122 = vmatprep.subr.bf16.mxu0 %v2387_v1  ;;  %v836_v23 = vrot.slane %v834_v10, 6  ;;  %v724_v20 = vrot.slane %v716_v29, %v2507_v26  ;;  %v2344_v29 = vld [vmem:[%s2964_s1 + $0x120] sm:$0xff]   ;;  %v994_v10 = vcombine.low %v2705_v39, %v2709_v40 }
  0x27   : > { %2142 = vmatprep.subr.bf16.mxu1 %v2387_v1  ;;  %v317_v44 = vsel %vm2584_vm7, %v312_v41, %v316_v22  ;;  %v559_v19 = vsel %vm2685_vm14, %v1839_v0, %v558_v2  ;;  %v731_v31 = vrot.slane %v717_v37, %v2507_v26  ;;  %v2342_v2 = vld [vmem:[%s2964_s1 + $0x128] sm:$0xff]  }
  0x28   : > { %v840_v43 = vor.u32 %v839_v25, %v836_v23  ;;  %v336_v46 = vcombine.low %v303_v16, %v317_v44  ;;  %v202_v25 = vld [vmem:[%s2474_s14 + $0x14] sm:$0x7] }
  0x29   : > { %2123 = vmatpush3.bf16.msra.mxu0 %v2316_v27  ;;  %v864_v27 = vcombine.low %v289_v13, %v303_v16  ;;  %v589_v13 = vcombine.low %v559_v19, %v2705_v39  ;;  %v732_v15 = vcombine.low %v724_v20, %v731_v31  ;;  %v2339_v16 = vld [vmem:[%s2964_s1 + $0x178] sm:$0xff]   ;;  %v2348_v20 = vld [vmem:[%s2964_s1 + $0x110] sm:$0xff]   ;;  %v2353_v31 = vld [vmem:[%s2964_s1 + $0x140] sm:$0xff]  }
  0x2a   : > { %2143 = vmatpush3.bf16.msra.mxu1 %v2317_v33  ;;  %2148 = vmatprep.subr.bf16.mxu0 %v2387_v1  ;;  %v458_v33 = vcombine.low %v2540_v35, %v2543_v36  ;;  %v841_v48 = vrot.slane %v840_v43, 2  ;;  %v2320_v35 = vld [vmem:[%s2964_s1 + $0xb8] sm:$0xff]   ;;  %v2622_v49 = vrot.slane %v336_v46, %v2507_v26  ;;  %v2350_v39 = vld [vmem:[%s2964_s1 + $0x108] sm:$0xff]  }
  0x2b   : > { %2168 = vmatprep.subr.bf16.mxu1 %v2387_v1  ;;  %v2633_v53 = vrot.slane %v864_v27, %v2507_v26  ;;  %v597_v22 = vrot.slane %v589_v13, %v2507_v26  ;;  %v1121_v27 = vcombine.low %v2515_v28, %v202_v25  ;;  %v2336_v43 = vld [vmem:[%s2964_s1 + $0x138] sm:$0xff]  }
  0x2c   : > { %v2626_v50 = vsel %vm2584_vm7, %v841_v48, %v845_v42  ;;  %v351_v54 = vcombine.low %v343_v47, %v2622_v49  ;;  %v1915_v42 = vrot.slane %v2537_v34, 9  ;;  %v2340_v34 = vld [vmem:[%s2964_s1 + $0x130] sm:$0xff]   ;;  %v2354_v13 = vld [vmem:[%s2964_s1 + $0x1b8] sm:$0xff]  }
  0x2d   : > { %2145 = vmatmul.mubr.bf16.vlgmr.msra.gmra.mxu1 %v458_v33  ;;  %v865_v51 = vcombine.low %v317_v44, %v2626_v50  ;;  %v1228_v33 = vrot.slane %v202_v25, %v2507_v26  ;;  %v2343_v44 = vld [vmem:[%s2964_s1 + $0x168] sm:$0xff]   ;;  %v2364_v25 = vld [vmem:[%s2964_s1 + $0x190] sm:$0xff]  }
  0x2e   : > { %2169 = vmatpush3.bf16.msra.mxu1 %v2321_v11  ;;  %2184 = vmatprep.mubr.msk.bf16.mxu1 %vm2388_vm0, %v2387_v1  ;;  %v2713_v11 = vsel %vm2685_vm14, %v1842_v30, %v570_v38  ;;  %v2346_v38 = vld [vmem:[%s2964_s1 + $0x118] sm:$0xff]  }
  0x2f   : > { %2170 = vmatprep.subr.bf16.mxu1 %v2387_v1  ;;  %v2638_v55 = vrot.slane %v865_v51, %v2507_v26  ;;  %2125 = vmatmul.mubr.bf16.vlgmr.msra.gmra.mxu0 %v351_v54  ;;  %v590_v14 = vcombine.low %v2709_v40, %v2713_v11  ;;  %v1229_v28 = vcombine.high %v1228_v33, %v1228_v33  ;;  %v1231_v46 = vshrl.u32 %v1228_v33, 16  ;;  %v2355_v40 = vld [vmem:[%s2964_s1 + $0x1f8] sm:$0xff]  }
  0x30   : > { %2149 = vmatpush3.bf16.msra.mxu0 %v2320_v35  ;;  %2164 = vmatprep.mubr.msk.bf16.mxu0 %vm2388_vm0, %v2387_v1  ;;  %v1234_v47 = vshll.u32 %v1228_v33, 16  ;;  %v975_v54 = vrot.slane %v2592_v3, 7 }
  0x31   : > { %v880_v58 = vcombine.low %v2633_v53, %v2638_v55  ;;  %2150 = vmatprep.subr.bf16.mxu0 %v2387_v1  ;;  %v2733_v23 = vrot.slane %v590_v14, %v2507_v26  ;;  %v1233_v35 = vrot.slane %v1231_v46, 6  ;;  %v2359_v14 = vld [vmem:[%s2964_s1 + $0x1e8] sm:$0xff]   ;;  %v2363_v55 = vld [vmem:[%s2964_s1 + $0x1d8] sm:$0xff]  }
  0x32   : > { %2171 = vmatpush3.bf16.msra.mxu1 %v2323_v45  ;;  %v2754_v45 = vrot.slane %v1121_v27, %v2507_v26  ;;  %v1236_v51 = vrot.slane %v1234_v47, 7  ;;  %v976_v3 = vsel %vm2685_vm14, %v1915_v42, %v975_v54  ;;  %v2358_v53 = vld [vmem:[%s2964_s1 + $0x1a8] sm:$0xff]   ;;  %v2369_v27 = vld [vmem:[%s2964_s1 + $0x1c0] sm:$0xff]   ;;  %v2371_v42 = vld [vmem:[%s2964_s1 + $0x238] sm:$0xff]  }
  0x33   : > { %2172 = vmatprep.subr.bf16.mxu1 %v2387_v1  ;;  %v605_v41 = vcombine.low %v597_v22, %v2733_v23  ;;  %v995_v30 = vcombine.low %v2713_v11, %v976_v3  ;;  %v2352_v11 = vld [vmem:[%s2964_s1 + $0x100] sm:$0xff]   ;;  %v2362_v22 = vld [vmem:[%s2964_s1 + $0x198] sm:$0xff]   ;;  %v2377_v46 = vld [vmem:[%s2964_s1 + $0x208] sm:$0xff]  }
  0x34   : > { %2151 = vmatpush3.bf16.msra.mxu0 %v2322_v56  ;;  %v1129_v48 = vcombine.low %v2543_v36, %v2754_v45  ;;  %v1988_v56 = vrot.slane %v1228_v33, 9  ;;  %v2366_v33 = vld [vmem:[%s2964_s1 + $0x188] sm:$0xff]   ;;  %v2374_v36 = vld [vmem:[%s2964_s1 + $0x220] sm:$0xff]   ;;  %v2375_v45 = vld [vmem:[%s2964_s1 + $0x218] sm:$0xff]  }
  0x35   : > { %2152 = vmatprep.subr.bf16.mxu0 %v2387_v1  ;;  %v1009_v19 = vrot.slane %v995_v30, %v2507_v26  ;;  %v2378_v47 = vld [vmem:[%s2964_s1 + $0x200] sm:$0xff]  }
  0x36   : > { %2173 = vmatpush3.bf16.msra.mxu1 %v2325_v52  ;;  %v1240_v52 = vshll.u32 %v1229_v28, 16 }
  0x37   : > { %2174 = vmatprep.subr.bf16.mxu1 %v2387_v1 }
  0x38   : > { %2153 = vmatpush3.bf16.msra.mxu0 %v2324_v59  ;;  %v1237_v59 = vor.u32 %v1236_v51, %v1233_v35 }
  0x39   : > { %2154 = vmatprep.subr.bf16.mxu0 %v2387_v1 }
  0x3a   : > { %2175 = vmatpush3.bf16.msra.mxu1 %v2327_v57  ;;  %v2345_v57 = vld [vmem:[%s2964_s1 + $0x160] sm:$0xff]  }
  0x3b   : > { %2176 = vmatprep.subr.bf16.mxu1 %v2387_v1 }
  0x3c   : > { %2155 = vmatpush3.bf16.msra.mxu0 %v2326_v61  ;;  %v1364_v61 = vrot.slane %v1229_v28, 7  ;;  %v2376_v28 = vld [vmem:[%s2964_s1 + $0x210] sm:$0xff]  }
  0x3d   : > { %2156 = vmatprep.subr.bf16.mxu0 %v2387_v1 }
  0x3e   : > { %2177 = vmatpush3.bf16.msra.mxu1 %v2329_v60  ;;  %v1242_v60 = vrot.slane %v1240_v52, 7  ;;  %v1365_v0 = vsel %vm2685_vm14, %v1988_v56, %v1364_v61 }
  0x3f   : > { %2178 = vmatprep.subr.bf16.mxu1 %v2387_v1  ;;  %v1383_v6 = vcombine.low %v976_v3, %v1365_v0 }
  0x40   : > { %2157 = vmatpush3.bf16.msra.mxu0 %v2328_v4  ;;  %v2347_v4 = vld [vmem:[%s2964_s1 + $0x158] sm:$0xff]  }
  0x41   : > { %2158 = vmatprep.subr.bf16.mxu0 %v2387_v1  ;;  %v2787_v8 = vrot.slane %v1383_v6, %v2507_v26 }
  0x42   : > { %2179 = vmatpush3.bf16.msra.mxu1 %v2331_v63  ;;  %v1238_v63 = vrot.slane %v1237_v59, 2 }
  0x43   : > { %2180 = vmatprep.subr.bf16.mxu1 %v2387_v1  ;;  %v1391_v37 = vcombine.low %v2733_v23, %v2787_v8 }
  0x44   : > { %2159 = vmatpush3.bf16.msra.mxu0 %v2330_v18  ;;  %v2351_v18 = vld [vmem:[%s2964_s1 + $0x148] sm:$0xff]  }
  0x45   : > { %2160 = vmatprep.subr.bf16.mxu0 %v2387_v1 }
  0x46   : > { %2181 = vmatpush3.bf16.msra.mxu1 %v2333_v5  ;;  %v1243_v5 = vsel %vm2584_vm7, %v1238_v63, %v1242_v60 }
  0x47   : > { %2182 = vmatprep.subr.bf16.mxu1 %v2387_v1  ;;  %v1261_v7 = vcombine.low %v2626_v50, %v1243_v5 }
  0x48   : > { %2161 = vmatpush3.bf16.msra.mxu0 %v2332_v12  ;;  %v2357_v12 = vld [vmem:[%s2964_s1 + $0x1f0] sm:$0xff]  }
  0x49   : > { %2162 = vmatprep.subr.bf16.mxu0 %v2387_v1  ;;  %v1268_v9 = vrot.slane %v1261_v7, %v2507_v26 }
  0x4a   : > { %2183 = vmatpush3.bf16.msra.mxu1 %v2335_v32 }
  0x4b   : > { %2208 = vmatprep.subr.bf16.mxu1 %v2387_v1  ;;  %v2801_v50 = vcombine.low %v2622_v49, %v1268_v9  ;;  %v1002_v49 = vrot.slane %v994_v10, %v2507_v26 }
  0x4c   : > { %2163 = vmatpush3.bf16.msra.mxu0 %v2334_v21  ;;  %v2365_v21 = vld [vmem:[%s2964_s1 + $0x1d0] sm:$0xff]  }
  0x4d   : > { %2185 = vmatmul.mubr.bf16.vlgmr.msra.gmra.mxu1 %v732_v15  ;;  %2188 = vmatprep.subr.bf16.mxu0 %v2387_v1  ;;  %v1010_v32 = vcombine.low %v1002_v49, %v1009_v19  ;;  %v2356_v15 = vld [vmem:[%s2964_s1 + $0x1b0] sm:$0xff]  }
  0x4e   : > { %2209 = vmatpush3.bf16.msra.mxu1 %v2339_v16  ;;  %2224 = vmatprep.mubr.msk.bf16.mxu1 %vm2388_vm0, %v2387_v1  ;;  %v2361_v16 = vld [vmem:[%s2964_s1 + $0x1e0] sm:$0xff]  }
  0x4f   : > { %2210 = vmatprep.subr.bf16.mxu1 %v2387_v1  ;;  %2165 = vmatmul.mubr.bf16.vlgmr.msra.gmra.mxu0 %v605_v41  ;;  %v2368_v41 = vld [vmem:[%s2964_s1 + $0x180] sm:$0xff]  }
  0x50   : > { %2189 = vmatpush3.bf16.msra.mxu0 %v2336_v43  ;;  %2204 = vmatprep.mubr.msk.bf16.mxu0 %vm2388_vm0, %v2387_v1  ;;  %v2372_v43 = vld [vmem:[%s2964_s1 + $0x230] sm:$0xff]  }
  0x51   : > { %2190 = vmatprep.subr.bf16.mxu0 %v2387_v1 }
  0x52   : > { %2211 = vmatpush3.bf16.msra.mxu1 %v2341_v24  ;;  %v2367_v24 = vld [vmem:[%s2964_s1 + $0x1c8] sm:$0xff]  }
  0x53   : > { %2212 = vmatprep.subr.bf16.mxu1 %v2387_v1 }
  0x54   : > { %2191 = vmatpush3.bf16.msra.mxu0 %v2340_v34 }
  0x55   : > { %2192 = vmatprep.subr.bf16.mxu0 %v2387_v1 }
  0x56   : > { %2213 = vmatpush3.bf16.msra.mxu1 %v2343_v44  ;;  %v2373_v44 = vld [vmem:[%s2964_s1 + $0x228] sm:$0xff]  }
  0x57   : > { %2214 = vmatprep.subr.bf16.mxu1 %v2387_v1 }
  0x58   : > { %2193 = vmatpush3.bf16.msra.mxu0 %v2342_v2 }
  0x59   : > { %2194 = vmatprep.subr.bf16.mxu0 %v2387_v1 }
  0x5a   : > { %2215 = vmatpush3.bf16.msra.mxu1 %v2345_v57 }
  0x5b   : > { %2216 = vmatprep.subr.bf16.mxu1 %v2387_v1 }
  0x5c   : > { %2195 = vmatpush3.bf16.msra.mxu0 %v2344_v29 }
  0x5d   : > { %2196 = vmatprep.subr.bf16.mxu0 %v2387_v1 }
  0x5e   : > { %2217 = vmatpush3.bf16.msra.mxu1 %v2347_v4 }
  0x5f   : > { %2218 = vmatprep.subr.bf16.mxu1 %v2387_v1 }
  0x60   : > { %2197 = vmatpush3.bf16.msra.mxu0 %v2346_v38 }
  0x61   : > { %2198 = vmatprep.subr.bf16.mxu0 %v2387_v1 }
  0x62   : > { %2219 = vmatpush3.bf16.msra.mxu1 %v2349_v62 }
  0x63   : > { %2220 = vmatprep.subr.bf16.mxu1 %v2387_v1 }
  0x64   : > { %2199 = vmatpush3.bf16.msra.mxu0 %v2348_v20 }
  0x65   : > { %2200 = vmatprep.subr.bf16.mxu0 %v2387_v1 }
  0x66   : > { %2221 = vmatpush3.bf16.msra.mxu1 %v2351_v18 }
  0x67   : > { %2222 = vmatprep.subr.bf16.mxu1 %v2387_v1 }
  0x68   : > { %2201 = vmatpush3.bf16.msra.mxu0 %v2350_v39 }
  0x69   : > { %2202 = vmatprep.subr.bf16.mxu0 %v2387_v1 }
  0x6a   : > { %2223 = vmatpush3.bf16.msra.mxu1 %v2353_v31 }
  0x6b   : > { %2248 = vmatprep.subr.bf16.mxu1 %v2387_v1 }
  0x6c   : > { %2203 = vmatpush3.bf16.msra.mxu0 %v2352_v11 }
  0x6d   : > { %2225 = vmatmul.mubr.bf16.vlgmr.msra.gmra.mxu1 %v1010_v32  ;;  %2228 = vmatprep.subr.bf16.mxu0 %v2387_v1 }
  0x6e   : > { %2249 = vmatpush3.bf16.msra.mxu1 %v2355_v40  ;;  %2264 = vmatprep.mubr.msk.bf16.mxu1 %vm2388_vm0, %v2387_v1 }
  0x6f   : > { %2250 = vmatprep.subr.bf16.mxu1 %v2387_v1  ;;  %2205 = vmatmul.mubr.bf16.vlgmr.msra.gmra.mxu0 %v880_v58  ;;  %v2360_v58 = vld [vmem:[%s2964_s1 + $0x1a0] sm:$0xff]  }
  0x70   : > { %2229 = vmatpush3.bf16.msra.mxu0 %v2354_v13  ;;  %2244 = vmatprep.mubr.msk.bf16.mxu0 %vm2388_vm0, %v2387_v1 }
  0x71   : > { %2230 = vmatprep.subr.bf16.mxu0 %v2387_v1 }
  0x72   : > { %2251 = vmatpush3.bf16.msra.mxu1 %v2357_v12 }
  0x73   : > { %2252 = vmatprep.subr.bf16.mxu1 %v2387_v1 }
  0x74   : > { %2231 = vmatpush3.bf16.msra.mxu0 %v2356_v15 }
  0x75   : > { %2232 = vmatprep.subr.bf16.mxu0 %v2387_v1 }
  0x76   : > { %2253 = vmatpush3.bf16.msra.mxu1 %v2359_v14 }
  0x77   : > { %2254 = vmatprep.subr.bf16.mxu1 %v2387_v1 }
  0x78   : > { %2233 = vmatpush3.bf16.msra.mxu0 %v2358_v53 }
  0x79   : > { %2234 = vmatprep.subr.bf16.mxu0 %v2387_v1 }
  0x7a   : > { %2255 = vmatpush3.bf16.msra.mxu1 %v2361_v16 }
  0x7b   : > { %2256 = vmatprep.subr.bf16.mxu1 %v2387_v1 }
  0x7c   : > { %2235 = vmatpush3.bf16.msra.mxu0 %v2360_v58  ;;  %v2013_v58 = vld [vmem:[%s2965_s2] ss:$0 sm:$0xff] }
  0x7d   : > { %2236 = vmatprep.subr.bf16.mxu0 %v2387_v1 }
  0x7e   : > { %2257 = vmatpush3.bf16.msra.mxu1 %v2363_v55 }
  0x7f   : > { %2258 = vmatprep.subr.bf16.mxu1 %v2387_v1 }
  0x80   : > { %2237 = vmatpush3.bf16.msra.mxu0 %v2362_v22  ;;  %v2014_v22 = vld [vmem:[%s2966_s3] ss:$0 sm:$0xff] }
  0x81   : > { %2238 = vmatprep.subr.bf16.mxu0 %v2387_v1 }
  0x82   : > { %2259 = vmatpush3.bf16.msra.mxu1 %v2365_v21 }
  0x83   : > { %2260 = vmatprep.subr.bf16.mxu1 %v2387_v1 }
  0x84   : > { %2239 = vmatpush3.bf16.msra.mxu0 %v2364_v25 }
  0x85   : > { %2240 = vmatprep.subr.bf16.mxu0 %v2387_v1 }
  0x86   : > { %2261 = vmatpush3.bf16.msra.mxu1 %v2367_v24 }
  0x87   : > { %2262 = vmatprep.subr.bf16.mxu1 %v2387_v1 }
  0x88   : > { %2241 = vmatpush3.bf16.msra.mxu0 %v2366_v33 }
  0x89   : > { %2242 = vmatprep.subr.bf16.mxu0 %v2387_v1 }
  0x8a   : > { %2263 = vmatpush3.bf16.msra.mxu1 %v2369_v27 }
  0x8c   : > { %2243 = vmatpush3.bf16.msra.mxu0 %v2368_v41 }
  0x8d   : > { %2265 = vmatmul.mubr.bf16.vlgmr.msra.gmra.mxu1 %v2801_v50  ;;  %2268 = vmatprep.subr.bf16.mxu0 %v2387_v1 }
  0x8f   : > { %2245 = vmatmul.mubr.bf16.vlgmr.msra.gmra.mxu0 %v1129_v48 }
  0x90   : > { %2269 = vmatpush3.bf16.msra.mxu0 %v2371_v42  ;;  %2284 = vmatprep.mubr.msk.bf16.mxu0 %vm2388_vm0, %v2387_v1 }
  0x91   : > { %2270 = vmatprep.subr.bf16.mxu0 %v2387_v1 }
  0x94   : > { %2271 = vmatpush3.bf16.msra.mxu0 %v2372_v43 }
  0x95   : > { %2272 = vmatprep.subr.bf16.mxu0 %v2387_v1 }
  0x98   : > { %2273 = vmatpush3.bf16.msra.mxu0 %v2373_v44 }
  0x99   : > { %2274 = vmatprep.subr.bf16.mxu0 %v2387_v1 }
  0x9c   : > { %2275 = vmatpush3.bf16.msra.mxu0 %v2374_v36 }
  0x9d   : > { %2276 = vmatprep.subr.bf16.mxu0 %v2387_v1 }
  0xa0   : > { %2277 = vmatpush3.bf16.msra.mxu0 %v2375_v45  ;;  %v2390_v45 = vmov 1966171168  }
  0xa1   : > { %2278 = vmatprep.subr.bf16.mxu0 %v2387_v1 }
  0xa4   : > { %2279 = vmatpush3.bf16.msra.mxu0 %v2376_v28  ;;  %v1593_v28 = vunpack.c.l.s4 %v2390_v45 }
  0xa5   : > { %2280 = vmatprep.subr.bf16.mxu0 %v2387_v1 }
  0xa8   : > { %2281 = vmatpush3.bf16.msra.mxu0 %v2377_v46 }
  0xa9   : > { %2282 = vmatprep.subr.bf16.mxu0 %v2387_v1 }
  0xac   : > { %2283 = vmatpush3.bf16.msra.mxu0 %v2378_v47 }
  0xaf   : > { %2285 = vmatmul.mubr.bf16.vlgmr.msra.gmra.mxu0 %v1391_v37 }
  0xed   : > { %v542_v34 = vpop.f32.mrf.mxu1 }
  0xef   : > { %v2146_v48 = vpop.f32.mrf.mxu1  ;;  %v435_v52 = vpop.f32.mrf.mxu0 }
  0xf0   : > { %v543_v54 = vadd.f32 %v542_v34, %v435_v52 }
  0xf1   : > { %v545_v35 = vpop.f32.mrf.mxu1  ;;  %v2126_v56 = vpop.f32.mrf.mxu0 }
  0xf3   : > { %v2147_v51 = vpop.f32.mrf.mxu1  ;;  %v438_v57 = vpop.f32.mrf.mxu0 }
  0xf4   : > { %v546_v59 = vadd.f32 %v545_v35, %v438_v57 }
  0xf5   : > { %v2127_v60 = vpop.f32.mrf.mxu0 }
  0xf6   : > { %v2391_v60 = vmov 1935823168  }
 0x10d   : > { %v816_v61 = vpop.f32.mrf.mxu1 }
 0x10f   : > { %v2186_v63 = vpop.f32.mrf.mxu1  ;;  %v689_v1 = vpop.f32.mrf.mxu0 }
 0x110   : > { %v696_v2 = vadd.f32 %v689_v1, %v543_v54  ;;  %v1594_v54 = vunpack.c.0.s8 %v1593_v28 }
 0x111   : > { %v819_v3 = vpop.f32.mrf.mxu1  ;;  %v2166_v4 = vpop.f32.mrf.mxu0 }
 0x112   : > { %v823_v5 = vadd.f32 %v816_v61, %v696_v2  ;;  %v1649_v61 = vunpack.c.l.s4 %v2391_v60  ;;  %v1597_v4 = vsub.s32 %v1594_v54, %v2484_v17 }
 0x113   : > { %v2187_v0 = vpop.f32.mrf.mxu1  ;;  %v692_v23 = vpop.f32.mrf.mxu0 }
 0x114   : > { %v697_v6 = vadd.f32 %v692_v23, %v546_v59 }
 0x115   : > { %v2167_v7 = vpop.f32.mrf.mxu0 }
 0x116   : > { %v824_v8 = vadd.f32 %v819_v3, %v697_v6 }
 0x12d   : > { %v1094_v9 = vpop.f32.mrf.mxu1 }
 0x12f   : > { %v2226_v29 = vpop.f32.mrf.mxu1  ;;  %v964_v50 = vpop.f32.mrf.mxu0 }
 0x130   : > { %v971_v10 = vadd.f32 %v964_v50, %v823_v5  ;;  %v1650_v29 = vunpack.c.0.s8 %v1649_v61 }
 0x131   : > { %v1097_v62 = vpop.f32.mrf.mxu1  ;;  %v2206_v30 = vpop.f32.mrf.mxu0 }
 0x132   : > { %v1101_v38 = vadd.f32 %v1094_v9, %v971_v10 }
 0x133   : > { %v2227_v37 = vpop.f32.mrf.mxu1  ;;  %v967_v18 = vpop.f32.mrf.mxu0 }
 0x134   : > { %v972_v49 = vadd.f32 %v967_v18, %v824_v8 }
 0x135   : > { %v2207_v19 = vpop.f32.mrf.mxu0 }
 0x136   : > { %v1102_v20 = vadd.f32 %v1097_v62, %v972_v49 }
 0x14d   : > { %v1353_v31 = vpop.f32.mrf.mxu1 }
 0x14f   : > { %v2266_v32 = vpop.f32.mrf.mxu1  ;;  %v1213_v11 = vpop.f32.mrf.mxu0 }
 0x150   : > { %v1220_v15 = vadd.f32 %v1213_v11, %v1101_v38 }
 0x151   : > { %v1356_v39 = vpop.f32.mrf.mxu1  ;;  %v2246_v12 = vpop.f32.mrf.mxu0 }
 0x152   : > { %v1360_v16 = vadd.f32 %v1353_v31, %v1220_v15  ;;  %v1653_v31 = vsub.s32 %v1650_v29, %v2484_v17 }
 0x153   : > { %v2267_v40 = vpop.f32.mrf.mxu1  ;;  %v1216_v13 = vpop.f32.mrf.mxu0 }
 0x154   : > { %v1221_v53 = vadd.f32 %v1216_v13, %v1102_v20 }
 0x155   : > { %v2247_v14 = vpop.f32.mrf.mxu0 }
 0x156   : > { %v1361_v25 = vadd.f32 %v1356_v39, %v1221_v53 }
 0x16f   : > { %v1475_v55 = vpop.f32.mrf.mxu0 }
 0x170   : > { %v1482_v21 = vadd.f32 %v1475_v55, %v1360_v16 }
 0x171   : > { %v2286_v24 = vpop.f32.mrf.mxu0 }
 0x172   : > { %v1491_v27 = vmul.f32 %v2013_v58, %v1482_v21 }
 0x173   : > { %v1478_v33 = vpop.f32.mrf.mxu0 }
 0x174   : > { %v1500_v41 = vadd.f32 %v2014_v22, %v1491_v27  ;;  %v1483_v42 = vadd.f32 %v1478_v33, %v1361_v25 }
 0x175   : > { %v2287_v43 = vpop.f32.mrf.mxu0 }
 0x176   : > { %v1502_v44 = vmax.f32 %v1500_v41, 0.0  ;;  %v1492_v36 = vmul.f32 %v2013_v58, %v1483_v42 }
 0x178   : > { %v1506_v46 = vcombine.high %v1502_v44, %v1502_v44  ;;  %v1513_v47 = vrot.slane %v1502_v44, %v2507_v26  ;;  %v1501_v34 = vadd.f32 %v2014_v22, %v1492_v36 }
 0x17a   : > { %v1520_v48 = vrot.slane %v1506_v46, %v2507_v26  ;;  %v1521_v35 = vcombine.high %v1513_v47, %v1513_v47  ;;  %v2015_v51 = vrot.slane %v1513_v47, 9  ;;  %v1503_v52 = vmax.f32 %v1501_v34, 0.0 }
 0x17c   : > { %v1522_v56 = vcombine.high %v1520_v48, %v1520_v48  ;;  %v2016_v57 = vrot.slane %v1521_v35, 9  ;;  %v2019_v59 = vrot.slane %v1520_v48, 9  ;;  %v1523_v63 = vcombine.high %v1503_v52, %v1503_v52 }
 0x17d   : > { %v1530_v3 = vrot.slane %v1503_v52, %v2507_v26  ;;  %v1560_v0 = vmax.f32 %v1513_v47, %v2015_v51 }
 0x17e   : > { %v2020_v1 = vrot.slane %v1522_v56, 9  ;;  %v1576_v2 = vmax.f32 %v1520_v48, %v2019_v59  ;;  %v1537_v5 = vrot.slane %v1523_v63, %v2507_v26  ;;  %v1561_v7 = vmax.f32 %v1521_v35, %v2016_v57 }
 0x17f   : > { %v1538_v23 = vcombine.high %v1530_v3, %v1530_v3  ;;  %v2017_v6 = vrot.slane %v1530_v3, 9 }
 0x180   : > { %v1577_v8 = vmax.f32 %v1522_v56, %v2020_v1  ;;  %v1580_v9 = vmax.f32 %v1560_v0, %v1576_v2  ;;  %v1539_v62 = vcombine.high %v1537_v5, %v1537_v5  ;;  %v2021_v50 = vrot.slane %v1537_v5, 9 }
 0x181   : > { %v2018_v37 = vrot.slane %v1538_v23, 9  ;;  %v1562_v38 = vmax.f32 %v1530_v3, %v2017_v6 }
 0x182   : > { %v1581_v10 = vmax.f32 %v1561_v7, %v1577_v8  ;;  %v1584_v30 = vpack.c.bf16 %v1580_v9, %v1580_v9  ;;  %v2022_v18 = vrot.slane %v1539_v62, 9  ;;  %v1578_v49 = vmax.f32 %v1537_v5, %v2021_v50 }
 0x183   : > { %v1563_v32 = vmax.f32 %v1538_v23, %v2018_v37 }
 0x184   : > { %v1585_v19 = vpack.c.bf16 %v1581_v10, %v1581_v10  ;;  %v1598_v20 = vrot.slane %v1584_v30, %v1597_v4  ;;  %v1579_v26 = vmax.f32 %v1539_v62, %v2022_v18  ;;  %v1582_v39 = vmax.f32 %v1562_v38, %v1578_v49 }
 0x186   : > { %v1605_v40 = vrot.slane %v1598_v20, %v1597_v4  ;;  %v1612_v11 = vrot.slane %v1585_v19, %v1597_v4  ;;  %v1583_v12 = vmax.f32 %v1563_v32, %v1579_v26  ;;  %v1586_v13 = vpack.c.bf16 %v1582_v39, %v1582_v39 }
 0x188   : > { %v1619_v14 = vrot.slane %v1612_v11, %v1597_v4  ;;  %v1654_v15 = vrot.slane %v1605_v40, %v1653_v31  ;;  %v1587_v16 = vpack.c.bf16 %v1583_v12, %v1583_v12  ;;  %v1626_v53 = vrot.slane %v1586_v13, %v1597_v4 }
 0x18a   : > { %v1668_v55 = vrot.slane %v1619_v14, %v1653_v31  ;;  %v1633_v58 = vrot.slane %v1626_v53, %v1597_v4  ;;  %v1640_v21 = vrot.slane %v1587_v16, %v1597_v4  ;;  %v1661_v22 = vrot.slane %v1654_v15, %v1653_v31 }
 0x18c   : > { %v1675_v24 = vrot.slane %v1668_v55, %v1653_v31  ;;  %v1647_v25 = vrot.slane %v1640_v21, %v1597_v4  ;;  %v1682_v27 = vrot.slane %v1633_v58, %v1653_v31  ;;  %v1704_v41 = vunpack.c.l.b16 %v1661_v22 }
 0x18e   : > { %v1705_v17 = vunpack.c.l.b16 %v1675_v24  ;;  %v1696_v33 = vrot.slane %v1647_v25, %v1653_v31  ;;  %v1689_v43 = vrot.slane %v1682_v27, %v1653_v31 }
 0x190   : > { %v1708_v42 = vrot.slane %v1705_v17, 7  ;;  %v1703_v44 = vrot.slane %v1696_v33, %v1653_v31  ;;  %v1706_v47 = vunpack.c.l.b16 %v1689_v43 }
 0x192   : > { %v1710_v36 = vsel %vm1709_vm15, %v1708_v42, %v1704_v41  ;;  %v1707_v28 = vunpack.c.l.b16 %v1703_v44 }
 0x193   : > { %v1713_v45 = vpack.c.b16 %v1710_v36, %v1710_v36 }
 0x194   : > { %v1711_v34 = vrot.slane %v1707_v28, 7 }
 0x195   : > { %v1721_v46 = vrot.slane %v1713_v45, %v1597_v4 }
 0x196   : > { %v1712_v48 = vsel %vm1709_vm15, %v1711_v34, %v1706_v47 }
 0x197   : > { %2023 = vst.sshfl [vmem:[%s195_s29] sm:$0x1 pattern:$0x73625140] %v1721_v46  ;;  %v1714_v35 = vpack.c.b16 %v1712_v48, %v1712_v48 }
 0x199   : > { %v1735_v51 = vrot.slane %v1714_v35, %v1597_v4 }
 0x19b   : > { %2024 = vst.sshfl [vmem:[%s195_s29 + $0x1] sm:$0x1 pattern:$0x73625140] %v1735_v51 }
 0x19c PF: > { %s14_s15 = sadd.s32 1, %s2385_s15  }
 0x19d   : > { %p11_p4 = scmp.ge.s32.totalorder %s14_s15, 4  }
 0x19f   :  { %13 = sbr.rel (!%p11_p4) target bundleno = 1 (0x1), region = 74 }

// kernel: net_forward.5
= control target key start
LH: loop header
LB: loop body
LE: loop exit
PB: predicated region body
PF: predicated region fallthrough
CT: control target
= control target key end

     0   :  { %s3075_s15 = smov 0   ;;  %s3788_s0 = inlined_call_operand.vmem [shape: bf16[2,10,10,128], index: 0, kind: input, shape index: {}]   ;;  %s3789_s1 = inlined_call_operand.vmem [shape: bf16[9,128,128], index: 1, kind: input, shape index: {}]   ;;  %s3790_s2 = inlined_call_operand.vmem [shape: f32[1,128], index: 2, kind: input, shape index: {}]   ;;  %s3791_s3 = inlined_call_operand.vmem [shape: f32[1,128], index: 3, kind: input, shape index: {}]   ;;  %s3792_s4 = inlined_call_operand.vmem [shape: bf16[2,6,6,128], index: 4, kind: output, shape index: {}]  }
   0x1 LB: > { %s2287_s16 = sadd.s32 4294967295, %s3046_s15   ;;  %p2291_p0 = scmp.ge.s32.totalorder %s3046_s15, 1  ;;  %s3046_s15 = sphi %s3075_s15, %s14_s15  }
   0x2   : > { %p162_p1 = scmp.lt.s32.totalorder %s3046_s15, 3 }
   0x4   : > { %p163_p2 = pnand %p2291_p0, %p162_p1 }
   0x6   : > { %166 = sbr.rel (%p163_p2) target bundleno = 429 (0x1ad), region = 36 }
   0xb   : > { %v2959_v0 = vld [vmem:[%s3789_s1 + $0x78] sm:$0xff]   ;;  %p188_p3 = scmp.lt.s32.totalorder %s2287_s16, 1  ;;  %v2961_v2 = vld [vmem:[%s3789_s1 + $0x70] sm:$0xff]   ;;  %v2963_v4 = vld [vmem:[%s3789_s1 + $0x68] sm:$0xff]   ;;  %vm235_vm0 = vsmask.f32 3328 }
   0xc   : > { %v2960_v1 = vld [vmem:[%s3789_s1 + $0x38] sm:$0xff]   ;;  %2715 = vmatprep.subr.bf16.mxu0 %v2959_v0  ;;  %v2962_v3 = vld [vmem:[%s3789_s1 + $0x30] sm:$0xff]   ;;  %v2964_v5 = vld [vmem:[%s3789_s1 + $0x28] sm:$0xff]   ;;  %vm236_vm1 = vsmask.f32 7440  ;;  %vm641_vm3 = vcmask 1042432  }
   0xd   : > { %2739 = vmatprep.subr.bf16.mxu1 %v2960_v1  ;;  %2716 = vmatpush3.bf16.msra.mxu0 %v2959_v0  ;;  %s3806_s16 = smov (!%p188_p3, %s2287_s16), 1  ;;  %v2965_v6 = vld [vmem:[%s3789_s1 + $0x60] sm:$0xff]   ;;  %v2967_v8 = vld [vmem:[%s3789_s1 + $0x58] sm:$0xff]   ;;  %v2969_v10 = vld [vmem:[%s3789_s1 + $0x50] sm:$0xff]   ;;  %vm642_vm4 = vcmask 1046532   ;;  %vm2180_vm6 = vcmask 1042434  }
   0xe   : > { %2740 = vmatpush3.bf16.msra.mxu1 %v2960_v1  ;;  %2717 = vmatprep.subr.bf16.mxu0 %v2961_v2  ;;  %v2966_v7 = vld [vmem:[%s3789_s1 + $0x20] sm:$0xff]   ;;  %s2947_s7 = smul.u32 80, %s3806_s16  ;;  %v2968_v9 = vld [vmem:[%s3789_s1 + $0x18] sm:$0xff]   ;;  %v2970_v14 = vld [vmem:[%s3789_s1 + $0x10] sm:$0xff]   ;;  %vm2183_vm7 = vcmask 1043459   ;;  %vm2186_vm9 = vcmask 1044484  }
   0xf   : > { %2741 = vmatprep.subr.bf16.mxu1 %v2962_v3  ;;  %v2971_v18 = vld [vmem:[%s3789_s1 + $0x48] sm:$0xff]   ;;  %vm3169_vm2 = vmor %vm235_vm0, %vm236_vm1  ;;  %v2973_v43 = vld [vmem:[%s3789_s1 + $0x40] sm:$0xff]   ;;  %s2948_s23 = smul.u32 24, %s3806_s16  ;;  %vm2218_vm8 = vsmask.f32 2306 }
  0x10   : > { %s3119_s14 = scalar_lea.vmem %s3788_s0, %s2947_s7  ;;  %v2972_v21 = vld [vmem:[%s3789_s1 + $0x8] sm:$0xff]   ;;  %v2974_v47 = vld [vmem:[%s3789_s1] sm:$0xff]   ;;  %v2977_v57 = vld [vmem:[%s3789_s1 + $0xb8] sm:$0xff]  }
  0x11   : > { %2718 = vmatpush3.bf16.msra.mxu0 %v2961_v2  ;;  %v3125_v11 = vld [vmem:[%s3119_s14] sm:$0xf]  ;;  %v3128_v12 = vld [vmem:[%s3119_s14 + $0x4] sm:$0x1]  ;;  %v3131_v13 = vld [vmem:[%s3119_s14 + $0x8] sm:$0xf]  ;;  %s3617_s26 = scalar_lea.vmem %s3792_s4, %s2948_s23 }
  0x12   : > { %2742 = vmatpush3.bf16.msra.mxu1 %v2962_v3  ;;  %2719 = vmatprep.subr.bf16.mxu0 %v2963_v4  ;;  %v3137_v15 = vld [vmem:[%s3119_s14 + $0xc] sm:$0x1]  ;;  %v3140_v16 = vld [vmem:[%s3119_s14 + $0x10] sm:$0xf]  ;;  %v2322_v17 = vcombine.low %v3125_v11, %v3131_v13  ;;  %v239_v19 = vshrl.u32 %v3125_v11, 16  ;;  %v242_v20 = vshll.u32 %v3125_v11, 16  ;;  %vm3279_vm5 = vmor %vm641_vm3, %vm642_vm4 }
  0x13   : > { %2743 = vmatprep.subr.bf16.mxu1 %v2964_v5  ;;  %v3153_v22 = vld [vmem:[%s3119_s14 + $0x14] sm:$0x1]  ;;  %v248_v23 = vshll.u32 %v3128_v12, 16  ;;  %v253_v24 = vshrl.u32 %v3131_v13, 16  ;;  %v256_v25 = vshll.u32 %v3131_v13, 16  ;;  %v262_v26 = vshll.u32 %v3137_v15, 16  ;;  %vm3745_vm10 = vmand %vm641_vm3, %vm2218_vm8 }
  0x14   : > { %2755 = vmatprep.mubr.bf16.mxu1 %v2322_v17  ;;  %v241_v27 = vrot.slane %v239_v19, 4  ;;  %v244_v28 = vrot.slane %v242_v20, 5  ;;  %v267_v29 = vshrl.u32 %v3140_v16, 16  ;;  %v270_v30 = vshll.u32 %v3140_v16, 16  ;;  %v3162_v31 = vld [vmem:[%s3119_s14 + $0x18] sm:$0xf] }
  0x15   : > { %2720 = vmatpush3.bf16.msra.mxu0 %v2963_v4  ;;  %v255_v32 = vrot.slane %v253_v24, 4  ;;  %v258_v33 = vrot.slane %v256_v25, 5  ;;  %v3165_v34 = vld [vmem:[%s3119_s14 + $0x1c] sm:$0x1]  ;;  %v250_v36 = vrot.slane %v248_v23, 5  ;;  %v264_v41 = vrot.slane %v262_v26, 5 }
  0x16   : > { %2744 = vmatpush3.bf16.msra.mxu1 %v2964_v5  ;;  %2721 = vmatprep.subr.bf16.mxu0 %v2965_v6  ;;  %v245_v35 = vor.u32 %v244_v28, %v241_v27  ;;  %v269_v37 = vrot.slane %v267_v29, 4  ;;  %v272_v38 = vrot.slane %v270_v30, 5  ;;  %v276_v42 = vshll.u32 %v3153_v22, 16  ;;  %v2978_v61 = vld [vmem:[%s3789_s1 + $0xf8] sm:$0xff]   ;;  %v2979_v3 = vld [vmem:[%s3789_s1 + $0xb0] sm:$0xff]   ;;  %v2981_v25 = vld [vmem:[%s3789_s1 + $0xa8] sm:$0xff]  }
  0x17   : > { %2745 = vmatprep.subr.bf16.mxu1 %v2966_v7  ;;  %v259_v40 = vor.u32 %v258_v33, %v255_v32  ;;  %v281_v46 = vshrl.u32 %v3162_v31, 16  ;;  %v284_v49 = vshll.u32 %v3162_v31, 16  ;;  %v290_v50 = vshll.u32 %v3165_v34, 16  ;;  %v2980_v4 = vld [vmem:[%s3789_s1 + $0xf0] sm:$0xff]   ;;  %v3232_v17 = vld [vmem:[%s3119_s14 + $0x2c] sm:$0x1] }
  0x18   : > { %v246_v44 = vrot.slane %v245_v35, 4  ;;  %v273_v45 = vor.u32 %v272_v38, %v269_v37  ;;  %v278_v55 = vrot.slane %v276_v42, 5  ;;  %v646_v63 = vrot.slane %v3128_v12, 5  ;;  %v3243_v24 = vld [vmem:[%s3119_s14 + $0x30] sm:$0xf]  ;;  %v3011_v39 = vld [vmem:[%s3789_s1 + $0x108] sm:$0xff]  }
  0x19   : > { %2722 = vmatpush3.bf16.msra.mxu0 %v2965_v6  ;;  %v260_v48 = vrot.slane %v259_v40, 4  ;;  %v283_v52 = vrot.slane %v281_v46, 4  ;;  %v286_v56 = vrot.slane %v284_v49, 5  ;;  %v292_v60 = vrot.slane %v290_v50, 5  ;;  %v3217_v6 = vld [vmem:[%s3119_s14 + $0x20] sm:$0xf] }
  0x1a   : > { %2746 = vmatpush3.bf16.msra.mxu1 %v2966_v7  ;;  %2723 = vmatprep.subr.bf16.mxu0 %v2967_v8  ;;  %v251_v51 = vsel %vm3169_vm2, %v246_v44, %v250_v36  ;;  %v274_v54 = vrot.slane %v273_v45, 4  ;;  %v3203_v1 = vcombine.low %v3140_v16, %v3162_v31  ;;  %v650_v2 = vrot.slane %v3137_v15, 5  ;;  %v3256_v29 = vld [vmem:[%s3119_s14 + $0x34] sm:$0x1]  ;;  %v3259_v30 = vld [vmem:[%s3119_s14 + $0x38] sm:$0xf] }
  0x1b   : > { %2747 = vmatprep.subr.bf16.mxu1 %v2968_v9  ;;  %v3187_v53 = vsel %vm3169_vm2, %v260_v48, %v264_v41  ;;  %v287_v59 = vor.u32 %v286_v56, %v283_v52  ;;  %v2334_v7 = vrot.slane %v3125_v11, 9  ;;  %v295_v19 = vshrl.u32 %v3217_v6, 16  ;;  %v3262_v37 = vld [vmem:[%s3119_s14 + $0x3c] sm:$0x1]  ;;  %v2984_v52 = vld [vmem:[%s3789_s1 + $0xe0] sm:$0xff]  }
  0x1c   : > { %v2310_v58 = vcombine.low %v251_v51, %v3187_v53  ;;  %v3198_v62 = vsel %vm3169_vm2, %v274_v54, %v278_v55  ;;  %v298_v20 = vshll.u32 %v3217_v6, 16  ;;  %v318_v27 = vshll.u32 %v3232_v17, 16 }
  0x1d   : > { %2724 = vmatpush3.bf16.msra.mxu0 %v2967_v8  ;;  %v288_v0 = vrot.slane %v287_v59, 4  ;;  %v2335_v8 = vrot.slane %v3131_v13, 9  ;;  %v297_v32 = vrot.slane %v295_v19, 4  ;;  %v323_v41 = vshrl.u32 %v3243_v24, 16 }
  0x1e   : > { %2748 = vmatpush3.bf16.msra.mxu1 %v2968_v9  ;;  %2725 = vmatprep.subr.bf16.mxu0 %v2969_v10  ;;  %v300_v33 = vrot.slane %v298_v20, 5  ;;  %v320_v40 = vrot.slane %v318_v27, 5  ;;  %v326_v42 = vshll.u32 %v3243_v24, 16  ;;  %v332_v44 = vshll.u32 %v3256_v29, 16 }
  0x1f   : > { %2749 = vmatprep.subr.bf16.mxu1 %v2970_v14  ;;  %2731 = vmatprep.mubr.bf16.mxu0 %v2310_v58  ;;  %v3214_v5 = vsel %vm3169_vm2, %v288_v0, %v292_v60  ;;  %v337_v45 = vshrl.u32 %v3259_v30, 16  ;;  %v340_v46 = vshll.u32 %v3259_v30, 16  ;;  %v325_v49 = vrot.slane %v323_v41, 4 }
  0x20   : > { %v3223_v9 = vcombine.low %v3198_v62, %v3214_v5  ;;  %v328_v50 = vrot.slane %v326_v42, 5  ;;  %v346_v51 = vshll.u32 %v3262_v37, 16  ;;  %v334_v60 = vrot.slane %v332_v44, 5  ;;  %v2993_v42 = vld [vmem:[%s3789_s1 + $0x80] sm:$0xff]  }
  0x21   : > { %2726 = vmatpush3.bf16.msra.mxu0 %v2969_v10  ;;  %v3226_v10 = vld [vmem:[%s3119_s14 + $0x24] sm:$0x1]  ;;  %v339_v55 = vrot.slane %v337_v45, 4  ;;  %v342_v56 = vrot.slane %v340_v46, 5  ;;  %v2386_v19 = vcombine.low %v3131_v13, %v3140_v16  ;;  %v2985_v13 = vld [vmem:[%s3789_s1 + $0x98] sm:$0xff]   ;;  %v654_v27 = vrot.slane %v3153_v22, 5 }
  0x22   : > { %2750 = vmatpush3.bf16.msra.mxu1 %v2970_v14  ;;  %2727 = vmatprep.subr.bf16.mxu0 %v2971_v18  ;;  %v3229_v14 = vld [vmem:[%s3119_s14 + $0x28] sm:$0xf]  ;;  %v329_v59 = vor.u32 %v328_v50, %v325_v49  ;;  %v2338_v41 = vrot.slane %v3217_v6, 9  ;;  %v666_v45 = vrot.slane %v3232_v17, 5  ;;  %v2387_v17 = vcombine.low %v3162_v31, %v3217_v6  ;;  %v2997_v50 = vld [vmem:[%s3789_s1 + $0x138] sm:$0xff]  }
  0x23   : > { %2751 = vmatprep.subr.bf16.mxu1 %v2972_v21  ;;  %v309_v23 = vshrl.u32 %v3229_v14, 16  ;;  %v312_v26 = vshll.u32 %v3229_v14, 16  ;;  %v3253_v28 = vcombine.low %v3217_v6, %v3229_v14  ;;  %v2339_v44 = vrot.slane %v3229_v14, 9 }
  0x24   : > { %v2341_v6 = vrot.slane %v3259_v30, 9 }
  0x25   : > { %2728 = vmatpush3.bf16.msra.mxu0 %v2971_v18  ;;  %v2982_v18 = vld [vmem:[%s3789_s1 + $0xe8] sm:$0xff]   ;;  %v311_v36 = vrot.slane %v309_v23, 4  ;;  %v314_v38 = vrot.slane %v312_v26, 5  ;;  %v647_v23 = vsel %vm3279_vm5, %v2334_v7, %v646_v63  ;;  %v3309_v26 = vsel %vm3279_vm5, %v2335_v8, %v650_v2  ;;  %v2990_v8 = vld [vmem:[%s3789_s1 + $0xd0] sm:$0xff]  }
  0x26   : > { %2752 = vmatpush3.bf16.msra.mxu1 %v2972_v21  ;;  %2729 = vmatprep.subr.bf16.mxu0 %v2973_v43  ;;  %v304_v21 = vshll.u32 %v3226_v10, 16  ;;  %v2358_v2 = vcombine.low %v647_v23, %v3309_v26 }
  0x27   : > { %2753 = vmatprep.subr.bf16.mxu1 %v2974_v47  ;;  %v315_v48 = vor.u32 %v314_v38, %v311_v36  ;;  %v2991_v36 = vld [vmem:[%s3789_s1 + $0x88] sm:$0xff]   ;;  %v2337_v38 = vrot.slane %v3162_v31, 9 }
  0x28   : > { %v306_v35 = vrot.slane %v304_v21, 5  ;;  %v330_v21 = vrot.slane %v329_v59, 4  ;;  %v3000_v59 = vld [vmem:[%s3789_s1 + $0x170] sm:$0xff]  }
  0x29   : > { %2730 = vmatpush3.bf16.msra.mxu0 %v2973_v43  ;;  %v301_v43 = vor.u32 %v300_v33, %v297_v32  ;;  %v316_v58 = vrot.slane %v315_v48, 4  ;;  %v658_v32 = vrot.slane %v3165_v34, 5  ;;  %v2992_v33 = vld [vmem:[%s3789_s1 + $0xc8] sm:$0xff]  }
  0x2a   : > { %2754 = vmatpush3.bf16.msra.mxu1 %v2974_v47  ;;  %2763 = vmatprep.subr.bf16.mxu0 %v2977_v57  ;;  %v2983_v47 = vld [vmem:[%s3789_s1 + $0xa0] sm:$0xff]   ;;  %v3323_v15 = vsel %vm3169_vm2, %v330_v21, %v334_v60 }
  0x2b   : > { %2787 = vmatprep.subr.bf16.mxu1 %v2978_v61  ;;  %v302_v54 = vrot.slane %v301_v43, 4  ;;  %v3295_v20 = vsel %vm3169_vm2, %v316_v58, %v320_v40  ;;  %v3354_v40 = vld [vmem:[%s3119_s14 + $0x40] sm:$0xf]  ;;  %v662_v43 = vrot.slane %v3226_v10, 5  ;;  %v3374_v49 = vsel %vm3279_vm5, %v2337_v38, %v658_v32  ;;  %v2998_v10 = vld [vmem:[%s3789_s1 + $0x178] sm:$0xff]  }
  0x2c   : > { %2732 = vmatmul.mubr.bf16.vlgmr.msra.gmra.mxu0 %v3223_v9  ;;  %v979_v22 = vshrl.u32 %v3354_v40, 16  ;;  %v982_v34 = vshll.u32 %v3354_v40, 16 }
  0x2d   : > { %2756 = vmatmul.mubr.bf16.vlgmr.msra.gmra.mxu1 %v3203_v1  ;;  %2764 = vmatpush3.bf16.msra.mxu0 %v2977_v57  ;;  %v3289_v0 = vsel %vm3169_vm2, %v302_v54, %v306_v35  ;;  %v2336_v35 = vrot.slane %v3140_v16, 9  ;;  %v2994_v16 = vld [vmem:[%s3789_s1 + $0xc0] sm:$0xff]   ;;  %v2340_v54 = vrot.slane %v3243_v24, 9 }
  0x2e   : > { %2788 = vmatpush3.bf16.msra.mxu1 %v2978_v61  ;;  %2765 = vmatprep.subr.bf16.mxu0 %v2979_v3  ;;  %v3285_v61 = vcombine.low %v3243_v24, %v3259_v30  ;;  %v3316_v11 = vcombine.low %v3289_v0, %v3295_v20  ;;  %v981_v46 = vrot.slane %v979_v22, 4  ;;  %v3005_v57 = vld [vmem:[%s3789_s1 + $0x120] sm:$0xff]  }
  0x2f   : > { %2789 = vmatprep.subr.bf16.mxu1 %v2980_v4  ;;  %2759 = vmatprep.mubr.bf16.mxu1 %v3253_v28  ;;  %v3370_v48 = vsel %vm3279_vm5, %v2336_v35, %v654_v27  ;;  %v2389_v35 = vcombine.low %v3259_v30, %v3354_v40  ;;  %v3006_v30 = vld [vmem:[%s3789_s1 + $0x160] sm:$0xff]  }
  0x30   : > { %2735 = vmatprep.mubr.bf16.mxu0 %v3316_v11  ;;  %v3396_v31 = vcombine.low %v3370_v48, %v3374_v49 }
  0x31   : > { %2766 = vmatpush3.bf16.msra.mxu0 %v2979_v3  ;;  %v343_v3 = vor.u32 %v342_v56, %v339_v55  ;;  %v670_v55 = vrot.slane %v3256_v29, 5  ;;  %v674_v56 = vrot.slane %v3262_v37, 5  ;;  %v2999_v29 = vld [vmem:[%s3789_s1 + $0x130] sm:$0xff]   ;;  %v2426_v37 = vrot.slane %v3354_v40, 9 }
  0x32   : > { %2790 = vmatpush3.bf16.msra.mxu1 %v2980_v4  ;;  %2767 = vmatprep.subr.bf16.mxu0 %v2981_v25  ;;  %v348_v4 = vrot.slane %v346_v51, 5  ;;  %v3386_v51 = vsel %vm3279_vm5, %v2338_v41, %v662_v43 }
  0x33   : > { %2791 = vmatprep.subr.bf16.mxu1 %v2982_v18  ;;  %v344_v12 = vrot.slane %v343_v3, 4  ;;  %v2388_v3 = vcombine.low %v3229_v14, %v3243_v24  ;;  %v3421_v21 = vsel %vm3279_vm5, %v2341_v6, %v674_v56  ;;  %v3002_v14 = vld [vmem:[%s3789_s1 + $0x168] sm:$0xff]   ;;  %v3014_v6 = vld [vmem:[%s3789_s1 + $0x140] sm:$0xff]  }
  0x34   : > { %v3427_v24 = vld [vmem:[%s3119_s14 + $0x48] sm:$0xf]  ;;  %v3013_v56 = vld [vmem:[%s3789_s1 + $0x100] sm:$0xff]  }
  0x35   : > { %2768 = vmatpush3.bf16.msra.mxu0 %v2981_v25  ;;  %2760 = vmatmul.mubr.bf16.gmra.mxu1 %v3285_v61  ;;  %v3329_v63 = vsel %vm3169_vm2, %v344_v12, %v348_v4  ;;  %v2989_v25 = vld [vmem:[%s3789_s1 + $0x90] sm:$0xff]   ;;  %v216_v4 = vld [vmem:[%s3119_s14 + $0x44] sm:$0x1]  ;;  %v218_v12 = vld [vmem:[%s3119_s14 + $0x4c] sm:$0x1]  ;;  %v2471_v32 = vcombine.low %v3354_v40, %v3427_v24  ;;  %v1437_v41 = vshll.u32 %v3427_v24, 16 }
  0x36   : > { %2792 = vmatpush3.bf16.msra.mxu1 %v2982_v18  ;;  %v2986_v18 = vld [vmem:[%s3789_s1 + $0xd8] sm:$0xff]   ;;  %2769 = vmatprep.subr.bf16.mxu0 %v2983_v47  ;;  %v3334_v7 = vcombine.low %v3323_v15, %v3329_v63  ;;  %v1591_v27 = vrot.slane %v218_v12, 5  ;;  %v3039_v40 = vld [vmem:[%s3789_s1 + $0x200] sm:$0xff]  }
  0x37   : > { %2793 = vmatprep.subr.bf16.mxu1 %v2984_v52  ;;  %2803 = vmatprep.mubr.bf16.mxu1 %v2386_v19  ;;  %v3417_v19 = vsel %vm3279_vm5, %v2340_v54, %v670_v55  ;;  %v3012_v55 = vld [vmem:[%s3789_s1 + $0x148] sm:$0xff]  }
  0x38   : > { %2736 = vmatmul.mubr.bf16.gmra.mxu0 %v3334_v7 }
  0x39   : > { %2770 = vmatpush3.bf16.msra.mxu0 %v2983_v47  ;;  %2779 = vmatprep.mubr.bf16.mxu0 %v2358_v2  ;;  %v984_v47 = vrot.slane %v982_v34, 5  ;;  %v3001_v2 = vld [vmem:[%s3789_s1 + $0x128] sm:$0xff]   ;;  %v1434_v34 = vshrl.u32 %v3427_v24, 16 }
  0x3a   : > { %2794 = vmatpush3.bf16.msra.mxu1 %v2984_v52  ;;  %2771 = vmatprep.subr.bf16.mxu0 %v2985_v13  ;;  %v3390_v52 = vsel %vm3279_vm5, %v2339_v44, %v666_v45  ;;  %v2443_v44 = vcombine.low %v3309_v26, %v3370_v48  ;;  %v1439_v45 = vrot.slane %v1437_v41, 5  ;;  %v3010_v48 = vld [vmem:[%s3789_s1 + $0x150] sm:$0xff]   ;;  %v3048_v41 = vmov 0  }
  0x3b   : > { %2795 = vmatprep.subr.bf16.mxu1 %v2986_v18  ;;  %v985_v58 = vor.u32 %v984_v47, %v981_v46  ;;  %v3408_v60 = vcombine.low %v3386_v51, %v3390_v52  ;;  %v1436_v43 = vrot.slane %v1434_v34, 4  ;;  %v1443_v46 = vshll.u32 %v218_v12, 16  ;;  %v3007_v47 = vld [vmem:[%s3789_s1 + $0x118] sm:$0xff]   ;;  %v3029_v12 = vld [vmem:[%s3789_s1 + $0x180] sm:$0xff]   ;;  %2108 = vst [vmem:[%s3617_s26] sm:$0x7] %v3048_v41 }
  0x3c   : > { %2110 = vst [vmem:[%s3617_s26 + $0x8] sm:$0x7] %v3048_v41  ;;  %2113 = vst [vmem:[%s3617_s26 + $0x14] sm:$0x7] %v3048_v41 }
  0x3d   : > { %2772 = vmatpush3.bf16.msra.mxu0 %v2985_v13  ;;  %v986_v23 = vrot.slane %v985_v58, 4  ;;  %v1142_v13 = vrot.slane %v216_v4, 5  ;;  %v3016_v58 = vld [vmem:[%s3789_s1 + $0x1f8] sm:$0xff]   ;;  %2109 = vst [vmem:[%s3617_s26 + $0x4] sm:$0x7] %v3048_v41 }
  0x3e   : > { %2796 = vmatpush3.bf16.msra.mxu1 %v2986_v18  ;;  %2773 = vmatprep.subr.bf16.mxu0 %v2989_v25  ;;  %v988_v18 = vshll.u32 %v216_v4, 16  ;;  %v3017_v4 = vld [vmem:[%s3789_s1 + $0x1b0] sm:$0xff]   ;;  %2111 = vst [vmem:[%s3617_s26 + $0xc] sm:$0x7] %v3048_v41  ;;  %2112 = vst [vmem:[%s3617_s26 + $0x10] sm:$0x7] %v3048_v41 }
  0x3f   : > { %2797 = vmatprep.subr.bf16.mxu1 %v2990_v8  ;;  %v3449_v38 = vsel %vm3279_vm5, %v2426_v37, %v1142_v13  ;;  %v2415_v37 = vcombine.low %v3214_v5, %v3289_v0  ;;  %v3020_v5 = vld [vmem:[%s3789_s1 + $0x1e8] sm:$0xff]   ;;  %v3031_v13 = vld [vmem:[%s3789_s1 + $0x238] sm:$0xff]  }
  0x40   : > { %v3019_v0 = vld [vmem:[%s3789_s1 + $0x1a8] sm:$0xff]  }
  0x41   : > { %2774 = vmatpush3.bf16.msra.mxu0 %v2989_v25  ;;  %v2505_v25 = vrot.slane %v3427_v24, 9 }
  0x42   : > { %2798 = vmatpush3.bf16.msra.mxu1 %v2990_v8  ;;  %2775 = vmatprep.subr.bf16.mxu0 %v2991_v36  ;;  %v990_v8 = vrot.slane %v988_v18, 5  ;;  %v3025_v18 = vld [vmem:[%s3789_s1 + $0x190] sm:$0xff]  }
  0x43   : > { %2799 = vmatprep.subr.bf16.mxu1 %v2992_v33  ;;  %v3453_v22 = vsel %vm3279_vm5, %v2505_v25, %v1591_v27 }
  0x45   : > { %2776 = vmatpush3.bf16.msra.mxu0 %v2991_v36  ;;  %v3445_v36 = vsel %vm3169_vm2, %v986_v23, %v990_v8  ;;  %v2416_v23 = vcombine.low %v3295_v20, %v3323_v15  ;;  %v2446_v20 = vcombine.low %v3421_v21, %v3449_v38  ;;  %v3034_v8 = vld [vmem:[%s3789_s1 + $0x228] sm:$0xff]  }
  0x46   : > { %2800 = vmatpush3.bf16.msra.mxu1 %v2992_v33  ;;  %2777 = vmatprep.subr.bf16.mxu0 %v2993_v42  ;;  %v3439_v33 = vcombine.low %v3417_v19, %v3421_v21  ;;  %v2417_v15 = vcombine.low %v3329_v63, %v3445_v36  ;;  %v3024_v63 = vld [vmem:[%s3789_s1 + $0x1d8] sm:$0xff]   ;;  %v3026_v21 = vld [vmem:[%s3789_s1 + $0x1d0] sm:$0xff]  }
  0x47   : > { %2801 = vmatprep.subr.bf16.mxu1 %v2994_v16 }
  0x49   : > { %2778 = vmatpush3.bf16.msra.mxu0 %v2993_v42  ;;  %v2414_v42 = vcombine.low %v3187_v53, %v3198_v62  ;;  %v3008_v53 = vld [vmem:[%s3789_s1 + $0x158] sm:$0xff]   ;;  %v1440_v62 = vor.u32 %v1439_v45, %v1436_v43 }
  0x4a   : > { %2802 = vmatpush3.bf16.msra.mxu1 %v2994_v16  ;;  %2811 = vmatprep.subr.bf16.mxu0 %v2997_v50  ;;  %v2522_v16 = vcombine.low %v3449_v38, %v3453_v22 }
  0x4b   : > { %2835 = vmatprep.subr.bf16.mxu1 %v2998_v10  ;;  %v1441_v26 = vrot.slane %v1440_v62, 4 }
  0x4c   : > { %2780 = vmatmul.mubr.bf16.vlgmr.msra.gmra.mxu0 %v3396_v31 }
  0x4d   : > { %2804 = vmatmul.mubr.bf16.vlgmr.msra.gmra.mxu1 %v2387_v17  ;;  %2812 = vmatpush3.bf16.msra.mxu0 %v2997_v50  ;;  %v3009_v50 = vld [vmem:[%s3789_s1 + $0x110] sm:$0xff]  }
  0x4e   : > { %2836 = vmatpush3.bf16.msra.mxu1 %v2998_v10  ;;  %2813 = vmatprep.subr.bf16.mxu0 %v2999_v29  ;;  %v1445_v10 = vrot.slane %v1443_v46, 5 }
  0x4f   : > { %2837 = vmatprep.subr.bf16.mxu1 %v3000_v59  ;;  %2783 = vmatprep.mubr.bf16.mxu0 %v3408_v60 }
  0x50   : > { %2807 = vmatprep.mubr.bf16.mxu1 %v2388_v3  ;;  %v1446_v17 = vsel %vm3169_vm2, %v1441_v26, %v1445_v10  ;;  %v3018_v3 = vld [vmem:[%s3789_s1 + $0x1f0] sm:$0xff]  }
  0x51   : > { %2814 = vmatpush3.bf16.msra.mxu0 %v2999_v29  ;;  %v3485_v54 = vcombine.low %v3445_v36, %v1446_v17  ;;  %v2444_v29 = vcombine.low %v3374_v49, %v3386_v51  ;;  %v2445_v49 = vcombine.low %v3390_v52, %v3417_v19  ;;  %v3022_v51 = vld [vmem:[%s3789_s1 + $0x1e0] sm:$0xff]   ;;  %v3023_v19 = vld [vmem:[%s3789_s1 + $0x198] sm:$0xff]  }
  0x52   : > { %2838 = vmatpush3.bf16.msra.mxu1 %v3000_v59  ;;  %2815 = vmatprep.subr.bf16.mxu0 %v3001_v2  ;;  %v3015_v59 = vld [vmem:[%s3789_s1 + $0x1b8] sm:$0xff]   ;;  %v3021_v52 = vld [vmem:[%s3789_s1 + $0x1a0] sm:$0xff]  }
  0x53   : > { %2839 = vmatprep.subr.bf16.mxu1 %v3002_v14 }
  0x54   : > { %2784 = vmatmul.mubr.bf16.gmra.mxu0 %v3439_v33 }
  0x55   : > { %2808 = vmatmul.mubr.bf16.gmra.mxu1 %v2389_v35  ;;  %2816 = vmatpush3.bf16.msra.mxu0 %v3001_v2  ;;  %v3032_v2 = vld [vmem:[%s3789_s1 + $0x230] sm:$0xff]  }
  0x56   : > { %2840 = vmatpush3.bf16.msra.mxu1 %v3002_v14  ;;  %2817 = vmatprep.subr.bf16.mxu0 %v3005_v57  ;;  %v3030_v14 = vld [vmem:[%s3789_s1 + $0x1c0] sm:$0xff]  }
  0x57   : > { %2841 = vmatprep.subr.bf16.mxu1 %v3006_v30  ;;  %2827 = vmatprep.mubr.bf16.mxu0 %v2414_v42 }
  0x58   : > { %2851 = vmatprep.mubr.bf16.mxu1 %v2443_v44 }
  0x59   : > { %2818 = vmatpush3.bf16.msra.mxu0 %v3005_v57 }
  0x5a   : > { %2842 = vmatpush3.bf16.msra.mxu1 %v3006_v30  ;;  %2819 = vmatprep.subr.bf16.mxu0 %v3007_v47 }
  0x5b   : > { %2843 = vmatprep.subr.bf16.mxu1 %v3008_v53 }
  0x5d   : > { %2820 = vmatpush3.bf16.msra.mxu0 %v3007_v47 }
  0x5e   : > { %2844 = vmatpush3.bf16.msra.mxu1 %v3008_v53  ;;  %2821 = vmatprep.subr.bf16.mxu0 %v3009_v50 }
  0x5f   : > { %2845 = vmatprep.subr.bf16.mxu1 %v3010_v48 }
  0x61   : > { %2822 = vmatpush3.bf16.msra.mxu0 %v3009_v50 }
  0x62   : > { %2846 = vmatpush3.bf16.msra.mxu1 %v3010_v48  ;;  %2823 = vmatprep.subr.bf16.mxu0 %v3011_v39 }
  0x63   : > { %2847 = vmatprep.subr.bf16.mxu1 %v3012_v55 }
  0x65   : > { %2824 = vmatpush3.bf16.msra.mxu0 %v3011_v39 }
  0x66   : > { %2848 = vmatpush3.bf16.msra.mxu1 %v3012_v55  ;;  %2825 = vmatprep.subr.bf16.mxu0 %v3013_v56 }
  0x67   : > { %2849 = vmatprep.subr.bf16.mxu1 %v3014_v6 }
  0x69   : > { %2826 = vmatpush3.bf16.msra.mxu0 %v3013_v56 }
  0x6a   : > { %2850 = vmatpush3.bf16.msra.mxu1 %v3014_v6  ;;  %2859 = vmatprep.subr.bf16.mxu0 %v3015_v59 }
  0x6b   : > { %2883 = vmatprep.subr.bf16.mxu1 %v3016_v58 }
  0x6c   : > { %2828 = vmatmul.mubr.bf16.vlgmr.msra.gmra.mxu0 %v2415_v37 }
  0x6d   : > { %2852 = vmatmul.mubr.bf16.vlgmr.msra.gmra.mxu1 %v2444_v29  ;;  %2860 = vmatpush3.bf16.msra.mxu0 %v3015_v59 }
  0x6e   : > { %2884 = vmatpush3.bf16.msra.mxu1 %v3016_v58  ;;  %2861 = vmatprep.subr.bf16.mxu0 %v3017_v4 }
  0x6f   : > { %2885 = vmatprep.subr.bf16.mxu1 %v3018_v3  ;;  %2831 = vmatprep.mubr.bf16.mxu0 %v2416_v23 }
  0x70   : > { %2855 = vmatprep.mubr.bf16.mxu1 %v2445_v49 }
  0x71   : > { %2862 = vmatpush3.bf16.msra.mxu0 %v3017_v4 }
  0x72   : > { %2886 = vmatpush3.bf16.msra.mxu1 %v3018_v3  ;;  %2863 = vmatprep.subr.bf16.mxu0 %v3019_v0 }
  0x73   : > { %2887 = vmatprep.subr.bf16.mxu1 %v3020_v5 }
  0x74   : > { %2832 = vmatmul.mubr.bf16.gmra.mxu0 %v2417_v15 }
  0x75   : > { %2856 = vmatmul.mubr.bf16.gmra.mxu1 %v2446_v20  ;;  %2864 = vmatpush3.bf16.msra.mxu0 %v3019_v0 }
  0x76   : > { %2888 = vmatpush3.bf16.msra.mxu1 %v3020_v5  ;;  %2865 = vmatprep.subr.bf16.mxu0 %v3021_v52 }
  0x77   : > { %2889 = vmatprep.subr.bf16.mxu1 %v3022_v51  ;;  %2875 = vmatprep.mubr.bf16.mxu0 %v3203_v1  ;;  %v3028_v1 = vld [vmem:[%s3789_s1 + $0x1c8] sm:$0xff]  }
  0x78   : > { %2899 = vmatprep.mubr.bf16.mxu1 %v3223_v9  ;;  %v3027_v9 = vld [vmem:[%s3789_s1 + $0x188] sm:$0xff]  }
  0x79   : > { %2866 = vmatpush3.bf16.msra.mxu0 %v3021_v52 }
  0x7a   : > { %2890 = vmatpush3.bf16.msra.mxu1 %v3022_v51  ;;  %2867 = vmatprep.subr.bf16.mxu0 %v3023_v19 }
  0x7b   : > { %2891 = vmatprep.subr.bf16.mxu1 %v3024_v63 }
  0x7d   : > { %2868 = vmatpush3.bf16.msra.mxu0 %v3023_v19 }
  0x7e   : > { %2892 = vmatpush3.bf16.msra.mxu1 %v3024_v63  ;;  %2869 = vmatprep.subr.bf16.mxu0 %v3025_v18 }
  0x7f   : > { %2893 = vmatprep.subr.bf16.mxu1 %v3026_v21 }
  0x81   : > { %2870 = vmatpush3.bf16.msra.mxu0 %v3025_v18 }
  0x82   : > { %2894 = vmatpush3.bf16.msra.mxu1 %v3026_v21  ;;  %2871 = vmatprep.subr.bf16.mxu0 %v3027_v9 }
  0x83   : > { %2895 = vmatprep.subr.bf16.mxu1 %v3028_v1 }
  0x85   : > { %2872 = vmatpush3.bf16.msra.mxu0 %v3027_v9 }
  0x86   : > { %2896 = vmatpush3.bf16.msra.mxu1 %v3028_v1  ;;  %2873 = vmatprep.subr.bf16.mxu0 %v3029_v12 }
  0x87   : > { %2897 = vmatprep.subr.bf16.mxu1 %v3030_v14 }
  0x89   : > { %2874 = vmatpush3.bf16.msra.mxu0 %v3029_v12 }
  0x8a   : > { %2898 = vmatpush3.bf16.msra.mxu1 %v3030_v14  ;;  %2907 = vmatprep.subr.bf16.mxu0 %v3031_v13 }
  0x8b   : > { %2931 = vmatprep.subr.bf16.mxu1 %v3031_v13 }
  0x8c   : > { %2876 = vmatmul.mubr.bf16.vlgmr.msra.gmra.mxu0 %v3253_v28  ;;  %v3036_v28 = vld [vmem:[%s3789_s1 + $0x218] sm:$0xff]  }
  0x8d   : > { %2900 = vmatmul.mubr.bf16.vlgmr.msra.gmra.mxu1 %v3316_v11  ;;  %2908 = vmatpush3.bf16.msra.mxu0 %v3031_v13  ;;  %v3035_v11 = vld [vmem:[%s3789_s1 + $0x220] sm:$0xff]  }
  0x8e   : > { %2939 = vmatpush3.bf16.msra.mxu1 %v3031_v13  ;;  %2909 = vmatprep.subr.bf16.mxu0 %v3032_v2 }
  0x8f   : > { %2932 = vmatprep.subr.bf16.mxu1 %v3032_v2  ;;  %2879 = vmatprep.mubr.bf16.mxu0 %v3285_v61  ;;  %v3037_v61 = vld [vmem:[%s3789_s1 + $0x210] sm:$0xff]  }
  0x90   : > { %2903 = vmatprep.mubr.bf16.mxu1 %v3334_v7  ;;  %v3038_v7 = vld [vmem:[%s3789_s1 + $0x208] sm:$0xff]  }
  0x91   : > { %2910 = vmatpush3.bf16.msra.mxu0 %v3032_v2 }
  0x92   : > { %2940 = vmatpush3.bf16.msra.mxu1 %v3032_v2  ;;  %2911 = vmatprep.subr.bf16.mxu0 %v3034_v8 }
  0x93   : > { %2933 = vmatprep.subr.bf16.mxu1 %v3034_v8 }
  0x94   : > { %2880 = vmatmul.mubr.bf16.gmra.mxu0 %v2471_v32 }
  0x95   : > { %2904 = vmatmul.mubr.bf16.gmra.mxu1 %v3485_v54  ;;  %2912 = vmatpush3.bf16.msra.mxu0 %v3034_v8 }
  0x96   : > { %2941 = vmatpush3.bf16.msra.mxu1 %v3034_v8  ;;  %2913 = vmatprep.subr.bf16.mxu0 %v3035_v11 }
  0x97   : > { %2934 = vmatprep.subr.bf16.mxu1 %v3035_v11  ;;  %2923 = vmatprep.mubr.bf16.mxu0 %v3396_v31 }
  0x98   : > { %2927 = vmatprep.mubr.bf16.mxu1 %v3439_v33 }
  0x99   : > { %2914 = vmatpush3.bf16.msra.mxu0 %v3035_v11 }
  0x9a   : > { %2942 = vmatpush3.bf16.msra.mxu1 %v3035_v11  ;;  %2915 = vmatprep.subr.bf16.mxu0 %v3036_v28 }
  0x9b   : > { %2935 = vmatprep.subr.bf16.mxu1 %v3036_v28 }
  0x9d   : > { %2916 = vmatpush3.bf16.msra.mxu0 %v3036_v28 }
  0x9e   : > { %2943 = vmatpush3.bf16.msra.mxu1 %v3036_v28  ;;  %2917 = vmatprep.subr.bf16.mxu0 %v3037_v61 }
  0x9f   : > { %2936 = vmatprep.subr.bf16.mxu1 %v3037_v61 }
  0xa1   : > { %2918 = vmatpush3.bf16.msra.mxu0 %v3037_v61 }
  0xa2   : > { %2944 = vmatpush3.bf16.msra.mxu1 %v3037_v61  ;;  %2919 = vmatprep.subr.bf16.mxu0 %v3038_v7 }
  0xa3   : > { %2937 = vmatprep.subr.bf16.mxu1 %v3038_v7 }
  0xa5   : > { %2920 = vmatpush3.bf16.msra.mxu0 %v3038_v7 }
  0xa6   : > { %2945 = vmatpush3.bf16.msra.mxu1 %v3038_v7  ;;  %2921 = vmatprep.subr.bf16.mxu0 %v3039_v40 }
  0xa7   : > { %2938 = vmatprep.subr.bf16.mxu1 %v3039_v40 }
  0xa9   : > { %2922 = vmatpush3.bf16.msra.mxu0 %v3039_v40 }
  0xaa   : > { %2946 = vmatpush3.bf16.msra.mxu1 %v3039_v40 }
  0xac   : > { %2924 = vmatmul.mubr.bf16.vlgmr.msra.gmra.mxu0 %v3408_v60 }
  0xad   : > { %2928 = vmatmul.mubr.bf16.vlgmr.msra.gmra.mxu1 %v2522_v16 }
  0xec   : > { %v3601_v24 = vpop.f32.mrf.mxu0 }
  0xed   : > { %v3599_v31 = vpop.f32.mrf.mxu1 }
  0xee   : > { %v465_v27 = vpop.f32.mrf.mxu0  ;;  %v611_v2 = vadd.f32 %v3599_v31, %v3601_v24 }
  0xef   : > { %v602_v25 = vpop.f32.mrf.mxu1 }
  0xf0   : > { %v3603_v32 = vadd.f32 %v602_v25, %v465_v27  ;;  %v3605_v33 = vpop.f32.mrf.mxu0 }
  0xf1   : > { %v3609_v36 = vpop.f32.mrf.mxu1 }
  0xf2   : > { %v3607_v35 = vpop.f32.mrf.mxu0  ;;  %v614_v27 = vadd.f32 %v3609_v36, %v3605_v33 }
  0xf3   : > { %v3612_v38 = vpop.f32.mrf.mxu1 }
  0xf4   : > { %v606_v31 = vadd.f32 %v3612_v38, %v3607_v35 }
  0xf5   : > { %v2761_v60 = vpop.f32.mrf.mxu1 }
  0xf7   : > { %v618_v16 = vpop.f32.mrf.mxu1 }
  0xf8   : > { %v2737_v34 = vpop.f32.mrf.mxu0 }
  0xf9   : > { %v2762_v57 = vpop.f32.mrf.mxu1  ;;  %v627_v13 = vadd.f32 %v2761_v60, %v2737_v34 }
  0xfa   : > { %v481_v22 = vpop.f32.mrf.mxu0 }
  0xfb   : > { %v621_v44 = vpop.f32.mrf.mxu1  ;;  %v619_v11 = vadd.f32 %v618_v16, %v481_v22 }
  0xfc   : > { %v2738_v30 = vpop.f32.mrf.mxu0 }
  0xfd   : > { %v630_v40 = vadd.f32 %v2762_v57, %v2738_v30 }
  0xfe   : > { %v484_v42 = vpop.f32.mrf.mxu0 }
  0xff   : > { %v622_v34 = vadd.f32 %v621_v44, %v484_v42 }
 0x10c   : > { %v2781_v43 = vpop.f32.mrf.mxu0 }
 0x10d   : > { %v2805_v46 = vpop.f32.mrf.mxu1  ;;  %v824_v61 = vadd.f32 %v2781_v43, %v611_v2 }
 0x10e   : > { %v791_v45 = vpop.f32.mrf.mxu0 }
 0x10f   : > { %v939_v62 = vpop.f32.mrf.mxu1  ;;  %v822_v41 = vadd.f32 %v791_v45, %v3603_v32  ;;  %v972_v24 = vadd.f32 %v2805_v46, %v824_v61 }
 0x110   : > { %v2782_v53 = vpop.f32.mrf.mxu0 }
 0x111   : > { %v2806_v10 = vpop.f32.mrf.mxu1  ;;  %v825_v22 = vadd.f32 %v2782_v53, %v614_v27  ;;  %v970_v30 = vadd.f32 %v939_v62, %v822_v41 }
 0x112   : > { %v794_v47 = vpop.f32.mrf.mxu0 }
 0x113   : > { %v3625_v48 = vpop.f32.mrf.mxu1  ;;  %v823_v57 = vadd.f32 %v794_v47, %v606_v31  ;;  %v973_v45 = vadd.f32 %v2806_v10, %v825_v22  ;;  %v3049_v47 = vmov 1983009808   ;;  %v1784_v10 = vlaneseq }
 0x114   : > { %v2785_v26 = vpop.f32.mrf.mxu0 }
 0x115   : > { %v2809_v50 = vpop.f32.mrf.mxu1  ;;  %v828_v28 = vadd.f32 %v2785_v26, %v627_v13 }
 0x116   : > { %v807_v17 = vpop.f32.mrf.mxu0 }
 0x117   : > { %v955_v55 = vpop.f32.mrf.mxu1  ;;  %v826_v25 = vadd.f32 %v807_v17, %v619_v11  ;;  %v976_v60 = vadd.f32 %v2809_v50, %v828_v28 }
 0x118   : > { %v2786_v54 = vpop.f32.mrf.mxu0 }
 0x119   : > { %v2810_v6 = vpop.f32.mrf.mxu1  ;;  %v974_v16 = vadd.f32 %v955_v55, %v826_v25 }
 0x11a   : > { %v810_v39 = vpop.f32.mrf.mxu0 }
 0x11b   : > { %v958_v58 = vpop.f32.mrf.mxu1  ;;  %v827_v43 = vadd.f32 %v810_v39, %v622_v34 }
 0x11d   : > { %v975_v42 = vadd.f32 %v958_v58, %v827_v43 }
 0x12c   : > { %v2829_v56 = vpop.f32.mrf.mxu0 }
 0x12d   : > { %v2853_v59 = vpop.f32.mrf.mxu1  ;;  %v1133_v17 = vadd.f32 %v2829_v56, %v972_v24  ;;  %v1782_v56 = vunpack.c.l.s4 %v3049_v47 }
 0x12e   : > { %v1100_v29 = vpop.f32.mrf.mxu0 }
 0x12f   : > { %v3627_v37 = vpop.f32.mrf.mxu1  ;;  %v1131_v2 = vadd.f32 %v1100_v29, %v970_v30  ;;  %v1285_v35 = vadd.f32 %v2853_v59, %v1133_v17 }
 0x130   : > { %v2830_v3 = vpop.f32.mrf.mxu0 }
 0x131   : > { %v3629_v4 = vpop.f32.mrf.mxu1  ;;  %v1134_v38 = vadd.f32 %v2830_v3, %v973_v45 }
 0x132   : > { %v1103_v23 = vpop.f32.mrf.mxu0 }
 0x133   : > { %v3631_v49 = vpop.f32.mrf.mxu1 }
 0x134   : > { %v2833_v5 = vpop.f32.mrf.mxu0 }
 0x135   : > { %v2857_v0 = vpop.f32.mrf.mxu1  ;;  %v1137_v26 = vadd.f32 %v2833_v5, %v976_v60  ;;  %v1283_v5 = vadd.f32 %v3627_v37, %v1131_v2  ;;  %v3658_v37 = vld [vmem:[%s3790_s2] ss:$0 sm:$0xff] }
 0x136   : > { %v1116_v20 = vpop.f32.mrf.mxu0 }
 0x137   : > { %v1268_v15 = vpop.f32.mrf.mxu1  ;;  %v1135_v32 = vadd.f32 %v1116_v20, %v974_v16  ;;  %v1289_v44 = vadd.f32 %v2857_v0, %v1137_v26  ;;  %v1286_v0 = vadd.f32 %v3629_v4, %v1134_v38 }
 0x138   : > { %v2834_v51 = vpop.f32.mrf.mxu0 }
 0x139   : > { %v2858_v52 = vpop.f32.mrf.mxu1  ;;  %v1287_v55 = vadd.f32 %v1268_v15, %v1135_v32  ;;  %v1783_v15 = vunpack.c.0.s8 %v1782_v56 }
 0x13a   : > { %v1119_v63 = vpop.f32.mrf.mxu0 }
 0x13b   : > { %v1271_v19 = vpop.f32.mrf.mxu1  ;;  %v1136_v39 = vadd.f32 %v1119_v63, %v975_v42 }
 0x13d   : > { %v1288_v3 = vadd.f32 %v1271_v19, %v1136_v39 }
 0x14c   : > { %v2877_v21 = vpop.f32.mrf.mxu0 }
 0x14d   : > { %v3633_v18 = vpop.f32.mrf.mxu1  ;;  %v1427_v20 = vadd.f32 %v2877_v21, %v1285_v35 }
 0x14e   : > { %3797 = vst [vmem:[#allocation2_spill] sm:$0xff] %v3633_v18  ;;  %v1394_v1 = vpop.f32.mrf.mxu0  ;;  %v829_v18 = vadd.f32 %v2786_v54, %v630_v40  ;;  %v971_v54 = vadd.f32 %v3625_v48, %v823_v57 }
 0x14f   : > { %v3635_v9 = vpop.f32.mrf.mxu1 }
 0x150   : > { %3798 = vst [vmem:[#allocation3_spill] sm:$0xff] %v3635_v9  ;;  %v2878_v14 = vpop.f32.mrf.mxu0  ;;  %v977_v36 = vadd.f32 %v2810_v6, %v829_v18  ;;  %v1132_v6 = vadd.f32 %v1103_v23, %v971_v54  ;;  %v1785_v23 = vshrl.u32 %v1784_v10, 7 }
 0x151   : > { %v3637_v12 = vpop.f32.mrf.mxu1  ;;  %v1428_v61 = vadd.f32 %v2878_v14, %v1286_v0 }
 0x152   : > { %3799 = vst [vmem:[#allocation4_spill] sm:$0xff] %v3637_v12  ;;  %v3641_v8 = vpop.f32.mrf.mxu0  ;;  %v1138_v50 = vadd.f32 %v2834_v51, %v977_v36  ;;  %v1425_v51 = vadd.f32 %v1394_v1, %v1283_v5  ;;  %v1284_v63 = vadd.f32 %v3631_v49, %v1132_v6  ;;  %v3665_v49 = vld [vmem:[%s3791_s3] ss:$0 sm:$0xff]  ;;  %v3670_v43 = vsub.s32 %v1783_v15, %v1785_v23 }
 0x153   : > { %v3643_v7 = vpop.f32.mrf.mxu1 }
 0x154   : > { %v2881_v9 = vpop.f32.mrf.mxu0  ;;  %v1290_v29 = vadd.f32 %v2858_v52, %v1138_v50  ;;  %v1426_v25 = vadd.f32 %v3641_v8, %v1284_v63 }
 0x155   : > { %v2905_v12 = vpop.f32.mrf.mxu1  ;;  %v1431_v62 = vadd.f32 %v2881_v9, %v1289_v44  ;;  %v3800_v9 = vld [vmem:[#allocation2_spill] sm:$0xff] }
 0x156   : > { %v1410_v13 = vpop.f32.mrf.mxu0  ;;  %v1582_v28 = vadd.f32 %v3800_v9, %v1427_v20  ;;  %v1581_v36 = vadd.f32 %v3643_v7, %v1426_v25 }
 0x157   : > { %v1565_v33 = vpop.f32.mrf.mxu1  ;;  %v1429_v58 = vadd.f32 %v1410_v13, %v1287_v55  ;;  %v1586_v18 = vadd.f32 %v2905_v12, %v1431_v62  ;;  %v3801_v19 = vld [vmem:[#allocation3_spill] sm:$0xff] }
 0x158   : > { %v2882_v46 = vpop.f32.mrf.mxu0  ;;  %v1580_v12 = vadd.f32 %v3801_v19, %v1425_v51 }
 0x159   : > { %v2906_v53 = vpop.f32.mrf.mxu1  ;;  %v1432_v11 = vadd.f32 %v2882_v46, %v1290_v29  ;;  %v1584_v4 = vadd.f32 %v1565_v33, %v1429_v58  ;;  %v3802_v24 = vld [vmem:[#allocation4_spill] sm:$0xff] }
 0x15a   : > { %v1413_v48 = vpop.f32.mrf.mxu0  ;;  %v1583_v22 = vadd.f32 %v3802_v24, %v1428_v61 }
 0x15b   : > { %v1568_v59 = vpop.f32.mrf.mxu1  ;;  %v1430_v21 = vadd.f32 %v1413_v48, %v1288_v3  ;;  %v1587_v41 = vadd.f32 %v2906_v53, %v1432_v11 }
 0x15d   : > { %v1585_v30 = vadd.f32 %v1568_v59, %v1430_v21 }
 0x16c   : > { %v2925_v1 = vpop.f32.mrf.mxu0 }
 0x16d   : > { %v2929_v52 = vpop.f32.mrf.mxu1  ;;  %v1728_v27 = vadd.f32 %v2925_v1, %v1582_v28 }
 0x16e   : > { %v1732_v40 = vadd.f32 %v2929_v52, %v1586_v18  ;;  %v1695_v60 = vpop.f32.mrf.mxu0 }
 0x16f   : > { %v1711_v14 = vpop.f32.mrf.mxu1  ;;  %v1743_v16 = vmul.f32 %v3658_v37, %v1728_v27  ;;  %v1726_v26 = vadd.f32 %v1695_v60, %v1580_v12 }
 0x170   : > { %v1747_v34 = vmul.f32 %v3658_v37, %v1732_v40  ;;  %v1730_v31 = vadd.f32 %v1711_v14, %v1584_v4  ;;  %v2926_v13 = vpop.f32.mrf.mxu0 }
 0x171   : > { %v2930_v8 = vpop.f32.mrf.mxu1  ;;  %v1758_v32 = vadd.f32 %v3665_v49, %v1743_v16  ;;  %v1741_v45 = vmul.f32 %v3658_v37, %v1726_v26  ;;  %v1729_v2 = vadd.f32 %v2926_v13, %v1583_v22 }
 0x172   : > { %v1762_v57 = vadd.f32 %v3665_v49, %v1747_v34  ;;  %v1745_v17 = vmul.f32 %v3658_v37, %v1730_v31  ;;  %v1733_v33 = vadd.f32 %v2930_v8, %v1587_v41  ;;  %v1698_v35 = vpop.f32.mrf.mxu0 }
 0x173   : > { %v1714_v42 = vpop.f32.mrf.mxu1  ;;  %v1766_v46 = vmax.f32 %v1758_v32, 0.0  ;;  %v1756_v53 = vadd.f32 %v3665_v49, %v1741_v45  ;;  %v1744_v55 = vmul.f32 %v3658_v37, %v1729_v2  ;;  %v1727_v7 = vadd.f32 %v1698_v35, %v1581_v36 }
 0x174   : > { %v1770_v44 = vmax.f32 %v1762_v57, 0.0  ;;  %v1760_v50 = vadd.f32 %v3665_v49, %v1745_v17  ;;  %v1748_v54 = vmul.f32 %v3658_v37, %v1733_v33  ;;  %v3679_v38 = vadd.f32 %v1714_v42, %v1585_v30 }
 0x175   : > { %v1814_v5 = vcombine.high %v1766_v46, %v1766_v46  ;;  %v1821_v6 = vrot.slane %v1766_v46, %v3670_v43  ;;  %v1764_v20 = vmax.f32 %v1756_v53, 0.0  ;;  %v1759_v10 = vadd.f32 %v3665_v49, %v1744_v55 }
 0x176   : > { %v1882_v39 = vcombine.high %v1770_v44, %v1770_v44  ;;  %v1889_v62 = vrot.slane %v1770_v44, %v3670_v43  ;;  %v1768_v47 = vmax.f32 %v1760_v50, 0.0  ;;  %v1763_v56 = vadd.f32 %v3665_v49, %v1748_v54 }
 0x177   : > { %v1828_v48 = vrot.slane %v1814_v5, %v3670_v43  ;;  %v1829_v59 = vcombine.high %v1821_v6, %v1821_v6  ;;  %v2537_v3 = vrot.slane %v1821_v6, 9  ;;  %v1780_v18 = vcombine.high %v1764_v20, %v1764_v20 }
 0x178   : > { %v1896_v29 = vrot.slane %v1882_v39, %v3670_v43  ;;  %v1897_v58 = vcombine.high %v1889_v62, %v1889_v62  ;;  %v2545_v0 = vrot.slane %v1889_v62, 9  ;;  %v1848_v51 = vcombine.high %v1768_v47, %v1768_v47 }
 0x179   : > { %v1830_v28 = vcombine.high %v1828_v48, %v1828_v48  ;;  %v2538_v61 = vrot.slane %v1829_v59, 9  ;;  %v2539_v23 = vrot.slane %v1828_v48, 9  ;;  %v2000_v52 = vmax.f32 %v1821_v6, %v2537_v3 }
 0x17a   : > { %v1898_v11 = vcombine.high %v1896_v29, %v1896_v29  ;;  %v2546_v15 = vrot.slane %v1897_v58, 9  ;;  %v2547_v63 = vrot.slane %v1896_v29, 9  ;;  %v3689_v9 = vmax.f32 %v1889_v62, %v2545_v0 }
 0x17b   : > { %v1787_v40 = vrot.slane %v1764_v20, %v3670_v43  ;;  %v2540_v19 = vrot.slane %v1830_v28, 9  ;;  %v3696_v12 = vmax.f32 %v1829_v59, %v2538_v61  ;;  %v3698_v25 = vmax.f32 %v1828_v48, %v2539_v23 }
 0x17c   : > { %v2548_v4 = vrot.slane %v1898_v11, 9  ;;  %v3691_v21 = vmax.f32 %v1897_v58, %v2546_v15  ;;  %v3693_v1 = vmax.f32 %v1896_v29, %v2547_v63  ;;  %v1794_v27 = vrot.slane %v1780_v18, %v3670_v43 }
 0x17d   : > { %v1795_v41 = vcombine.high %v1787_v40, %v1787_v40  ;;  %v2533_v34 = vrot.slane %v1787_v40, 9  ;;  %v1855_v60 = vrot.slane %v1768_v47, %v3670_v43  ;;  %v3704_v31 = vmax.f32 %v1830_v28, %v2540_v19 }
 0x17e   : > { %v3701_v14 = vmax.f32 %v1898_v11, %v2548_v4  ;;  %v1796_v24 = vcombine.high %v1794_v27, %v1794_v27  ;;  %v2535_v22 = vrot.slane %v1794_v27, 9  ;;  %v1862_v16 = vrot.slane %v1848_v51, %v3670_v43 }
 0x17f   : > { %v2534_v26 = vrot.slane %v1795_v41, 9  ;;  %v3707_v8 = vmax.f32 %v1787_v40, %v2533_v34  ;;  %v1863_v30 = vcombine.high %v1855_v60, %v1855_v60  ;;  %v2541_v57 = vrot.slane %v1855_v60, 9 }
 0x180   : > { %v2536_v17 = vrot.slane %v1796_v24, 9  ;;  %v3709_v13 = vmax.f32 %v1794_v27, %v2535_v22  ;;  %v1864_v33 = vcombine.high %v1862_v16, %v1862_v16  ;;  %v2543_v36 = vrot.slane %v1862_v16, 9 }
 0x181   : > { %v3711_v32 = vmax.f32 %v1795_v41, %v2534_v26  ;;  %v2542_v45 = vrot.slane %v1863_v30, 9  ;;  %v3713_v2 = vmax.f32 %v1855_v60, %v2541_v57  ;;  %v1767_v42 = vmax.f32 %v1759_v10, 0.0 }
 0x182   : > { %v3715_v44 = vmax.f32 %v1796_v24, %v2536_v17  ;;  %v2544_v50 = vrot.slane %v1864_v33, 9  ;;  %v3717_v54 = vmax.f32 %v1862_v16, %v2543_v36  ;;  %v1771_v35 = vmax.f32 %v1763_v56, 0.0 }
 0x183   : > { %v3719_v46 = vmax.f32 %v1863_v30, %v2542_v45  ;;  %v1831_v53 = vcombine.high %v1767_v42, %v1767_v42  ;;  %v1838_v55 = vrot.slane %v1767_v42, %v3670_v43  ;;  %v1742_v39 = vmul.f32 %v3658_v37, %v1727_v7 }
 0x184   : > { %v3723_v62 = vmax.f32 %v1864_v33, %v2544_v50  ;;  %v1899_v47 = vcombine.high %v1771_v35, %v1771_v35  ;;  %v1906_v5 = vrot.slane %v1771_v35, %v3670_v43  ;;  %v1746_v6 = vmul.f32 %v3658_v37, %v3679_v38 }
 0x185   : > { %v1845_v20 = vrot.slane %v1831_v53, %v3670_v43  ;;  %v1846_v10 = vcombine.high %v1838_v55, %v1838_v55  ;;  %v2553_v29 = vrot.slane %v1838_v55, 9  ;;  %v1757_v56 = vadd.f32 %v3665_v49, %v1742_v39 }
 0x186   : > { %v1913_v58 = vrot.slane %v1899_v47, %v3670_v43  ;;  %v1914_v0 = vcombine.high %v1906_v5, %v1906_v5  ;;  %v2561_v51 = vrot.slane %v1906_v5, 9  ;;  %v1761_v7 = vadd.f32 %v3665_v49, %v1746_v6 }
 0x187   : > { %v1847_v48 = vcombine.high %v1845_v20, %v1845_v20  ;;  %v2554_v59 = vrot.slane %v1846_v10, 9  ;;  %v2555_v3 = vrot.slane %v1845_v20, 9  ;;  %v2064_v18 = vmax.f32 %v1838_v55, %v2553_v29 }
 0x188   : > { %v1915_v11 = vcombine.high %v1913_v58, %v1913_v58  ;;  %v2562_v15 = vrot.slane %v1914_v0, 9  ;;  %v2563_v37 = vrot.slane %v1913_v58, 9  ;;  %v2072_v38 = vmax.f32 %v1906_v5, %v2561_v51 }
 0x189   : > { %v2556_v63 = vrot.slane %v1847_v48, 9  ;;  %v2065_v28 = vmax.f32 %v1846_v10, %v2554_v59  ;;  %v2066_v61 = vmax.f32 %v1845_v20, %v2555_v3  ;;  %v2080_v23 = vmax.f32 %v2000_v52, %v2064_v18  ;;  %v2583_v18 = vld [vmem:[%s3617_s26 + $0x8] sm:$0x7] }
 0x18a   : > { %v2564_v4 = vrot.slane %v1915_v11, 9  ;;  %v2073_v40 = vmax.f32 %v1914_v0, %v2562_v15  ;;  %v2074_v19 = vmax.f32 %v1913_v58, %v2563_v37  ;;  %v2088_v49 = vmax.f32 %v3689_v9, %v2072_v38 }
 0x18b   : > { %v2067_v27 = vmax.f32 %v1847_v48, %v2556_v63  ;;  %v2081_v41 = vmax.f32 %v3696_v12, %v2065_v28  ;;  %v2082_v34 = vmax.f32 %v3698_v25, %v2066_v61  ;;  %v2595_v60 = vpack.c.bf16 %v2080_v23, %v2080_v23  ;;  %v2587_v28 = vld [vmem:[%s3617_s26 + $0x10] sm:$0x7] }
 0x18c   : > { %v2075_v24 = vmax.f32 %v1915_v11, %v2564_v4  ;;  %v2089_v22 = vmax.f32 %v3691_v21, %v2073_v40  ;;  %v2090_v16 = vmax.f32 %v3693_v1, %v2074_v19  ;;  %v2603_v52 = vpack.c.bf16 %v2088_v49, %v2088_v49 }
 0x18d   : > { %v2083_v26 = vmax.f32 %v3704_v31, %v2067_v27  ;;  %v2596_v30 = vpack.c.bf16 %v2081_v41, %v2081_v41  ;;  %v2597_v57 = vpack.c.bf16 %v2082_v34, %v2082_v34  ;;  %v2166_v17 = vunpack.c.l.b16 %v2595_v60 }
 0x18e   : > { %v2091_v33 = vmax.f32 %v3701_v14, %v2075_v24  ;;  %v2604_v9 = vpack.c.bf16 %v2089_v22, %v2089_v22  ;;  %v2605_v36 = vpack.c.bf16 %v2090_v16, %v2090_v16  ;;  %v2174_v45 = vunpack.c.l.b16 %v2603_v52 }
 0x18f   : > { %v2598_v12 = vpack.c.bf16 %v2083_v26, %v2083_v26  ;;  %v2167_v42 = vunpack.c.l.b16 %v2596_v30  ;;  %v2168_v25 = vunpack.c.l.b16 %v2597_v57  ;;  %v2188_v50 = vrot.slane %v2166_v17, 7 }
 0x190   : > { %v2606_v35 = vpack.c.bf16 %v2091_v33, %v2091_v33  ;;  %v2175_v53 = vunpack.c.l.b16 %v2604_v9  ;;  %v2176_v21 = vunpack.c.l.b16 %v2605_v36  ;;  %v2202_v55 = vrot.slane %v2174_v45, 7 }
 0x191   : > { %v2169_v1 = vunpack.c.l.b16 %v2598_v12  ;;  %v2189_v39 = vrot.slane %v2167_v42, 6  ;;  %v2191_v47 = vrot.slane %v2168_v25, 5  ;;  %v1765_v31 = vmax.f32 %v1757_v56, 0.0 }
 0x192   : > { %v2177_v5 = vunpack.c.l.b16 %v2606_v35  ;;  %v2203_v6 = vrot.slane %v2175_v53, 6  ;;  %v2205_v20 = vrot.slane %v2176_v21, 5  ;;  %v1769_v14 = vmax.f32 %v1761_v7, 0.0 }
 0x193   : > { %v2190_v10 = vsel %vm2180_vm6, %v2189_v39, %v2188_v50  ;;  %v2193_v29 = vrot.slane %v2169_v1, 4  ;;  %v1797_v58 = vcombine.high %v1765_v31, %v1765_v31  ;;  %v1804_v0 = vrot.slane %v1765_v31, %v3670_v43 }
 0x194   : > { %v2192_v51 = vsel %vm2183_vm7, %v2191_v47, %v2190_v10  ;;  %v2204_v48 = vsel %vm2180_vm6, %v2203_v6, %v2202_v55  ;;  %v2207_v59 = vrot.slane %v2177_v5, 4  ;;  %v1865_v3 = vcombine.high %v1769_v14, %v1769_v14 }
 0x195   : > { %v2194_v7 = vsel %vm2186_vm9, %v2193_v29, %v2192_v51  ;;  %v2206_v11 = vsel %vm2183_vm7, %v2205_v20, %v2204_v48  ;;  %v1811_v15 = vrot.slane %v1797_v58, %v3670_v43  ;;  %v1812_v37 = vcombine.high %v1804_v0, %v1804_v0 }
 0x196   : > { %v2210_v38 = vpack.c.b16 %v2194_v7, %v2194_v7  ;;  %v2208_v63 = vsel %vm2186_vm9, %v2207_v59, %v2206_v11  ;;  %v2549_v61 = vrot.slane %v1804_v0, 9  ;;  %v1872_v23 = vrot.slane %v1769_v14, %v3670_v43  ;;  %v2581_v11 = vld [vmem:[%s3617_s26 + $0x4] sm:$0x7] }
 0x197   : > { %v2212_v4 = vpack.c.b16 %v2208_v63, %v2208_v63  ;;  %v1813_v40 = vcombine.high %v1811_v15, %v1811_v15  ;;  %v2550_v19 = vrot.slane %v1812_v37, 9  ;;  %v2551_v49 = vrot.slane %v1811_v15, 9 }
 0x198   : > { %v2224_v27 = vsel %vm3745_vm10, %v2210_v38, %v2583_v18  ;;  %v2060_v41 = vmax.f32 %v1804_v0, %v2549_v61  ;;  %v1879_v34 = vrot.slane %v1865_v3, %v3670_v43  ;;  %v1880_v60 = vcombine.high %v1872_v23, %v1872_v23 }
 0x199   : > { %2584 = vst [vmem:[%s3617_s26 + $0x8] sm:$0x7] %v2224_v27  ;;  %v2230_v24 = vsel %vm3745_vm10, %v2212_v4, %v2587_v28  ;;  %v2552_v22 = vrot.slane %v1813_v40, 9  ;;  %v2061_v16 = vmax.f32 %v1812_v37, %v2550_v19  ;;  %v2062_v52 = vmax.f32 %v1811_v15, %v2551_v49  ;;  %v2585_v4 = vld [vmem:[%s3617_s26 + $0xc] sm:$0x7] }
 0x19a   : > { %2588 = vst [vmem:[%s3617_s26 + $0x10] sm:$0x7] %v2230_v24  ;;  %v2076_v26 = vmax.f32 %v3707_v8, %v2060_v41  ;;  %v1881_v30 = vcombine.high %v1879_v34, %v1879_v34  ;;  %v2557_v57 = vrot.slane %v1872_v23, 9  ;;  %v2558_v17 = vrot.slane %v1880_v60, 9 }
 0x19b   : > { %v2063_v33 = vmax.f32 %v1813_v40, %v2552_v22  ;;  %v2077_v9 = vmax.f32 %v3711_v32, %v2061_v16  ;;  %v2078_v36 = vmax.f32 %v3709_v13, %v2062_v52  ;;  %v2559_v43 = vrot.slane %v1879_v34, 9 }
 0x19c   : > { %v2591_v45 = vpack.c.bf16 %v2076_v26, %v2076_v26  ;;  %v2560_v12 = vrot.slane %v1881_v30, 9  ;;  %v2068_v42 = vmax.f32 %v1872_v23, %v2557_v57  ;;  %v2069_v25 = vmax.f32 %v1880_v60, %v2558_v17 }
 0x19d   : > { %v2079_v50 = vmax.f32 %v3715_v44, %v2063_v33  ;;  %v2592_v35 = vpack.c.bf16 %v2077_v9, %v2077_v9  ;;  %v2593_v53 = vpack.c.bf16 %v2078_v36, %v2078_v36  ;;  %v2070_v21 = vmax.f32 %v1879_v34, %v2559_v43 }
 0x19e   : > { %v2162_v55 = vunpack.c.l.b16 %v2591_v45  ;;  %v2071_v8 = vmax.f32 %v1881_v30, %v2560_v12  ;;  %v2084_v1 = vmax.f32 %v3713_v2, %v2068_v42  ;;  %v2085_v39 = vmax.f32 %v3719_v46, %v2069_v25 }
 0x19f   : > { %v2594_v47 = vpack.c.bf16 %v2079_v50, %v2079_v50  ;;  %v2163_v32 = vunpack.c.l.b16 %v2592_v35  ;;  %v2164_v31 = vunpack.c.l.b16 %v2593_v53  ;;  %v2086_v13 = vmax.f32 %v3717_v54, %v2070_v21 }
 0x1a0   : > { %v2178_v5 = vrot.slane %v2162_v55, 7  ;;  %v2087_v6 = vmax.f32 %v3723_v62, %v2071_v8  ;;  %v2599_v20 = vpack.c.bf16 %v2084_v1, %v2084_v1  ;;  %v2600_v14 = vpack.c.bf16 %v2085_v39, %v2085_v39 }
 0x1a1   : > { %v2165_v44 = vunpack.c.l.b16 %v2594_v47  ;;  %v2179_v10 = vrot.slane %v2163_v32, 6  ;;  %v2182_v29 = vrot.slane %v2164_v31, 5  ;;  %v2601_v58 = vpack.c.bf16 %v2086_v13, %v2086_v13 }
 0x1a2   : > { %v2602_v0 = vpack.c.bf16 %v2087_v6, %v2087_v6  ;;  %v2170_v51 = vunpack.c.l.b16 %v2599_v20  ;;  %v2171_v2 = vunpack.c.l.b16 %v2600_v14 }
 0x1a3   : > { %v2181_v46 = vsel %vm2180_vm6, %v2179_v10, %v2178_v5  ;;  %v2185_v48 = vrot.slane %v2165_v44, 4  ;;  %v2172_v59 = vunpack.c.l.b16 %v2601_v58 }
 0x1a4   : > { %v2184_v54 = vsel %vm2183_vm7, %v2182_v29, %v2181_v46  ;;  %v2173_v3 = vunpack.c.l.b16 %v2602_v0  ;;  %v2195_v62 = vrot.slane %v2170_v51, 7  ;;  %v2196_v7 = vrot.slane %v2171_v2, 6 }
 0x1a5   : > { %v2187_v18 = vsel %vm2186_vm9, %v2185_v48, %v2184_v54  ;;  %v2198_v15 = vrot.slane %v2172_v59, 5 }
 0x1a6   : > { %v2209_v37 = vpack.c.b16 %v2187_v18, %v2187_v18  ;;  %v2197_v38 = vsel %vm2180_vm6, %v2196_v7, %v2195_v62  ;;  %v2200_v63 = vrot.slane %v2173_v3, 4 }
 0x1a7   : > { %v2199_v28 = vsel %vm2183_vm7, %v2198_v15, %v2197_v38 }
 0x1a8   : > { %v2221_v61 = vsel %vm3745_vm10, %v2209_v37, %v2581_v11  ;;  %v2201_v23 = vsel %vm2186_vm9, %v2200_v63, %v2199_v28 }
 0x1a9   : > { %2582 = vst [vmem:[%s3617_s26 + $0x4] sm:$0x7] %v2221_v61  ;;  %v2211_v40 = vpack.c.b16 %v2201_v23, %v2201_v23 }
 0x1ab   : > { %v2227_v19 = vsel %vm3745_vm10, %v2211_v40, %v2585_v4 }
 0x1ac   : > { %2586 = vst [vmem:[%s3617_s26 + $0xc] sm:$0x7] %v2227_v19 }
 0x1ad PF: > { %s14_s15 = sadd.s32 1, %s3046_s15  }
 0x1ae   : > { %p11_p4 = scmp.ge.s32.totalorder %s14_s15, 4  }
 0x1b0   :  { %13 = sbr.rel (!%p11_p4) target bundleno = 1 (0x1), region = 75 }

// kernel: net_forward.4
= control target key start
LH: loop header
LB: loop body
LE: loop exit
PB: predicated region body
PF: predicated region fallthrough
CT: control target
= control target key end

     0   :  { %s6161_s15 = smov 0   ;;  %s7868_s0 = inlined_call_operand.vmem [shape: bf16[2,18,18,32], index: 0, kind: input, shape index: {}]   ;;  %s7869_s1 = inlined_call_operand.vmem [shape: bf16[9,32,128], index: 1, kind: input, shape index: {}]   ;;  %s7870_s2 = inlined_call_operand.vmem [shape: f32[1,128], index: 2, kind: input, shape index: {}]   ;;  %s7871_s3 = inlined_call_operand.vmem [shape: f32[1,128], index: 3, kind: input, shape index: {}]   ;;  %s7872_s4 = inlined_call_operand.vmem [shape: bf16[2,10,10,128], index: 4, kind: output, shape index: {}]  }
   0x1 LB: > { %s5003_s16 = sadd.s32 4294967295, %s6132_s15   ;;  %p5007_p0 = scmp.ge.s32.totalorder %s6132_s15, 1  ;;  %s6132_s15 = sphi %s6161_s15, %s14_s15  }
   0x2   : > { %p162_p1 = scmp.lt.s32.totalorder %s6132_s15, 3 }
   0x4   : > { %p163_p2 = pnand %p5007_p0, %p162_p1 }
   0x6   : > { %166 = sbr.rel (%p163_p2) target bundleno = 725 (0x2d5), region = 36 }
   0xb   : > { %v6086_v0 = vld [vmem:[%s7869_s1 + $0x18] sm:$0xff]   ;;  %p188_p3 = scmp.lt.s32.totalorder %s5003_s16, 1  ;;  %v6087_v1 = vld [vmem:[%s7869_s1 + $0x10] sm:$0xff]   ;;  %v6180_v2 = vld [vmem:[%s7869_s1 + $0x8] sm:$0xff]   ;;  %vm257_vm0 = vsmask.f32 3328 }
   0xc   : > { %6070 = vmatprep.subr.bf16.mxu1 %v6086_v0  ;;  %5746 = vmatprep.subr.bf16.mxu0 %v6086_v0  ;;  %v6186_v3 = vld [vmem:[%s7869_s1 + $0x28] sm:$0xff]   ;;  %vm258_vm1 = vsmask.f32 7440  ;;  %vm709_vm2 = vcmask 261120   ;;  %v7916_v30 = vmov 0  ;;  %vm1236_vm4 = vcmask 1042432  }
   0xd   : > { %s7998_s16 = smov (!%p188_p3, %s5003_s16), 1  ;;  %6072 = vmatpush3.bf16.msra.mxu1 %v6086_v0  ;;  %5747 = vmatpush3.bf16.msra.mxu0 %v6086_v0  ;;  %vm6232_vm3 = vmor %vm257_vm0, %vm258_vm1  ;;  %vm1237_vm5 = vcmask 1046532   ;;  %vm4753_vm7 = vcmask 1042434   ;;  %vm4756_vm8 = vcmask 1043459   ;;  %vm4759_vm9 = vcmask 1044484  }
   0xe   : > { %6071 = vmatprep.subr.bf16.mxu1 %v6087_v1  ;;  %5748 = vmatprep.subr.bf16.mxu0 %v6087_v1  ;;  %s6074_s23 = smul.u32 216, %s7998_s16  ;;  %v7917_v30 = vsel %vm6232_vm3, 4294967295, %v7916_v30  ;;  %vm6559_vm6 = vmor %vm1236_vm4, %vm1237_vm5  ;;  %vm4900_vm10 = vcmask 1040384   ;;  %vm4901_vm11 = vsmask.f32 256  ;;  %vm4762_vm12 = vcmask 1045509  }
   0xf   : > { %7918 = vst [vmem:[#allocation2_spill] sm:$0xff] %v7917_v30  ;;  %vm4765_vm13 = vcmask 1046534   ;;  %vm4768_vm14 = vcmask 1047559   ;;  %vm4894_vm15 = vcmask 1043456   ;;  %vm4895_vm0 = vsmask.f32 7938  ;;  %vm7572_vm1 = vmand %vm4900_vm10, %vm4901_vm11 }
  0x10   : > { %s6191_s28 = scalar_lea.vmem %s7868_s0, %s6074_s23 }
  0x11   : > { %6073 = vmatpush3.bf16.msra.mxu1 %v6087_v1  ;;  %5749 = vmatpush3.bf16.msra.mxu0 %v6087_v1  ;;  %v6194_v4 = vld [vmem:[%s6191_s28] sm:$0xf]  ;;  %v6197_v5 = vld [vmem:[%s6191_s28 + $0x4] sm:$0xf]  ;;  %v6200_v6 = vld [vmem:[%s6191_s28 + $0x8] sm:$0x1] }
  0x12   : > { %v261_v7 = vshrl.u32 %v6194_v4, 16  ;;  %v264_v8 = vshll.u32 %v6194_v4, 16  ;;  %v270_v9 = vshll.u32 %v6197_v5, 16  ;;  %v274_v10 = vshrl.u32 %v6197_v5, 16  ;;  %v6207_v11 = vld [vmem:[%s6191_s28 + $0x60] sm:$0xf]  ;;  %5782 = vmatprep.subr.bf16.mxu1 %v6180_v2  ;;  %5818 = vmatprep.subr.bf16.mxu0 %v6186_v3 }
  0x13   : > { %v280_v12 = vshll.u32 %v6200_v6, 16  ;;  %v6214_v14 = vld [vmem:[%s6191_s28 + $0x64] sm:$0xf]  ;;  %v6217_v15 = vld [vmem:[%s6191_s28 + $0x68] sm:$0x1]  ;;  %v453_v21 = vshrl.u32 %v6207_v11, 16 }
  0x14   : > { %v263_v16 = vrot.slane %v261_v7, 4  ;;  %v266_v17 = vrot.slane %v264_v8, 5  ;;  %v272_v18 = vrot.slane %v270_v9, 5  ;;  %v276_v19 = vrot.slane %v274_v10, 4  ;;  %v6225_v28 = vld [vmem:[%s6191_s28 + $0xc] sm:$0xf] }
  0x15   : > { %v282_v20 = vrot.slane %v280_v12, 5  ;;  %v456_v22 = vshll.u32 %v6207_v11, 16  ;;  %v462_v23 = vshll.u32 %v6214_v14, 16  ;;  %v466_v26 = vshrl.u32 %v6214_v14, 16  ;;  %v6228_v29 = vld [vmem:[%s6191_s28 + $0x10] sm:$0xf] }
  0x16   : > { %v267_v24 = vor.u32 %v266_v17, %v263_v16  ;;  %v277_v25 = vor.u32 %v276_v19, %v272_v18  ;;  %v472_v27 = vshll.u32 %v6217_v15, 16  ;;  %v455_v31 = vrot.slane %v453_v21, 4  ;;  %v6239_v40 = vld [vmem:[%s6191_s28 + $0x14] sm:$0x1]  ;;  %v6250_v52 = vld [vmem:[%s6191_s28 + $0x6c] sm:$0xf] }
  0x17   : > { %v458_v32 = vrot.slane %v456_v22, 5  ;;  %v464_v33 = vrot.slane %v462_v23, 5  ;;  %v468_v37 = vrot.slane %v466_v26, 4  ;;  %v285_v41 = vshrl.u32 %v6225_v28, 16  ;;  %7919 = vst [vmem:[#allocation3_spill] sm:$0xff] %v6250_v52 }
  0x18   : > { %v268_v35 = vrot.slane %v267_v24, 4  ;;  %v278_v36 = vrot.slane %v277_v25, 4  ;;  %v474_v38 = vrot.slane %v472_v27, 5  ;;  %v288_v42 = vshll.u32 %v6225_v28, 16  ;;  %v6254_v57 = vld [vmem:[%s6191_s28 + $0x70] sm:$0xf] }
  0x19   : > { %v459_v39 = vor.u32 %v458_v32, %v455_v31  ;;  %v294_v43 = vshll.u32 %v6228_v29, 16  ;;  %v469_v46 = vor.u32 %v468_v37, %v464_v33  ;;  %v298_v47 = vshrl.u32 %v6228_v29, 16  ;;  %v6262_v62 = vld [vmem:[%s6191_s28 + $0x74] sm:$0x1]  ;;  %v6268_v8 = vld [vmem:[%s6191_s28 + $0x18] sm:$0xf] }
  0x1a   : > { %v273_v44 = vsel %vm6232_vm3, %v268_v35, %v272_v18  ;;  %v283_v45 = vsel %vm6232_vm3, %v278_v36, %v282_v20  ;;  %v287_v50 = vrot.slane %v285_v41, 4  ;;  %v290_v51 = vrot.slane %v288_v42, 5  ;;  %7920 = vst [vmem:[#allocation4_spill] sm:$0xff] %v6262_v62  ;;  %v6277_v21 = vld [vmem:[%s6191_s28 + $0x1c] sm:$0xf]  ;;  %v6091_v41 = vld [vmem:[%s7869_s1 + $0x20] sm:$0xff]  }
  0x1b   : > { %v5014_v48 = vcombine.low %v273_v44, %v283_v45  ;;  %v460_v49 = vrot.slane %v459_v39, 4  ;;  %v470_v53 = vrot.slane %v469_v46, 4  ;;  %v296_v54 = vrot.slane %v294_v43, 5  ;;  %v6284_v25 = vld [vmem:[%s6191_s28 + $0x20] sm:$0x1] }
  0x1c   : > { %v300_v55 = vrot.slane %v298_v47, 4  ;;  %v304_v56 = vshll.u32 %v6239_v40, 16  ;;  %v291_v59 = vor.u32 %v290_v51, %v287_v50  ;;  %v477_v7 = vshrl.u32 %v6250_v52, 16  ;;  %v6291_v35 = vld [vmem:[%s6191_s28 + $0x78] sm:$0xf] }
  0x1d   : > { %5750 = vmatprep.mubr.msk.bf16.mxu0 %vm709_vm2, %v5014_v48  ;;  %v465_v58 = vsel %vm6232_vm3, %v460_v49, %v464_v33  ;;  %v475_v63 = vsel %vm6232_vm3, %v470_v53, %v474_v38  ;;  %v480_v12 = vshll.u32 %v6250_v52, 16  ;;  %v486_v16 = vshll.u32 %v6254_v57, 16  ;;  %7922 = vst [vmem:[#allocation6_spill] sm:$0xff] %v6291_v35  ;;  %v6302_v46 = vld [vmem:[%s6191_s28 + $0x7c] sm:$0xf] }
  0x1e   : > { %v301_v0 = vor.u32 %v300_v55, %v296_v54  ;;  %v306_v1 = vrot.slane %v304_v56, 5  ;;  %v6270_v9 = vcombine.low %v465_v58, %v475_v63  ;;  %v292_v10 = vrot.slane %v291_v59, 4  ;;  %7924 = vst [vmem:[#allocation8_spill] sm:$0xff] %v6302_v46  ;;  %v6310_v56 = vld [vmem:[%s6191_s28 + $0x80] sm:$0x1] }
  0x1f   : > { %v479_v18 = vrot.slane %v477_v7, 4  ;;  %v490_v19 = vshrl.u32 %v6254_v57, 16  ;;  %v496_v20 = vshll.u32 %v6262_v62, 16  ;;  %v482_v23 = vrot.slane %v480_v12, 5  ;;  %7925 = vst [vmem:[#allocation9_spill] sm:$0xff] %v6310_v56 }
  0x20   : > { %7921 = vst [vmem:[#allocation5_spill] sm:$0xff] %v6270_v9  ;;  %v302_v17 = vrot.slane %v301_v0, 4  ;;  %5766 = vmatprep.mubr.msk.bf16.mxu1 %vm709_vm2, %v6270_v9  ;;  %v297_v22 = vsel %vm6232_vm3, %v292_v10, %v296_v54  ;;  %v488_v24 = vrot.slane %v486_v16, 5  ;;  %v309_v26 = vshrl.u32 %v6268_v8, 16  ;;  %v6430_v60 = vld [vmem:[%s6191_s28 + $0x44] sm:$0x1] }
  0x21   : > { %v492_v31 = vrot.slane %v490_v19, 4  ;;  %v498_v32 = vrot.slane %v496_v20, 5  ;;  %v312_v33 = vshll.u32 %v6268_v8, 16  ;;  %v483_v37 = vor.u32 %v482_v23, %v479_v18  ;;  %v6090_v23 = vld [vmem:[%s7869_s1] sm:$0xff]  }
  0x22   : > { %v307_v27 = vsel %vm6232_vm3, %v302_v17, %v306_v1  ;;  %v311_v38 = vrot.slane %v309_v26, 4  ;;  %v318_v39 = vshll.u32 %v6277_v21, 16  ;;  %v322_v44 = vshrl.u32 %v6277_v21, 16  ;;  %v6316_v1 = vld [vmem:[%s6191_s28 + $0x24] sm:$0xf] }
  0x23   : > { %v6293_v36 = vcombine.low %v297_v22, %v307_v27  ;;  %v493_v42 = vor.u32 %v492_v31, %v488_v24  ;;  %v314_v43 = vrot.slane %v312_v33, 5  ;;  %v328_v45 = vshll.u32 %v6284_v25, 16  ;;  %v6327_v17 = vld [vmem:[%s6191_s28 + $0x28] sm:$0xf]  ;;  %v6338_v31 = vld [vmem:[%s6191_s28 + $0x2c] sm:$0x1] }
  0x24   : > { %v484_v47 = vrot.slane %v483_v37, 4  ;;  %v320_v48 = vrot.slane %v318_v39, 5  ;;  %v501_v49 = vshrl.u32 %v6291_v35, 16  ;;  %v504_v50 = vshll.u32 %v6291_v35, 16  ;;  %v6449_v9 = vld [vmem:[%s6191_s28 + $0xa4] sm:$0x1] }
  0x25   : > { %7923 = vst [vmem:[#allocation7_spill] sm:$0xff] %v6293_v36  ;;  %5751 = vmatmul.mubr.msk.bf16.vlgmr.msra.gmra.mxu0 %vm709_vm2, %v6293_v36  ;;  %v494_v51 = vrot.slane %v493_v42, 4  ;;  %v315_v53 = vor.u32 %v314_v43, %v311_v38  ;;  %v324_v54 = vrot.slane %v322_v44, 4  ;;  %v330_v55 = vrot.slane %v328_v45, 5  ;;  %v6346_v42 = vld [vmem:[%s6191_s28 + $0x84] sm:$0xf] }
  0x26   : > { %5819 = vmatpush3.bf16.msra.mxu0 %v6186_v3  ;;  %v489_v58 = vsel %vm6232_vm3, %v484_v47, %v488_v24  ;;  %v503_v59 = vrot.slane %v501_v49, 4  ;;  %v506_v63 = vrot.slane %v504_v50, 5  ;;  %v510_v0 = vshll.u32 %v6302_v46, 16  ;;  %v6321_v3 = vld [vmem:[%s7869_s1 + $0x48] sm:$0xff]   ;;  %7931 = vst [vmem:[#allocation15_spill] sm:$0xff] %v6449_v9 }
  0x27   : > { %5820 = vmatprep.subr.bf16.mxu0 %v6091_v41  ;;  %v499_v7 = vsel %vm6232_vm3, %v494_v51, %v498_v32  ;;  %v316_v10 = vrot.slane %v315_v53, 4  ;;  %v325_v12 = vor.u32 %v324_v54, %v320_v48  ;;  %v514_v16 = vshrl.u32 %v6302_v46, 16  ;;  %v6354_v47 = vld [vmem:[%s6191_s28 + $0x88] sm:$0xf]  ;;  %v6520_v46 = vld [vmem:[%s6191_s28 + $0x5c] sm:$0x1] }
  0x28   : > { %v6329_v18 = vcombine.low %v489_v58, %v499_v7  ;;  %v507_v19 = vor.u32 %v506_v63, %v503_v59  ;;  %v512_v20 = vrot.slane %v510_v0, 5  ;;  %v520_v22 = vshll.u32 %v6310_v56, 16  ;;  %v6367_v58 = vld [vmem:[%s6191_s28 + $0x8c] sm:$0x1] }
  0x29   : > { %v321_v24 = vsel %vm6232_vm3, %v316_v10, %v320_v48  ;;  %v326_v26 = vrot.slane %v325_v12, 4  ;;  %v516_v27 = vrot.slane %v514_v16, 4  ;;  %v333_v32 = vshrl.u32 %v6316_v1, 16  ;;  %v6376_v12 = vld [vmem:[%s6191_s28 + $0x30] sm:$0xf] }
  0x2a   : > { %7926 = vst [vmem:[#allocation10_spill] sm:$0xff] %v6329_v18  ;;  %5821 = vmatpush3.bf16.msra.mxu0 %v6091_v41  ;;  %5767 = vmatmul.mubr.msk.bf16.vlgmr.msra.gmra.mxu1 %vm709_vm2, %v6329_v18  ;;  %v508_v33 = vrot.slane %v507_v19, 4  ;;  %v522_v37 = vrot.slane %v520_v22, 5  ;;  %v336_v38 = vshll.u32 %v6316_v1, 16  ;;  %v342_v39 = vshll.u32 %v6327_v17, 16 }
  0x2b   : > { %5890 = vmatprep.subr.bf16.mxu0 %v6321_v3  ;;  %5783 = vmatpush3.bf16.msra.mxu1 %v6180_v2  ;;  %v331_v43 = vsel %vm6232_vm3, %v326_v26, %v330_v55  ;;  %v517_v41 = vor.u32 %v516_v27, %v512_v20  ;;  %v335_v44 = vrot.slane %v333_v32, 4  ;;  %v346_v45 = vshrl.u32 %v6327_v17, 16  ;;  %v6363_v2 = vld [vmem:[%s7869_s1 + $0x38] sm:$0xff]  }
  0x2c   : > { %v6356_v48 = vcombine.low %v321_v24, %v331_v43  ;;  %v513_v49 = vsel %vm6232_vm3, %v508_v33, %v512_v20  ;;  %v338_v50 = vrot.slane %v336_v38, 5  ;;  %v344_v51 = vrot.slane %v342_v39, 5  ;;  %5784 = vmatprep.subr.bf16.mxu1 %v6090_v23  ;;  %v6381_v24 = vld [vmem:[%s6191_s28 + $0x34] sm:$0xf]  ;;  %v6386_v38 = vld [vmem:[%s6191_s28 + $0x38] sm:$0x1] }
  0x2d   : > { %v518_v53 = vrot.slane %v517_v41, 4  ;;  %v348_v54 = vrot.slane %v346_v45, 4  ;;  %v352_v55 = vshll.u32 %v6338_v31, 16  ;;  %v525_v59 = vshrl.u32 %v6346_v42, 16 }
  0x2e   : > { %7927 = vst [vmem:[#allocation11_spill] sm:$0xff] %v6356_v48  ;;  %5754 = vmatprep.mubr.msk.bf16.mxu0 %vm709_vm2, %v6356_v48  ;;  %v339_v63 = vor.u32 %v338_v50, %v335_v44  ;;  %v528_v0 = vshll.u32 %v6346_v42, 16  ;;  %v534_v7 = vshll.u32 %v6354_v47, 16  ;;  %v538_v10 = vshrl.u32 %v6354_v47, 16  ;;  %v6392_v44 = vld [vmem:[%s6191_s28 + $0x90] sm:$0xf] }
  0x2f   : > { %v523_v16 = vsel %vm6232_vm3, %v518_v53, %v522_v37  ;;  %v349_v19 = vor.u32 %v348_v54, %v344_v51  ;;  %v354_v20 = vrot.slane %v352_v55, 5  ;;  %v527_v22 = vrot.slane %v525_v59, 4  ;;  %5785 = vmatpush3.bf16.msra.mxu1 %v6090_v23  ;;  %v6401_v53 = vld [vmem:[%s6191_s28 + $0x94] sm:$0xf] }
  0x30   : > { %v6383_v26 = vcombine.low %v513_v49, %v523_v16  ;;  %v340_v27 = vrot.slane %v339_v63, 4  ;;  %v530_v32 = vrot.slane %v528_v0, 5  ;;  %v536_v33 = vrot.slane %v534_v7, 5  ;;  %5854 = vmatprep.subr.bf16.mxu1 %v6363_v2 }
  0x31   : > { %v350_v39 = vrot.slane %v349_v19, 4  ;;  %v540_v43 = vrot.slane %v538_v10, 4  ;;  %v544_v37 = vshll.u32 %v6367_v58, 16  ;;  %v357_v41 = vshrl.u32 %v6376_v12, 16  ;;  %v6411_v19 = vld [vmem:[%s6191_s28 + $0x3c] sm:$0xf] }
  0x32   : > { %7928 = vst [vmem:[#allocation12_spill] sm:$0xff] %v6383_v26  ;;  %5770 = vmatprep.mubr.msk.bf16.mxu1 %vm709_vm2, %v6383_v26  ;;  %v345_v23 = vsel %vm6232_vm3, %v340_v27, %v344_v51  ;;  %v531_v45 = vor.u32 %v530_v32, %v527_v22  ;;  %v360_v49 = vshll.u32 %v6376_v12, 16  ;;  %v366_v50 = vshll.u32 %v6381_v24, 16  ;;  %v6408_v51 = vld [vmem:[%s6191_s28 + $0x98] sm:$0x1] }
  0x33   : > { %v355_v54 = vsel %vm6232_vm3, %v350_v39, %v354_v20  ;;  %v541_v55 = vor.u32 %v540_v43, %v536_v33  ;;  %v546_v59 = vrot.slane %v544_v37, 5  ;;  %v359_v63 = vrot.slane %v357_v41, 4  ;;  %v6417_v39 = vld [vmem:[%s6191_s28 + $0x40] sm:$0xf] }
  0x34   : > { %v6405_v0 = vcombine.low %v345_v23, %v355_v54  ;;  %v532_v7 = vrot.slane %v531_v45, 4  ;;  %v362_v10 = vrot.slane %v360_v49, 5  ;;  %v368_v16 = vrot.slane %v366_v50, 5 }
  0x35   : > { %v542_v22 = vrot.slane %v541_v55, 4  ;;  %v370_v27 = vshrl.u32 %v6381_v24, 16  ;;  %v376_v32 = vshll.u32 %v6386_v38, 16  ;;  %v549_v20 = vshrl.u32 %v6392_v44, 16 }
  0x36   : > { %7929 = vst [vmem:[#allocation13_spill] sm:$0xff] %v6405_v0  ;;  %5755 = vmatmul.mubr.msk.bf16.gmra.mxu0 %vm709_vm2, %v6405_v0  ;;  %v537_v43 = vsel %vm6232_vm3, %v532_v7, %v536_v33  ;;  %v363_v37 = vor.u32 %v362_v10, %v359_v63  ;;  %v552_v41 = vshll.u32 %v6392_v44, 16  ;;  %v558_v23 = vshll.u32 %v6401_v53, 16  ;;  %v6433_v33 = vld [vmem:[%s6191_s28 + $0x9c] sm:$0xf] }
  0x37   : > { %v547_v45 = vsel %vm6232_vm3, %v542_v22, %v546_v59  ;;  %v372_v49 = vrot.slane %v370_v27, 4  ;;  %v378_v50 = vrot.slane %v376_v32, 5  ;;  %v551_v54 = vrot.slane %v549_v20, 4 }
  0x38   : > { %v6427_v55 = vcombine.low %v537_v43, %v547_v45  ;;  %v364_v34 = vrot.slane %v363_v37, 4  ;;  %v554_v61 = vrot.slane %v552_v41, 5  ;;  %v560_v13 = vrot.slane %v558_v23, 5  ;;  %v6445_v45 = vld [vmem:[%s6191_s28 + $0xa0] sm:$0xf] }
  0x39   : > { %v373_v63 = vor.u32 %v372_v49, %v368_v16  ;;  %v562_v7 = vshrl.u32 %v6401_v53, 16  ;;  %v568_v10 = vshll.u32 %v6408_v51, 16  ;;  %v381_v59 = vshrl.u32 %v6411_v19, 16 }
  0x3a   : > { %7930 = vst [vmem:[#allocation14_spill] sm:$0xff] %v6427_v55  ;;  %5771 = vmatmul.mubr.msk.bf16.gmra.mxu1 %vm709_vm2, %v6427_v55  ;;  %v369_v22 = vsel %vm6232_vm3, %v364_v34, %v368_v16  ;;  %v555_v27 = vor.u32 %v554_v61, %v551_v54  ;;  %v384_v32 = vshll.u32 %v6411_v19, 16  ;;  %v390_v20 = vshll.u32 %v6417_v39, 16 }
  0x3b   : > { %v374_v43 = vrot.slane %v373_v63, 4  ;;  %v564_v37 = vrot.slane %v562_v7, 4  ;;  %v570_v41 = vrot.slane %v568_v10, 5  ;;  %v383_v23 = vrot.slane %v381_v59, 4  ;;  %v6456_v63 = vld [vmem:[%s6191_s28 + $0x48] sm:$0xf] }
  0x3c   : > { %v556_v49 = vrot.slane %v555_v27, 4  ;;  %v386_v26 = vrot.slane %v384_v32, 5  ;;  %v392_v18 = vrot.slane %v390_v20, 5  ;;  %v394_v55 = vshrl.u32 %v6417_v39, 16 }
  0x3d   : > { %v379_v34 = vsel %vm6232_vm3, %v374_v43, %v378_v50  ;;  %v565_v61 = vor.u32 %v564_v37, %v560_v13  ;;  %v400_v16 = vshll.u32 %v6430_v60, 16  ;;  %v573_v54 = vshrl.u32 %v6433_v33, 16  ;;  %v6464_v43 = vld [vmem:[%s6191_s28 + $0x4c] sm:$0xf] }
  0x3e   : > { %v6458_v7 = vcombine.low %v369_v22, %v379_v34  ;;  %v561_v10 = vsel %vm6232_vm3, %v556_v49, %v560_v13  ;;  %v387_v59 = vor.u32 %v386_v26, %v383_v23  ;;  %v396_v27 = vrot.slane %v394_v55, 4  ;;  %v6471_v13 = vld [vmem:[%s6191_s28 + $0x50] sm:$0x1] }
  0x3f   : > { %v566_v32 = vrot.slane %v565_v61, 4  ;;  %v402_v20 = vrot.slane %v400_v16, 5  ;;  %v575_v0 = vrot.slane %v573_v54, 4  ;;  %v576_v50 = vshll.u32 %v6433_v33, 16  ;;  %v6478_v61 = vld [vmem:[%s6191_s28 + $0xa8] sm:$0xf] }
  0x40   : > { %7932 = vst [vmem:[#allocation16_spill] sm:$0xff] %v6458_v7  ;;  %5758 = vmatprep.mubr.msk.bf16.mxu0 %vm709_vm2, %v6458_v7  ;;  %v388_v37 = vrot.slane %v387_v59, 4  ;;  %v397_v48 = vor.u32 %v396_v27, %v392_v18  ;;  %v582_v22 = vshll.u32 %v6445_v45, 16  ;;  %v586_v34 = vshrl.u32 %v6445_v45, 16  ;;  %7933 = vst [vmem:[#allocation17_spill] sm:$0xff] %v6478_v61 }
  0x41   : > { %v571_v26 = vsel %vm6232_vm3, %v566_v32, %v570_v41  ;;  %v578_v55 = vrot.slane %v576_v50, 5  ;;  %v592_v23 = vshll.u32 %v6449_v9, 16  ;;  %v405_v49 = vshrl.u32 %v6456_v63, 16 }
  0x42   : > { %v6480_v16 = vcombine.low %v561_v10, %v571_v26  ;;  %v393_v54 = vsel %vm6232_vm3, %v388_v37, %v392_v18  ;;  %v398_v59 = vrot.slane %v397_v48, 4  ;;  %v584_v27 = vrot.slane %v582_v22, 5 }
  0x43   : > { %v579_v7 = vor.u32 %v578_v55, %v575_v0  ;;  %v588_v36 = vrot.slane %v586_v34, 4  ;;  %v594_v56 = vrot.slane %v592_v23, 5  ;;  %v407_v41 = vrot.slane %v405_v49, 4  ;;  %v6495_v34 = vld [vmem:[%s6191_s28 + $0xac] sm:$0xf] }
  0x44   : > { %7934 = vst [vmem:[#allocation18_spill] sm:$0xff] %v6480_v16  ;;  %5774 = vmatprep.mubr.msk.bf16.mxu1 %vm709_vm2, %v6480_v16  ;;  %v403_v32 = vsel %vm6232_vm3, %v398_v59, %v402_v20  ;;  %v408_v10 = vshll.u32 %v6456_v63, 16  ;;  %v414_v50 = vshll.u32 %v6464_v43, 16  ;;  %v418_v18 = vshrl.u32 %v6464_v43, 16  ;;  %7936 = vst [vmem:[#allocation20_spill] sm:$0xff] %v6495_v34 }
  0x45   : > { %v6491_v37 = vcombine.low %v393_v54, %v403_v32  ;;  %v580_v48 = vrot.slane %v579_v7, 4  ;;  %v589_v0 = vor.u32 %v588_v36, %v584_v27  ;;  %v424_v22 = vshll.u32 %v6471_v13, 16  ;;  %v6498_v49 = vld [vmem:[%s6191_s28 + $0xb0] sm:$0x1] }
  0x46   : > { %v410_v26 = vrot.slane %v408_v10, 5  ;;  %v416_v55 = vrot.slane %v414_v50, 5  ;;  %v420_v23 = vrot.slane %v418_v18, 4  ;;  %7937 = vst [vmem:[#allocation21_spill] sm:$0xff] %v6498_v49  ;;  %v597_v20 = vshrl.u32 %v6478_v61, 16 }
  0x47   : > { %7935 = vst [vmem:[#allocation19_spill] sm:$0xff] %v6491_v37  ;;  %5759 = vmatmul.mubr.msk.bf16.gmra.mxu0 %vm709_vm2, %v6491_v37  ;;  %v585_v7 = vsel %vm6232_vm3, %v580_v48, %v584_v27  ;;  %v590_v36 = vrot.slane %v589_v0, 4  ;;  %v426_v54 = vrot.slane %v424_v22, 5  ;;  %v600_v59 = vshll.u32 %v6478_v61, 16  ;;  %v6508_v18 = vld [vmem:[%s6191_s28 + $0x54] sm:$0xf] }
  0x48   : > { %v411_v32 = vor.u32 %v410_v26, %v407_v41  ;;  %v421_v16 = vor.u32 %v420_v23, %v416_v55  ;;  %v599_v10 = vrot.slane %v597_v20, 4  ;;  %v606_v50 = vshll.u32 %v6495_v34, 16  ;;  %v6515_v0 = vld [vmem:[%s6191_s28 + $0x58] sm:$0xf] }
  0x49   : > { %v595_v37 = vsel %vm6232_vm3, %v590_v36, %v594_v56  ;;  %v602_v35 = vrot.slane %v600_v59, 5  ;;  %v610_v27 = vshrl.u32 %v6495_v34, 16  ;;  %v616_v48 = vshll.u32 %v6498_v49, 16 }
  0x4a   : > { %v6517_v41 = vcombine.low %v585_v7, %v595_v37  ;;  %v412_v22 = vrot.slane %v411_v32, 4  ;;  %v422_v26 = vrot.slane %v421_v16, 4  ;;  %v608_v23 = vrot.slane %v606_v50, 5 }
  0x4b   : > { %v603_v20 = vor.u32 %v602_v35, %v599_v10  ;;  %v612_v62 = vrot.slane %v610_v27, 4  ;;  %v618_v52 = vrot.slane %v616_v48, 5  ;;  %v429_v56 = vshrl.u32 %v6508_v18, 16  ;;  %v6532_v35 = vld [vmem:[%s6191_s28 + $0xb4] sm:$0xf] }
  0x4c   : > { %7938 = vst [vmem:[#allocation22_spill] sm:$0xff] %v6517_v41  ;;  %5775 = vmatmul.mubr.msk.bf16.gmra.mxu1 %vm709_vm2, %v6517_v41  ;;  %v417_v36 = vsel %vm6232_vm3, %v412_v22, %v416_v55  ;;  %v427_v37 = vsel %vm6232_vm3, %v422_v26, %v426_v54  ;;  %v432_v16 = vshll.u32 %v6508_v18, 16  ;;  %v438_v7 = vshll.u32 %v6515_v0, 16  ;;  %7939 = vst [vmem:[#allocation23_spill] sm:$0xff] %v6532_v35  ;;  %v6537_v27 = vld [vmem:[%s6191_s28 + $0xb8] sm:$0xf] }
  0x4d   : > { %v6534_v59 = vcombine.low %v417_v36, %v427_v37  ;;  %v604_v32 = vrot.slane %v603_v20, 4  ;;  %v613_v10 = vor.u32 %v612_v62, %v608_v23  ;;  %v431_v50 = vrot.slane %v429_v56, 4 }
  0x4e   : > { %v434_v48 = vrot.slane %v432_v16, 5  ;;  %v440_v41 = vrot.slane %v438_v7, 5  ;;  %v442_v55 = vshrl.u32 %v6515_v0, 16  ;;  %v448_v54 = vshll.u32 %v6520_v46, 16  ;;  %v6548_v16 = vld [vmem:[%s6191_s28 + $0xbc] sm:$0x1] }
  0x4f   : > { %7940 = vst [vmem:[#allocation24_spill] sm:$0xff] %v6534_v59  ;;  %5762 = vmatprep.mubr.msk.bf16.mxu0 %vm709_vm2, %v6534_v59  ;;  %v609_v22 = vsel %vm6232_vm3, %v604_v32, %v608_v23  ;;  %v614_v26 = vrot.slane %v613_v10, 4  ;;  %v621_v20 = vshrl.u32 %v6532_v35, 16  ;;  %v624_v62 = vshll.u32 %v6532_v35, 16 }
  0x50   : > { %v435_v56 = vor.u32 %v434_v48, %v431_v50  ;;  %v444_v36 = vrot.slane %v442_v55, 4  ;;  %v450_v37 = vrot.slane %v448_v54, 5  ;;  %v630_v7 = vshll.u32 %v6537_v27, 16 }
  0x51   : > { %v619_v49 = vsel %vm6232_vm3, %v614_v26, %v618_v52  ;;  %v623_v61 = vrot.slane %v621_v20, 4  ;;  %v626_v59 = vrot.slane %v624_v62, 5  ;;  %v634_v34 = vshrl.u32 %v6537_v27, 16 }
  0x52   : > { %v6554_v23 = vcombine.low %v609_v22, %v619_v49  ;;  %v436_v32 = vrot.slane %v435_v56, 4  ;;  %v445_v10 = vor.u32 %v444_v36, %v440_v41  ;;  %v632_v9 = vrot.slane %v630_v7, 5 }
  0x53   : > { %v627_v35 = vor.u32 %v626_v59, %v623_v61  ;;  %v636_v50 = vrot.slane %v634_v34, 4  ;;  %v640_v48 = vshll.u32 %v6548_v16, 16  ;;  %v5082_v52 = vrot.slane %v6194_v4, 9 }
  0x54   : > { %5778 = vmatprep.mubr.msk.bf16.mxu1 %vm709_vm2, %v6554_v23  ;;  %v441_v49 = vsel %vm6232_vm3, %v436_v32, %v440_v41  ;;  %v446_v54 = vrot.slane %v445_v10, 4  ;;  %v1241_v61 = vrot.slane %v6197_v5, 5  ;;  %v6571_v34 = vcombine.low %v6225_v28, %v6228_v29 }
  0x55   : > { %v628_v59 = vrot.slane %v627_v35, 4  ;;  %v637_v22 = vor.u32 %v636_v50, %v632_v9  ;;  %v642_v26 = vrot.slane %v640_v48, 5  ;;  %v5083_v20 = vrot.slane %v6225_v28, 9 }
  0x56   : > { %v451_v62 = vsel %vm6232_vm3, %v446_v54, %v450_v37  ;;  %v1242_v56 = vsel %vm6559_vm6, %v5082_v52, %v1241_v61  ;;  %v1243_v36 = vrot.slane %v1241_v61, 4  ;;  %v7943_v41 = vrot.slane %v6228_v29, 5 }
  0x57   : > { %v6580_v32 = vcombine.low %v441_v49, %v451_v62  ;;  %v633_v10 = vsel %vm6232_vm3, %v628_v59, %v632_v9  ;;  %v638_v35 = vrot.slane %v637_v22, 4  ;;  %v7945_v37 = vrot.slane %v6200_v6, 5 }
  0x58   : > { %v1250_v7 = vrot.slane %v7943_v41, 4  ;;  %v7944_v50 = vmov %v7943_v41  ;;  %v7946_v52 = vrot.slane %v6239_v40, 5  ;;  %v6598_v54 = vcombine.low %v6268_v8, %v6277_v21 }
  0x59   : > { %v1249_v28 = vsel %vm6559_vm6, %v5083_v20, %v7944_v50  ;;  %v1245_v48 = vsel %vm6559_vm6, %v1243_v36, %v7945_v37  ;;  %v5084_v9 = vrot.slane %v6268_v8, 9  ;;  %5763 = vmatmul.mubr.msk.bf16.gmra.mxu0 %vm709_vm2, %v6580_v32  ;;  %v643_v6 = vsel %vm6232_vm3, %v638_v35, %v642_v26  ;;  %v6105_v37 = vld [vmem:[%s7869_s1 + $0x40] sm:$0xff]  }
  0x5a   : > { %v1252_v49 = vsel %vm6559_vm6, %v1250_v7, %v7946_v52  ;;  %v5102_v29 = vcombine.low %v1242_v56, %v1245_v48  ;;  %v1255_v40 = vrot.slane %v6277_v21, 5  ;;  %v6608_v59 = vcombine.low %v633_v10, %v643_v6 }
  0x5b   : > { %v6605_v61 = vcombine.low %v1249_v28, %v1252_v49  ;;  %v1258_v22 = vrot.slane %v6284_v25, 5  ;;  %v1262_v62 = vrot.slane %v6327_v17, 5  ;;  %v5085_v26 = vrot.slane %v6316_v1, 9 }
  0x5c   : > { %7947 = vst [vmem:[#allocation25_spill] sm:$0xff] %v6608_v59  ;;  %5822 = vmatprep.mubr.msk.bf16.mxu0 %vm709_vm2, %v5102_v29  ;;  %v1256_v8 = vsel %vm6559_vm6, %v5084_v9, %v1255_v40  ;;  %v1257_v20 = vrot.slane %v1255_v40, 4  ;;  %5779 = vmatmul.mubr.msk.bf16.gmra.mxu1 %vm709_vm2, %v6608_v59  ;;  %v5086_v56 = vrot.slane %v6376_v12, 9  ;;  %v1269_v21 = vrot.slane %v6381_v24, 5 }
  0x5d   : > { %v7948_v25 = vcombine.low %v6194_v4, %v6197_v5  ;;  %v1264_v41 = vrot.slane %v1262_v62, 4  ;;  %v1265_v7 = vrot.slane %v6338_v31, 5  ;;  %v1272_v10 = vrot.slane %v6386_v38, 5 }
  0x5e   : > { %v1259_v36 = vsel %vm6559_vm6, %v1257_v20, %v1258_v22  ;;  %v1271_v50 = vrot.slane %v1269_v21, 4  ;;  %v1276_v28 = vrot.slane %v6417_v39, 5  ;;  %v1263_v4 = vsel %vm6559_vm6, %v5085_v26, %v1262_v62  ;;  %v6103_v22 = vld [vmem:[%s7869_s1 + $0x30] sm:$0xff]  }
  0x5f   : > { %5786 = vmatprep.mubr.msk.bf16.mxu1 %vm709_vm2, %v7948_v25  ;;  %v6628_v35 = vcombine.low %v1256_v8, %v1259_v36  ;;  %v1270_v5 = vsel %vm6559_vm6, %v5086_v56, %v1269_v21  ;;  %v1283_v48 = vrot.slane %v6464_v43, 5  ;;  %v1266_v31 = vsel %vm6559_vm6, %v1264_v41, %v1265_v7  ;;  %v6681_v56 = vld [vmem:[%s7869_s1 + $0x58] sm:$0xff]  }
  0x60   : > { %v1273_v38 = vsel %vm6559_vm6, %v1271_v50, %v1272_v10  ;;  %v5087_v52 = vrot.slane %v6411_v19, 9  ;;  %v1279_v49 = vrot.slane %v6430_v60, 5  ;;  %v1278_v9 = vrot.slane %v1276_v28, 4  ;;  %v6658_v60 = vld [vmem:[%s7869_s1 + $0x68] sm:$0xff]  }
  0x61   : > { %5823 = vmatmul.mubr.msk.bf16.vlgmr.msra.gmra.mxu0 %vm709_vm2, %v6605_v61  ;;  %v5088_v6 = vrot.slane %v6456_v63, 9  ;;  %v1285_v29 = vrot.slane %v1283_v48, 4  ;;  %v1286_v40 = vrot.slane %v6471_v13, 5  ;;  %v6667_v13 = vcombine.low %v1270_v5, %v1273_v38 }
  0x62   : > { %5891 = vmatpush3.bf16.msra.mxu0 %v6321_v3  ;;  %5826 = vmatprep.mubr.msk.bf16.mxu0 %vm709_vm2, %v6628_v35  ;;  %v6665_v3 = vcombine.low %v1263_v4, %v1266_v31  ;;  %v1277_v8 = vsel %vm6559_vm6, %v5087_v52, %v1276_v28  ;;  %v1280_v20 = vsel %vm6559_vm6, %v1278_v9, %v1279_v49  ;;  %v1300_v21 = vrot.slane %v6217_v15, 5  ;;  %v7949_v9 = vld [vmem:[#allocation15_spill] sm:$0xff] }
  0x63   : > { %5892 = vmatprep.subr.bf16.mxu0 %v6105_v37  ;;  %v1284_v62 = vsel %vm6559_vm6, %v5088_v6, %v1283_v48  ;;  %v1287_v26 = vsel %vm6559_vm6, %v1285_v29, %v1286_v40  ;;  %v5089_v25 = vrot.slane %v6508_v18, 9  ;;  %v5090_v36 = vrot.slane %v6207_v11, 9  ;;  %v7950_v29 = vld [vmem:[#allocation20_spill] sm:$0xff]  ;;  %v7951_v40 = vld [vmem:[#allocation17_spill] sm:$0xff] }
  0x64   : > { %5787 = vmatmul.mubr.msk.bf16.vlgmr.msra.gmra.mxu1 %vm709_vm2, %v6571_v34  ;;  %v1297_v41 = vrot.slane %v6214_v14, 5  ;;  %v6690_v7 = vcombine.low %v6316_v1, %v6327_v17  ;;  %v6694_v10 = vcombine.low %v6376_v12, %v6381_v24  ;;  %v6698_v50 = vcombine.low %v6411_v19, %v6417_v39 }
  0x65   : > { %5855 = vmatpush3.bf16.msra.mxu1 %v6363_v2  ;;  %5790 = vmatprep.mubr.msk.bf16.mxu1 %vm709_vm2, %v6598_v54  ;;  %v1290_v2 = vrot.slane %v6515_v0, 5  ;;  %v6702_v15 = vcombine.low %v6456_v63, %v6464_v43  ;;  %v6706_v11 = vcombine.low %v1277_v8, %v1280_v20  ;;  %v6708_v14 = vcombine.low %v1284_v62, %v1287_v26  ;;  %v7952_v62 = vld [vmem:[#allocation21_spill] sm:$0xff] }
  0x66   : > { %5856 = vmatprep.subr.bf16.mxu1 %v6103_v22  ;;  %5893 = vmatpush3.bf16.msra.mxu0 %v6105_v37  ;;  %v1293_v1 = vrot.slane %v6520_v46, 5  ;;  %v6713_v17 = vcombine.low %v6346_v42, %v6354_v47  ;;  %v5093_v24 = vrot.slane %v6346_v42, 9  ;;  %v1318_v19 = vrot.slane %v6354_v47, 5 }
  0x67   : > { %5962 = vmatprep.subr.bf16.mxu0 %v6658_v60  ;;  %v1292_v12 = vrot.slane %v1290_v2, 4  ;;  %v1321_v39 = vrot.slane %v6367_v58, 5  ;;  %v1291_v46 = vsel %vm6559_vm6, %v5089_v25, %v1290_v2  ;;  %v1298_v63 = vsel %vm6559_vm6, %v5090_v36, %v1297_v41  ;;  %v7953_v36 = vld [vmem:[#allocation23_spill] sm:$0xff] }
  0x68   : > { %v1299_v43 = vrot.slane %v1297_v41, 4  ;;  %v6727_v28 = vcombine.low %v6392_v44, %v6401_v53  ;;  %v1319_v42 = vsel %vm6559_vm6, %v5093_v24, %v1318_v19  ;;  %v1320_v47 = vrot.slane %v1318_v19, 4 }
  0x69   : > { %5827 = vmatmul.mubr.msk.bf16.gmra.mxu0 %vm709_vm2, %v6665_v3  ;;  %5857 = vmatpush3.bf16.msra.mxu1 %v6103_v22  ;;  %v5094_v58 = vrot.slane %v6392_v44, 9  ;;  %v1325_v37 = vrot.slane %v6401_v53, 5  ;;  %v1304_v4 = vrot.slane %v6254_v57, 5  ;;  %v1328_v5 = vrot.slane %v6408_v51, 5 }
  0x6a   : > { %5830 = vmatprep.mubr.msk.bf16.mxu0 %vm709_vm2, %v6667_v13  ;;  %5926 = vmatprep.subr.bf16.mxu1 %v6681_v56  ;;  %v6741_v48 = vcombine.low %v6433_v33, %v6445_v45  ;;  %v5095_v31 = vrot.slane %v6433_v33, 9  ;;  %v1294_v38 = vsel %vm6559_vm6, %v1292_v12, %v1293_v1  ;;  %v1322_v44 = vsel %vm6559_vm6, %v1320_v47, %v1321_v39 }
  0x6b   : > { %v1326_v53 = vsel %vm6559_vm6, %v5094_v58, %v1325_v37  ;;  %v1327_v52 = vrot.slane %v1325_v37, 4  ;;  %v6750_v49 = vcombine.low %v1319_v42, %v1322_v44  ;;  %v1332_v51 = vrot.slane %v6445_v45, 5  ;;  %v7954_v42 = vld [vmem:[#allocation8_spill] sm:$0xff] }
  0x6c   : > { %5791 = vmatmul.mubr.msk.bf16.gmra.mxu1 %vm709_vm2, %v6690_v7  ;;  %v1335_v6 = vrot.slane %v7949_v9, 5  ;;  %v6756_v22 = vcombine.low %v7951_v40, %v7950_v29  ;;  %v5096_v8 = vrot.slane %v7951_v40, 9  ;;  %v1339_v20 = vrot.slane %v7950_v29, 5  ;;  %v7956_v9 = vld [vmem:[#allocation4_spill] sm:$0xff]  ;;  %v7957_v40 = vld [vmem:[#allocation6_spill] sm:$0xff] }
  0x6d   : > { %5794 = vmatprep.mubr.msk.bf16.mxu1 %vm709_vm2, %v6694_v10  ;;  %v1329_v33 = vsel %vm6559_vm6, %v1327_v52, %v1328_v5  ;;  %v1342_v26 = vrot.slane %v7952_v62, 5  ;;  %v1333_v45 = vsel %vm6559_vm6, %v5095_v31, %v1332_v51  ;;  %v1334_v25 = vrot.slane %v1332_v51, 4 }
  0x6e   : > { %v6765_v2 = vcombine.low %v1326_v53, %v1329_v33  ;;  %v6771_v41 = vcombine.low %v7953_v36, %v6537_v27  ;;  %v1340_v1 = vsel %vm6559_vm6, %v5096_v8, %v1339_v20  ;;  %v1341_v12 = vrot.slane %v1339_v20, 4  ;;  %v7958_v20 = vld [vmem:[#allocation9_spill] sm:$0xff] }
  0x6f   : > { %v5097_v24 = vrot.slane %v7953_v36, 9  ;;  %v1346_v19 = vrot.slane %v6537_v27, 5  ;;  %v1301_v39 = vsel %vm6559_vm6, %v1299_v43, %v1300_v21  ;;  %v1311_v47 = vrot.slane %v7954_v42, 5 }
  0x70   : > { %v1336_v58 = vsel %vm6559_vm6, %v1334_v25, %v1335_v6  ;;  %v1349_v37 = vrot.slane %v6548_v16, 5  ;;  %v1343_v31 = vsel %vm6559_vm6, %v1341_v12, %v1342_v26  ;;  %v6795_v43 = vcombine.low %v1291_v46, %v1294_v38  ;;  %v7955_v16 = vld [vmem:[#allocation3_spill] sm:$0xff]  ;;  %v6123_v38 = vld [vmem:[%s6191_s28 + $0x64] sm:$0xf] }
  0x71   : > { %5831 = vmatmul.mubr.msk.bf16.gmra.mxu0 %vm709_vm2, %v6706_v11  ;;  %v6787_v5 = vcombine.low %v1333_v45, %v1336_v58  ;;  %v1347_v27 = vsel %vm6559_vm6, %v5097_v24, %v1346_v19  ;;  %v1348_v21 = vrot.slane %v1346_v19, 4  ;;  %v5091_v44 = vrot.slane %v7955_v16, 9 }
  0x72   : > { %5834 = vmatprep.mubr.msk.bf16.mxu0 %vm709_vm2, %v6708_v14  ;;  %v6798_v53 = vcombine.low %v1340_v1, %v1343_v31  ;;  %v6800_v52 = vcombine.low %v1298_v63, %v1301_v39  ;;  %v1306_v51 = vrot.slane %v1304_v4, 4  ;;  %v1307_v6 = vrot.slane %v7956_v9, 5  ;;  %v6122_v63 = vld [vmem:[%s6191_s28 + $0x60] sm:$0xf]  ;;  %v7961_v9 = vld [vmem:[#allocation13_spill] sm:$0xff] }
  0x73   : > { %v1350_v29 = vsel %vm6559_vm6, %v1348_v21, %v1349_v37  ;;  %v5092_v33 = vrot.slane %v7957_v40, 9  ;;  %v1313_v8 = vrot.slane %v1311_v47, 4  ;;  %v1314_v62 = vrot.slane %v7958_v20, 5  ;;  %v6874_v39 = vld [vmem:[%s6191_s28 + $0xc0] sm:$0xf]  ;;  %v7959_v21 = vld [vmem:[#allocation7_spill] sm:$0xff] }
  0x74   : > { %5795 = vmatmul.mubr.msk.bf16.gmra.mxu1 %vm709_vm2, %v6698_v50  ;;  %v6807_v26 = vcombine.low %v1347_v27, %v1350_v29  ;;  %v6811_v46 = vcombine.low %v6508_v18, %v6515_v0  ;;  %v6817_v45 = vcombine.low %v6122_v63, %v6123_v38  ;;  %v1305_v25 = vsel %vm6559_vm6, %v5091_v44, %v1304_v4  ;;  %v6115_v44 = vld [vmem:[%s7869_s1 + $0x60] sm:$0xff]   ;;  %v7962_v29 = vld [vmem:[#allocation16_spill] sm:$0xff] }
  0x75   : > { %5798 = vmatprep.mubr.msk.bf16.mxu1 %vm709_vm2, %v6702_v15  ;;  %v1308_v36 = vsel %vm6559_vm6, %v1306_v51, %v1307_v6  ;;  %v1312_v18 = vsel %vm6559_vm6, %v5092_v33, %v1311_v47  ;;  %v1315_v0 = vsel %vm6559_vm6, %v1313_v8, %v1314_v62  ;;  %v6839_v4 = vcombine.low %v7955_v16, %v6254_v57  ;;  %v6868_v57 = vld [vmem:[%s6191_s28 + $0xc4] sm:$0xf]  ;;  %v7960_v51 = vld [vmem:[#allocation11_spill] sm:$0xff]  ;;  %v6114_v6 = vld [vmem:[%s7869_s1 + $0x50] sm:$0xff]  }
  0x76   : > { %v6833_v1 = vcombine.low %v1305_v25, %v1308_v36  ;;  %v6835_v12 = vcombine.low %v1312_v18, %v1315_v0  ;;  %v6845_v24 = vcombine.low %v7957_v40, %v7954_v42  ;;  %v2118_v19 = vrot.slane %v6868_v57, 5  ;;  %v249_v42 = vld [vmem:[%s6191_s28 + $0xc8] sm:$0x1]  ;;  %v7965_v33 = vld [vmem:[#allocation5_spill] sm:$0xff]  ;;  %v7966_v8 = vld [vmem:[#allocation10_spill] sm:$0xff] }
  0x77   : > { %v5182_v47 = vrot.slane %v6874_v39, 9  ;;  %v2121_v37 = vrot.slane %v249_v42, 5  ;;  %v7963_v40 = vld [vmem:[#allocation19_spill] sm:$0xff]  ;;  %v7967_v20 = vld [vmem:[#allocation12_spill] sm:$0xff]  ;;  %v7968_v62 = vld [vmem:[#allocation14_spill] sm:$0xff]  ;;  %v1876_v63 = vshrl.u32 %v6874_v39, 16 }
  0x78   : > { %v2120_v58 = vrot.slane %v2118_v19, 4  ;;  %v1879_v38 = vshll.u32 %v6874_v39, 16  ;;  %v1889_v25 = vshrl.u32 %v6868_v57, 16  ;;  %v1885_v36 = vshll.u32 %v6868_v57, 16 }
  0x79   : > { %5835 = vmatmul.mubr.msk.bf16.gmra.mxu0 %vm709_vm2, %v6795_v43  ;;  %v2119_v31 = vsel %vm6559_vm6, %v5182_v47, %v2118_v19  ;;  %v1878_v18 = vrot.slane %v1876_v63, 4 }
  0x7a   : > { %5838 = vmatprep.mubr.msk.bf16.mxu0 %vm709_vm2, %v6800_v52  ;;  %v2122_v27 = vsel %vm6559_vm6, %v2120_v58, %v2121_v37  ;;  %v1881_v0 = vrot.slane %v1879_v38, 5  ;;  %v1887_v19 = vrot.slane %v1885_v36, 5  ;;  %v1891_v47 = vrot.slane %v1889_v25, 4  ;;  %v7969_v58 = vld [vmem:[#allocation18_spill] sm:$0xff] }
  0x7b   : > { %v6886_v16 = vcombine.low %v2119_v31, %v2122_v27  ;;  %v7970_v37 = vld [vmem:[#allocation22_spill] sm:$0xff]  ;;  %v5140_v36 = vcombine.low %v6874_v39, %v6868_v57 }
  0x7c   : > { %5799 = vmatmul.mubr.msk.bf16.gmra.mxu1 %vm709_vm2, %v6811_v46  ;;  %v1882_v31 = vor.u32 %v1881_v0, %v1878_v18  ;;  %v1892_v27 = vor.u32 %v1891_v47, %v1887_v19  ;;  %v6120_v18 = vld [vmem:[%s7869_s1 + $0x80] sm:$0xff]  }
  0x7d   : > { %5802 = vmatprep.mubr.msk.bf16.mxu1 %vm709_vm2, %v6817_v45 }
  0x81   : > { %5839 = vmatmul.mubr.msk.bf16.gmra.mxu0 %vm709_vm2, %v6833_v1 }
  0x82   : > { %5842 = vmatprep.mubr.msk.bf16.mxu0 %vm709_vm2, %v6835_v12 }
  0x84   : > { %5803 = vmatmul.mubr.msk.bf16.gmra.mxu1 %vm709_vm2, %v6839_v4 }
  0x85   : > { %5806 = vmatprep.mubr.msk.bf16.mxu1 %vm709_vm2, %v6845_v24 }
  0x89   : > { %5843 = vmatmul.mubr.msk.bf16.gmra.mxu0 %vm709_vm2, %v6750_v49 }
  0x8a   : > { %5846 = vmatprep.mubr.msk.bf16.mxu0 %vm709_vm2, %v6765_v2 }
  0x8c   : > { %5807 = vmatmul.mubr.msk.bf16.gmra.mxu1 %vm709_vm2, %v6713_v17 }
  0x8d   : > { %5810 = vmatprep.mubr.msk.bf16.mxu1 %vm709_vm2, %v6727_v28 }
  0x91   : > { %5847 = vmatmul.mubr.msk.bf16.gmra.mxu0 %vm709_vm2, %v6787_v5 }
  0x92   : > { %5850 = vmatprep.mubr.msk.bf16.mxu0 %vm709_vm2, %v6798_v53 }
  0x94   : > { %5811 = vmatmul.mubr.msk.bf16.gmra.mxu1 %vm709_vm2, %v6741_v48 }
  0x95   : > { %5814 = vmatprep.mubr.msk.bf16.mxu1 %vm709_vm2, %v6756_v22 }
  0x99   : > { %5851 = vmatmul.mubr.msk.bf16.gmra.mxu0 %vm709_vm2, %v6807_v26 }
  0x9a   : > { %5894 = vmatprep.mubr.msk.bf16.mxu0 %vm709_vm2, %v7959_v21  ;;  %v1895_v21 = vshll.u32 %v249_v42, 16 }
  0x9c   : > { %5815 = vmatmul.mubr.msk.bf16.gmra.mxu1 %vm709_vm2, %v6771_v41  ;;  %v1897_v63 = vrot.slane %v1895_v21, 5  ;;  %v7084_v21 = vld [vmem:[%s6191_s28 + $0xd0] sm:$0xf] }
  0x9d   : > { %5858 = vmatprep.mubr.msk.bf16.mxu1 %vm709_vm2, %v6571_v34  ;;  %v6118_v34 = vld [vmem:[%s7869_s1 + $0x88] sm:$0xff]  }
  0xa1   : > { %5895 = vmatmul.mubr.msk.bf16.vlgmr.msra.gmra.mxu0 %vm709_vm2, %v7960_v51 }
  0xa2   : > { %5963 = vmatpush3.bf16.msra.mxu0 %v6658_v60  ;;  %5898 = vmatprep.mubr.msk.bf16.mxu0 %vm709_vm2, %v7961_v9  ;;  %v6117_v60 = vld [vmem:[%s7869_s1 + $0x78] sm:$0xff]  }
  0xa3   : > { %5964 = vmatprep.subr.bf16.mxu0 %v6115_v44 }
  0xa4   : > { %5859 = vmatmul.mubr.msk.bf16.vlgmr.msra.gmra.mxu1 %vm709_vm2, %v6598_v54 }
  0xa5   : > { %5927 = vmatpush3.bf16.msra.mxu1 %v6681_v56  ;;  %5862 = vmatprep.mubr.msk.bf16.mxu1 %vm709_vm2, %v6690_v7  ;;  %v7964_v56 = vld [vmem:[#allocation24_spill] sm:$0xff] }
  0xa6   : > { %5928 = vmatprep.subr.bf16.mxu1 %v6114_v6  ;;  %5965 = vmatpush3.bf16.msra.mxu0 %v6115_v44  ;;  %v1883_v44 = vrot.slane %v1882_v31, 4 }
  0xa7   : > { %6034 = vmatprep.subr.bf16.mxu0 %v6118_v34 }
  0xa8   : > { %v1888_v38 = vsel %vm6232_vm3, %v1883_v44, %v1887_v19 }
  0xa9   : > { %5899 = vmatmul.mubr.msk.bf16.gmra.mxu0 %vm709_vm2, %v7962_v29  ;;  %5929 = vmatpush3.bf16.msra.mxu1 %v6114_v6  ;;  %v1893_v6 = vrot.slane %v1892_v27, 4 }
  0xaa   : > { %5902 = vmatprep.mubr.msk.bf16.mxu0 %vm709_vm2, %v7963_v40  ;;  %5998 = vmatprep.subr.bf16.mxu1 %v6117_v60 }
  0xab   : > { %v1898_v42 = vsel %vm6232_vm3, %v1893_v6, %v1897_v63 }
  0xac   : > { %5863 = vmatmul.mubr.msk.bf16.gmra.mxu1 %vm709_vm2, %v6694_v10  ;;  %v6970_v25 = vcombine.low %v1888_v38, %v1898_v42 }
  0xad   : > { %5866 = vmatprep.mubr.msk.bf16.mxu1 %vm709_vm2, %v6698_v50 }
  0xae   : > { %7971 = vst [vmem:[#allocation15_spill] sm:$0xff] %v6970_v25 }
  0xb1   : > { %5903 = vmatmul.mubr.msk.bf16.gmra.mxu0 %vm709_vm2, %v7964_v56 }
  0xb2   : > { %5906 = vmatprep.mubr.msk.bf16.mxu0 %vm709_vm2, %v6580_v32 }
  0xb4   : > { %5867 = vmatmul.mubr.msk.bf16.gmra.mxu1 %vm709_vm2, %v6702_v15 }
  0xb5   : > { %5870 = vmatprep.mubr.msk.bf16.mxu1 %vm709_vm2, %v6811_v46 }
  0xb9   : > { %5907 = vmatmul.mubr.msk.bf16.gmra.mxu0 %vm709_vm2, %v7965_v33 }
  0xba   : > { %5910 = vmatprep.mubr.msk.bf16.mxu0 %vm709_vm2, %v7966_v8 }
  0xbc   : > { %5871 = vmatmul.mubr.msk.bf16.gmra.mxu1 %vm709_vm2, %v6817_v45 }
  0xbd   : > { %5874 = vmatprep.mubr.msk.bf16.mxu1 %vm709_vm2, %v6839_v4 }
  0xc1   : > { %5911 = vmatmul.mubr.msk.bf16.gmra.mxu0 %vm709_vm2, %v7967_v20 }
  0xc2   : > { %5914 = vmatprep.mubr.msk.bf16.mxu0 %vm709_vm2, %v7968_v62 }
  0xc4   : > { %5875 = vmatmul.mubr.msk.bf16.gmra.mxu1 %vm709_vm2, %v6845_v24 }
  0xc5   : > { %5878 = vmatprep.mubr.msk.bf16.mxu1 %vm709_vm2, %v6713_v17 }
  0xc9   : > { %5915 = vmatmul.mubr.msk.bf16.gmra.mxu0 %vm709_vm2, %v7969_v58 }
  0xca   : > { %5918 = vmatprep.mubr.msk.bf16.mxu0 %vm709_vm2, %v7970_v37 }
  0xcc   : > { %5879 = vmatmul.mubr.msk.bf16.gmra.mxu1 %vm709_vm2, %v6727_v28 }
  0xcd   : > { %5882 = vmatprep.mubr.msk.bf16.mxu1 %vm709_vm2, %v6741_v48 }
  0xd1   : > { %5919 = vmatmul.mubr.msk.bf16.gmra.mxu0 %vm709_vm2, %v6554_v23 }
  0xd2   : > { %5922 = vmatprep.mubr.msk.bf16.mxu0 %vm709_vm2, %v6608_v59 }
  0xd4   : > { %5883 = vmatmul.mubr.msk.bf16.gmra.mxu1 %vm709_vm2, %v6756_v22 }
  0xd5   : > { %5886 = vmatprep.mubr.msk.bf16.mxu1 %vm709_vm2, %v6771_v41 }
  0xd9   : > { %5923 = vmatmul.mubr.msk.bf16.gmra.mxu0 %vm709_vm2, %v6970_v25 }
  0xda   : > { %5966 = vmatprep.mubr.msk.bf16.mxu0 %vm709_vm2, %v6598_v54  ;;  %v6119_v54 = vld [vmem:[%s7869_s1 + $0x70] sm:$0xff]  }
  0xdc   : > { %5887 = vmatmul.mubr.msk.bf16.gmra.mxu1 %vm709_vm2, %v5140_v36 }
  0xdd   : > { %5930 = vmatprep.mubr.msk.bf16.mxu1 %vm709_vm2, %v6605_v61 }
  0xe1   : > { %5967 = vmatmul.mubr.msk.bf16.vlgmr.msra.gmra.mxu0 %vm709_vm2, %v6690_v7 }
  0xe2   : > { %6035 = vmatpush3.bf16.msra.mxu0 %v6118_v34  ;;  %5970 = vmatprep.mubr.msk.bf16.mxu0 %vm709_vm2, %v6694_v10 }
  0xe3   : > { %6036 = vmatprep.subr.bf16.mxu0 %v6120_v18 }
  0xe4   : > { %5931 = vmatmul.mubr.msk.bf16.vlgmr.msra.gmra.mxu1 %vm709_vm2, %v6628_v35 }
  0xe5   : > { %5999 = vmatpush3.bf16.msra.mxu1 %v6117_v60  ;;  %5934 = vmatprep.mubr.msk.bf16.mxu1 %vm709_vm2, %v6665_v3  ;;  %v6997_v61 = vpop.f32.mrf.mxu0 }
  0xe6   : > { %6000 = vmatprep.subr.bf16.mxu1 %v6119_v54  ;;  %6037 = vmatpush3.bf16.msra.mxu0 %v6120_v18 }
  0xe7   : > { %v7007_v10 = vpop.f32.mrf.mxu0 }
  0xe9   : > { %5971 = vmatmul.mubr.msk.bf16.gmra.mxu0 %vm709_vm2, %v6698_v50  ;;  %6001 = vmatpush3.bf16.msra.mxu1 %v6119_v54  ;;  %v7013_v50 = vpop.f32.mrf.mxu0 }
  0xea   : > { %5974 = vmatprep.mubr.msk.bf16.mxu0 %vm709_vm2, %v6702_v15  ;;  %v7003_v7 = vpop.f32.mrf.mxu1 }
  0xeb   : > { %v7023_v39 = vpop.f32.mrf.mxu0 }
  0xec   : > { %5935 = vmatmul.mubr.msk.bf16.gmra.mxu1 %vm709_vm2, %v6667_v13  ;;  %v7009_v57 = vpop.f32.mrf.mxu1 }
  0xed   : > { %5938 = vmatprep.mubr.msk.bf16.mxu1 %vm709_vm2, %v6706_v11 }
  0xee   : > { %v7019_v15 = vpop.f32.mrf.mxu1 }
  0xf0   : > { %v7025_v34 = vpop.f32.mrf.mxu1 }
  0xf1   : > { %5975 = vmatmul.mubr.msk.bf16.gmra.mxu0 %vm709_vm2, %v6811_v46 }
  0xf2   : > { %5978 = vmatprep.mubr.msk.bf16.mxu0 %vm709_vm2, %v6817_v45 }
  0xf4   : > { %5939 = vmatmul.mubr.msk.bf16.gmra.mxu1 %vm709_vm2, %v6708_v14 }
  0xf5   : > { %5942 = vmatprep.mubr.msk.bf16.mxu1 %vm709_vm2, %v6795_v43 }
  0xf6   : > { %v7029_v46 = vpop.f32.mrf.mxu0 }
  0xf8   : > { %v7039_v60 = vpop.f32.mrf.mxu0 }
  0xf9   : > { %5979 = vmatmul.mubr.msk.bf16.gmra.mxu0 %vm709_vm2, %v6839_v4 }
  0xfa   : > { %5982 = vmatprep.mubr.msk.bf16.mxu0 %vm709_vm2, %v6845_v24  ;;  %v7035_v45 = vpop.f32.mrf.mxu1  ;;  %v7045_v4 = vpop.f32.mrf.mxu0 }
  0xfc   : > { %5943 = vmatmul.mubr.msk.bf16.gmra.mxu1 %vm709_vm2, %v6800_v52  ;;  %v7041_v0 = vpop.f32.mrf.mxu1  ;;  %v7055_v19 = vpop.f32.mrf.mxu0 }
  0xfd   : > { %5946 = vmatprep.mubr.msk.bf16.mxu1 %vm709_vm2, %v6833_v1 }
  0xfe   : > { %v7051_v24 = vpop.f32.mrf.mxu1 }
 0x100   : > { %v7057_v47 = vpop.f32.mrf.mxu1 }
 0x101   : > { %5983 = vmatmul.mubr.msk.bf16.gmra.mxu0 %vm709_vm2, %v6713_v17 }
 0x102   : > { %5986 = vmatprep.mubr.msk.bf16.mxu0 %vm709_vm2, %v6727_v28 }
 0x104   : > { %5947 = vmatmul.mubr.msk.bf16.gmra.mxu1 %vm709_vm2, %v6835_v12 }
 0x105   : > { %5950 = vmatprep.mubr.msk.bf16.mxu1 %vm709_vm2, %v6750_v49 }
 0x107   : > { %v7061_v17 = vpop.f32.mrf.mxu0 }
 0x109   : > { %5987 = vmatmul.mubr.msk.bf16.gmra.mxu0 %vm709_vm2, %v6741_v48  ;;  %v7071_v31 = vpop.f32.mrf.mxu0 }
 0x10a   : > { %5990 = vmatprep.mubr.msk.bf16.mxu0 %vm709_vm2, %v6756_v22  ;;  %v7081_v22 = vld [vmem:[%s6191_s28 + $0xcc] sm:$0xf] }
 0x10b   : > { %v7077_v48 = vpop.f32.mrf.mxu0 }
 0x10c   : > { %5951 = vmatmul.mubr.msk.bf16.gmra.mxu1 %vm709_vm2, %v6765_v2  ;;  %v7067_v28 = vpop.f32.mrf.mxu1 }
 0x10d   : > { %7972 = vst [vmem:[#allocation20_spill] sm:$0xff] %v7067_v28  ;;  %5954 = vmatprep.mubr.msk.bf16.mxu1 %vm709_vm2, %v6787_v5  ;;  %v7090_v6 = vpop.f32.mrf.mxu0 }
 0x10e   : > { %v7073_v27 = vpop.f32.mrf.mxu1 }
 0x10f   : > { %7973 = vst [vmem:[#allocation17_spill] sm:$0xff] %v7073_v27 }
 0x110   : > { %v7088_v44 = vpop.f32.mrf.mxu1 }
 0x111   : > { %5991 = vmatmul.mubr.msk.bf16.gmra.mxu0 %vm709_vm2, %v6771_v41  ;;  %7974 = vst [vmem:[#allocation21_spill] sm:$0xff] %v7088_v44  ;;  %v5210_v41 = vcombine.low %v7081_v22, %v7084_v21 }
 0x112   : > { %5994 = vmatprep.mubr.msk.bf16.mxu0 %vm709_vm2, %v5140_v36  ;;  %v7096_v63 = vpop.f32.mrf.mxu1 }
 0x113   : > { %7975 = vst [vmem:[#allocation23_spill] sm:$0xff] %v7096_v63 }
 0x114   : > { %5955 = vmatmul.mubr.msk.bf16.gmra.mxu1 %vm709_vm2, %v6798_v53 }
 0x115   : > { %5958 = vmatprep.mubr.msk.bf16.mxu1 %vm709_vm2, %v6807_v26 }
 0x119   : > { %v7098_v38 = vpop.f32.mrf.mxu0  ;;  %5995 = vmatmul.mubr.msk.bf16.gmra.mxu0 %vm709_vm2, %v5210_v41 }
 0x11a   : > { %6038 = vmatprep.mubr.msk.bf16.mxu0 %vm709_vm2, %v6628_v35 }
 0x11b   : > { %v7103_v42 = vpop.f32.mrf.mxu0 }
 0x11c   : > { %v7105_v36 = vpop.f32.mrf.mxu1  ;;  %5959 = vmatmul.mubr.msk.bf16.gmra.mxu1 %vm709_vm2, %v6886_v16 }
 0x11d   : > { %7976 = vst [vmem:[#allocation8_spill] sm:$0xff] %v7105_v36  ;;  %v7109_v18 = vpop.f32.mrf.mxu0  ;;  %6002 = vmatprep.mubr.msk.bf16.mxu1 %vm709_vm2, %v7960_v51 }
 0x11e   : > { %v7113_v54 = vpop.f32.mrf.mxu1 }
 0x11f   : > { %7977 = vst [vmem:[#allocation3_spill] sm:$0xff] %v7113_v54  ;;  %v7115_v63 = vpop.f32.mrf.mxu0 }
 0x120   : > { %v7117_v41 = vpop.f32.mrf.mxu1 }
 0x121   : > { %7978 = vst [vmem:[#allocation4_spill] sm:$0xff] %v7117_v41  ;;  %v5824_v44 = vpop.f32.mrf.mxu0  ;;  %6039 = vmatmul.mubr.msk.bf16.vlgmr.msra.gmra.mxu0 %vm709_vm2, %v6665_v3 }
 0x122   : > { %v7121_v35 = vpop.f32.mrf.mxu1  ;;  %6042 = vmatprep.mubr.msk.bf16.mxu0 %vm709_vm2, %v6667_v13 }
 0x123   : > { %7979 = vst [vmem:[#allocation6_spill] sm:$0xff] %v7121_v35  ;;  %v1498_v36 = vpop.f32.mrf.mxu0 }
 0x124   : > { %v5788_v27 = vpop.f32.mrf.mxu1  ;;  %6003 = vmatmul.mubr.msk.bf16.vlgmr.msra.gmra.mxu1 %vm709_vm2, %v7961_v9 }
 0x125   : > { %v1102_v51 = vadd.f32 %v5788_v27, %v6997_v61  ;;  %v5825_v54 = vpop.f32.mrf.mxu0  ;;  %6006 = vmatprep.mubr.msk.bf16.mxu1 %vm709_vm2, %v7962_v29 }
 0x126   : > { %v1093_v41 = vpop.f32.mrf.mxu1 }
 0x127   : > { %v7130_v25 = vadd.f32 %v5824_v44, %v1102_v51  ;;  %v1094_v3 = vadd.f32 %v1093_v41, %v7007_v10  ;;  %v1501_v35 = vpop.f32.mrf.mxu0 }
 0x128   : > { %v5789_v28 = vpop.f32.mrf.mxu1 }
 0x129   : > { %v7133_v30 = vadd.f32 %v1498_v36, %v1094_v3  ;;  %v1105_v13 = vadd.f32 %v5789_v28, %v7013_v50  ;;  %v5828_v59 = vpop.f32.mrf.mxu0  ;;  %6043 = vmatmul.mubr.msk.bf16.gmra.mxu0 %vm709_vm2, %v6706_v11 }
 0x12a   : > { %v1096_v9 = vpop.f32.mrf.mxu1  ;;  %6046 = vmatprep.mubr.msk.bf16.mxu0 %vm709_vm2, %v6708_v14 }
 0x12b   : > { %v7140_v29 = vadd.f32 %v5825_v54, %v1105_v13  ;;  %v1097_v61 = vadd.f32 %v1096_v9, %v7023_v39  ;;  %v1514_v27 = vpop.f32.mrf.mxu0 }
 0x12c   : > { %v5792_v10 = vpop.f32.mrf.mxu1  ;;  %6007 = vmatmul.mubr.msk.bf16.gmra.mxu1 %vm709_vm2, %v7963_v40 }
 0x12d   : > { %v7145_v44 = vadd.f32 %v1501_v35, %v1097_v61  ;;  %v1118_v50 = vadd.f32 %v5792_v10, %v7029_v46  ;;  %v5829_v28 = vpop.f32.mrf.mxu0  ;;  %6010 = vmatprep.mubr.msk.bf16.mxu1 %vm709_vm2, %v7964_v56 }
 0x12e   : > { %v1109_v11 = vpop.f32.mrf.mxu1 }
 0x12f   : > { %v7150_v36 = vadd.f32 %v5828_v59, %v1118_v50  ;;  %v1110_v14 = vadd.f32 %v1109_v11, %v7039_v60  ;;  %v1517_v54 = vpop.f32.mrf.mxu0 }
 0x130   : > { %v5793_v39 = vpop.f32.mrf.mxu1 }
 0x131   : > { %v7153_v41 = vadd.f32 %v1514_v27, %v1110_v14  ;;  %v1121_v51 = vadd.f32 %v5793_v39, %v7045_v4  ;;  %v5832_v40 = vpop.f32.mrf.mxu0  ;;  %6047 = vmatmul.mubr.msk.bf16.gmra.mxu0 %vm709_vm2, %v6795_v43 }
 0x132   : > { %v1112_v46 = vpop.f32.mrf.mxu1  ;;  %6050 = vmatprep.mubr.msk.bf16.mxu0 %vm709_vm2, %v6800_v52 }
 0x133   : > { %v7160_v56 = vadd.f32 %v5829_v28, %v1121_v51  ;;  %v1113_v59 = vadd.f32 %v1112_v46, %v7055_v19  ;;  %v1530_v35 = vpop.f32.mrf.mxu0 }
 0x134   : > { %v5796_v60 = vpop.f32.mrf.mxu1  ;;  %6011 = vmatmul.mubr.msk.bf16.gmra.mxu1 %vm709_vm2, %v6580_v32 }
 0x135   : > { %v7165_v3 = vadd.f32 %v1517_v54, %v1113_v59  ;;  %v1134_v4 = vadd.f32 %v5796_v60, %v7061_v17  ;;  %v5833_v13 = vpop.f32.mrf.mxu0  ;;  %6014 = vmatprep.mubr.msk.bf16.mxu1 %vm709_vm2, %v7965_v33 }
 0x136   : > { %v1125_v43 = vpop.f32.mrf.mxu1 }
 0x137   : > { %v7170_v9 = vadd.f32 %v5832_v40, %v1134_v4  ;;  %v1126_v52 = vadd.f32 %v1125_v43, %v7071_v31  ;;  %v1533_v61 = vpop.f32.mrf.mxu0 }
 0x138   : > { %v5797_v19 = vpop.f32.mrf.mxu1 }
 0x139   : > { %v7173_v27 = vadd.f32 %v1530_v35, %v1126_v52  ;;  %v1137_v10 = vadd.f32 %v5797_v19, %v7077_v48  ;;  %v5836_v32 = vpop.f32.mrf.mxu0  ;;  %6051 = vmatmul.mubr.msk.bf16.gmra.mxu0 %vm709_vm2, %v6833_v1  ;;  %v2561_v35 = vshll.u32 %v7081_v22, 16 }
 0x13a   : > { %v1128_v17 = vpop.f32.mrf.mxu1  ;;  %6054 = vmatprep.mubr.msk.bf16.mxu0 %vm709_vm2, %v6835_v12 }
 0x13b   : > { %v7180_v33 = vadd.f32 %v5833_v13, %v1137_v10  ;;  %v1129_v50 = vadd.f32 %v1128_v17, %v7090_v6  ;;  %v1546_v28 = vpop.f32.mrf.mxu0  ;;  %v2563_v19 = vrot.slane %v2561_v35, 5 }
 0x13c   : > { %v5800_v31 = vpop.f32.mrf.mxu1  ;;  %6015 = vmatmul.mubr.msk.bf16.gmra.mxu1 %vm709_vm2, %v7966_v8 }
 0x13d   : > { %v7185_v11 = vadd.f32 %v1533_v61, %v1129_v50  ;;  %v1150_v48 = vadd.f32 %v5800_v31, %v7098_v38  ;;  %v5837_v14 = vpop.f32.mrf.mxu0  ;;  %6018 = vmatprep.mubr.msk.bf16.mxu1 %vm709_vm2, %v7967_v20 }
 0x13e   : > { %v1141_v1 = vpop.f32.mrf.mxu1 }
 0x13f   : > { %v7190_v54 = vadd.f32 %v5836_v32, %v1150_v48  ;;  %v1142_v12 = vadd.f32 %v1141_v1, %v7103_v42  ;;  %v1549_v39 = vpop.f32.mrf.mxu0  ;;  %v2558_v42 = vshrl.u32 %v7081_v22, 16 }
 0x140   : > { %v5801_v6 = vpop.f32.mrf.mxu1 }
 0x141   : > { %v7193_v51 = vadd.f32 %v1546_v28, %v1142_v12  ;;  %v1153_v40 = vadd.f32 %v5801_v6, %v7109_v18  ;;  %v5840_v8 = vpop.f32.mrf.mxu0  ;;  %6055 = vmatmul.mubr.msk.bf16.gmra.mxu0 %vm709_vm2, %v6750_v49  ;;  %v2567_v18 = vshll.u32 %v7084_v21, 16  ;;  %v2571_v49 = vshrl.u32 %v7084_v21, 16 }
 0x142   : > { %v1144_v38 = vpop.f32.mrf.mxu1  ;;  %6058 = vmatprep.mubr.msk.bf16.mxu0 %vm709_vm2, %v6765_v2 }
 0x143   : > { %v7200_v20 = vadd.f32 %v5837_v14, %v1153_v40  ;;  %v1145_v46 = vadd.f32 %v1144_v38, %v7115_v63  ;;  %v1562_v59 = vpop.f32.mrf.mxu0  ;;  %v2569_v32 = vrot.slane %v2567_v18, 5  ;;  %v2573_v17 = vrot.slane %v2571_v49, 4 }
 0x144   : > { %v5804_v60 = vpop.f32.mrf.mxu1  ;;  %6019 = vmatmul.mubr.msk.bf16.gmra.mxu1 %vm709_vm2, %v7968_v62  ;;  %v2560_v62 = vrot.slane %v2558_v42, 4  ;;  %v5252_v40 = vrot.slane %v7081_v22, 9 }
 0x145   : > { %v7209_v4 = vadd.f32 %v1549_v39, %v1145_v46  ;;  %v1166_v2 = vadd.f32 %v5804_v60, %v7003_v7  ;;  %v5841_v13 = vpop.f32.mrf.mxu0  ;;  %6022 = vmatprep.mubr.msk.bf16.mxu1 %vm709_vm2, %v7969_v58  ;;  %v2800_v58 = vrot.slane %v7084_v21, 5 }
 0x146   : > { %v1157_v63 = vpop.f32.mrf.mxu1 }
 0x147   : > { %v7214_v43 = vadd.f32 %v5840_v8, %v1166_v2  ;;  %v1158_v52 = vadd.f32 %v1157_v63, %v7009_v57  ;;  %v1565_v61 = vpop.f32.mrf.mxu0  ;;  %v252_v57 = vld [vmem:[%s6191_s28 + $0xd4] sm:$0x1]  ;;  %s6075_s28 = smul.u32 80, %s7998_s16 }
 0x148   : > { %v5805_v10 = vpop.f32.mrf.mxu1  ;;  %v2577_v6 = vshll.u32 %v252_v57, 16  ;;  %v2803_v38 = vrot.slane %v252_v57, 5 }
 0x149   : > { %v7217_v50 = vadd.f32 %v1562_v59, %v1158_v52  ;;  %v1169_v7 = vadd.f32 %v5805_v10, %v7019_v15  ;;  %v5844_v28 = vpop.f32.mrf.mxu0  ;;  %6059 = vmatmul.mubr.msk.bf16.gmra.mxu0 %vm709_vm2, %v6787_v5  ;;  %v2564_v15 = vor.u32 %v2563_v19, %v2560_v62  ;;  %s7337_s10 = scalar_lea.vmem %s7872_s4, %s6075_s28 }
 0x14a   : > { %v1160_v31 = vpop.f32.mrf.mxu1  ;;  %6062 = vmatprep.mubr.msk.bf16.mxu0 %vm709_vm2, %v6798_v53  ;;  %v2574_v53 = vor.u32 %v2573_v17, %v2569_v32  ;;  %v2579_v22 = vrot.slane %v2577_v6, 5 }
 0x14b   : > { %v7226_v48 = vadd.f32 %v5841_v13, %v1169_v7  ;;  %v1161_v14 = vadd.f32 %v1160_v31, %v7025_v34  ;;  %v1578_v1 = vpop.f32.mrf.mxu0  ;;  %v2802_v34 = vrot.slane %v2800_v58, 4  ;;  %v2565_v35 = vrot.slane %v2564_v15, 4  ;;  %v7983_v7 = vld [vmem:[#allocation15_spill] sm:$0xff]  ;;  %v7984_v31 = vld [vmem:[#allocation17_spill] sm:$0xff] }
 0x14c   : > { %v5808_v12 = vpop.f32.mrf.mxu1  ;;  %6023 = vmatmul.mubr.msk.bf16.gmra.mxu1 %vm709_vm2, %v7970_v37  ;;  %v7985_v15 = vld [vmem:[#allocation21_spill] sm:$0xff] }
 0x14d   : > { %v7231_v39 = vadd.f32 %v1565_v61, %v1161_v14  ;;  %v1182_v5 = vadd.f32 %v5808_v12, %v7035_v45  ;;  %v5845_v21 = vpop.f32.mrf.mxu0  ;;  %6026 = vmatprep.mubr.msk.bf16.mxu1 %vm709_vm2, %v6554_v23  ;;  %v2575_v23 = vrot.slane %v2574_v53, 4  ;;  %v2804_v2 = vsel %vm6559_vm6, %v2802_v34, %v2803_v38  ;;  %v7980_v61 = vld [vmem:[#allocation25_spill] sm:$0xff] }
 0x14e   : > { %v1173_v8 = vpop.f32.mrf.mxu1  ;;  %v2570_v62 = vsel %vm6232_vm3, %v2565_v35, %v2569_v32 }
 0x14f   : > { %v7237_v46 = vadd.f32 %v5844_v28, %v1182_v5  ;;  %v1174_v37 = vadd.f32 %v1173_v8, %v7041_v0  ;;  %v1581_v59 = vpop.f32.mrf.mxu0  ;;  %v2801_v0 = vsel %vm6559_vm6, %v5252_v40, %v2800_v58  ;;  %v2580_v55 = vsel %vm6232_vm3, %v2575_v23, %v2579_v22  ;;  %v7986_v40 = vld [vmem:[#allocation23_spill] sm:$0xff] }
 0x150   : > { %v5809_v42 = vpop.f32.mrf.mxu1  ;;  %v5233_v32 = vcombine.low %v2570_v62, %v2580_v55  ;;  %v7988_v23 = vld [vmem:[#allocation3_spill] sm:$0xff]  ;;  %v7990_v62 = vld [vmem:[#allocation6_spill] sm:$0xff] }
 0x151   : > { %v7240_v60 = vadd.f32 %v1578_v1, %v1174_v37  ;;  %v1185_v45 = vadd.f32 %v5809_v42, %v7051_v24  ;;  %v5848_v18 = vpop.f32.mrf.mxu0  ;;  %6063 = vmatmul.mubr.msk.bf16.gmra.mxu0 %vm709_vm2, %v6807_v26 }
 0x152   : > { %v1176_v49 = vpop.f32.mrf.mxu1  ;;  %6066 = vmatprep.mubr.msk.bf16.mxu0 %vm709_vm2, %v6886_v16  ;;  %v7982_v16 = vld [vmem:[#allocation20_spill] sm:$0xff] }
 0x153   : > { %v7251_v13 = vadd.f32 %v5845_v21, %v1185_v45  ;;  %v1177_v24 = vadd.f32 %v1176_v49, %v7057_v47  ;;  %v1594_v63 = vpop.f32.mrf.mxu0  ;;  %v5257_v47 = vcombine.low %v2801_v0, %v2804_v2 }
 0x154   : > { %v5812_v52 = vpop.f32.mrf.mxu1  ;;  %6027 = vmatmul.mubr.msk.bf16.gmra.mxu1 %vm709_vm2, %v7980_v61 }
 0x155   : > { %v7258_v19 = vadd.f32 %v1581_v59, %v1177_v24  ;;  %v1198_v10 = vadd.f32 %v5812_v52, %v7982_v16  ;;  %v5849_v17 = vpop.f32.mrf.mxu0  ;;  %6030 = vmatprep.mubr.msk.bf16.mxu1 %vm709_vm2, %v7983_v7  ;;  %v7987_v59 = vld [vmem:[#allocation8_spill] sm:$0xff] }
 0x156   : > { %v1189_v28 = vpop.f32.mrf.mxu1  ;;  %v7989_v24 = vld [vmem:[#allocation4_spill] sm:$0xff] }
 0x157   : > { %v7265_v58 = vadd.f32 %v5848_v18, %v1198_v10  ;;  %v1190_v57 = vadd.f32 %v1189_v28, %v7984_v31  ;;  %v1597_v14 = vpop.f32.mrf.mxu0 }
 0x158   : > { %v5813_v1 = vpop.f32.mrf.mxu1 }
 0x159   : > { %v7268_v12 = vadd.f32 %v1594_v63, %v1190_v57  ;;  %v1201_v5 = vadd.f32 %v5813_v1, %v7985_v15  ;;  %v5852_v21 = vpop.f32.mrf.mxu0  ;;  %6067 = vmatmul.mubr.msk.bf16.gmra.mxu0 %vm709_vm2, %v5257_v47 }
 0x15a   : > { %v1192_v53 = vpop.f32.mrf.mxu1 }
 0x15b   : > { %v7272_v6 = vadd.f32 %v5849_v17, %v1201_v5  ;;  %v1193_v8 = vadd.f32 %v1192_v53, %v7986_v40  ;;  %v1610_v34 = vpop.f32.mrf.mxu0 }
 0x15c   : > { %v5816_v38 = vpop.f32.mrf.mxu1  ;;  %6031 = vmatmul.mubr.msk.bf16.gmra.mxu1 %vm709_vm2, %v5233_v32  ;;  %vm7600_vm2 = vmand %vm4894_vm15, %vm4895_vm0 }
 0x15d   : > { %v7276_v37 = vadd.f32 %v1597_v14, %v1193_v8  ;;  %v1214_v42 = vadd.f32 %v5816_v38, %v7987_v59  ;;  %v5853_v35 = vpop.f32.mrf.mxu0 }
 0x15e   : > { %v1205_v45 = vpop.f32.mrf.mxu1 }
 0x15f   : > { %v7279_v18 = vadd.f32 %v5852_v21, %v1214_v42  ;;  %v1206_v22 = vadd.f32 %v1205_v45, %v7988_v23  ;;  %v1613_v49 = vpop.f32.mrf.mxu0 }
 0x160   : > { %v5817_v0 = vpop.f32.mrf.mxu1 }
 0x161   : > { %v7282_v2 = vadd.f32 %v1610_v34, %v1206_v22  ;;  %v1217_v63 = vadd.f32 %v5817_v0, %v7989_v24  ;;  %v5896_v52 = vpop.f32.mrf.mxu0 }
 0x162   : > { %v1208_v61 = vpop.f32.mrf.mxu1 }
 0x163   : > { %v7285_v26 = vadd.f32 %v5853_v35, %v1217_v63  ;;  %v1209_v16 = vadd.f32 %v1208_v61, %v7990_v62  ;;  %v1956_v10 = vpop.f32.mrf.mxu0 }
 0x164   : > { %v5860_v17 = vpop.f32.mrf.mxu1 }
 0x165   : > { %v7288_v7 = vadd.f32 %v1613_v49, %v1209_v16  ;;  %v1845_v55 = vadd.f32 %v5860_v17, %v7130_v25  ;;  %v5897_v47 = vpop.f32.mrf.mxu0 }
 0x166   : > { %v1716_v28 = vpop.f32.mrf.mxu1 }
 0x167   : > { %v7291_v31 = vadd.f32 %v5896_v52, %v1845_v55  ;;  %v1843_v57 = vadd.f32 %v1716_v28, %v7133_v30  ;;  %v1959_v14 = vpop.f32.mrf.mxu0 }
 0x168   : > { %v5861_v1 = vpop.f32.mrf.mxu1 }
 0x169   : > { %v7294_v32 = vadd.f32 %v1956_v10, %v1843_v57  ;;  %v1846_v15 = vadd.f32 %v5861_v1, %v7140_v29  ;;  %v5900_v5 = vpop.f32.mrf.mxu0 }
 0x16a   : > { %v1719_v21 = vpop.f32.mrf.mxu1 }
 0x16b   : > { %v7297_v53 = vadd.f32 %v5897_v47, %v1846_v15  ;;  %v1844_v40 = vadd.f32 %v1719_v21, %v7145_v44  ;;  %v1972_v8 = vpop.f32.mrf.mxu0 }
 0x16c   : > { %v5864_v25 = vpop.f32.mrf.mxu1 }
 0x16d   : > { %v7300_v34 = vadd.f32 %v1959_v14, %v1844_v40  ;;  %v1849_v38 = vadd.f32 %v5864_v25, %v7150_v36  ;;  %v5901_v59 = vpop.f32.mrf.mxu0 }
 0x16e   : > { %v1732_v30 = vpop.f32.mrf.mxu1 }
 0x16f   : > { %v7303_v42 = vadd.f32 %v5900_v5, %v1849_v38  ;;  %v1847_v35 = vadd.f32 %v1732_v30, %v7153_v41  ;;  %v1975_v45 = vpop.f32.mrf.mxu0 }
 0x170   : > { %v5865_v29 = vpop.f32.mrf.mxu1 }
 0x171   : > { %v7306_v23 = vadd.f32 %v1972_v8, %v1847_v35  ;;  %v1850_v22 = vadd.f32 %v5865_v29, %v7160_v56  ;;  %v5904_v49 = vpop.f32.mrf.mxu0 }
 0x172   : > { %v1735_v44 = vpop.f32.mrf.mxu1 }
 0x173   : > { %v7309_v0 = vadd.f32 %v5901_v59, %v1850_v22  ;;  %v1848_v24 = vadd.f32 %v1735_v44, %v7165_v3  ;;  %v1988_v63 = vpop.f32.mrf.mxu0 }
 0x174   : > { %v5868_v36 = vpop.f32.mrf.mxu1 }
 0x175   : > { %v7312_v52 = vadd.f32 %v1975_v45, %v1848_v24  ;;  %v1853_v61 = vadd.f32 %v5868_v36, %v7170_v9  ;;  %v5905_v62 = vpop.f32.mrf.mxu0  ;;  %v6134_v45 = vmov 0  }
 0x176   : > { %v1748_v41 = vpop.f32.mrf.mxu1  ;;  %4477 = vst [vmem:[%s7337_s10 + $0x8] sm:$0xf] %v6134_v45  ;;  %4478 = vst [vmem:[%s7337_s10 + $0xc] sm:$0x1] %v6134_v45 }
 0x177   : > { %v7315_v16 = vadd.f32 %v5904_v49, %v1853_v61  ;;  %v1851_v10 = vadd.f32 %v1748_v41, %v7173_v27  ;;  %v1991_v56 = vpop.f32.mrf.mxu0  ;;  %4475 = vst [vmem:[%s7337_s10] sm:$0xf] %v6134_v45  ;;  %4476 = vst [vmem:[%s7337_s10 + $0x4] sm:$0x1] %v6134_v45 }
 0x178   : > { %v5869_v17 = vpop.f32.mrf.mxu1  ;;  %4479 = vst [vmem:[%s7337_s10 + $0x10] sm:$0xf] %v6134_v45  ;;  %4480 = vst [vmem:[%s7337_s10 + $0x14] sm:$0x1] %v6134_v45 }
 0x179   : > { %v7318_v55 = vadd.f32 %v1988_v63, %v1851_v10  ;;  %v1854_v47 = vadd.f32 %v5869_v17, %v7180_v33  ;;  %v5908_v3 = vpop.f32.mrf.mxu0  ;;  %4481 = vst [vmem:[%s7337_s10 + $0x18] sm:$0xf] %v6134_v45  ;;  %4482 = vst [vmem:[%s7337_s10 + $0x1c] sm:$0x1] %v6134_v45 }
 0x17a   : > { %v1751_v28 = vpop.f32.mrf.mxu1  ;;  %4483 = vst [vmem:[%s7337_s10 + $0x20] sm:$0xf] %v6134_v45  ;;  %4484 = vst [vmem:[%s7337_s10 + $0x24] sm:$0x1] %v6134_v45 }
 0x17b   : > { %v7321_v57 = vadd.f32 %v5905_v62, %v1854_v47  ;;  %v1852_v14 = vadd.f32 %v1751_v28, %v7185_v11  ;;  %v2004_v9 = vpop.f32.mrf.mxu0  ;;  %4485 = vst [vmem:[%s7337_s10 + $0x28] sm:$0xf] %v6134_v45  ;;  %4486 = vst [vmem:[%s7337_s10 + $0x2c] sm:$0x1] %v6134_v45 }
 0x17c   : > { %v5872_v1 = vpop.f32.mrf.mxu1  ;;  %4487 = vst [vmem:[%s7337_s10 + $0x30] sm:$0xf] %v6134_v45  ;;  %4488 = vst [vmem:[%s7337_s10 + $0x34] sm:$0x1] %v6134_v45 }
 0x17d   : > { %v7324_v15 = vadd.f32 %v1991_v56, %v1852_v14  ;;  %v1857_v5 = vadd.f32 %v5872_v1, %v7190_v54  ;;  %v5909_v21 = vpop.f32.mrf.mxu0  ;;  %4489 = vst [vmem:[%s7337_s10 + $0x38] sm:$0xf] %v6134_v45  ;;  %4490 = vst [vmem:[%s7337_s10 + $0x3c] sm:$0x1] %v6134_v45 }
 0x17e   : > { %v1764_v27 = vpop.f32.mrf.mxu1  ;;  %4491 = vst [vmem:[%s7337_s10 + $0x40] sm:$0xf] %v6134_v45  ;;  %4492 = vst [vmem:[%s7337_s10 + $0x44] sm:$0x1] %v6134_v45 }
 0x17f   : > { %v7328_v40 = vadd.f32 %v5908_v3, %v1857_v5  ;;  %v1855_v8 = vadd.f32 %v1764_v27, %v7193_v51  ;;  %v2007_v33 = vpop.f32.mrf.mxu0  ;;  %4493 = vst [vmem:[%s7337_s10 + $0x48] sm:$0xf] %v6134_v45  ;;  %4494 = vst [vmem:[%s7337_s10 + $0x4c] sm:$0x1] %v6134_v45 }
 0x180   : > { %v5873_v25 = vpop.f32.mrf.mxu1 }
 0x181   : > { %v7331_v38 = vadd.f32 %v2004_v9, %v1855_v8  ;;  %v1858_v59 = vadd.f32 %v5873_v25, %v7200_v20  ;;  %v5912_v11 = vpop.f32.mrf.mxu0 }
 0x182   : > { %v1767_v54 = vpop.f32.mrf.mxu1 }
 0x183   : > { %v7339_v51 = vadd.f32 %v5909_v21, %v1858_v59  ;;  %v1856_v20 = vadd.f32 %v1767_v54, %v7209_v4  ;;  %v2020_v30 = vpop.f32.mrf.mxu0 }
 0x184   : > { %v5876_v35 = vpop.f32.mrf.mxu1 }
 0x185   : > { %v7362_v4 = vadd.f32 %v2007_v33, %v1856_v20  ;;  %v1861_v29 = vadd.f32 %v5876_v35, %v7214_v43  ;;  %v5913_v22 = vpop.f32.mrf.mxu0 }
 0x186   : > { %v1780_v49 = vpop.f32.mrf.mxu1 }
 0x187   : > { %v7365_v44 = vadd.f32 %v5912_v11, %v1861_v29  ;;  %v1859_v24 = vadd.f32 %v1780_v49, %v7217_v50  ;;  %v2023_v63 = vpop.f32.mrf.mxu0 }
 0x188   : > { %v5877_v36 = vpop.f32.mrf.mxu1 }
 0x189   : > { %v7368_v61 = vadd.f32 %v2020_v30, %v1859_v24  ;;  %v1862_v62 = vadd.f32 %v5877_v36, %v7226_v48  ;;  %v5916_v41 = vpop.f32.mrf.mxu0 }
 0x18a   : > { %v1783_v10 = vpop.f32.mrf.mxu1 }
 0x18b   : > { %v7371_v56 = vadd.f32 %v5913_v22, %v1862_v62  ;;  %v1860_v17 = vadd.f32 %v1783_v10, %v7231_v39  ;;  %v2036_v47 = vpop.f32.mrf.mxu0 }
 0x18c   : > { %v5880_v43 = vpop.f32.mrf.mxu1 }
 0x18d   : > { %v7374_v3 = vadd.f32 %v2023_v63, %v1860_v17  ;;  %v1865_v28 = vadd.f32 %v5880_v43, %v7237_v46  ;;  %v5917_v14 = vpop.f32.mrf.mxu0 }
 0x18e   : > { %v1796_v50 = vpop.f32.mrf.mxu1 }
 0x18f   : > { %v7377_v9 = vadd.f32 %v5916_v41, %v1865_v28  ;;  %v1863_v1 = vadd.f32 %v1796_v50, %v7240_v60  ;;  %v2039_v5 = vpop.f32.mrf.mxu0 }
 0x190   : > { %v5881_v48 = vpop.f32.mrf.mxu1 }
 0x191   : > { %v7380_v21 = vadd.f32 %v2036_v47, %v1863_v1  ;;  %v1866_v27 = vadd.f32 %v5881_v48, %v7251_v13  ;;  %v5920_v8 = vpop.f32.mrf.mxu0 }
 0x192   : > { %v1799_v39 = vpop.f32.mrf.mxu1 }
 0x193   : > { %v7383_v33 = vadd.f32 %v5917_v14, %v1866_v27  ;;  %v1864_v25 = vadd.f32 %v1799_v39, %v7258_v19  ;;  %v2052_v59 = vpop.f32.mrf.mxu0 }
 0x194   : > { %v5884_v46 = vpop.f32.mrf.mxu1 }
 0x195   : > { %v7386_v11 = vadd.f32 %v2039_v5, %v1864_v25  ;;  %v1869_v54 = vadd.f32 %v5884_v46, %v7265_v58  ;;  %v5921_v20 = vpop.f32.mrf.mxu0 }
 0x196   : > { %v1812_v60 = vpop.f32.mrf.mxu1 }
 0x197   : > { %v7389_v30 = vadd.f32 %v5920_v8, %v1869_v54  ;;  %v1867_v35 = vadd.f32 %v1812_v60, %v7268_v12  ;;  %v2055_v45 = vpop.f32.mrf.mxu0 }
 0x198   : > { %v5885_v13 = vpop.f32.mrf.mxu1 }
 0x199   : > { %v7392_v29 = vadd.f32 %v2052_v59, %v1867_v35  ;;  %v1870_v22 = vadd.f32 %v5885_v13, %v7272_v6  ;;  %v5924_v49 = vpop.f32.mrf.mxu0 }
 0x19a   : > { %v1815_v19 = vpop.f32.mrf.mxu1 }
 0x19b   : > { %v7395_v24 = vadd.f32 %v5921_v20, %v1870_v22  ;;  %v1868_v63 = vadd.f32 %v1815_v19, %v7276_v37  ;;  %v2068_v36 = vpop.f32.mrf.mxu0 }
 0x19c   : > { %v5888_v58 = vpop.f32.mrf.mxu1 }
 0x19d   : > { %v7398_v62 = vadd.f32 %v2055_v45, %v1868_v63  ;;  %v1873_v41 = vadd.f32 %v5888_v58, %v7279_v18  ;;  %v5925_v10 = vpop.f32.mrf.mxu0 }
 0x19e   : > { %v1828_v12 = vpop.f32.mrf.mxu1 }
 0x19f   : > { %v7401_v17 = vadd.f32 %v5924_v49, %v1873_v41  ;;  %v1871_v47 = vadd.f32 %v1828_v12, %v7282_v2  ;;  %v2071_v43 = vpop.f32.mrf.mxu0 }
 0x1a0   : > { %v5889_v6 = vpop.f32.mrf.mxu1 }
 0x1a1   : > { %v7404_v28 = vadd.f32 %v2068_v36, %v1871_v47  ;;  %v1874_v14 = vadd.f32 %v5889_v6, %v7285_v26  ;;  %v7407_v50 = vpop.f32.mrf.mxu0 }
 0x1a2   : > { %v1831_v37 = vpop.f32.mrf.mxu1 }
 0x1a3   : > { %v7409_v1 = vadd.f32 %v5925_v10, %v1874_v14  ;;  %v1872_v5 = vadd.f32 %v1831_v37, %v7288_v7  ;;  %v7412_v18 = vpop.f32.mrf.mxu0 }
 0x1a4   : > { %v7414_v48 = vpop.f32.mrf.mxu1 }
 0x1a5   : > { %v7416_v27 = vadd.f32 %v2071_v43, %v1872_v5  ;;  %v7418_v2 = vpop.f32.mrf.mxu0 }
 0x1a6   : > { %v7420_v8 = vpop.f32.mrf.mxu1 }
 0x1a7   : > { %v7422_v39 = vpop.f32.mrf.mxu0 }
 0x1a8   : > { %v7424_v26 = vpop.f32.mrf.mxu1 }
 0x1a9   : > { %v5972_v25 = vpop.f32.mrf.mxu0 }
 0x1aa   : > { %v7426_v59 = vpop.f32.mrf.mxu1 }
 0x1ab   : > { %v2414_v46 = vpop.f32.mrf.mxu0 }
 0x1ac   : > { %v5936_v54 = vpop.f32.mrf.mxu1 }
 0x1ad   : > { %v2313_v7 = vadd.f32 %v5936_v54, %v7303_v42  ;;  %v5973_v20 = vpop.f32.mrf.mxu0 }
 0x1ae   : > { %v2196_v60 = vpop.f32.mrf.mxu1 }
 0x1af   : > { %v7429_v35 = vadd.f32 %v5972_v25, %v2313_v7  ;;  %v2311_v45 = vadd.f32 %v2196_v60, %v7306_v23  ;;  %v2417_v13 = vpop.f32.mrf.mxu0 }
 0x1b0   : > { %v5937_v22 = vpop.f32.mrf.mxu1 }
 0x1b1   : > { %v7432_v49 = vadd.f32 %v2414_v46, %v2311_v45  ;;  %v2314_v19 = vadd.f32 %v5937_v22, %v7309_v0  ;;  %v5976_v63 = vpop.f32.mrf.mxu0 }
 0x1b2   : > { %v2199_v36 = vpop.f32.mrf.mxu1 }
 0x1b3   : > { %v7435_v58 = vadd.f32 %v5973_v20, %v2314_v19  ;;  %v2312_v41 = vadd.f32 %v2199_v36, %v7312_v52  ;;  %v2430_v10 = vpop.f32.mrf.mxu0 }
 0x1b4   : > { %v5940_v42 = vpop.f32.mrf.mxu1 }
 0x1b5   : > { %v7438_v12 = vadd.f32 %v2417_v13, %v2312_v41  ;;  %v2317_v47 = vadd.f32 %v5940_v42, %v7315_v16  ;;  %v5977_v43 = vpop.f32.mrf.mxu0 }
 0x1b6   : > { %v2212_v23 = vpop.f32.mrf.mxu1 }
 0x1b7   : > { %v7441_v6 = vadd.f32 %v5976_v63, %v2317_v47  ;;  %v2315_v14 = vadd.f32 %v2212_v23, %v7318_v55  ;;  %v2433_v37 = vpop.f32.mrf.mxu0 }
 0x1b8   : > { %v5941_v0 = vpop.f32.mrf.mxu1 }
 0x1b9   : > { %v7444_v5 = vadd.f32 %v2430_v10, %v2315_v14  ;;  %v2318_v25 = vadd.f32 %v5941_v0, %v7321_v57  ;;  %v5980_v46 = vpop.f32.mrf.mxu0 }
 0x1ba   : > { %v2215_v52 = vpop.f32.mrf.mxu1 }
 0x1bb   : > { %v7447_v54 = vadd.f32 %v5977_v43, %v2318_v25  ;;  %v2316_v7 = vadd.f32 %v2215_v52, %v7324_v15  ;;  %v2446_v20 = vpop.f32.mrf.mxu0 }
 0x1bc   : > { %v5944_v16 = vpop.f32.mrf.mxu1 }
 0x1bd   : > { %v7450_v60 = vadd.f32 %v2433_v37, %v2316_v7  ;;  %v2321_v45 = vadd.f32 %v5944_v16, %v7328_v40  ;;  %v5981_v13 = vpop.f32.mrf.mxu0 }
 0x1be   : > { %v2228_v55 = vpop.f32.mrf.mxu1 }
 0x1bf   : > { %v7453_v22 = vadd.f32 %v5980_v46, %v2321_v45  ;;  %v2319_v19 = vadd.f32 %v2228_v55, %v7331_v38  ;;  %v2449_v63 = vpop.f32.mrf.mxu0 }
 0x1c0   : > { %v5945_v57 = vpop.f32.mrf.mxu1 }
 0x1c1   : > { %v7456_v36 = vadd.f32 %v2446_v20, %v2319_v19  ;;  %v2322_v41 = vadd.f32 %v5945_v57, %v7339_v51  ;;  %v5984_v10 = vpop.f32.mrf.mxu0 }
 0x1c2   : > { %v2231_v15 = vpop.f32.mrf.mxu1 }
 0x1c3   : > { %v7459_v42 = vadd.f32 %v5981_v13, %v2322_v41  ;;  %v2320_v47 = vadd.f32 %v2231_v15, %v7362_v4  ;;  %v2462_v43 = vpop.f32.mrf.mxu0 }
 0x1c4   : > { %v5948_v40 = vpop.f32.mrf.mxu1 }
 0x1c5   : > { %v7462_v23 = vadd.f32 %v2449_v63, %v2320_v47  ;;  %v2325_v14 = vadd.f32 %v5948_v40, %v7365_v44  ;;  %v5985_v37 = vpop.f32.mrf.mxu0 }
 0x1c6   : > { %v2244_v38 = vpop.f32.mrf.mxu1 }
 0x1c7   : > { %v7465_v0 = vadd.f32 %v5984_v10, %v2325_v14  ;;  %v2323_v25 = vadd.f32 %v2244_v38, %v7368_v61  ;;  %v2465_v46 = vpop.f32.mrf.mxu0 }
 0x1c8   : > { %v5949_v51 = vpop.f32.mrf.mxu1 }
 0x1c9   : > { %v7468_v52 = vadd.f32 %v2462_v43, %v2323_v25  ;;  %v2326_v7 = vadd.f32 %v5949_v51, %v7371_v56  ;;  %v5988_v20 = vpop.f32.mrf.mxu0 }
 0x1ca   : > { %v2247_v4 = vpop.f32.mrf.mxu1 }
 0x1cb   : > { %v7471_v16 = vadd.f32 %v5985_v37, %v2326_v7  ;;  %v2324_v45 = vadd.f32 %v2247_v4, %v7374_v3  ;;  %v2478_v13 = vpop.f32.mrf.mxu0 }
 0x1cc   : > { %v5952_v44 = vpop.f32.mrf.mxu1 }
 0x1cd   : > { %v7474_v55 = vadd.f32 %v2465_v46, %v2324_v45  ;;  %v2329_v19 = vadd.f32 %v5952_v44, %v7377_v9  ;;  %v5989_v63 = vpop.f32.mrf.mxu0 }
 0x1ce   : > { %v2260_v61 = vpop.f32.mrf.mxu1 }
 0x1cf   : > { %v7477_v57 = vadd.f32 %v5988_v20, %v2329_v19  ;;  %v2327_v41 = vadd.f32 %v2260_v61, %v7380_v21  ;;  %v2481_v10 = vpop.f32.mrf.mxu0 }
 0x1d0   : > { %v5953_v56 = vpop.f32.mrf.mxu1 }
 0x1d1   : > { %v7480_v15 = vadd.f32 %v2478_v13, %v2327_v41  ;;  %v2330_v47 = vadd.f32 %v5953_v56, %v7383_v33  ;;  %v5992_v43 = vpop.f32.mrf.mxu0  ;;  %v2309_v56 = vadd.f32 %v7414_v48, %v7291_v31  ;;  %v2310_v48 = vadd.f32 %v7424_v26, %v7297_v53 }
 0x1d2   : > { %v2263_v3 = vpop.f32.mrf.mxu1 }
 0x1d3   : > { %v7483_v40 = vadd.f32 %v5989_v63, %v2330_v47  ;;  %v2328_v14 = vadd.f32 %v2263_v3, %v7386_v11  ;;  %v2494_v37 = vpop.f32.mrf.mxu0  ;;  %v2527_v31 = vadd.f32 %v7407_v50, %v2309_v56  ;;  %v7525_v50 = vld [vmem:[%s7870_s2] ss:$0 sm:$0xff] }
 0x1d4   : > { %v5956_v9 = vpop.f32.mrf.mxu1 }
 0x1d5   : > { %v7486_v38 = vadd.f32 %v2481_v10, %v2328_v14  ;;  %v2333_v25 = vadd.f32 %v5956_v9, %v7389_v30  ;;  %v5993_v46 = vpop.f32.mrf.mxu0 }
 0x1d6   : > { %v2276_v21 = vpop.f32.mrf.mxu1 }
 0x1d7   : > { %v7489_v51 = vadd.f32 %v5992_v43, %v2333_v25  ;;  %v2331_v7 = vadd.f32 %v2276_v21, %v7392_v29  ;;  %v2497_v20 = vpop.f32.mrf.mxu0  ;;  %v6135_v25 = vmov 1983009808   ;;  %v3167_v21 = vlaneseq }
 0x1d8   : > { %v5957_v33 = vpop.f32.mrf.mxu1 }
 0x1d9   : > { %v7492_v4 = vadd.f32 %v2494_v37, %v2331_v7  ;;  %v2334_v45 = vadd.f32 %v5957_v33, %v7395_v24  ;;  %v5996_v13 = vpop.f32.mrf.mxu0  ;;  %v3168_v26 = vshrl.u32 %v3167_v21, 7 }
 0x1da   : > { %v2279_v11 = vpop.f32.mrf.mxu1 }
 0x1db   : > { %v7495_v44 = vadd.f32 %v5993_v46, %v2334_v45  ;;  %v2332_v19 = vadd.f32 %v2279_v11, %v7398_v62  ;;  %v2510_v63 = vpop.f32.mrf.mxu0  ;;  %v2307_v62 = vadd.f32 %v7420_v8, %v7294_v32  ;;  %v3165_v46 = vunpack.c.l.s4 %v6135_v25 }
 0x1dc   : > { %v5960_v30 = vpop.f32.mrf.mxu1 }
 0x1dd   : > { %v7498_v61 = vadd.f32 %v2497_v20, %v2332_v19  ;;  %v2337_v41 = vadd.f32 %v5960_v30, %v7401_v17  ;;  %v5997_v10 = vpop.f32.mrf.mxu0  ;;  %v2525_v8 = vadd.f32 %v7412_v18, %v2307_v62  ;;  %v3166_v53 = vunpack.c.0.s8 %v3165_v46 }
 0x1de   : > { %v2292_v29 = vpop.f32.mrf.mxu1 }
 0x1df   : > { %v7503_v47 = vadd.f32 %v5996_v13, %v2337_v41  ;;  %v2335_v24 = vadd.f32 %v2292_v29, %v7404_v28  ;;  %v2513_v43 = vpop.f32.mrf.mxu0  ;;  %v7535_v29 = vsub.s32 %v3166_v53, %v3168_v26 }
 0x1e0   : > { %v5961_v3 = vpop.f32.mrf.mxu1 }
 0x1e1   : > { %v7508_v14 = vadd.f32 %v2510_v63, %v2335_v24  ;;  %v2338_v37 = vadd.f32 %v5961_v3, %v7409_v1  ;;  %v6040_v9 = vpop.f32.mrf.mxu0  ;;  %v2308_v1 = vadd.f32 %v7426_v59, %v7300_v34  ;;  %v7531_v34 = vld [vmem:[%s7871_s3] ss:$0 sm:$0xff] }
 0x1e2   : > { %v2295_v17 = vpop.f32.mrf.mxu1 }
 0x1e3   : > { %v7514_v28 = vadd.f32 %v5997_v10, %v2338_v37  ;;  %v2336_v7 = vadd.f32 %v2295_v17, %v7416_v27  ;;  %v2862_v20 = vpop.f32.mrf.mxu0  ;;  %v2528_v27 = vadd.f32 %v7418_v2, %v2310_v48  ;;  %v2526_v59 = vadd.f32 %v7422_v39, %v2308_v1 }
 0x1e4   : > { %v6004_v32 = vpop.f32.mrf.mxu1 }
 0x1e5   : > { %v7520_v33 = vadd.f32 %v2513_v43, %v2336_v7  ;;  %v2767_v45 = vadd.f32 %v6004_v32, %v2527_v31  ;;  %v6041_v63 = vpop.f32.mrf.mxu0 }
 0x1e6   : > { %v2638_v13 = vpop.f32.mrf.mxu1 }
 0x1e7   : > { %7991 = vst [vmem:[#allocation9_spill] sm:$0xff] %v7520_v33  ;;  %v2991_v11 = vadd.f32 %v6040_v9, %v2767_v45  ;;  %v2765_v19 = vadd.f32 %v2638_v13, %v2525_v8  ;;  %v2865_v62 = vpop.f32.mrf.mxu0 }
 0x1e8   : > { %v6005_v18 = vpop.f32.mrf.mxu1 }
 0x1e9   : > { %v3030_v30 = vmul.f32 %v7525_v50, %v2991_v11  ;;  %v2989_v41 = vadd.f32 %v2862_v20, %v2765_v19  ;;  %v2768_v10 = vadd.f32 %v6005_v18, %v2528_v27  ;;  %v6044_v32 = vpop.f32.mrf.mxu0 }
 0x1ea   : > { %v2641_v56 = vpop.f32.mrf.mxu1 }
 0x1eb   : > { %v3069_v2 = vadd.f32 %v7531_v34, %v3030_v30  ;;  %v3028_v24 = vmul.f32 %v7525_v50, %v2989_v41  ;;  %v2992_v43 = vadd.f32 %v6041_v63, %v2768_v10  ;;  %v2766_v3 = vadd.f32 %v2641_v56, %v2526_v59 }
 0x1ec   : > { %v6008_v37 = vpop.f32.mrf.mxu1 }
 0x1ed   : > { %v3101_v9 = vmax.f32 %v3069_v2, 0.0  ;;  %v3067_v17 = vadd.f32 %v7531_v34, %v3028_v24  ;;  %v3031_v39 = vmul.f32 %v7525_v50, %v2992_v43  ;;  %v2990_v25 = vadd.f32 %v2865_v62, %v2766_v3 }
 0x1ee   : > { %v2771_v46 = vadd.f32 %v6008_v37, %v7429_v35  ;;  %v2654_v21 = vpop.f32.mrf.mxu1 }
 0x1ef   : > { %v3197_v31 = vcombine.high %v3101_v9, %v3101_v9  ;;  %v3204_v48 = vrot.slane %v3101_v9, %v7535_v29  ;;  %v3099_v7 = vmax.f32 %v3067_v17, 0.0  ;;  %v3070_v20 = vadd.f32 %v7531_v34, %v3031_v39 }
 0x1f0   : > { %v3029_v8 = vmul.f32 %v7525_v50, %v2990_v25  ;;  %v2995_v1 = vadd.f32 %v6044_v32, %v2771_v46  ;;  %v7546_v45 = vadd.f32 %v2654_v21, %v7432_v49 }
 0x1f1   : > { %v3211_v53 = vrot.slane %v3197_v31, %v7535_v29  ;;  %v3212_v26 = vcombine.high %v3204_v48, %v3204_v48  ;;  %v5342_v13 = vrot.slane %v3204_v48, 9  ;;  %v3163_v27 = vcombine.high %v3099_v7, %v3099_v7 }
 0x1f2   : > { %v3170_v35 = vrot.slane %v3099_v7, %v7535_v29  ;;  %v3102_v11 = vmax.f32 %v3070_v20, 0.0  ;;  %v3068_v19 = vadd.f32 %v7531_v34, %v3029_v8  ;;  %v3034_v63 = vmul.f32 %v7525_v50, %v2995_v1 }
 0x1f3   : > { %v3213_v18 = vcombine.high %v3211_v53, %v3211_v53  ;;  %v5343_v59 = vrot.slane %v3212_v26, 9  ;;  %v5344_v30 = vrot.slane %v3211_v53, 9  ;;  %v4283_v41 = vmax.f32 %v3204_v48, %v5342_v13 }
 0x1f4   : > { %v3177_v10 = vrot.slane %v3163_v27, %v7535_v29  ;;  %v3178_v49 = vcombine.high %v3170_v35, %v3170_v35  ;;  %v5278_v56 = vrot.slane %v3170_v35, 9  ;;  %v3214_v2 = vcombine.high %v3102_v11, %v3102_v11 }
 0x1f5   : > { %v5345_v24 = vrot.slane %v3213_v18, 9  ;;  %v4284_v43 = vmax.f32 %v3212_v26, %v5343_v59  ;;  %v4285_v3 = vmax.f32 %v3211_v53, %v5344_v30  ;;  %v3221_v62 = vrot.slane %v3102_v11, %v7535_v29 }
 0x1f6   : > { %v3179_v37 = vcombine.high %v3177_v10, %v3177_v10  ;;  %v5279_v9 = vrot.slane %v3178_v49, 9  ;;  %v5280_v17 = vrot.slane %v3177_v10, 9  ;;  %v4027_v39 = vmax.f32 %v3170_v35, %v5278_v56 }
 0x1f7   : > { %v4286_v25 = vmax.f32 %v3213_v18, %v5345_v24  ;;  %v3228_v46 = vrot.slane %v3214_v2, %v7535_v29  ;;  %v3229_v21 = vcombine.high %v3221_v62, %v3221_v62  ;;  %v5346_v31 = vrot.slane %v3221_v62, 9  ;;  %v7555_v18 = vpop.f32.mrf.mxu1  ;;  %v2878_v24 = vpop.f32.mrf.mxu0 }
 0x1f8   : > { %v5281_v48 = vrot.slane %v3179_v37, 9  ;;  %v4028_v7 = vmax.f32 %v3178_v49, %v5279_v9  ;;  %v4029_v20 = vmax.f32 %v3177_v10, %v5280_v17  ;;  %v4347_v32 = vmax.f32 %v4027_v39, %v4283_v41 }
 0x1f9   : > { %v3230_v8 = vcombine.high %v3228_v46, %v3228_v46  ;;  %v5347_v1 = vrot.slane %v3229_v21, 9  ;;  %v5348_v53 = vrot.slane %v3228_v46, 9  ;;  %v4287_v26 = vmax.f32 %v3221_v62, %v5346_v31 }
 0x1fa   : > { %v4030_v13 = vmax.f32 %v3179_v37, %v5281_v48  ;;  %v4348_v27 = vmax.f32 %v4028_v7, %v4284_v43  ;;  %v4349_v11 = vmax.f32 %v4029_v20, %v4285_v3  ;;  %v5512_v35 = vpack.c.bf16 %v4347_v32, %v4347_v32  ;;  %v7560_v20 = vpop.f32.mrf.mxu0 }
 0x1fb   : > { %v5349_v59 = vrot.slane %v3230_v8, 9  ;;  %v4288_v30 = vmax.f32 %v3229_v21, %v5347_v1  ;;  %v4289_v56 = vmax.f32 %v3228_v46, %v5348_v53  ;;  %v3100_v2 = vmax.f32 %v3068_v19, 0.0  ;;  %v2657_v21 = vpop.f32.mrf.mxu1 }
 0x1fc   : > { %v4350_v49 = vmax.f32 %v4030_v13, %v4286_v25  ;;  %v5513_v10 = vpack.c.bf16 %v4348_v27, %v4348_v27  ;;  %v5514_v41 = vpack.c.bf16 %v4349_v11, %v4349_v11  ;;  %v4687_v9 = vunpack.c.l.b16 %v5512_v35 }
 0x1fd   : > { %v4290_v17 = vmax.f32 %v3230_v8, %v5349_v59  ;;  %v3180_v39 = vcombine.high %v3100_v2, %v3100_v2  ;;  %v3187_v62 = vrot.slane %v3100_v2, %v7535_v29  ;;  %v3073_v43 = vadd.f32 %v7531_v34, %v3034_v63 }
 0x1fe   : > { %v5515_v3 = vpack.c.bf16 %v4350_v49, %v4350_v49  ;;  %v4688_v37 = vunpack.c.l.b16 %v5513_v10  ;;  %v4689_v31 = vunpack.c.l.b16 %v5514_v41  ;;  %v4751_v48 = vrot.slane %v4687_v9, 7  ;;  %v6012_v10 = vpop.f32.mrf.mxu1 }
 0x1ff   : > { %v3194_v19 = vrot.slane %v3180_v39, %v7535_v29  ;;  %v3195_v46 = vcombine.high %v3187_v62, %v3187_v62  ;;  %v5282_v25 = vrot.slane %v3187_v62, 9  ;;  %v3105_v7 = vmax.f32 %v3073_v43, 0.0 }
 0x200   : > { %v4690_v32 = vunpack.c.l.b16 %v5515_v3  ;;  %v4752_v8 = vrot.slane %v4688_v37, 6  ;;  %v4755_v1 = vrot.slane %v4689_v31, 5  ;;  %v2993_v53 = vadd.f32 %v2878_v24, %v7546_v45  ;;  %v2881_v45 = vpop.f32.mrf.mxu0 }
 0x201   : > { %v3196_v13 = vcombine.high %v3194_v19, %v3194_v19  ;;  %v5283_v27 = vrot.slane %v3195_v46, 9  ;;  %v5284_v63 = vrot.slane %v3194_v19, 9  ;;  %v4031_v11 = vmax.f32 %v3187_v62, %v5282_v25 }
 0x202   : > { %v4754_v35 = vsel %vm4753_vm7, %v4752_v8, %v4751_v48  ;;  %v4758_v59 = vrot.slane %v4690_v32, 4  ;;  %v3265_v2 = vcombine.high %v3105_v7, %v3105_v7  ;;  %v3272_v49 = vrot.slane %v3105_v7, %v7535_v29 }
 0x203   : > { %v4757_v41 = vsel %vm4756_vm8, %v4755_v1, %v4754_v35  ;;  %v5285_v9 = vrot.slane %v3196_v13, 9  ;;  %v4032_v39 = vmax.f32 %v3195_v46, %v5283_v27  ;;  %v4033_v43 = vmax.f32 %v3194_v19, %v5284_v63  ;;  %v2670_v19 = vpop.f32.mrf.mxu1 }
 0x204   : > { %v4351_v24 = vmax.f32 %v4031_v11, %v4287_v26  ;;  %v4760_v62 = vsel %vm4759_vm9, %v4758_v59, %v4757_v41  ;;  %v3279_v3 = vrot.slane %v3265_v2, %v7535_v29  ;;  %v3280_v37 = vcombine.high %v3272_v49, %v3272_v49  ;;  %v6048_v26 = vpop.f32.mrf.mxu0 }
 0x205   : > { %v4034_v31 = vmax.f32 %v3196_v13, %v5285_v9  ;;  %v4352_v48 = vmax.f32 %v4032_v39, %v4288_v30  ;;  %v4353_v25 = vmax.f32 %v4033_v43, %v4289_v56  ;;  %v5350_v7 = vrot.slane %v3272_v49, 9  ;;  %v5480_v30 = vld [vmem:[%s7337_s10 + $0xc] sm:$0x1] }
 0x206   : > { %v5516_v32 = vpack.c.bf16 %v4351_v24, %v4351_v24  ;;  %v3281_v8 = vcombine.high %v3279_v3, %v3279_v3  ;;  %v5351_v1 = vrot.slane %v3280_v37, 9  ;;  %v5352_v46 = vrot.slane %v3279_v3, 9 }
 0x207   : > { %v4354_v27 = vmax.f32 %v4034_v31, %v4290_v17  ;;  %v5517_v63 = vpack.c.bf16 %v4352_v48, %v4352_v48  ;;  %v5518_v35 = vpack.c.bf16 %v4353_v25, %v4353_v25  ;;  %v7568_v33 = vmax.f32 %v3272_v49, %v5350_v7  ;;  %v6013_v48 = vpop.f32.mrf.mxu1 }
 0x208   : > { %v4691_v11 = vunpack.c.l.b16 %v5516_v32  ;;  %v5353_v56 = vrot.slane %v3281_v8, 9  ;;  %v7577_v59 = vmax.f32 %v3280_v37, %v5351_v1  ;;  %v7579_v2 = vmax.f32 %v3279_v3, %v5352_v46  ;;  %v2894_v32 = vpop.f32.mrf.mxu0 }
 0x209   : > { %v4692_v17 = vunpack.c.l.b16 %v5517_v63  ;;  %v4693_v41 = vunpack.c.l.b16 %v5518_v35  ;;  %v5576_v9 = vpack.c.bf16 %v4354_v27, %v4354_v27  ;;  %v3032_v49 = vmul.f32 %v7525_v50, %v2993_v53 }
 0x20a   : > { %v4761_v39 = vrot.slane %v4691_v11, 3  ;;  %v7582_v43 = vmax.f32 %v3281_v8, %v5353_v56  ;;  %v2772_v24 = vadd.f32 %v7555_v18, %v7435_v58  ;;  %v2770_v31 = vadd.f32 %v2657_v21, %v7438_v12 }
 0x20b   : > { %v4764_v25 = vrot.slane %v4692_v17, 2  ;;  %v4767_v37 = vrot.slane %v4693_v41, 1  ;;  %v4904_v3 = vsel %vm7572_vm1, %v5576_v9, %v5480_v30  ;;  %v3071_v7 = vadd.f32 %v7531_v34, %v3032_v49 }
 0x20c   : > { %v4763_v53 = vsel %vm4762_vm12, %v4761_v39, %v4760_v62  ;;  %5481 = vst [vmem:[%s7337_s10 + $0xc] sm:$0x1] %v4904_v3  ;;  %v2996_v8 = vadd.f32 %v7560_v20, %v2772_v24  ;;  %v2994_v1 = vadd.f32 %v2881_v45, %v2770_v31  ;;  %v2775_v58 = vadd.f32 %v6012_v10, %v7441_v6  ;;  %v5478_v62 = vld [vmem:[%s7337_s10 + $0x8] sm:$0xf] }
 0x20d   : > { %v4766_v12 = vsel %vm4765_vm13, %v4764_v25, %v4763_v53  ;;  %v3103_v18 = vmax.f32 %v3071_v7, 0.0  ;;  %v2773_v21 = vadd.f32 %v2670_v19, %v7444_v5  ;;  %v2776_v46 = vadd.f32 %v6013_v48, %v7447_v54  ;;  %v6049_v19 = vpop.f32.mrf.mxu0 }
 0x20e   : > { %v4769_v27 = vsel %vm4768_vm14, %v4767_v37, %v4766_v12  ;;  %v3035_v20 = vmul.f32 %v7525_v50, %v2996_v8  ;;  %v3033_v6 = vmul.f32 %v7525_v50, %v2994_v1  ;;  %v2999_v10 = vadd.f32 %v6048_v26, %v2775_v58 }
 0x20f   : > { %v4861_v45 = vpack.c.b16 %v4769_v27, %v4769_v27  ;;  %v3231_v35 = vcombine.high %v3103_v18, %v3103_v18  ;;  %v3238_v5 = vrot.slane %v3103_v18, %v7535_v29  ;;  %v2997_v54 = vadd.f32 %v2894_v32, %v2773_v21 }
 0x210   : > { %v3074_v11 = vadd.f32 %v7531_v34, %v3035_v20  ;;  %v3072_v30 = vadd.f32 %v7531_v34, %v3033_v6  ;;  %v3038_v56 = vmul.f32 %v7525_v50, %v2999_v10  ;;  %v7611_v17 = vadd.f32 %v6049_v19, %v2776_v46 }
 0x211   : > { %v4898_v41 = vsel %vm7600_vm2, %v4861_v45, %v5478_v62  ;;  %v3245_v9 = vrot.slane %v3231_v35, %v7535_v29  ;;  %v3246_v26 = vcombine.high %v3238_v5, %v3238_v5  ;;  %v5286_v49 = vrot.slane %v3238_v5, 9 }
 0x212   : > { %5479 = vst [vmem:[%s7337_s10 + $0x8] sm:$0xf] %v4898_v41  ;;  %v3106_v39 = vmax.f32 %v3074_v11, 0.0  ;;  %v3104_v24 = vmax.f32 %v3072_v30, 0.0  ;;  %v3077_v31 = vadd.f32 %v7531_v34, %v3038_v56  ;;  %v3036_v48 = vmul.f32 %v7525_v50, %v2997_v54 }
 0x213   : > { %v3247_v25 = vcombine.high %v3245_v9, %v3245_v9  ;;  %v5287_v37 = vrot.slane %v3246_v26, 9  ;;  %v5288_v3 = vrot.slane %v3245_v9, 9  ;;  %v4035_v7 = vmax.f32 %v3238_v5, %v5286_v49 }
 0x214   : > { %v3282_v32 = vcombine.high %v3106_v39, %v3106_v39  ;;  %v3289_v53 = vrot.slane %v3106_v39, %v7535_v29  ;;  %v3248_v8 = vcombine.high %v3104_v24, %v3104_v24  ;;  %v3255_v1 = vrot.slane %v3104_v24, %v7535_v29 }
 0x215   : > { %v5289_v58 = vrot.slane %v3247_v25, 9  ;;  %v4036_v12 = vmax.f32 %v3246_v26, %v5287_v37  ;;  %v4037_v18 = vmax.f32 %v3245_v9, %v5288_v3  ;;  %v4355_v21 = vmax.f32 %v4035_v7, %v7568_v33 }
 0x216   : > { %v3296_v46 = vrot.slane %v3282_v32, %v7535_v29  ;;  %v3297_v27 = vcombine.high %v3289_v53, %v3289_v53  ;;  %v5354_v62 = vrot.slane %v3289_v53, 9  ;;  %v3262_v20 = vrot.slane %v3248_v8, %v7535_v29 }
 0x217   : > { %v4038_v6 = vmax.f32 %v3247_v25, %v5289_v58  ;;  %v4356_v10 = vmax.f32 %v4036_v12, %v7577_v59  ;;  %v4357_v45 = vmax.f32 %v4037_v18, %v7579_v2  ;;  %v5520_v35 = vpack.c.bf16 %v4355_v21, %v4355_v21 }
 0x218   : > { %v3298_v5 = vcombine.high %v3296_v46, %v3296_v46  ;;  %v5355_v54 = vrot.slane %v3297_v27, 9  ;;  %v5356_v19 = vrot.slane %v3296_v46, 9  ;;  %v4295_v11 = vmax.f32 %v3289_v53, %v5354_v62 }
 0x219   : > { %v4358_v30 = vmax.f32 %v4038_v6, %v7582_v43  ;;  %v5521_v56 = vpack.c.bf16 %v4356_v10, %v4356_v10  ;;  %v5522_v33 = vpack.c.bf16 %v4357_v45, %v4357_v45  ;;  %v4695_v41 = vunpack.c.l.b16 %v5520_v35 }
 0x21a   : > { %v5357_v9 = vrot.slane %v3298_v5, 9  ;;  %v4296_v26 = vmax.f32 %v3297_v27, %v5355_v54  ;;  %v4297_v49 = vmax.f32 %v3296_v46, %v5356_v19  ;;  %v3263_v39 = vcombine.high %v3255_v1, %v3255_v1 }
 0x21b   : > { %v5523_v24 = vpack.c.bf16 %v4358_v30, %v4358_v30  ;;  %v4696_v25 = vunpack.c.l.b16 %v5521_v56  ;;  %v4697_v37 = vunpack.c.l.b16 %v5522_v33  ;;  %v4770_v59 = vrot.slane %v4695_v41, 7 }
 0x21c   : > { %v4298_v3 = vmax.f32 %v3298_v5, %v5357_v9  ;;  %v3264_v2 = vcombine.high %v3262_v20, %v3262_v20  ;;  %v5290_v7 = vrot.slane %v3255_v1, 9  ;;  %v5291_v32 = vrot.slane %v3263_v39, 9 }
 0x21d   : > { %v4698_v8 = vunpack.c.l.b16 %v5523_v24  ;;  %v4771_v58 = vrot.slane %v4696_v25, 6  ;;  %v4773_v53 = vrot.slane %v4697_v37, 5  ;;  %v5292_v12 = vrot.slane %v3262_v20, 9  ;;  %v5484_v24 = vld [vmem:[%s7337_s10 + $0x14] sm:$0x1] }
 0x21e   : > { %v5293_v43 = vrot.slane %v3264_v2, 9  ;;  %v4039_v18 = vmax.f32 %v3255_v1, %v5290_v7  ;;  %v4040_v21 = vmax.f32 %v3263_v39, %v5291_v32  ;;  %v3109_v62 = vmax.f32 %v3077_v31, 0.0  ;;  %v2673_v39 = vpop.f32.mrf.mxu1 }
 0x21f   : > { %v4772_v27 = vsel %vm4753_vm7, %v4771_v58, %v4770_v59  ;;  %v4775_v46 = vrot.slane %v4698_v8, 4  ;;  %v4041_v6 = vmax.f32 %v3262_v20, %v5292_v12  ;;  %v3075_v10 = vadd.f32 %v7531_v34, %v3036_v48 }
 0x220   : > { %v4774_v45 = vsel %vm4756_vm8, %v4773_v53, %v4772_v27  ;;  %v4042_v35 = vmax.f32 %v3264_v2, %v5293_v43  ;;  %v4359_v5 = vmax.f32 %v4039_v18, %v4295_v11  ;;  %v4360_v54 = vmax.f32 %v4040_v21, %v4296_v26  ;;  %v6016_v43 = vpop.f32.mrf.mxu1 }
 0x221   : > { %v4361_v19 = vmax.f32 %v4041_v6, %v4297_v49  ;;  %v4776_v30 = vsel %vm4759_vm9, %v4775_v46, %v4774_v45  ;;  %v3333_v56 = vcombine.high %v3109_v62, %v3109_v62  ;;  %v3340_v1 = vrot.slane %v3109_v62, %v7535_v29  ;;  %v2897_v46 = vpop.f32.mrf.mxu0 }
 0x222   : > { %v4362_v33 = vmax.f32 %v4042_v35, %v4298_v3  ;;  %v5524_v31 = vpack.c.bf16 %v4359_v5, %v4359_v5  ;;  %v5525_v41 = vpack.c.bf16 %v4360_v54, %v4360_v54  ;;  %v3107_v9 = vmax.f32 %v3075_v10, 0.0 }
 0x223   : > { %v5526_v20 = vpack.c.bf16 %v4361_v19, %v4361_v19  ;;  %v3347_v48 = vrot.slane %v3333_v56, %v7535_v29  ;;  %v3348_v25 = vcombine.high %v3340_v1, %v3340_v1  ;;  %v5358_v37 = vrot.slane %v3340_v1, 9 }
 0x224   : > { %v4699_v11 = vunpack.c.l.b16 %v5524_v31  ;;  %v4700_v26 = vunpack.c.l.b16 %v5525_v41  ;;  %v5577_v49 = vpack.c.bf16 %v4362_v33, %v4362_v33  ;;  %v3299_v59 = vcombine.high %v3107_v9, %v3107_v9  ;;  %v5482_v33 = vld [vmem:[%s7337_s10 + $0x10] sm:$0xf] }
 0x225   : > { %v4701_v2 = vunpack.c.l.b16 %v5526_v20  ;;  %v3349_v7 = vcombine.high %v3347_v48, %v3347_v48  ;;  %v5359_v32 = vrot.slane %v3348_v25, 9  ;;  %v5360_v8 = vrot.slane %v3347_v48, 9 }
 0x226   : > { %v4777_v3 = vrot.slane %v4699_v11, 3  ;;  %v4779_v58 = vrot.slane %v4700_v26, 2  ;;  %v4910_v53 = vsel %vm7572_vm1, %v5577_v49, %v5484_v24  ;;  %v4299_v12 = vmax.f32 %v3340_v1, %v5358_v37 }
 0x227   : > { %v4781_v18 = vrot.slane %v4701_v2, 1  ;;  %5485 = vst [vmem:[%s7337_s10 + $0x14] sm:$0x1] %v4910_v53  ;;  %v5361_v21 = vrot.slane %v3349_v7, 9  ;;  %v4300_v62 = vmax.f32 %v3348_v25, %v5359_v32  ;;  %v4301_v27 = vmax.f32 %v3347_v48, %v5360_v8 }
 0x228   : > { %v4778_v6 = vsel %vm4762_vm12, %v4777_v3, %v4776_v30  ;;  %v3306_v10 = vrot.slane %v3107_v9, %v7535_v29  ;;  %v3313_v45 = vrot.slane %v3299_v59, %v7535_v29  ;;  %v3039_v35 = vmul.f32 %v7525_v50, %v7611_v17  ;;  %v6052_v17 = vpop.f32.mrf.mxu0 }
 0x229   : > { %v4780_v5 = vsel %vm4765_vm13, %v4779_v58, %v4778_v6  ;;  %v4302_v54 = vmax.f32 %v3349_v7, %v5361_v21  ;;  %v2774_v19 = vadd.f32 %v2673_v39, %v7450_v60  ;;  %v2779_v56 = vadd.f32 %v6016_v43, %v7453_v22  ;;  %v2686_v43 = vpop.f32.mrf.mxu1 }
 0x22a   : > { %v4782_v1 = vsel %vm4768_vm14, %v4781_v18, %v4780_v5  ;;  %v3314_v31 = vcombine.high %v3306_v10, %v3306_v10  ;;  %v3315_v30 = vcombine.high %v3313_v45, %v3313_v45  ;;  %v5294_v41 = vrot.slane %v3306_v10, 9 }
 0x22b   : > { %v4863_v9 = vpack.c.b16 %v4782_v1, %v4782_v1  ;;  %v5296_v20 = vrot.slane %v3313_v45, 9  ;;  %v3078_v24 = vadd.f32 %v7531_v34, %v3039_v35  ;;  %v2998_v48 = vadd.f32 %v2897_v46, %v2774_v19 }
 0x22c   : > { %v5295_v25 = vrot.slane %v3314_v31, 9  ;;  %v5297_v37 = vrot.slane %v3315_v30, 9  ;;  %v4043_v11 = vmax.f32 %v3306_v10, %v5294_v41  ;;  %v3003_v26 = vadd.f32 %v6052_v17, %v2779_v56  ;;  %v6017_v41 = vpop.f32.mrf.mxu1 }
 0x22d   : > { %v4907_v60 = vsel %vm7600_vm2, %v4863_v9, %v5482_v33  ;;  %v4045_v22 = vmax.f32 %v3313_v45, %v5296_v20  ;;  %v3110_v39 = vmax.f32 %v3078_v24, 0.0  ;;  %v3037_v49 = vmul.f32 %v7525_v50, %v2998_v48 }
 0x22e   : > { %5483 = vst [vmem:[%s7337_s10 + $0x10] sm:$0xf] %v4907_v60  ;;  %v4044_v59 = vmax.f32 %v3314_v31, %v5295_v25  ;;  %v4046_v2 = vmax.f32 %v3315_v30, %v5297_v37  ;;  %v4363_v7 = vmax.f32 %v4043_v11, %v4299_v12  ;;  %v3042_v32 = vmul.f32 %v7525_v50, %v3003_v26 }
 0x22f   : > { %v4365_v8 = vmax.f32 %v4045_v22, %v4301_v27  ;;  %v3350_v3 = vcombine.high %v3110_v39, %v3110_v39  ;;  %v3357_v58 = vrot.slane %v3110_v39, %v7535_v29  ;;  %v3076_v53 = vadd.f32 %v7531_v34, %v3037_v49 }
 0x230   : > { %v4364_v18 = vmax.f32 %v4044_v59, %v4300_v62  ;;  %v4366_v21 = vmax.f32 %v4046_v2, %v4302_v54  ;;  %v5528_v46 = vpack.c.bf16 %v4363_v7, %v4363_v7  ;;  %v3081_v6 = vadd.f32 %v7531_v34, %v3042_v32  ;;  %v2689_v2 = vpop.f32.mrf.mxu1 }
 0x231   : > { %v5530_v10 = vpack.c.bf16 %v4365_v8, %v4365_v8  ;;  %v3364_v45 = vrot.slane %v3350_v3, %v7535_v29  ;;  %v3365_v35 = vcombine.high %v3357_v58, %v3357_v58  ;;  %v5362_v5 = vrot.slane %v3357_v58, 9 }
 0x232   : > { %v5529_v12 = vpack.c.bf16 %v4364_v18, %v4364_v18  ;;  %v5531_v19 = vpack.c.bf16 %v4366_v21, %v4366_v21  ;;  %v4703_v56 = vunpack.c.l.b16 %v5528_v46  ;;  %v3108_v27 = vmax.f32 %v3076_v53, 0.0 }
 0x233   : > { %v4705_v1 = vunpack.c.l.b16 %v5530_v10  ;;  %v3366_v33 = vcombine.high %v3364_v45, %v3364_v45  ;;  %v5363_v31 = vrot.slane %v3365_v35, 9  ;;  %v5364_v30 = vrot.slane %v3364_v45, 9 }
 0x234   : > { %v4704_v9 = vunpack.c.l.b16 %v5529_v12  ;;  %v4706_v62 = vunpack.c.l.b16 %v5531_v19  ;;  %v4783_v54 = vrot.slane %v4703_v56, 7  ;;  %v4303_v20 = vmax.f32 %v3357_v58, %v5362_v5  ;;  %v2910_v58 = vpop.f32.mrf.mxu0  ;;  %v6020_v12 = vpop.f32.mrf.mxu1 }
 0x235   : > { %v4786_v24 = vrot.slane %v4705_v1, 5  ;;  %v5365_v48 = vrot.slane %v3366_v33, 9  ;;  %v4304_v17 = vmax.f32 %v3365_v35, %v5363_v31  ;;  %v4305_v25 = vmax.f32 %v3364_v45, %v5364_v30 }
 0x236   : > { %v4784_v37 = vrot.slane %v4704_v9, 6  ;;  %v4788_v11 = vrot.slane %v4706_v62, 4  ;;  %v3316_v26 = vcombine.high %v3108_v27, %v3108_v27  ;;  %v3323_v60 = vrot.slane %v3108_v27, %v7535_v29  ;;  %v6053_v9 = vpop.f32.mrf.mxu0 }
 0x237   : > { %v4306_v22 = vmax.f32 %v3366_v33, %v5365_v48  ;;  %v3113_v39 = vmax.f32 %v3081_v6, 0.0  ;;  %v2777_v49 = vadd.f32 %v2686_v43, %v7456_v36  ;;  %v2780_v59 = vadd.f32 %v6017_v41, %v7459_v42 }
 0x238   : > { %v4785_v7 = vsel %vm4753_vm7, %v4784_v37, %v4783_v54  ;;  %v3330_v32 = vrot.slane %v3316_v26, %v7535_v29  ;;  %v3331_v8 = vcombine.high %v3323_v60, %v3323_v60  ;;  %v5298_v3 = vrot.slane %v3323_v60, 9 }
 0x239   : > { %v4787_v53 = vsel %vm4756_vm8, %v4786_v24, %v4785_v7  ;;  %v3401_v18 = vcombine.high %v3113_v39, %v3113_v39  ;;  %v3408_v21 = vrot.slane %v3113_v39, %v7535_v29  ;;  %v3001_v46 = vadd.f32 %v2910_v58, %v2777_v49  ;;  %v2702_v39 = vpop.f32.mrf.mxu1 }
 0x23a   : > { %v3332_v10 = vcombine.high %v3330_v32, %v3330_v32  ;;  %v5299_v6 = vrot.slane %v3331_v8, 9  ;;  %v5300_v45 = vrot.slane %v3330_v32, 9  ;;  %v4047_v36 = vmax.f32 %v3323_v60, %v5298_v3 }
 0x23b   : > { %v4789_v42 = vsel %vm4759_vm9, %v4788_v11, %v4787_v53  ;;  %v3415_v43 = vrot.slane %v3401_v18, %v7535_v29  ;;  %v3416_v35 = vcombine.high %v3408_v21, %v3408_v21  ;;  %v5366_v5 = vrot.slane %v3408_v21, 9 }
 0x23c   : > { %v5301_v19 = vrot.slane %v3332_v10, 9  ;;  %v4048_v56 = vmax.f32 %v3331_v8, %v5299_v6  ;;  %v4049_v27 = vmax.f32 %v3330_v32, %v5300_v45  ;;  %v4367_v1 = vmax.f32 %v4047_v36, %v4303_v20  ;;  %v5488_v8 = vld [vmem:[%s7337_s10 + $0x1c] sm:$0x1] }
 0x23d   : > { %v3417_v33 = vcombine.high %v3415_v43, %v3415_v43  ;;  %v5367_v31 = vrot.slane %v3416_v35, 9  ;;  %v5368_v30 = vrot.slane %v3415_v43, 9  ;;  %v7666_v41 = vmax.f32 %v3408_v21, %v5366_v5 }
 0x23e   : > { %v4050_v62 = vmax.f32 %v3332_v10, %v5301_v19  ;;  %v4368_v54 = vmax.f32 %v4048_v56, %v4304_v17  ;;  %v4369_v24 = vmax.f32 %v4049_v27, %v4305_v25  ;;  %v5532_v48 = vpack.c.bf16 %v4367_v1, %v4367_v1  ;;  %v2913_v25 = vpop.f32.mrf.mxu0 }
 0x23f   : > { %v5369_v37 = vrot.slane %v3417_v33, 9  ;;  %v7668_v11 = vmax.f32 %v3416_v35, %v5367_v31  ;;  %v7670_v26 = vmax.f32 %v3415_v43, %v5368_v30  ;;  %v3040_v60 = vmul.f32 %v7525_v50, %v3001_v46  ;;  %v6021_v43 = vpop.f32.mrf.mxu1  ;;  %v5486_v30 = vld [vmem:[%s7337_s10 + $0x18] sm:$0xf] }
 0x240   : > { %v4370_v20 = vmax.f32 %v4050_v62, %v4306_v22  ;;  %v5533_v49 = vpack.c.bf16 %v4368_v54, %v4368_v54  ;;  %v5534_v7 = vpack.c.bf16 %v4369_v24, %v4369_v24  ;;  %v4707_v32 = vunpack.c.l.b16 %v5532_v48  ;;  %v6056_v1 = vpop.f32.mrf.mxu0 }
 0x241   : > { %v4310_v3 = vmax.f32 %v3417_v33, %v5369_v37  ;;  %v3079_v58 = vadd.f32 %v7531_v34, %v3040_v60  ;;  %v3004_v53 = vadd.f32 %v6053_v9, %v2780_v59  ;;  %v2778_v17 = vadd.f32 %v2689_v2, %v7462_v23 }
 0x242   : > { %v4708_v18 = vunpack.c.l.b16 %v5533_v49  ;;  %v4709_v21 = vunpack.c.l.b16 %v5534_v7  ;;  %v4790_v10 = vrot.slane %v4707_v32, 3  ;;  %v5578_v6 = vpack.c.bf16 %v4370_v20, %v4370_v20 }
 0x243   : > { %v3111_v45 = vmax.f32 %v3079_v58, 0.0  ;;  %v3043_v46 = vmul.f32 %v7525_v50, %v3004_v53  ;;  %v3002_v22 = vadd.f32 %v2913_v25, %v2778_v17  ;;  %v2783_v36 = vadd.f32 %v6020_v12, %v7465_v0 }
 0x244   : > { %v4791_v35 = vsel %vm4762_vm12, %v4790_v10, %v4789_v42  ;;  %v4792_v5 = vrot.slane %v4708_v18, 2  ;;  %v4794_v59 = vrot.slane %v4709_v21, 1  ;;  %v4916_v23 = vsel %vm7572_vm1, %v5578_v6, %v5488_v8 }
 0x245   : > { %5489 = vst [vmem:[%s7337_s10 + $0x1c] sm:$0x1] %v4916_v23  ;;  %v3367_v2 = vcombine.high %v3111_v45, %v3111_v45  ;;  %v3374_v19 = vrot.slane %v3111_v45, %v7535_v29  ;;  %v3082_v56 = vadd.f32 %v7531_v34, %v3043_v46  ;;  %v3041_v27 = vmul.f32 %v7525_v50, %v3002_v22 }
 0x246   : > { %v4793_v0 = vsel %vm4765_vm13, %v4792_v5, %v4791_v35  ;;  %v3007_v12 = vadd.f32 %v6056_v1, %v2783_v36  ;;  %v7687_v33 = vadd.f32 %v2702_v39, %v7468_v52  ;;  %v7690_v42 = vadd.f32 %v6021_v43, %v7471_v16 }
 0x247   : > { %v4795_v31 = vsel %vm4768_vm14, %v4794_v59, %v4793_v0  ;;  %v3381_v9 = vrot.slane %v3367_v2, %v7535_v29  ;;  %v3382_v62 = vcombine.high %v3374_v19, %v3374_v19  ;;  %v5302_v54 = vrot.slane %v3374_v19, 9 }
 0x248   : > { %v4865_v24 = vpack.c.b16 %v4795_v31, %v4795_v31  ;;  %v3114_v48 = vmax.f32 %v3082_v56, 0.0  ;;  %v3080_v37 = vadd.f32 %v7531_v34, %v3041_v27  ;;  %v3046_v60 = vmul.f32 %v7525_v50, %v3007_v12 }
 0x249   : > { %v3383_v20 = vcombine.high %v3381_v9, %v3381_v9  ;;  %v5303_v52 = vrot.slane %v3382_v62, 9  ;;  %v5304_v39 = vrot.slane %v3381_v9, 9  ;;  %v4051_v49 = vmax.f32 %v3374_v19, %v5302_v54 }
 0x24a   : > { %v4913_v16 = vsel %vm7600_vm2, %v4865_v24, %v5486_v30  ;;  %v3418_v7 = vcombine.high %v3114_v48, %v3114_v48  ;;  %v3425_v32 = vrot.slane %v3114_v48, %v7535_v29  ;;  %v3112_v8 = vmax.f32 %v3080_v37, 0.0  ;;  %v2926_v24 = vpop.f32.mrf.mxu0 }
 0x24b   : > { %5487 = vst [vmem:[%s7337_s10 + $0x18] sm:$0xf] %v4913_v16  ;;  %v5305_v58 = vrot.slane %v3383_v20, 9  ;;  %v4052_v53 = vmax.f32 %v3382_v62, %v5303_v52  ;;  %v4053_v17 = vmax.f32 %v3381_v9, %v5304_v39  ;;  %v4371_v25 = vmax.f32 %v4051_v49, %v7666_v41 }
 0x24c   : > { %v3432_v18 = vrot.slane %v3418_v7, %v7535_v29  ;;  %v3433_v21 = vcombine.high %v3425_v32, %v3425_v32  ;;  %v5370_v10 = vrot.slane %v3425_v32, 9  ;;  %v3384_v6 = vcombine.high %v3112_v8, %v3112_v8 }
 0x24d   : > { %v4054_v45 = vmax.f32 %v3383_v20, %v5305_v58  ;;  %v4372_v46 = vmax.f32 %v4052_v53, %v7668_v11  ;;  %v4373_v22 = vmax.f32 %v4053_v17, %v7670_v26  ;;  %v5536_v36 = vpack.c.bf16 %v4371_v25, %v4371_v25 }
 0x24e   : > { %v3434_v43 = vcombine.high %v3432_v18, %v3432_v18  ;;  %v5371_v35 = vrot.slane %v3433_v21, 9  ;;  %v5372_v5 = vrot.slane %v3432_v18, 9  ;;  %v4311_v59 = vmax.f32 %v3425_v32, %v5370_v10  ;;  %v2705_v10 = vpop.f32.mrf.mxu1 }
 0x24f   : > { %v4374_v23 = vmax.f32 %v4054_v45, %v4310_v3  ;;  %v5537_v2 = vpack.c.bf16 %v4372_v46, %v4372_v46  ;;  %v5538_v19 = vpack.c.bf16 %v4373_v22, %v4373_v22  ;;  %v4711_v56 = vunpack.c.l.b16 %v5536_v36 }
 0x250   : > { %v5373_v41 = vrot.slane %v3434_v43, 9  ;;  %v4312_v27 = vmax.f32 %v3433_v21, %v5371_v35  ;;  %v4313_v1 = vmax.f32 %v3432_v18, %v5372_v5  ;;  %v3391_v0 = vrot.slane %v3112_v8, %v7535_v29  ;;  %v6057_v21 = vpop.f32.mrf.mxu0 }
 0x251   : > { %v5539_v12 = vpack.c.bf16 %v4374_v23, %v4374_v23  ;;  %v4712_v31 = vunpack.c.l.b16 %v5537_v2  ;;  %v4713_v30 = vunpack.c.l.b16 %v5538_v19  ;;  %v4796_v11 = vrot.slane %v4711_v56, 7 }
 0x252   : > { %v4314_v9 = vmax.f32 %v3434_v43, %v5373_v41  ;;  %v3398_v26 = vrot.slane %v3384_v6, %v7535_v29  ;;  %v3399_v62 = vcombine.high %v3391_v0, %v3391_v0  ;;  %v5306_v54 = vrot.slane %v3391_v0, 9 }
 0x253   : > { %v4714_v48 = vunpack.c.l.b16 %v5539_v12  ;;  %v4797_v3 = vrot.slane %v4712_v31, 6  ;;  %v4799_v37 = vrot.slane %v4713_v30, 5  ;;  %v3085_v20 = vadd.f32 %v7531_v34, %v3046_v60  ;;  %v6024_v12 = vpop.f32.mrf.mxu1  ;;  %v5492_v30 = vld [vmem:[%s7337_s10 + $0x24] sm:$0x1] }
 0x254   : > { %v3400_v52 = vcombine.high %v3398_v26, %v3398_v26  ;;  %v5307_v39 = vrot.slane %v3399_v62, 9  ;;  %v5308_v49 = vrot.slane %v3398_v26, 9  ;;  %v4055_v16 = vmax.f32 %v3391_v0, %v5306_v54  ;;  %v2929_v0 = vpop.f32.mrf.mxu0 }
 0x255   : > { %v4798_v7 = vsel %vm4753_vm7, %v4797_v3, %v4796_v11  ;;  %v4801_v32 = vrot.slane %v4714_v48, 4  ;;  %v3117_v8 = vmax.f32 %v3085_v20, 0.0  ;;  %v3005_v58 = vadd.f32 %v2926_v24, %v7687_v33 }
 0x256   : > { %v4800_v53 = vsel %vm4756_vm8, %v4799_v37, %v4798_v7  ;;  %v5309_v17 = vrot.slane %v3400_v52, 9  ;;  %v4056_v25 = vmax.f32 %v3399_v62, %v5307_v39  ;;  %v4057_v18 = vmax.f32 %v3398_v26, %v5308_v49  ;;  %v6060_v39 = vpop.f32.mrf.mxu0  ;;  %v2718_v49 = vpop.f32.mrf.mxu1 }
 0x257   : > { %v4375_v6 = vmax.f32 %v4055_v16, %v4311_v59  ;;  %v4802_v60 = vsel %vm4759_vm9, %v4801_v32, %v4800_v53  ;;  %v3469_v45 = vcombine.high %v3117_v8, %v3117_v8  ;;  %v3476_v46 = vrot.slane %v3117_v8, %v7535_v29 }
 0x258   : > { %v4058_v22 = vmax.f32 %v3400_v52, %v5309_v17  ;;  %v4376_v36 = vmax.f32 %v4056_v25, %v4312_v27  ;;  %v4377_v43 = vmax.f32 %v4057_v18, %v4313_v1  ;;  %v3044_v35 = vmul.f32 %v7525_v50, %v3005_v58 }
 0x259   : > { %v5540_v33 = vpack.c.bf16 %v4375_v6, %v4375_v6  ;;  %v3483_v5 = vrot.slane %v3469_v45, %v7535_v29  ;;  %v3484_v23 = vcombine.high %v3476_v46, %v3476_v46  ;;  %v5374_v2 = vrot.slane %v3476_v46, 9  ;;  %v5490_v6 = vld [vmem:[%s7337_s10 + $0x20] sm:$0xf] }
 0x25a   : > { %v4378_v19 = vmax.f32 %v4058_v22, %v4314_v9  ;;  %v5541_v56 = vpack.c.bf16 %v4376_v36, %v4376_v36  ;;  %v5542_v41 = vpack.c.bf16 %v4377_v43, %v4377_v43  ;;  %v3083_v59 = vadd.f32 %v7531_v34, %v3044_v35  ;;  %v7739_v36 = vld [vmem:[%s7871_s3] ss:$0 sm:$0xff] }
 0x25b   : > { %v4715_v31 = vunpack.c.l.b16 %v5540_v33  ;;  %v3485_v11 = vcombine.high %v3483_v5, %v3483_v5  ;;  %v5375_v26 = vrot.slane %v3484_v23, 9  ;;  %v5376_v27 = vrot.slane %v3483_v5, 9 }
 0x25c   : > { %v4716_v1 = vunpack.c.l.b16 %v5541_v56  ;;  %v4717_v50 = vunpack.c.l.b16 %v5542_v41  ;;  %v5579_v62 = vpack.c.bf16 %v4378_v19, %v4378_v19  ;;  %v4315_v54 = vmax.f32 %v3476_v46, %v5374_v2 }
 0x25d   : > { %v4803_v24 = vrot.slane %v4715_v31, 3  ;;  %v5377_v48 = vrot.slane %v3485_v11, 9  ;;  %v4316_v3 = vmax.f32 %v3484_v23, %v5375_v26  ;;  %v4317_v9 = vmax.f32 %v3483_v5, %v5376_v27 }
 0x25e   : > { %v4805_v37 = vrot.slane %v4716_v1, 2  ;;  %v4807_v20 = vrot.slane %v4717_v50, 1  ;;  %v4922_v34 = vsel %vm7572_vm1, %v5579_v62, %v5492_v30  ;;  %v3115_v52 = vmax.f32 %v3083_v59, 0.0 }
 0x25f   : > { %v4804_v16 = vsel %vm4762_vm12, %v4803_v24, %v4802_v60  ;;  %5493 = vst [vmem:[%s7337_s10 + $0x24] sm:$0x1] %v4922_v34  ;;  %v4318_v7 = vmax.f32 %v3485_v11, %v5377_v48  ;;  %v3008_v32 = vadd.f32 %v6057_v21, %v7690_v42  ;;  %v2782_v8 = vadd.f32 %v2705_v10, %v7474_v55  ;;  %v7731_v60 = vld [vmem:[%s7870_s2] ss:$0 sm:$0xff] }
 0x260   : > { %v4806_v58 = vsel %vm4765_vm13, %v4805_v37, %v4804_v16  ;;  %v3435_v53 = vcombine.high %v3115_v52, %v3115_v52  ;;  %v3442_v17 = vrot.slane %v3115_v52, %v7535_v29  ;;  %v2787_v25 = vadd.f32 %v6024_v12, %v7477_v57  ;;  %v2942_v57 = vpop.f32.mrf.mxu0 }
 0x261   : > { %v4808_v18 = vsel %vm4768_vm14, %v4807_v20, %v4806_v58  ;;  %v3047_v45 = vmul.f32 %v7731_v60, %v3008_v32  ;;  %v3006_v42 = vadd.f32 %v2929_v0, %v2782_v8  ;;  %v2785_v55 = vadd.f32 %v2718_v49, %v7480_v15 }
 0x262   : > { %v4867_v21 = vpack.c.b16 %v4808_v18, %v4808_v18  ;;  %v3449_v10 = vrot.slane %v3435_v53, %v7535_v29  ;;  %v3450_v46 = vcombine.high %v3442_v17, %v3442_v17  ;;  %v5310_v22 = vrot.slane %v3442_v17, 9 }
 0x263   : > { %v3086_v43 = vadd.f32 %v7739_v36, %v3047_v45  ;;  %v3045_v35 = vmul.f32 %v7731_v60, %v3006_v42  ;;  %v3011_v33 = vadd.f32 %v6060_v39, %v2787_v25  ;;  %v3009_v5 = vadd.f32 %v2942_v57, %v2785_v55 }
 0x264   : > { %v4919_v15 = vsel %vm7600_vm2, %v4867_v21, %v5490_v6  ;;  %v3451_v23 = vcombine.high %v3449_v10, %v3449_v10  ;;  %v5311_v2 = vrot.slane %v3450_v46, 9  ;;  %v5312_v19 = vrot.slane %v3449_v10, 9 }
 0x265   : > { %5491 = vst [vmem:[%s7337_s10 + $0x20] sm:$0xf] %v4919_v15  ;;  %v4059_v56 = vmax.f32 %v3442_v17, %v5310_v22  ;;  %v3118_v41 = vmax.f32 %v3086_v43, 0.0  ;;  %v3084_v59 = vadd.f32 %v7739_v36, %v3045_v35  ;;  %v3050_v0 = vmul.f32 %v7731_v60, %v3011_v33 }
 0x266   : > { %v5313_v12 = vrot.slane %v3451_v23, 9  ;;  %v4060_v31 = vmax.f32 %v3450_v46, %v5311_v2  ;;  %v4061_v30 = vmax.f32 %v3449_v10, %v5312_v19  ;;  %v3048_v11 = vmul.f32 %v7731_v60, %v3009_v5 }
 0x267   : > { %v4379_v26 = vmax.f32 %v4059_v56, %v4315_v54  ;;  %v3486_v27 = vcombine.high %v3118_v41, %v3118_v41  ;;  %v3493_v1 = vrot.slane %v3118_v41, %v7535_v29  ;;  %v3116_v50 = vmax.f32 %v3084_v59, 0.0 }
 0x268   : > { %v4062_v62 = vmax.f32 %v3451_v23, %v5313_v12  ;;  %v4380_v24 = vmax.f32 %v4060_v31, %v4316_v3  ;;  %v4381_v48 = vmax.f32 %v4061_v30, %v4317_v9  ;;  %v3089_v37 = vadd.f32 %v7739_v36, %v3050_v0 }
 0x269   : > { %v5544_v20 = vpack.c.bf16 %v4379_v26, %v4379_v26  ;;  %v3500_v34 = vrot.slane %v3486_v27, %v7535_v29  ;;  %v3501_v52 = vcombine.high %v3493_v1, %v3493_v1  ;;  %v5378_v39 = vrot.slane %v3493_v1, 9 }
 0x26a   : > { %v4382_v49 = vmax.f32 %v4062_v62, %v4318_v7  ;;  %v5545_v16 = vpack.c.bf16 %v4380_v24, %v4380_v24  ;;  %v5546_v32 = vpack.c.bf16 %v4381_v48, %v4381_v48  ;;  %v3452_v8 = vcombine.high %v3116_v50, %v3116_v50 }
 0x26b   : > { %v4719_v58 = vunpack.c.l.b16 %v5544_v20  ;;  %v3502_v54 = vcombine.high %v3500_v34, %v3500_v34  ;;  %v5379_v53 = vrot.slane %v3501_v52, 9  ;;  %v5380_v17 = vrot.slane %v3500_v34, 9 }
 0x26c   : > { %v5547_v25 = vpack.c.bf16 %v4382_v49, %v4382_v49  ;;  %v4720_v18 = vunpack.c.l.b16 %v5545_v16  ;;  %v4721_v6 = vunpack.c.l.b16 %v5546_v32  ;;  %v4319_v3 = vmax.f32 %v3493_v1, %v5378_v39  ;;  %v6025_v1 = vpop.f32.mrf.mxu1 }
 0x26d   : > { %v4809_v9 = vrot.slane %v4719_v58, 7  ;;  %v5381_v45 = vrot.slane %v3502_v54, 9  ;;  %v4320_v42 = vmax.f32 %v3501_v52, %v5379_v53  ;;  %v4321_v55 = vmax.f32 %v3500_v34, %v5380_v17 }
 0x26e   : > { %v4722_v21 = vunpack.c.l.b16 %v5547_v25  ;;  %v4810_v10 = vrot.slane %v4720_v18, 6  ;;  %v4812_v46 = vrot.slane %v4721_v6, 5  ;;  %v3459_v7 = vrot.slane %v3116_v50, %v7535_v29  ;;  %v2721_v17 = vpop.f32.mrf.mxu1  ;;  %v5496_v6 = vld [vmem:[%s7337_s10 + $0x2c] sm:$0x1] }
 0x26f   : > { %v4322_v22 = vmax.f32 %v3502_v54, %v5381_v45  ;;  %v3466_v57 = vrot.slane %v3452_v8, %v7535_v29  ;;  %v3121_v43 = vmax.f32 %v3089_v37, 0.0  ;;  %v3087_v35 = vadd.f32 %v7739_v36, %v3048_v11  ;;  %v6061_v45 = vpop.f32.mrf.mxu0 }
 0x270   : > { %v4811_v33 = vsel %vm4753_vm7, %v4810_v10, %v4809_v9  ;;  %v4814_v5 = vrot.slane %v4722_v21, 4  ;;  %v3467_v15 = vcombine.high %v3459_v7, %v3459_v7  ;;  %v5314_v23 = vrot.slane %v3459_v7, 9 }
 0x271   : > { %v4813_v2 = vsel %vm4756_vm8, %v4812_v46, %v4811_v33  ;;  %v3468_v19 = vcombine.high %v3466_v57, %v3466_v57  ;;  %v5316_v56 = vrot.slane %v3466_v57, 9  ;;  %v3537_v41 = vcombine.high %v3121_v43, %v3121_v43 }
 0x272   : > { %v5315_v59 = vrot.slane %v3467_v15, 9  ;;  %v4063_v0 = vmax.f32 %v3459_v7, %v5314_v23  ;;  %v4815_v12 = vsel %vm4759_vm9, %v4814_v5, %v4813_v2  ;;  %v3544_v31 = vrot.slane %v3121_v43, %v7535_v29 }
 0x273   : > { %v5317_v30 = vrot.slane %v3468_v19, 9  ;;  %v4065_v26 = vmax.f32 %v3466_v57, %v5316_v56  ;;  %v3551_v11 = vrot.slane %v3537_v41, %v7535_v29  ;;  %v3119_v27 = vmax.f32 %v3087_v35, 0.0  ;;  %v2945_v41 = vpop.f32.mrf.mxu0 }
 0x274   : > { %v4064_v50 = vmax.f32 %v3467_v15, %v5315_v59  ;;  %v4383_v62 = vmax.f32 %v4063_v0, %v4319_v3  ;;  %v3552_v24 = vcombine.high %v3544_v31, %v3544_v31  ;;  %v5382_v48 = vrot.slane %v3544_v31, 9  ;;  %v6028_v15 = vpop.f32.mrf.mxu1 }
 0x275   : > { %v4066_v37 = vmax.f32 %v3468_v19, %v5317_v30  ;;  %v4385_v20 = vmax.f32 %v4065_v26, %v4321_v55  ;;  %v3553_v34 = vcombine.high %v3551_v11, %v3551_v11  ;;  %v5384_v52 = vrot.slane %v3551_v11, 9 }
 0x276   : > { %v4384_v39 = vmax.f32 %v4064_v50, %v4320_v42  ;;  %v5548_v49 = vpack.c.bf16 %v4383_v62, %v4383_v62  ;;  %v5383_v16 = vrot.slane %v3552_v24, 9  ;;  %v4323_v32 = vmax.f32 %v3544_v31, %v5382_v48  ;;  %v5494_v50 = vld [vmem:[%s7337_s10 + $0x28] sm:$0xf] }
 0x277   : > { %v4386_v8 = vmax.f32 %v4066_v37, %v4322_v22  ;;  %v5550_v58 = vpack.c.bf16 %v4385_v20, %v4385_v20  ;;  %v5385_v54 = vrot.slane %v3553_v34, 9  ;;  %v4325_v53 = vmax.f32 %v3551_v11, %v5384_v52  ;;  %v6064_v52 = vpop.f32.mrf.mxu0 }
 0x278   : > { %v5549_v25 = vpack.c.bf16 %v4384_v39, %v4384_v39  ;;  %v4723_v18 = vunpack.c.l.b16 %v5548_v49  ;;  %v4324_v3 = vmax.f32 %v3552_v24, %v5383_v16  ;;  %v3503_v9 = vcombine.high %v3119_v27, %v3119_v27 }
 0x279   : > { %v4725_v21 = vunpack.c.l.b16 %v5550_v58  ;;  %v5580_v55 = vpack.c.bf16 %v4386_v8, %v4386_v8  ;;  %v4326_v10 = vmax.f32 %v3553_v34, %v5385_v54  ;;  %v3510_v42 = vrot.slane %v3119_v27, %v7535_v29  ;;  %v2734_v8 = vpop.f32.mrf.mxu1 }
 0x27a   : > { %v4724_v46 = vunpack.c.l.b16 %v5549_v25  ;;  %v4816_v7 = vrot.slane %v4723_v18, 3  ;;  %v3517_v22 = vrot.slane %v3503_v9, %v7535_v29  ;;  %v2788_v57 = vadd.f32 %v6025_v1, %v7483_v40 }
 0x27b   : > { %v4820_v43 = vrot.slane %v4725_v21, 1  ;;  %v4928_v35 = vsel %vm7572_vm1, %v5580_v55, %v5496_v6  ;;  %v3518_v33 = vcombine.high %v3510_v42, %v3510_v42  ;;  %v5318_v5 = vrot.slane %v3510_v42, 9 }
 0x27c   : > { %v4817_v23 = vsel %vm4762_vm12, %v4816_v7, %v4815_v12  ;;  %v4818_v2 = vrot.slane %v4724_v46, 2  ;;  %5497 = vst [vmem:[%s7337_s10 + $0x2c] sm:$0x1] %v4928_v35  ;;  %v3519_v19 = vcombine.high %v3517_v22, %v3517_v22  ;;  %v5320_v56 = vrot.slane %v3517_v22, 9 }
 0x27d   : > { %v5319_v59 = vrot.slane %v3518_v33, 9  ;;  %v4067_v0 = vmax.f32 %v3510_v42, %v5318_v5  ;;  %v3012_v31 = vadd.f32 %v6061_v45, %v2788_v57  ;;  %v2786_v40 = vadd.f32 %v2721_v17, %v7486_v38 }
 0x27e   : > { %v4819_v30 = vsel %vm4765_vm13, %v4818_v2, %v4817_v23  ;;  %v5321_v26 = vrot.slane %v3519_v19, 9  ;;  %v4069_v11 = vmax.f32 %v3517_v22, %v5320_v56  ;;  %v2791_v27 = vadd.f32 %v6028_v15, %v7489_v51 }
 0x27f   : > { %v4821_v1 = vsel %vm4768_vm14, %v4820_v43, %v4819_v30  ;;  %v4068_v12 = vmax.f32 %v3518_v33, %v5319_v59  ;;  %v4387_v62 = vmax.f32 %v4067_v0, %v4323_v32  ;;  %v3051_v24 = vmul.f32 %v7731_v60, %v3012_v31  ;;  %v6029_v0 = vpop.f32.mrf.mxu1 }
 0x280   : > { %v4869_v48 = vpack.c.b16 %v4821_v1, %v4821_v1  ;;  %v4070_v37 = vmax.f32 %v3519_v19, %v5321_v26  ;;  %v4389_v20 = vmax.f32 %v4069_v11, %v4325_v53  ;;  %v3010_v34 = vadd.f32 %v2945_v41, %v2786_v40  ;;  %v2958_v11 = vpop.f32.mrf.mxu0 }
 0x281   : > { %v4388_v38 = vmax.f32 %v4068_v12, %v4324_v3  ;;  %v5552_v39 = vpack.c.bf16 %v4387_v62, %v4387_v62  ;;  %v3090_v49 = vadd.f32 %v7739_v36, %v3051_v24  ;;  %v3015_v16 = vadd.f32 %v6064_v52, %v2791_v27 }
 0x282   : > { %v4925_v51 = vsel %vm7600_vm2, %v4869_v48, %v5494_v50  ;;  %v4390_v58 = vmax.f32 %v4070_v37, %v4326_v10  ;;  %v5554_v54 = vpack.c.bf16 %v4389_v20, %v4389_v20  ;;  %v3049_v32 = vmul.f32 %v7731_v60, %v3010_v34 }
 0x283   : > { %5495 = vst [vmem:[%s7337_s10 + $0x28] sm:$0xf] %v4925_v51  ;;  %v5553_v17 = vpack.c.bf16 %v4388_v38, %v4388_v38  ;;  %v4727_v25 = vunpack.c.l.b16 %v5552_v39  ;;  %v3122_v18 = vmax.f32 %v3090_v49, 0.0  ;;  %v3054_v53 = vmul.f32 %v7731_v60, %v3015_v16  ;;  %v2737_v39 = vpop.f32.mrf.mxu1 }
 0x284   : > { %v5555_v6 = vpack.c.bf16 %v4390_v58, %v4390_v58  ;;  %v4729_v3 = vunpack.c.l.b16 %v5554_v54  ;;  %v3088_v9 = vadd.f32 %v7739_v36, %v3049_v32  ;;  %v2789_v45 = vadd.f32 %v2734_v8, %v7492_v4  ;;  %v6065_v58 = vpop.f32.mrf.mxu0 }
 0x285   : > { %v4728_v21 = vunpack.c.l.b16 %v5553_v17  ;;  %v4822_v55 = vrot.slane %v4727_v25, 7  ;;  %v3554_v42 = vcombine.high %v3122_v18, %v3122_v18  ;;  %v3561_v10 = vrot.slane %v3122_v18, %v7535_v29 }
 0x286   : > { %v4730_v46 = vunpack.c.l.b16 %v5555_v6  ;;  %v4825_v7 = vrot.slane %v4729_v3, 5  ;;  %v3120_v22 = vmax.f32 %v3088_v9, 0.0  ;;  %v3093_v57 = vadd.f32 %v7739_v36, %v3054_v53 }
 0x287   : > { %v4823_v43 = vrot.slane %v4728_v21, 6  ;;  %v3568_v35 = vrot.slane %v3554_v42, %v7535_v29  ;;  %v3569_v33 = vcombine.high %v3561_v10, %v3561_v10  ;;  %v5386_v5 = vrot.slane %v3561_v10, 9 }
 0x288   : > { %v4827_v15 = vrot.slane %v4730_v46, 4  ;;  %v3520_v23 = vcombine.high %v3120_v22, %v3120_v22  ;;  %v3527_v2 = vrot.slane %v3120_v22, %v7535_v29  ;;  %v3125_v4 = vmax.f32 %v3093_v57, 0.0  ;;  %v2961_v57 = vpop.f32.mrf.mxu0 }
 0x289   : > { %v4824_v19 = vsel %vm4753_vm7, %v4823_v43, %v4822_v55  ;;  %v3570_v56 = vcombine.high %v3568_v35, %v3568_v35  ;;  %v5387_v41 = vrot.slane %v3569_v33, 9  ;;  %v5388_v59 = vrot.slane %v3568_v35, 9 }
 0x28a   : > { %v4826_v31 = vsel %vm4756_vm8, %v4825_v7, %v4824_v19  ;;  %v4327_v40 = vmax.f32 %v3561_v10, %v5386_v5  ;;  %v3534_v30 = vrot.slane %v3520_v23, %v7535_v29  ;;  %v3535_v26 = vcombine.high %v3527_v2, %v3527_v2  ;;  %v6032_v10 = vpop.f32.mrf.mxu1 }
 0x28b   : > { %v5389_v27 = vrot.slane %v3570_v56, 9  ;;  %v4328_v1 = vmax.f32 %v3569_v33, %v5387_v41  ;;  %v4329_v50 = vmax.f32 %v3568_v35, %v5388_v59  ;;  %v5322_v12 = vrot.slane %v3527_v2, 9  ;;  %v5500_v35 = vld [vmem:[%s7337_s10 + $0x34] sm:$0x1] }
 0x28c   : > { %v3536_v62 = vcombine.high %v3534_v30, %v3534_v30  ;;  %v5323_v24 = vrot.slane %v3535_v26, 9  ;;  %v5324_v48 = vrot.slane %v3534_v30, 9  ;;  %v4828_v37 = vsel %vm4759_vm9, %v4827_v15, %v4826_v31 }
 0x28d   : > { %v4330_v20 = vmax.f32 %v3570_v56, %v5389_v27  ;;  %v4071_v34 = vmax.f32 %v3527_v2, %v5322_v12  ;;  %v3605_v52 = vcombine.high %v3125_v4, %v3125_v4  ;;  %v3612_v38 = vrot.slane %v3125_v4, %v7535_v29 }
 0x28e   : > { %v5325_v49 = vrot.slane %v3536_v62, 9  ;;  %v4072_v16 = vmax.f32 %v3535_v26, %v5323_v24  ;;  %v4073_v8 = vmax.f32 %v3534_v30, %v5324_v48  ;;  %v3013_v51 = vadd.f32 %v2958_v11, %v2789_v45 }
 0x28f   : > { %v4391_v54 = vmax.f32 %v4071_v34, %v4327_v40  ;;  %v3619_v32 = vrot.slane %v3605_v52, %v7535_v29  ;;  %v3620_v17 = vcombine.high %v3612_v38, %v3612_v38  ;;  %v5390_v25 = vrot.slane %v3612_v38, 9  ;;  %v2750_v40 = vpop.f32.mrf.mxu1  ;;  %v5498_v34 = vld [vmem:[%s7337_s10 + $0x30] sm:$0xf] }
 0x290   : > { %v4074_v18 = vmax.f32 %v3536_v62, %v5325_v49  ;;  %v4392_v53 = vmax.f32 %v4072_v16, %v4328_v1  ;;  %v4393_v6 = vmax.f32 %v4073_v8, %v4329_v50  ;;  %v3052_v3 = vmul.f32 %v7731_v60, %v3013_v51  ;;  %v6068_v1 = vpop.f32.mrf.mxu0 }
 0x291   : > { %v5556_v9 = vpack.c.bf16 %v4391_v54, %v4391_v54  ;;  %v3621_v21 = vcombine.high %v3619_v32, %v3619_v32  ;;  %v5391_v55 = vrot.slane %v3620_v17, 9  ;;  %v5392_v42 = vrot.slane %v3619_v32, 9 }
 0x292   : > { %v4394_v46 = vmax.f32 %v4074_v18, %v4330_v20  ;;  %v5557_v7 = vpack.c.bf16 %v4392_v53, %v4392_v53  ;;  %v5558_v45 = vpack.c.bf16 %v4393_v6, %v4393_v6  ;;  %v4331_v22 = vmax.f32 %v3612_v38, %v5390_v25  ;;  %v2974_v8 = vpop.f32.mrf.mxu0 }
 0x293   : > { %v4731_v43 = vunpack.c.l.b16 %v5556_v9  ;;  %v5393_v33 = vrot.slane %v3621_v21, 9  ;;  %v4332_v5 = vmax.f32 %v3620_v17, %v5391_v55  ;;  %v4333_v15 = vmax.f32 %v3619_v32, %v5392_v42 }
 0x294   : > { %v4732_v23 = vunpack.c.l.b16 %v5557_v7  ;;  %v4733_v2 = vunpack.c.l.b16 %v5558_v45  ;;  %v5581_v4 = vpack.c.bf16 %v4394_v46, %v4394_v46  ;;  %v3091_v19 = vadd.f32 %v7739_v36, %v3052_v3 }
 0x295   : > { %v4829_v56 = vrot.slane %v4731_v43, 3  ;;  %v4334_v41 = vmax.f32 %v3621_v21, %v5393_v33  ;;  %v2792_v59 = vadd.f32 %v6029_v0, %v7495_v44  ;;  %v2790_v31 = vadd.f32 %v2737_v39, %v7498_v61 }
 0x296   : > { %v4831_v30 = vrot.slane %v4732_v23, 2  ;;  %v4833_v26 = vrot.slane %v4733_v2, 1  ;;  %v4934_v11 = vsel %vm7572_vm1, %v5581_v4, %v5500_v35  ;;  %v3123_v27 = vmax.f32 %v3091_v19, 0.0 }
 0x297   : > { %v4830_v50 = vsel %vm4762_vm12, %v4829_v56, %v4828_v37  ;;  %5501 = vst [vmem:[%s7337_s10 + $0x34] sm:$0x1] %v4934_v11  ;;  %v3016_v12 = vadd.f32 %v6065_v58, %v2792_v59  ;;  %v3014_v62 = vadd.f32 %v2961_v57, %v2790_v31  ;;  %v2795_v24 = vadd.f32 %v6032_v10, %v7503_v47 }
 0x298   : > { %v4832_v44 = vsel %vm4765_vm13, %v4831_v30, %v4830_v50  ;;  %v3571_v0 = vcombine.high %v3123_v27, %v3123_v27  ;;  %v3578_v61 = vrot.slane %v3123_v27, %v7535_v29  ;;  %v2793_v48 = vadd.f32 %v2750_v40, %v7508_v14 }
 0x299   : > { %v4834_v20 = vsel %vm4768_vm14, %v4833_v26, %v4832_v44  ;;  %v3055_v52 = vmul.f32 %v7731_v60, %v3016_v12  ;;  %v3053_v37 = vmul.f32 %v7731_v60, %v3014_v62  ;;  %v3019_v38 = vadd.f32 %v6068_v1, %v2795_v24 }
 0x29a   : > { %v4871_v39 = vpack.c.b16 %v4834_v20, %v4834_v20  ;;  %v3585_v49 = vrot.slane %v3571_v0, %v7535_v29  ;;  %v3586_v47 = vcombine.high %v3578_v61, %v3578_v61  ;;  %v5326_v16 = vrot.slane %v3578_v61, 9 }
 0x29b   : > { %v3094_v51 = vadd.f32 %v7739_v36, %v3055_v52  ;;  %v3092_v58 = vadd.f32 %v7739_v36, %v3053_v37  ;;  %v3058_v14 = vmul.f32 %v7731_v60, %v3019_v38  ;;  %v3017_v54 = vadd.f32 %v2974_v8, %v2793_v48 }
 0x29c   : > { %v4931_v32 = vsel %vm7600_vm2, %v4871_v39, %v5498_v34  ;;  %v3587_v17 = vcombine.high %v3585_v49, %v3585_v49  ;;  %v5327_v25 = vrot.slane %v3586_v47, 9  ;;  %v5328_v18 = vrot.slane %v3585_v49, 9 }
 0x29d   : > { %5499 = vst [vmem:[%s7337_s10 + $0x30] sm:$0xf] %v4931_v32  ;;  %v4075_v53 = vmax.f32 %v3578_v61, %v5326_v16  ;;  %v3126_v6 = vmax.f32 %v3094_v51, 0.0  ;;  %v3124_v3 = vmax.f32 %v3092_v58, 0.0  ;;  %v3097_v9 = vadd.f32 %v7739_v36, %v3058_v14 }
 0x29e   : > { %v5329_v21 = vrot.slane %v3587_v17, 9  ;;  %v4076_v55 = vmax.f32 %v3586_v47, %v5327_v25  ;;  %v4077_v42 = vmax.f32 %v3585_v49, %v5328_v18  ;;  %v3056_v10 = vmul.f32 %v7731_v60, %v3017_v54 }
 0x29f   : > { %v4395_v46 = vmax.f32 %v4075_v53, %v4331_v22  ;;  %v3622_v7 = vcombine.high %v3126_v6, %v3126_v6  ;;  %v3629_v45 = vrot.slane %v3126_v6, %v7535_v29  ;;  %v3588_v57 = vcombine.high %v3124_v3, %v3124_v3 }
 0x2a0   : > { %v4078_v43 = vmax.f32 %v3587_v17, %v5329_v21  ;;  %v4396_v35 = vmax.f32 %v4076_v55, %v4332_v5  ;;  %v4397_v33 = vmax.f32 %v4077_v42, %v4333_v15  ;;  %v3595_v23 = vrot.slane %v3124_v3, %v7535_v29  ;;  %v6033_v42 = vpop.f32.mrf.mxu1 }
 0x2a1   : > { %v5560_v2 = vpack.c.bf16 %v4395_v46, %v4395_v46  ;;  %v3636_v4 = vrot.slane %v3622_v7, %v7535_v29  ;;  %v3637_v19 = vcombine.high %v3629_v45, %v3629_v45  ;;  %v5394_v56 = vrot.slane %v3629_v45, 9 }
 0x2a2   : > { %v4398_v59 = vmax.f32 %v4078_v43, %v4334_v41  ;;  %v5561_v31 = vpack.c.bf16 %v4396_v35, %v4396_v35  ;;  %v5562_v40 = vpack.c.bf16 %v4397_v33, %v4397_v33  ;;  %v3602_v30 = vrot.slane %v3588_v57, %v7535_v29  ;;  %v5504_v35 = vld [vmem:[%s7337_s10 + $0x3c] sm:$0x1] }
 0x2a3   : > { %v4735_v22 = vunpack.c.l.b16 %v5560_v2  ;;  %v3638_v26 = vcombine.high %v3636_v4, %v3636_v4  ;;  %v5395_v11 = vrot.slane %v3637_v19, 9  ;;  %v5396_v27 = vrot.slane %v3636_v4, 9 }
 0x2a4   : > { %v5563_v1 = vpack.c.bf16 %v4398_v59, %v4398_v59  ;;  %v4736_v50 = vunpack.c.l.b16 %v5561_v31  ;;  %v4737_v5 = vunpack.c.l.b16 %v5562_v40  ;;  %v4335_v15 = vmax.f32 %v3629_v45, %v5394_v56  ;;  %v6069_v31 = vpop.f32.mrf.mxu0  ;;  %v2753_v40 = vpop.f32.mrf.mxu1 }
 0x2a5   : > { %v4835_v12 = vrot.slane %v4735_v22, 7  ;;  %v5397_v62 = vrot.slane %v3638_v26, 9  ;;  %v4336_v24 = vmax.f32 %v3637_v19, %v5395_v11  ;;  %v4337_v44 = vmax.f32 %v3636_v4, %v5396_v27 }
 0x2a6   : > { %v4738_v0 = vunpack.c.l.b16 %v5563_v1  ;;  %v4836_v61 = vrot.slane %v4736_v50, 6  ;;  %v4838_v48 = vrot.slane %v4737_v5, 5  ;;  %v3603_v41 = vcombine.high %v3595_v23, %v3595_v23 }
 0x2a7   : > { %v4338_v20 = vmax.f32 %v3638_v26, %v5397_v62  ;;  %v3604_v34 = vcombine.high %v3602_v30, %v3602_v30  ;;  %v5330_v52 = vrot.slane %v3595_v23, 9  ;;  %v5332_v37 = vrot.slane %v3602_v30, 9 }
 0x2a8   : > { %v4837_v38 = vsel %vm4753_vm7, %v4836_v61, %v4835_v12  ;;  %v4840_v39 = vrot.slane %v4738_v0, 4  ;;  %v5331_v49 = vrot.slane %v3603_v41, 9  ;;  %v3129_v47 = vmax.f32 %v3097_v9, 0.0 }
 0x2a9   : > { %v4839_v16 = vsel %vm4756_vm8, %v4838_v48, %v4837_v38  ;;  %v5333_v8 = vrot.slane %v3604_v34, 9  ;;  %v4079_v51 = vmax.f32 %v3595_v23, %v5330_v52  ;;  %v4081_v58 = vmax.f32 %v3602_v30, %v5332_v37  ;;  %v5502_v52 = vld [vmem:[%s7337_s10 + $0x38] sm:$0xf] }
 0x2aa   : > { %v4080_v14 = vmax.f32 %v3603_v41, %v5331_v49  ;;  %v4841_v54 = vsel %vm4759_vm9, %v4840_v39, %v4839_v16  ;;  %v3673_v32 = vcombine.high %v3129_v47, %v3129_v47  ;;  %v3680_v17 = vrot.slane %v3129_v47, %v7535_v29 }
 0x2ab   : > { %v4082_v25 = vmax.f32 %v3604_v34, %v5333_v8  ;;  %v4399_v18 = vmax.f32 %v4079_v51, %v4335_v15  ;;  %v4401_v53 = vmax.f32 %v4081_v58, %v4337_v44  ;;  %v3095_v6 = vadd.f32 %v7739_v36, %v3056_v10 }
 0x2ac   : > { %v4400_v3 = vmax.f32 %v4080_v14, %v4336_v24  ;;  %v3687_v9 = vrot.slane %v3673_v32, %v7535_v29  ;;  %v3688_v21 = vcombine.high %v3680_v17, %v3680_v17  ;;  %v5398_v55 = vrot.slane %v3680_v17, 9  ;;  %v7996_v24 = vld [vmem:[#allocation9_spill] sm:$0xff] }
 0x2ad   : > { %v4402_v46 = vmax.f32 %v4082_v25, %v4338_v20  ;;  %v5564_v7 = vpack.c.bf16 %v4399_v18, %v4399_v18  ;;  %v5566_v45 = vpack.c.bf16 %v4401_v53, %v4401_v53  ;;  %v3127_v57 = vmax.f32 %v3095_v6, 0.0  ;;  %v2977_v20 = vpop.f32.mrf.mxu0 }
 0x2ae   : > { %v5565_v43 = vpack.c.bf16 %v4400_v3, %v4400_v3  ;;  %v3689_v33 = vcombine.high %v3687_v9, %v3687_v9  ;;  %v5399_v19 = vrot.slane %v3688_v21, 9  ;;  %v5400_v10 = vrot.slane %v3687_v9, 9 }
 0x2af   : > { %v4739_v23 = vunpack.c.l.b16 %v5564_v7  ;;  %v4741_v2 = vunpack.c.l.b16 %v5566_v45  ;;  %v5582_v4 = vpack.c.bf16 %v4402_v46, %v4402_v46  ;;  %v4339_v59 = vmax.f32 %v3680_v17, %v5398_v55 }
 0x2b0   : > { %v4740_v56 = vunpack.c.l.b16 %v5565_v43  ;;  %v3639_v11 = vcombine.high %v3127_v57, %v3127_v57  ;;  %v5401_v1 = vrot.slane %v3689_v33, 9  ;;  %v3646_v50 = vrot.slane %v3127_v57, %v7535_v29 }
 0x2b1   : > { %v4842_v30 = vrot.slane %v4739_v23, 3  ;;  %v4846_v22 = vrot.slane %v4741_v2, 1  ;;  %v4940_v26 = vsel %vm7572_vm1, %v5582_v4, %v5504_v35  ;;  %v2796_v5 = vadd.f32 %v6033_v42, %v7514_v28 }
 0x2b2   : > { %v4844_v27 = vrot.slane %v4740_v56, 2  ;;  %5505 = vst [vmem:[%s7337_s10 + $0x3c] sm:$0x1] %v4940_v26  ;;  %v4340_v12 = vmax.f32 %v3688_v21, %v5399_v19  ;;  %v3653_v62 = vrot.slane %v3639_v11, %v7535_v29  ;;  %v2794_v44 = vadd.f32 %v2753_v40, %v7996_v24 }
 0x2b3   : > { %v4843_v15 = vsel %vm4762_vm12, %v4842_v30, %v4841_v54  ;;  %v3654_v61 = vcombine.high %v3646_v50, %v3646_v50  ;;  %v5334_v48 = vrot.slane %v3646_v50, 9  ;;  %v3020_v41 = vadd.f32 %v6069_v31, %v2796_v5 }
 0x2b4   : > { %v4845_v0 = vsel %vm4765_vm13, %v4844_v27, %v4843_v15  ;;  %v3655_v37 = vcombine.high %v3653_v62, %v3653_v62  ;;  %v5336_v38 = vrot.slane %v3653_v62, 9  ;;  %v3018_v28 = vadd.f32 %v2977_v20, %v2794_v44 }
 0x2b5   : > { %v4847_v34 = vsel %vm4768_vm14, %v4846_v22, %v4845_v0  ;;  %v5335_v49 = vrot.slane %v3654_v61, 9  ;;  %v4083_v47 = vmax.f32 %v3646_v50, %v5334_v48  ;;  %v3059_v16 = vmul.f32 %v7731_v60, %v3020_v41 }
 0x2b6   : > { %v4873_v39 = vpack.c.b16 %v4847_v34, %v4847_v34  ;;  %v4341_v8 = vmax.f32 %v3687_v9, %v5400_v10  ;;  %v5337_v51 = vrot.slane %v3655_v37, 9  ;;  %v4085_v58 = vmax.f32 %v3653_v62, %v5336_v38 }
 0x2b7   : > { %v3057_v14 = vmul.f32 %v7731_v60, %v3018_v28  ;;  %v4084_v32 = vmax.f32 %v3654_v61, %v5335_v49  ;;  %v4403_v17 = vmax.f32 %v4083_v47, %v4339_v59  ;;  %v3098_v25 = vadd.f32 %v7739_v36, %v3059_v16 }
 0x2b8   : > { %v4937_v54 = vsel %vm7600_vm2, %v4873_v39, %v5502_v52  ;;  %v4342_v18 = vmax.f32 %v3689_v33, %v5401_v1  ;;  %v4086_v53 = vmax.f32 %v3655_v37, %v5337_v51  ;;  %v4405_v6 = vmax.f32 %v4085_v58, %v4341_v8  ;;  %v5508_v58 = vld [vmem:[%s7337_s10 + $0x44] sm:$0x1] }
 0x2b9   : > { %5503 = vst [vmem:[%s7337_s10 + $0x38] sm:$0xf] %v4937_v54  ;;  %v3096_v3 = vadd.f32 %v7739_v36, %v3057_v14  ;;  %v4404_v21 = vmax.f32 %v4084_v32, %v4340_v12  ;;  %v5568_v55 = vpack.c.bf16 %v4403_v17, %v4403_v17  ;;  %v3130_v9 = vmax.f32 %v3098_v25, 0.0 }
 0x2ba   : > { %v4406_v42 = vmax.f32 %v4086_v53, %v4342_v18  ;;  %v5570_v46 = vpack.c.bf16 %v4405_v6, %v4405_v6 }
 0x2bb   : > { %v3128_v7 = vmax.f32 %v3096_v3, 0.0  ;;  %v5569_v60 = vpack.c.bf16 %v4404_v21, %v4404_v21  ;;  %v4743_v45 = vunpack.c.l.b16 %v5568_v55  ;;  %v3690_v57 = vcombine.high %v3130_v9, %v3130_v9 }
 0x2bc   : > { %v3697_v43 = vrot.slane %v3130_v9, %v7535_v29  ;;  %v5571_v35 = vpack.c.bf16 %v4406_v42, %v4406_v42  ;;  %v4745_v23 = vunpack.c.l.b16 %v5570_v46  ;;  %v5506_v9 = vld [vmem:[%s7337_s10 + $0x40] sm:$0xf] }
 0x2bd   : > { %v3656_v2 = vcombine.high %v3128_v7, %v3128_v7  ;;  %v3663_v33 = vrot.slane %v3128_v7, %v7535_v29  ;;  %v4744_v4 = vunpack.c.l.b16 %v5569_v60  ;;  %v3704_v19 = vrot.slane %v3690_v57, %v7535_v29 }
 0x2be   : > { %v3705_v36 = vcombine.high %v3697_v43, %v3697_v43  ;;  %v4746_v56 = vunpack.c.l.b16 %v5571_v35  ;;  %v4848_v10 = vrot.slane %v4743_v45, 7  ;;  %v4851_v59 = vrot.slane %v4745_v23, 5 }
 0x2bf   : > { %v3670_v31 = vrot.slane %v3656_v2, %v7535_v29  ;;  %v4849_v40 = vrot.slane %v4744_v4, 6  ;;  %v3706_v30 = vcombine.high %v3704_v19, %v3704_v19  ;;  %v5402_v22 = vrot.slane %v3697_v43, 9 }
 0x2c0   : > { %v5403_v26 = vrot.slane %v3705_v36, 9  ;;  %v4853_v11 = vrot.slane %v4746_v56, 4  ;;  %v5404_v27 = vrot.slane %v3704_v19, 9  ;;  %v3671_v1 = vcombine.high %v3663_v33, %v3663_v33 }
 0x2c1   : > { %v3672_v50 = vcombine.high %v3670_v31, %v3670_v31  ;;  %v4850_v5 = vsel %vm4753_vm7, %v4849_v40, %v4848_v10  ;;  %v5405_v15 = vrot.slane %v3706_v30, 9  ;;  %v5338_v62 = vrot.slane %v3663_v33, 9 }
 0x2c2   : > { %v4852_v12 = vsel %vm4756_vm8, %v4851_v59, %v4850_v5  ;;  %v5339_v24 = vrot.slane %v3671_v1, 9  ;;  %v5340_v44 = vrot.slane %v3670_v31, 9  ;;  %v4343_v0 = vmax.f32 %v3697_v43, %v5402_v22 }
 0x2c3   : > { %v4344_v61 = vmax.f32 %v3705_v36, %v5403_v26  ;;  %v5341_v29 = vrot.slane %v3672_v50, 9  ;;  %v4854_v48 = vsel %vm4759_vm9, %v4853_v11, %v4852_v12  ;;  %v4345_v41 = vmax.f32 %v3704_v19, %v5404_v27 }
 0x2c4   : > { %v4087_v20 = vmax.f32 %v3663_v33, %v5338_v62  ;;  %v4088_v34 = vmax.f32 %v3671_v1, %v5339_v24  ;;  %v4089_v52 = vmax.f32 %v3670_v31, %v5340_v44  ;;  %v4346_v37 = vmax.f32 %v3706_v30, %v5405_v15 }
 0x2c5   : > { %v4090_v38 = vmax.f32 %v3672_v50, %v5341_v29 }
 0x2c6   : > { %v4407_v28 = vmax.f32 %v4087_v20, %v4343_v0  ;;  %v4408_v39 = vmax.f32 %v4088_v34, %v4344_v61  ;;  %v4409_v49 = vmax.f32 %v4089_v52, %v4345_v41 }
 0x2c7   : > { %v4410_v47 = vmax.f32 %v4090_v38, %v4346_v37 }
 0x2c8   : > { %v5572_v16 = vpack.c.bf16 %v4407_v28, %v4407_v28  ;;  %v5573_v8 = vpack.c.bf16 %v4408_v39, %v4408_v39  ;;  %v5574_v51 = vpack.c.bf16 %v4409_v49, %v4409_v49 }
 0x2c9   : > { %v5583_v14 = vpack.c.bf16 %v4410_v47, %v4410_v47 }
 0x2ca   : > { %v4747_v54 = vunpack.c.l.b16 %v5572_v16  ;;  %v4748_v32 = vunpack.c.l.b16 %v5573_v8  ;;  %v4749_v17 = vunpack.c.l.b16 %v5574_v51 }
 0x2cb   : > { %v4946_v25 = vsel %vm7572_vm1, %v5583_v14, %v5508_v58 }
 0x2cc   : > { %v4855_v18 = vrot.slane %v4747_v54, 3  ;;  %v4857_v53 = vrot.slane %v4748_v32, 2  ;;  %v4859_v6 = vrot.slane %v4749_v17, 1  ;;  %5509 = vst [vmem:[%s7337_s10 + $0x44] sm:$0x1] %v4946_v25 }
 0x2ce   : > { %v4856_v3 = vsel %vm4762_vm12, %v4855_v18, %v4854_v48 }
 0x2cf   : > { %v4858_v21 = vsel %vm4765_vm13, %v4857_v53, %v4856_v3 }
 0x2d0   : > { %v4860_v55 = vsel %vm4768_vm14, %v4859_v6, %v4858_v21 }
 0x2d1   : > { %v4875_v42 = vpack.c.b16 %v4860_v55, %v4860_v55 }
 0x2d3   : > { %v4943_v46 = vsel %vm7600_vm2, %v4875_v42, %v5506_v9 }
 0x2d4   : > { %5507 = vst [vmem:[%s7337_s10 + $0x40] sm:$0xf] %v4943_v46 }
 0x2d5 PF: > { %s14_s15 = sadd.s32 1, %s6132_s15  }
 0x2d6   : > { %p11_p4 = scmp.ge.s32.totalorder %s14_s15, 4  }
 0x2d8   :  { %13 = sbr.rel (!%p11_p4) target bundleno = 1 (0x1), region = 75 }

</bundles_post_ra>
